<compile_context>
chip_gen: v7x
topology: tpu7x:2x2x1
jax: 0.10.0
libtpu: 0.0.40
codegen_flags: <defaults>
</compile_context>

<pallas_src>
import functools

import numpy as np
import jax
import jax.numpy as jnp
from jax import lax
from jax.experimental import pallas as pl
from jax.experimental.pallas import tpu as pltpu


# ---------------------------------------------------------------------------
# Kernel 1: LayerNorm1 + fused (left/right projection, left/right gate, output gate)
# ---------------------------------------------------------------------------
def _proj_kernel(zraw_ref, mask_ref, ln1w_ref, ln1b_ref, wfused_ref, bfused_ref,
                 left_ref, right_ref, ogate_ref, *, c, eps):
    z = zraw_ref[0]                                    # [TI, J, D] f32
    ti, jj, d = z.shape

    # LayerNorm over channels (elementwise math stays f32 — v5e VPU/EUP have no bf16).
    mu = jnp.mean(z, axis=-1, keepdims=True)
    var = jnp.mean(jnp.square(z - mu), axis=-1, keepdims=True)
    zn = (z - mu) * lax.rsqrt(var + eps)
    zn = zn * ln1w_ref[0][None, None, :] + ln1b_ref[0][None, None, :]

    # One fused, lane-dense MXU matmul: [TI*J, D] @ [D, 4c + D], bf16 in, f32 accumulate.
    zf = zn.reshape(ti * jj, d).astype(jnp.bfloat16)
    proj = jnp.dot(zf, wfused_ref[...], preferred_element_type=jnp.float32)
    proj = proj + bfused_ref[...]                      # [TI*J, 4c + D] f32

    # left/right projection * sigmoid(left/right gate), then row mask.
    lr = proj[:, : 2 * c] * jax.nn.sigmoid(proj[:, 2 * c: 4 * c])
    lr = lr.reshape(ti, jj, 2 * c) * mask_ref[0][:, :, None]

    left_ref[0] = lr[..., :c].astype(left_ref.dtype)
    right_ref[0] = lr[..., c:].astype(right_ref.dtype)
    ogate_ref[0] = jax.nn.sigmoid(proj[:, 4 * c:]).reshape(ti, jj, d)


# ---------------------------------------------------------------------------
# Kernel 2: triangle contraction (j-reduction) + LayerNorm2 + output proj + gated residual
# ---------------------------------------------------------------------------
def _trimul_kernel(left_ref, right_ref, gate_ref, zraw_ref,
                   ln2w_ref, ln2b_ref, wop_ref, obias_ref,
                   out_ref, acc_ref, *, eps):
    j = pl.program_id(3)

    @pl.when(j == 0)
    def _():
        acc_ref[...] = jnp.zeros_like(acc_ref)

    # acc[c, i, k] += sum_j left[c, i, j] * right[c, k, j]   (batched over channels on MXU)
    l = left_ref[0]                                    # [c, TI, TJ] bf16
    r = right_ref[0]                                   # [c, TK, TJ] bf16
    acc_ref[...] += lax.dot_general(
        l, r,
        dimension_numbers=(((2,), (2,)), ((0,), (0,))),
        preferred_element_type=jnp.float32)            # [c, TI, TK] f32

    # Epilogue only once the j reduction is complete.
    @pl.when(j == pl.num_programs(3) - 1)
    def _():
        cdim, ti, tk = acc_ref.shape
        p = jnp.transpose(acc_ref[...].reshape(cdim, ti * tk))   # [M, c],  M = TI*TK

        # LayerNorm2 over channels (f32).
        mu = jnp.mean(p, axis=-1, keepdims=True)
        var = jnp.mean(jnp.square(p - mu), axis=-1, keepdims=True)
        pn = (p - mu) * lax.rsqrt(var + eps)
        pn = pn * ln2w_ref[...] + ln2b_ref[...]                  # [1, c] broadcast

        # Output projection (bf16 in, f32 accumulate), then bias / gate / residual.
        ab = jnp.dot(pn.astype(jnp.bfloat16), wop_ref[...],
                     preferred_element_type=jnp.float32)         # [M, D]
        ab = ab + obias_ref[...]                                 # [1, D] broadcast

        d = ab.shape[-1]
        ab3 = ab.reshape(ti, tk, d)
        out_ref[0] = (gate_ref[0] * ab3 + zraw_ref[0]).astype(out_ref.dtype)


# ---------------------------------------------------------------------------
# Wrapper
# ---------------------------------------------------------------------------
def _pick_tile(n, pref, align):
    """Largest multiple of `align` that divides n and is <= pref (or n itself)."""
    if n % align != 0:
        return n
    t = max(align, (min(pref, n) // align) * align)
    while n % t != 0:
        t -= align
    return t


def triangle_multiplication_outgoing(Z_raw, Z_mask_row, params, *, c, eps=1e-5,
                                     row_tile=None, ti=None, tk=None, tj=None):
    B, I, J, D = Z_raw.shape
    # Triangle product and residual add require a square pair representation.
    assert I == J, "pair representation must be square (I == J)"

    f32 = jnp.float32
    bf16 = jnp.bfloat16

    # Fuse the three projections into one lane-dense weight: [D, 2c] | [D, 2c] | [D, D].
    w_fused = jnp.concatenate(
        [params['w_lr'], params['w_lrg'], params['w_og']], axis=1).astype(bf16)
    b_fused = jnp.concatenate(
        [params['b_lr'], params['b_lrg'], params['b_og']])[None, :].astype(f32)
    wtot = 4 * c + D

    ln1w = params['ln1_w'][None, :].astype(f32)
    ln1b = params['ln1_b'][None, :].astype(f32)

    TI1 = row_tile if row_tile is not None else _pick_tile(I, 256, 8)
    assert I % TI1 == 0

    left, right, ogate = pl.pallas_call(
        functools.partial(_proj_kernel, c=c, eps=eps),
        out_shape=(jax.ShapeDtypeStruct((B, I, J, c), bf16),
                   jax.ShapeDtypeStruct((B, I, J, c), bf16),
                   jax.ShapeDtypeStruct((B, I, J, D), f32)),
        grid_spec=pltpu.PrefetchScalarGridSpec(
            num_scalar_prefetch=0,
            grid=(B, I // TI1),
            in_specs=[
                pl.BlockSpec((1, TI1, J, D), lambda b, i: (b, i, 0, 0)),   # Z_raw
                pl.BlockSpec((1, TI1, J), lambda b, i: (b, i, 0)),         # mask
                pl.BlockSpec((1, D), lambda b, i: (0, 0)),                 # ln1 weight
                pl.BlockSpec((1, D), lambda b, i: (0, 0)),                 # ln1 bias
                pl.BlockSpec((D, wtot), lambda b, i: (0, 0)),              # fused weight
                pl.BlockSpec((1, wtot), lambda b, i: (0, 0)),              # fused bias
            ],
            out_specs=[
                pl.BlockSpec((1, TI1, J, c), lambda b, i: (b, i, 0, 0)),   # left  (bf16)
                pl.BlockSpec((1, TI1, J, c), lambda b, i: (b, i, 0, 0)),   # right (bf16)
                pl.BlockSpec((1, TI1, J, D), lambda b, i: (b, i, 0, 0)),   # output gate
            ]),
        compiler_params=pltpu.CompilerParams(
            dimension_semantics=("parallel", "parallel"),
            vmem_limit_bytes=64 * 1024 * 1024),
    )(Z_raw.astype(f32), Z_mask_row.astype(f32), ln1w, ln1b, w_fused, b_fused)

    # Channel-major relayout (once, in XLA) so the triangle contraction is a
    # leading-batch MXU matmul inside kernel 2.
    left_cm = jnp.transpose(left, (0, 3, 1, 2))        # [B, c, I, J] bf16
    right_cm = jnp.transpose(right, (0, 3, 1, 2))      # [B, c, I, J] bf16

    TI = ti if ti is not None else _pick_tile(I, 128, 8)
    TK = tk if tk is not None else _pick_tile(I, 128, 8)
    TJ = tj if tj is not None else _pick_tile(J, 256, 128)
    assert I % TI == 0 and I % TK == 0 and J % TJ == 0

    ln2w = params['ln2_w'][None, :].astype(f32)        # [1, c]
    ln2b = params['ln2_b'][None, :].astype(f32)        # [1, c]
    w_op = params['w_op'].astype(bf16)                 # [c, D]
    obias = params['out_bias'][None, :].astype(f32)    # [1, D]

    out = pl.pallas_call(
        functools.partial(_trimul_kernel, eps=eps),
        out_shape=jax.ShapeDtypeStruct((B, I, I, D), Z_raw.dtype),
        grid_spec=pltpu.PrefetchScalarGridSpec(
            num_scalar_prefetch=0,
            grid=(B, I // TI, I // TK, J // TJ),
            in_specs=[
                pl.BlockSpec((1, c, TI, TJ), lambda b, i, k, j: (b, 0, i, j)),  # left  (cm)
                pl.BlockSpec((1, c, TK, TJ), lambda b, i, k, j: (b, 0, k, j)),  # right (cm)
                pl.BlockSpec((1, TI, TK, D), lambda b, i, k, j: (b, i, k, 0)),  # gate
                pl.BlockSpec((1, TI, TK, D), lambda b, i, k, j: (b, i, k, 0)),  # Z_raw (residual)
                pl.BlockSpec((1, c), lambda b, i, k, j: (0, 0)),                # ln2 weight
                pl.BlockSpec((1, c), lambda b, i, k, j: (0, 0)),                # ln2 bias
                pl.BlockSpec((c, D), lambda b, i, k, j: (0, 0)),                # output proj
                pl.BlockSpec((1, D), lambda b, i, k, j: (0, 0)),                # output bias
            ],
            out_specs=pl.BlockSpec((1, TI, TK, D), lambda b, i, k, j: (b, i, k, 0)),
            scratch_shapes=[pltpu.VMEM((c, TI, TK), jnp.float32)]),
        compiler_params=pltpu.CompilerParams(
            dimension_semantics=("parallel", "parallel", "parallel", "arbitrary"),
            vmem_limit_bytes=64 * 1024 * 1024),
    )(left_cm, right_cm, ogate, Z_raw.astype(f32), ln2w, ln2b, w_op, obias)

    return out


# ---------------------------------------------------------------------------
# Pure-JAX f32 reference (mirrors the PyTorch forward, eval mode, single device)
# ---------------------------------------------------------------------------
def reference(Z_raw, Z_mask_row, p, *, c, eps=1e-5):
    hp = jax.lax.Precision.HIGHEST
    mu = Z_raw.mean(-1, keepdims=True)
    var = ((Z_raw - mu) ** 2).mean(-1, keepdims=True)
    Z = (Z_raw - mu) * jax.lax.rsqrt(var + eps) * p['ln1_w'] + p['ln1_b']

    lr = jnp.einsum('bijd,dm->bijm', Z, p['w_lr'], precision=hp) + p['b_lr']
    lr = Z_mask_row[..., None] * lr
    lr = lr * jax.nn.sigmoid(
        jnp.einsum('bijd,dm->bijm', Z, p['w_lrg'], precision=hp) + p['b_lrg'])
    left, right = lr[..., :c], lr[..., c:]

    g = jax.nn.sigmoid(
        jnp.einsum('bijd,de->bije', Z, p['w_og'], precision=hp) + p['b_og'])

    ab = jnp.einsum('bijc,bkjc->bikc', left, right, precision=hp)
    mu2 = ab.mean(-1, keepdims=True)
    var2 = ((ab - mu2) ** 2).mean(-1, keepdims=True)
    abn = (ab - mu2) * jax.lax.rsqrt(var2 + eps) * p['ln2_w'] + p['ln2_b']
    abp = jnp.einsum('bikc,cd->bikd', abn, p['w_op'], precision=hp)

    return Z_raw + g * (abp + p['out_bias'])


if __name__ == "__main__":
    B, N, D, C = 2, 16, 128, 128        # batch, seq (square pair rep), d_pair, hidden c
    key = jax.random.PRNGKey(0)
    ks = jax.random.split(key, 12)
    s = 0.1

    Z_raw = jax.random.normal(ks[0], (B, N, N, D), jnp.float32)
    Z_mask = (jax.random.uniform(ks[1], (B, N, N)) > 0.15).astype(jnp.float32)

    params = dict(
        ln1_w=1.0 + s * jax.random.normal(ks[2], (D,), jnp.float32),
        ln1_b=s * jax.random.normal(ks[3], (D,), jnp.float32),
        w_lr=s * jax.random.normal(ks[4], (D, 2 * C), jnp.float32),
        b_lr=s * jax.random.normal(ks[5], (2 * C,), jnp.float32),
        w_lrg=s * jax.random.normal(ks[6], (D, 2 * C), jnp.float32),
        b_lrg=jnp.ones((2 * C,), jnp.float32),            # left/right gate bias init = 1.0
        w_og=s * jax.random.normal(ks[7], (D, D), jnp.float32),
        b_og=jnp.ones((D,), jnp.float32),                 # output gate bias init = 1.0
        ln2_w=1.0 + s * jax.random.normal(ks[8], (C,), jnp.float32),
        ln2_b=s * jax.random.normal(ks[9], (C,), jnp.float32),
        w_op=s * jax.random.normal(ks[10], (C, D), jnp.float32),
        out_bias=s * jax.random.normal(ks[11], (D,), jnp.float32),
    )

    # Small tiles to exercise the (B, i-tile, k-tile, j-reduction) grid at this toy size;
    # production sizes would use ~128/256 tiles (k-tile ~64 on v7x, 64 MiB VMEM).
    fwd = jax.jit(functools.partial(
        triangle_multiplication_outgoing, c=C, row_tile=8, ti=8, tk=8, tj=N))

    out = jax.block_until_ready(fwd(Z_raw, Z_mask, params))

    ref = reference(Z_raw, Z_mask, params, c=C)
    # bf16 MXU inputs with f32 accumulation vs. a pure-f32 reference.
    np.testing.assert_allclose(np.asarray(out), np.asarray(ref), rtol=2e-2, atol=3e-2)
    print("KERNEL_OK")
</pallas_src>

<mosaic_0001>
module attributes {stable_mosaic.version = 11 : i64} {
  func.func @_proj_kernel(%arg0: i32, %arg1: i32, %arg2: memref<1x8x16x128xf32, #tpu.memory_space<vmem>>, %arg3: memref<1x8x16xf32, #tpu.memory_space<vmem>>, %arg4: memref<1x128xf32, #tpu.memory_space<vmem>>, %arg5: memref<1x128xf32, #tpu.memory_space<vmem>>, %arg6: memref<128x640xbf16, #tpu.memory_space<vmem>>, %arg7: memref<1x640xf32, #tpu.memory_space<vmem>>, %arg8: memref<1x8x16x128xbf16, #tpu.memory_space<vmem>>, %arg9: memref<1x8x16x128xbf16, #tpu.memory_space<vmem>>, %arg10: memref<1x8x16x128xf32, #tpu.memory_space<vmem>>) attributes {dimension_semantics = [#tpu.dimension_semantics<parallel>, #tpu.dimension_semantics<parallel>], iteration_bounds = array<i64: 2, 2>, scalar_prefetch = 0 : i64, scratch_operands = 0 : i64, tpu.core_type = #tpu.core_type<tc>, window_params = [{transform_indices = @transform_0, window_bounds = array<i64: 1, 8, 16, 128>}, {transform_indices = @transform_1, window_bounds = array<i64: 1, 8, 16>}, {pipeline_mode = #tpu.pipeline_mode<synchronous>, transform_indices = @transform_2, window_bounds = array<i64: 1, 128>}, {pipeline_mode = #tpu.pipeline_mode<synchronous>, transform_indices = @transform_3, window_bounds = array<i64: 1, 128>}, {pipeline_mode = #tpu.pipeline_mode<synchronous>, transform_indices = @transform_4, window_bounds = array<i64: 128, 640>}, {pipeline_mode = #tpu.pipeline_mode<synchronous>, transform_indices = @transform_5, window_bounds = array<i64: 1, 640>}, {transform_indices = @transform_6, window_bounds = array<i64: 1, 8, 16, 128>}, {transform_indices = @transform_7, window_bounds = array<i64: 1, 8, 16, 128>}, {transform_indices = @transform_8, window_bounds = array<i64: 1, 8, 16, 128>}]} {
    %c0 = arith.constant 0 : index
    %c0_0 = arith.constant 0 : index
    %c0_1 = arith.constant 0 : index
    %c0_2 = arith.constant 0 : index
    %0 = vector.load %arg2[%c0, %c0_0, %c0_1, %c0_2] : memref<1x8x16x128xf32, #tpu.memory_space<vmem>>, vector<1x8x16x128xf32>
    %1 = vector.shape_cast %0 : vector<1x8x16x128xf32> to vector<8x16x128xf32>
    %cst = arith.constant dense<0.000000e+00> : vector<8x16xf32>
    %2 = vector.multi_reduction <add>, %1, %cst [2] : vector<8x16x128xf32> to vector<8x16xf32>
    %3 = vector.shape_cast %2 : vector<8x16xf32> to vector<8x16x1xf32>
    %cst_3 = arith.constant 1.280000e+02 : f32
    %4 = vector.broadcast %cst_3 : f32 to vector<8x16x1xf32>
    %5 = arith.divf %3, %4 : vector<8x16x1xf32>
    %6 = vector.broadcast %5 : vector<8x16x1xf32> to vector<8x16x128xf32>
    %7 = arith.subf %1, %6 : vector<8x16x128xf32>
    %8 = arith.mulf %7, %7 : vector<8x16x128xf32>
    %cst_4 = arith.constant dense<0.000000e+00> : vector<8x16xf32>
    %9 = vector.multi_reduction <add>, %8, %cst_4 [2] : vector<8x16x128xf32> to vector<8x16xf32>
    %10 = vector.shape_cast %9 : vector<8x16xf32> to vector<8x16x1xf32>
    %cst_5 = arith.constant 1.280000e+02 : f32
    %11 = vector.broadcast %cst_5 : f32 to vector<8x16x1xf32>
    %12 = arith.divf %10, %11 : vector<8x16x1xf32>
    %13 = vector.broadcast %5 : vector<8x16x1xf32> to vector<8x16x128xf32>
    %14 = arith.subf %1, %13 : vector<8x16x128xf32>
    %cst_6 = arith.constant 9.99999974E-6 : f32
    %15 = vector.broadcast %cst_6 : f32 to vector<8x16x1xf32>
    %16 = arith.addf %12, %15 : vector<8x16x1xf32>
    %17 = math.rsqrt %16 : vector<8x16x1xf32>
    %18 = vector.broadcast %17 : vector<8x16x1xf32> to vector<8x16x128xf32>
    %19 = arith.mulf %14, %18 : vector<8x16x128xf32>
    %c0_7 = arith.constant 0 : index
    %c0_8 = arith.constant 0 : index
    %20 = vector.load %arg4[%c0_7, %c0_8] : memref<1x128xf32, #tpu.memory_space<vmem>>, vector<1x128xf32>
    %21 = vector.shape_cast %20 : vector<1x128xf32> to vector<128xf32>
    %22 = vector.shape_cast %21 : vector<128xf32> to vector<1x1x128xf32>
    %23 = vector.broadcast %22 : vector<1x1x128xf32> to vector<8x16x128xf32>
    %24 = arith.mulf %19, %23 : vector<8x16x128xf32>
    %c0_9 = arith.constant 0 : index
    %c0_10 = arith.constant 0 : index
    %25 = vector.load %arg5[%c0_9, %c0_10] : memref<1x128xf32, #tpu.memory_space<vmem>>, vector<1x128xf32>
    %26 = vector.shape_cast %25 : vector<1x128xf32> to vector<128xf32>
    %27 = vector.shape_cast %26 : vector<128xf32> to vector<1x1x128xf32>
    %28 = vector.broadcast %27 : vector<1x1x128xf32> to vector<8x16x128xf32>
    %29 = arith.addf %24, %28 : vector<8x16x128xf32>
    %30 = vector.shape_cast %29 : vector<8x16x128xf32> to vector<128x128xf32>
    %31 = arith.truncf %30 : vector<128x128xf32> to vector<128x128xbf16>
    %c0_11 = arith.constant 0 : index
    %c0_12 = arith.constant 0 : index
    %32 = vector.load %arg6[%c0_11, %c0_12] : memref<128x640xbf16, #tpu.memory_space<vmem>>, vector<128x640xbf16>
    %cst_13 = arith.constant dense<0.000000e+00> : vector<128x640xf32>
    %33 = tpu.matmul %31, %32, %cst_13 {dimension_numbers = #tpu.dot_dimension_numbers<[1], [0], [0], [1], [0, 0, 1, 1], [], []>} : vector<128x128xbf16>, vector<128x640xbf16>, vector<128x640xf32> -> vector<128x640xf32>
    %c0_14 = arith.constant 0 : index
    %c0_15 = arith.constant 0 : index
    %34 = vector.load %arg7[%c0_14, %c0_15] : memref<1x640xf32, #tpu.memory_space<vmem>>, vector<1x640xf32>
    %35 = vector.broadcast %34 : vector<1x640xf32> to vector<128x640xf32>
    %36 = arith.addf %33, %35 : vector<128x640xf32>
    %37 = vector.extract_strided_slice %36 {offsets = [0, 0], sizes = [128, 256], strides = [1, 1]} : vector<128x640xf32> to vector<128x256xf32>
    %38 = vector.extract_strided_slice %36 {offsets = [0, 256], sizes = [128, 256], strides = [1, 1]} : vector<128x640xf32> to vector<128x256xf32>
    %39 = arith.negf %38 : vector<128x256xf32>
    %40 = math.exp %39 : vector<128x256xf32>
    %cst_16 = arith.constant 1.000000e+00 : f32
    %41 = vector.broadcast %cst_16 : f32 to vector<128x256xf32>
    %42 = arith.addf %41, %40 : vector<128x256xf32>
    %43 = arith.divf %41, %42 : vector<128x256xf32>
    %44 = arith.mulf %37, %43 : vector<128x256xf32>
    %45 = vector.shape_cast %44 : vector<128x256xf32> to vector<8x16x256xf32>
    %c0_17 = arith.constant 0 : index
    %c0_18 = arith.constant 0 : index
    %c0_19 = arith.constant 0 : index
    %46 = vector.load %arg3[%c0_17, %c0_18, %c0_19] : memref<1x8x16xf32, #tpu.memory_space<vmem>>, vector<1x8x16xf32>
    %47 = vector.shape_cast %46 : vector<1x8x16xf32> to vector<8x16xf32>
    %48 = vector.shape_cast %47 : vector<8x16xf32> to vector<8x16x1xf32>
    %49 = vector.broadcast %48 : vector<8x16x1xf32> to vector<8x16x256xf32>
    %50 = arith.mulf %45, %49 : vector<8x16x256xf32>
    %51 = vector.extract_strided_slice %50 {offsets = [0, 0, 0], sizes = [8, 16, 128], strides = [1, 1, 1]} : vector<8x16x256xf32> to vector<8x16x128xf32>
    %52 = arith.truncf %51 : vector<8x16x128xf32> to vector<8x16x128xbf16>
    %c0_20 = arith.constant 0 : index
    %c0_21 = arith.constant 0 : index
    %c0_22 = arith.constant 0 : index
    %c0_23 = arith.constant 0 : index
    %53 = vector.load %arg8[%c0_20, %c0_21, %c0_22, %c0_23] : memref<1x8x16x128xbf16, #tpu.memory_space<vmem>>, vector<1x8x16x128xbf16>
    %54 = vector.shape_cast %53 : vector<1x8x16x128xbf16> to vector<8x16x128xbf16>
    %55 = vector.shape_cast %52 : vector<8x16x128xbf16> to vector<1x8x16x128xbf16>
    tpu.vector_store %arg8[%c0_20, %c0_21, %c0_22, %c0_23], %55 {strides = array<i32>} : memref<1x8x16x128xbf16, #tpu.memory_space<vmem>>, vector<1x8x16x128xbf16>,
    %56 = vector.extract_strided_slice %50 {offsets = [0, 0, 128], sizes = [8, 16, 128], strides = [1, 1, 1]} : vector<8x16x256xf32> to vector<8x16x128xf32>
    %57 = arith.truncf %56 : vector<8x16x128xf32> to vector<8x16x128xbf16>
    %c0_24 = arith.constant 0 : index
    %c0_25 = arith.constant 0 : index
    %c0_26 = arith.constant 0 : index
    %c0_27 = arith.constant 0 : index
    %58 = vector.load %arg9[%c0_24, %c0_25, %c0_26, %c0_27] : memref<1x8x16x128xbf16, #tpu.memory_space<vmem>>, vector<1x8x16x128xbf16>
    %59 = vector.shape_cast %58 : vector<1x8x16x128xbf16> to vector<8x16x128xbf16>
    %60 = vector.shape_cast %57 : vector<8x16x128xbf16> to vector<1x8x16x128xbf16>
    tpu.vector_store %arg9[%c0_24, %c0_25, %c0_26, %c0_27], %60 {strides = array<i32>} : memref<1x8x16x128xbf16, #tpu.memory_space<vmem>>, vector<1x8x16x128xbf16>,
    %61 = vector.extract_strided_slice %36 {offsets = [0, 512], sizes = [128, 128], strides = [1, 1]} : vector<128x640xf32> to vector<128x128xf32>
    %62 = arith.negf %61 : vector<128x128xf32>
    %63 = math.exp %62 : vector<128x128xf32>
    %cst_28 = arith.constant 1.000000e+00 : f32
    %64 = vector.broadcast %cst_28 : f32 to vector<128x128xf32>
    %65 = arith.addf %64, %63 : vector<128x128xf32>
    %66 = arith.divf %64, %65 : vector<128x128xf32>
    %67 = vector.shape_cast %66 : vector<128x128xf32> to vector<8x16x128xf32>
    %c0_29 = arith.constant 0 : index
    %c0_30 = arith.constant 0 : index
    %c0_31 = arith.constant 0 : index
    %c0_32 = arith.constant 0 : index
    %68 = vector.load %arg10[%c0_29, %c0_30, %c0_31, %c0_32] : memref<1x8x16x128xf32, #tpu.memory_space<vmem>>, vector<1x8x16x128xf32>
    %69 = vector.shape_cast %68 : vector<1x8x16x128xf32> to vector<8x16x128xf32>
    %70 = vector.shape_cast %67 : vector<8x16x128xf32> to vector<1x8x16x128xf32>
    tpu.vector_store %arg10[%c0_29, %c0_30, %c0_31, %c0_32], %70 {strides = array<i32>} : memref<1x8x16x128xf32, #tpu.memory_space<vmem>>, vector<1x8x16x128xf32>,
    return
  }
  func.func @transform_0(%arg0: i32, %arg1: i32) -> (i32, i32, i32, i32) {
    %c0_i32 = arith.constant 0 : i32
    %c0_i32_0 = arith.constant 0 : i32
    %c0_i32_1 = arith.constant 0 : i32
    return %arg0, %arg1, %c0_i32, %c0_i32_0 : i32, i32, i32, i32
  }
  func.func @transform_1(%arg0: i32, %arg1: i32) -> (i32, i32, i32) {
    %c0_i32 = arith.constant 0 : i32
    %c0_i32_0 = arith.constant 0 : i32
    return %arg0, %arg1, %c0_i32 : i32, i32, i32
  }
  func.func @transform_2(%arg0: i32, %arg1: i32) -> (i32, i32) {
    %c0_i32 = arith.constant 0 : i32
    %c0_i32_0 = arith.constant 0 : i32
    %c0_i32_1 = arith.constant 0 : i32
    return %c0_i32, %c0_i32_0 : i32, i32
  }
  func.func @transform_3(%arg0: i32, %arg1: i32) -> (i32, i32) {
    %c0_i32 = arith.constant 0 : i32
    %c0_i32_0 = arith.constant 0 : i32
    %c0_i32_1 = arith.constant 0 : i32
    return %c0_i32, %c0_i32_0 : i32, i32
  }
  func.func @transform_4(%arg0: i32, %arg1: i32) -> (i32, i32) {
    %c0_i32 = arith.constant 0 : i32
    %c0_i32_0 = arith.constant 0 : i32
    %c0_i32_1 = arith.constant 0 : i32
    return %c0_i32, %c0_i32_0 : i32, i32
  }
  func.func @transform_5(%arg0: i32, %arg1: i32) -> (i32, i32) {
    %c0_i32 = arith.constant 0 : i32
    %c0_i32_0 = arith.constant 0 : i32
    %c0_i32_1 = arith.constant 0 : i32
    return %c0_i32, %c0_i32_0 : i32, i32
  }
  func.func @transform_6(%arg0: i32, %arg1: i32) -> (i32, i32, i32, i32) {
    %c0_i32 = arith.constant 0 : i32
    %c0_i32_0 = arith.constant 0 : i32
    %c0_i32_1 = arith.constant 0 : i32
    return %arg0, %arg1, %c0_i32, %c0_i32_0 : i32, i32, i32, i32
  }
  func.func @transform_7(%arg0: i32, %arg1: i32) -> (i32, i32, i32, i32) {
    %c0_i32 = arith.constant 0 : i32
    %c0_i32_0 = arith.constant 0 : i32
    %c0_i32_1 = arith.constant 0 : i32
    return %arg0, %arg1, %c0_i32, %c0_i32_0 : i32, i32, i32, i32
  }
  func.func @transform_8(%arg0: i32, %arg1: i32) -> (i32, i32, i32, i32) {
    %c0_i32 = arith.constant 0 : i32
    %c0_i32_0 = arith.constant 0 : i32
    %c0_i32_1 = arith.constant 0 : i32
    return %arg0, %arg1, %c0_i32, %c0_i32_0 : i32, i32, i32, i32
  }
}

module attributes {stable_mosaic.version = 11 : i64} {
  func.func @_trimul_kernel(%arg0: i32, %arg1: i32, %arg2: i32, %arg3: i32, %arg4: memref<1x128x8x16xbf16, #tpu.memory_space<vmem>>, %arg5: memref<1x128x8x16xbf16, #tpu.memory_space<vmem>>, %arg6: memref<1x8x8x128xf32, #tpu.memory_space<vmem>>, %arg7: memref<1x8x8x128xf32, #tpu.memory_space<vmem>>, %arg8: memref<1x128xf32, #tpu.memory_space<vmem>>, %arg9: memref<1x128xf32, #tpu.memory_space<vmem>>, %arg10: memref<128x128xbf16, #tpu.memory_space<vmem>>, %arg11: memref<1x128xf32, #tpu.memory_space<vmem>>, %arg12: memref<1x8x8x128xf32, #tpu.memory_space<vmem>>, %arg13: memref<128x8x8xf32, #tpu.memory_space<vmem>>) attributes {dimension_semantics = [#tpu.dimension_semantics<parallel>, #tpu.dimension_semantics<parallel>, #tpu.dimension_semantics<parallel>, #tpu.dimension_semantics<arbitrary>], iteration_bounds = array<i64: 2, 2, 2, 1>, scalar_prefetch = 0 : i64, scratch_operands = 1 : i64, tpu.core_type = #tpu.core_type<tc>, window_params = [{transform_indices = @transform_0, window_bounds = array<i64: 1, 128, 8, 16>}, {transform_indices = @transform_1, window_bounds = array<i64: 1, 128, 8, 16>}, {transform_indices = @transform_2, window_bounds = array<i64: 1, 8, 8, 128>}, {transform_indices = @transform_3, window_bounds = array<i64: 1, 8, 8, 128>}, {pipeline_mode = #tpu.pipeline_mode<synchronous>, transform_indices = @transform_4, window_bounds = array<i64: 1, 128>}, {pipeline_mode = #tpu.pipeline_mode<synchronous>, transform_indices = @transform_5, window_bounds = array<i64: 1, 128>}, {pipeline_mode = #tpu.pipeline_mode<synchronous>, transform_indices = @transform_6, window_bounds = array<i64: 128, 128>}, {pipeline_mode = #tpu.pipeline_mode<synchronous>, transform_indices = @transform_7, window_bounds = array<i64: 1, 128>}, {transform_indices = @transform_8, window_bounds = array<i64: 1, 8, 8, 128>}]} {
    %c0_i32 = arith.constant 0 : i32
    %0 = arith.cmpi eq, %arg3, %c0_i32 : i32
    %1 = arith.extui %0 : i1 to i32
    %c0_i32_0 = arith.constant 0 : i32
    %2 = arith.cmpi ne, %1, %c0_i32_0 : i32
    scf.if %2 {
      %cst_16 = arith.constant 0.000000e+00 : f32
      %14 = vector.broadcast %cst_16 : f32 to vector<128x8x8xf32>
      %c0_17 = arith.constant 0 : index
      %c0_18 = arith.constant 0 : index
      %c0_19 = arith.constant 0 : index
      %15 = vector.load %arg13[%c0_17, %c0_18, %c0_19] : memref<128x8x8xf32, #tpu.memory_space<vmem>>, vector<128x8x8xf32>
      tpu.vector_store %arg13[%c0_17, %c0_18, %c0_19], %14 {strides = array<i32>} : memref<128x8x8xf32, #tpu.memory_space<vmem>>, vector<128x8x8xf32>,
    } else {
    }
    %c0 = arith.constant 0 : index
    %c0_1 = arith.constant 0 : index
    %c0_2 = arith.constant 0 : index
    %c0_3 = arith.constant 0 : index
    %3 = vector.load %arg4[%c0, %c0_1, %c0_2, %c0_3] : memref<1x128x8x16xbf16, #tpu.memory_space<vmem>>, vector<1x128x8x16xbf16>
    %4 = vector.shape_cast %3 : vector<1x128x8x16xbf16> to vector<128x8x16xbf16>
    %c0_4 = arith.constant 0 : index
    %c0_5 = arith.constant 0 : index
    %c0_6 = arith.constant 0 : index
    %c0_7 = arith.constant 0 : index
    %5 = vector.load %arg5[%c0_4, %c0_5, %c0_6, %c0_7] : memref<1x128x8x16xbf16, #tpu.memory_space<vmem>>, vector<1x128x8x16xbf16>
    %6 = vector.shape_cast %5 : vector<1x128x8x16xbf16> to vector<128x8x16xbf16>
    %c0_8 = arith.constant 0 : index
    %c0_9 = arith.constant 0 : index
    %c0_10 = arith.constant 0 : index
    %7 = vector.load %arg13[%c0_8, %c0_9, %c0_10] : memref<128x8x8xf32, #tpu.memory_space<vmem>>, vector<128x8x8xf32>
    %cst = arith.constant dense<0.000000e+00> : vector<128x8x8xf32>
    %8 = tpu.matmul %4, %6, %cst {dimension_numbers = #tpu.dot_dimension_numbers<[2], [2], [1], [1], [0, 0, 0, 1, 1, 1], [0], [0]>} : vector<128x8x16xbf16>, vector<128x8x16xbf16>, vector<128x8x8xf32> -> vector<128x8x8xf32>
    %9 = arith.addf %7, %8 : vector<128x8x8xf32>
    %c0_11 = arith.constant 0 : index
    %c0_12 = arith.constant 0 : index
    %c0_13 = arith.constant 0 : index
    %10 = vector.load %arg13[%c0_11, %c0_12, %c0_13] : memref<128x8x8xf32, #tpu.memory_space<vmem>>, vector<128x8x8xf32>
    tpu.vector_store %arg13[%c0_11, %c0_12, %c0_13], %9 {strides = array<i32>} : memref<128x8x8xf32, #tpu.memory_space<vmem>>, vector<128x8x8xf32>,
    %c0_i32_14 = arith.constant 0 : i32
    %11 = arith.cmpi eq, %arg3, %c0_i32_14 : i32
    %12 = arith.extui %11 : i1 to i32
    %c0_i32_15 = arith.constant 0 : i32
    %13 = arith.cmpi ne, %12, %c0_i32_15 : i32
    scf.if %13 {
      %c0_16 = arith.constant 0 : index
      %c0_17 = arith.constant 0 : index
      %c0_18 = arith.constant 0 : index
      %14 = vector.load %arg13[%c0_16, %c0_17, %c0_18] : memref<128x8x8xf32, #tpu.memory_space<vmem>>, vector<128x8x8xf32>
      %15 = vector.shape_cast %14 : vector<128x8x8xf32> to vector<128x64xf32>
      %16 = tpu.transpose %15, [1, 0] : vector<128x64xf32> -> vector<64x128xf32>
      %cst_19 = arith.constant dense<0.000000e+00> : vector<64xf32>
      %17 = vector.multi_reduction <add>, %16, %cst_19 [1] : vector<64x128xf32> to vector<64xf32>
      %18 = vector.shape_cast %17 : vector<64xf32> to vector<64x1xf32>
      %cst_20 = arith.constant 1.280000e+02 : f32
      %19 = vector.broadcast %cst_20 : f32 to vector<64x1xf32>
      %20 = arith.divf %18, %19 : vector<64x1xf32>
      %21 = vector.broadcast %20 : vector<64x1xf32> to vector<64x128xf32>
      %22 = arith.subf %16, %21 : vector<64x128xf32>
      %23 = arith.mulf %22, %22 : vector<64x128xf32>
      %cst_21 = arith.constant dense<0.000000e+00> : vector<64xf32>
      %24 = vector.multi_reduction <add>, %23, %cst_21 [1] : vector<64x128xf32> to vector<64xf32>
      %25 = vector.shape_cast %24 : vector<64xf32> to vector<64x1xf32>
      %cst_22 = arith.constant 1.280000e+02 : f32
      %26 = vector.broadcast %cst_22 : f32 to vector<64x1xf32>
      %27 = arith.divf %25, %26 : vector<64x1xf32>
      %28 = vector.broadcast %20 : vector<64x1xf32> to vector<64x128xf32>
      %29 = arith.subf %16, %28 : vector<64x128xf32>
      %cst_23 = arith.constant 9.99999974E-6 : f32
      %30 = vector.broadcast %cst_23 : f32 to vector<64x1xf32>
      %31 = arith.addf %27, %30 : vector<64x1xf32>
      %32 = math.rsqrt %31 : vector<64x1xf32>
      %33 = vector.broadcast %32 : vector<64x1xf32> to vector<64x128xf32>
      %34 = arith.mulf %29, %33 : vector<64x128xf32>
      %c0_24 = arith.constant 0 : index
      %c0_25 = arith.constant 0 : index
      %35 = vector.load %arg8[%c0_24, %c0_25] : memref<1x128xf32, #tpu.memory_space<vmem>>, vector<1x128xf32>
      %36 = vector.broadcast %35 : vector<1x128xf32> to vector<64x128xf32>
      %37 = arith.mulf %34, %36 : vector<64x128xf32>
      %c0_26 = arith.constant 0 : index
      %c0_27 = arith.constant 0 : index
      %38 = vector.load %arg9[%c0_26, %c0_27] : memref<1x128xf32, #tpu.memory_space<vmem>>, vector<1x128xf32>
      %39 = vector.broadcast %38 : vector<1x128xf32> to vector<64x128xf32>
      %40 = arith.addf %37, %39 : vector<64x128xf32>
      %41 = arith.truncf %40 : vector<64x128xf32> to vector<64x128xbf16>
      %c0_28 = arith.constant 0 : index
      %c0_29 = arith.constant 0 : index
      %42 = vector.load %arg10[%c0_28, %c0_29] : memref<128x128xbf16, #tpu.memory_space<vmem>>, vector<128x128xbf16>
      %cst_30 = arith.constant dense<0.000000e+00> : vector<64x128xf32>
      %43 = tpu.matmul %41, %42, %cst_30 {dimension_numbers = #tpu.dot_dimension_numbers<[1], [0], [0], [1], [0, 0, 1, 1], [], []>} : vector<64x128xbf16>, vector<128x128xbf16>, vector<64x128xf32> -> vector<64x128xf32>
      %c0_31 = arith.constant 0 : index
      %c0_32 = arith.constant 0 : index
      %44 = vector.load %arg11[%c0_31, %c0_32] : memref<1x128xf32, #tpu.memory_space<vmem>>, vector<1x128xf32>
      %45 = vector.broadcast %44 : vector<1x128xf32> to vector<64x128xf32>
      %46 = arith.addf %43, %45 : vector<64x128xf32>
      %47 = vector.shape_cast %46 : vector<64x128xf32> to vector<8x8x128xf32>
      %c0_33 = arith.constant 0 : index
      %c0_34 = arith.constant 0 : index
      %c0_35 = arith.constant 0 : index
      %c0_36 = arith.constant 0 : index
      %48 = vector.load %arg6[%c0_33, %c0_34, %c0_35, %c0_36] : memref<1x8x8x128xf32, #tpu.memory_space<vmem>>, vector<1x8x8x128xf32>
      %49 = vector.shape_cast %48 : vector<1x8x8x128xf32> to vector<8x8x128xf32>
      %50 = arith.mulf %49, %47 : vector<8x8x128xf32>
      %c0_37 = arith.constant 0 : index
      %c0_38 = arith.constant 0 : index
      %c0_39 = arith.constant 0 : index
      %c0_40 = arith.constant 0 : index
      %51 = vector.load %arg7[%c0_37, %c0_38, %c0_39, %c0_40] : memref<1x8x8x128xf32, #tpu.memory_space<vmem>>, vector<1x8x8x128xf32>
      %52 = vector.shape_cast %51 : vector<1x8x8x128xf32> to vector<8x8x128xf32>
      %53 = arith.addf %50, %52 : vector<8x8x128xf32>
      %c0_41 = arith.constant 0 : index
      %c0_42 = arith.constant 0 : index
      %c0_43 = arith.constant 0 : index
      %c0_44 = arith.constant 0 : index
      %54 = vector.load %arg12[%c0_41, %c0_42, %c0_43, %c0_44] : memref<1x8x8x128xf32, #tpu.memory_space<vmem>>, vector<1x8x8x128xf32>
      %55 = vector.shape_cast %54 : vector<1x8x8x128xf32> to vector<8x8x128xf32>
      %56 = vector.shape_cast %53 : vector<8x8x128xf32> to vector<1x8x8x128xf32>
      tpu.vector_store %arg12[%c0_41, %c0_42, %c0_43, %c0_44], %56 {strides = array<i32>} : memref<1x8x8x128xf32, #tpu.memory_space<vmem>>, vector<1x8x8x128xf32>,
    } else {
    }
    return
  }
  func.func @transform_0(%arg0: i32, %arg1: i32, %arg2: i32, %arg3: i32) -> (i32, i32, i32, i32) {
    %c0_i32 = arith.constant 0 : i32
    %c0_i32_0 = arith.constant 0 : i32
    return %arg0, %c0_i32, %arg1, %arg3 : i32, i32, i32, i32
  }
  func.func @transform_1(%arg0: i32, %arg1: i32, %arg2: i32, %arg3: i32) -> (i32, i32, i32, i32) {
    %c0_i32 = arith.constant 0 : i32
    %c0_i32_0 = arith.constant 0 : i32
    return %arg0, %c0_i32, %arg2, %arg3 : i32, i32, i32, i32
  }
  func.func @transform_2(%arg0: i32, %arg1: i32, %arg2: i32, %arg3: i32) -> (i32, i32, i32, i32) {
    %c0_i32 = arith.constant 0 : i32
    %c0_i32_0 = arith.constant 0 : i32
    return %arg0, %arg1, %arg2, %c0_i32 : i32, i32, i32, i32
  }
  func.func @transform_3(%arg0: i32, %arg1: i32, %arg2: i32, %arg3: i32) -> (i32, i32, i32, i32) {
    %c0_i32 = arith.constant 0 : i32
    %c0_i32_0 = arith.constant 0 : i32
    return %arg0, %arg1, %arg2, %c0_i32 : i32, i32, i32, i32
  }
  func.func @transform_4(%arg0: i32, %arg1: i32, %arg2: i32, %arg3: i32) -> (i32, i32) {
    %c0_i32 = arith.constant 0 : i32
    %c0_i32_0 = arith.constant 0 : i32
    %c0_i32_1 = arith.constant 0 : i32
    return %c0_i32, %c0_i32_0 : i32, i32
  }
  func.func @transform_5(%arg0: i32, %arg1: i32, %arg2: i32, %arg3: i32) -> (i32, i32) {
    %c0_i32 = arith.constant 0 : i32
    %c0_i32_0 = arith.constant 0 : i32
    %c0_i32_1 = arith.constant 0 : i32
    return %c0_i32, %c0_i32_0 : i32, i32
  }
  func.func @transform_6(%arg0: i32, %arg1: i32, %arg2: i32, %arg3: i32) -> (i32, i32) {
    %c0_i32 = arith.constant 0 : i32
    %c0_i32_0 = arith.constant 0 : i32
    %c0_i32_1 = arith.constant 0 : i32
    return %c0_i32, %c0_i32_0 : i32, i32
  }
  func.func @transform_7(%arg0: i32, %arg1: i32, %arg2: i32, %arg3: i32) -> (i32, i32) {
    %c0_i32 = arith.constant 0 : i32
    %c0_i32_0 = arith.constant 0 : i32
    %c0_i32_1 = arith.constant 0 : i32
    return %c0_i32, %c0_i32_0 : i32, i32
  }
  func.func @transform_8(%arg0: i32, %arg1: i32, %arg2: i32, %arg3: i32) -> (i32, i32, i32, i32) {
    %c0_i32 = arith.constant 0 : i32
    %c0_i32_0 = arith.constant 0 : i32
    return %arg0, %arg1, %arg2, %c0_i32 : i32, i32, i32, i32
  }
}

</mosaic_0001>

<bundles_post_ra>
// kernel: triangle_multiplication_outgoing.2
= control target key start
LH: loop header
LB: loop body
LE: loop exit
PB: predicated region body
PF: predicated region fallthrough
CT: control target
= control target key end

     0   :  { %s4360_s0 = inlined_call_operand.hbm [shape: f32[2,16,16,128], index: 0, kind: input, shape index: {}]   ;;  %s4361_s1 = inlined_call_operand.hbm [shape: f32[2,16,16], index: 1, kind: input, shape index: {}]   ;;  %s4362_s2 = inlined_call_operand.hbm [shape: f32[1,128], index: 2, kind: input, shape index: {}]   ;;  %s4363_s3 = inlined_call_operand.hbm [shape: f32[1,128], index: 3, kind: input, shape index: {}]   ;;  %s4364_s4 = inlined_call_operand.hbm [shape: bf16[128,640], index: 4, kind: input, shape index: {}]   ;;  %s4365_s5 = inlined_call_operand.hbm [shape: f32[1,640], index: 5, kind: input, shape index: {}]   ;;  %s4366_s6 = inlined_call_operand.hbm [shape: bf16[2,16,16,128], index: 6, kind: output, shape index: {0}]   ;;  %s4367_s7 = inlined_call_operand.hbm [shape: bf16[2,16,16,128], index: 7, kind: output, shape index: {1}]   ;;  %s4368_s8 = inlined_call_operand.hbm [shape: f32[2,16,16,128], index: 8, kind: output, shape index: {2}]  }
   0x1   :  { %4381 = sst [smem:[#allocation30_spill]] %s4360_s0 }
   0x2   :  { %4382 = sst [smem:[#allocation31_spill]] %s4362_s2 }
   0x3   :  { %4383 = sst [smem:[#allocation32_spill]] %s4363_s3 }
   0x4   :  { %4384 = sst [smem:[#allocation33_spill]] %s4364_s4 }
   0x5   :  { %4385 = sst [smem:[#allocation34_spill]] %s4365_s5 }
   0x6   :  { %4386 = sst [smem:[#allocation35_spill]] %s4367_s7 }
   0x7   :  { %4387 = sst [smem:[#allocation36_spill]] %s4368_s8 }
   0x8   :  { %14 = vsyncpa [#allocation3], 0 }
   0x9   :  { %16 = vsyncpa [#allocation3 + $0x1], 0 }
   0xa   :  { %17 = vsyncpa [#allocation6], 0 }
   0xb   :  { %19 = vsyncpa [#allocation6 + $0x1], 0 }
   0xc   :  { %20 = vsyncpa [#allocation9], 0 }
   0xd   :  { %21 = vsyncpa [#allocation12], 0 }
   0xe   :  { %22 = vsyncpa [#allocation4], 0 }
   0xf   :  { %24 = vsyncpa [#allocation4 + $0x1], 0 }
  0x10   :  { %25 = vsyncpa [#allocation15], 0 }
  0x11   :  { %27 = vsyncpa [#allocation15 + $0x1], 0  ;;  %s3411_s27 = smov 0   ;;  %s3413_s28 = smov 0  }
  0x12   :  { %s3415_s29 = smov 0   ;;  %s3417_s30 = smov 0  }
  0x13   :  { %s3419_s9 = smov 0   ;;  %s3421_s10 = smov 0  }
  0x14   :  { %s3423_s11 = smov 0   ;;  %s3425_s12 = smov 0  }
  0x15 LB: > { %4388 = sst [smem:[#allocation24_spill]] %s3318_s27  ;;  %s3452_s13 = sadd.s32 4294967295, %s3346_s12   ;;  %s3346_s12 = sphi %s3425_s12, %s33_s12   ;;  %s3342_s11 = sphi %s3423_s11, %s4434_s11   ;;  %s3338_s10 = sphi %s3421_s10, %s4433_s10   ;;  %s3334_s9 = sphi %s3419_s9, %s4432_s9   ;;  %s3330_s30 = sphi %s3417_s30, %s4431_s30   ;;  %s3326_s29 = sphi %s3415_s29, %s4430_s29   ;;  %s3322_s28 = sphi %s3413_s28, %s4429_s28   ;;  %s3318_s27 = sphi %s3411_s27, %s4428_s27  }
  0x16   : > { %s4369_s14 = sadd.s32 4294967294, %s3346_s12   ;;  %p67_p0 = scmp.ne.s32.totalorder %s3322_s28, %s3318_s27 }
  0x17   : > { %p4372_p1 = scmp.eq.s32.totalorder %s3452_s13, 0  ;;  %p211_p3 = scmp.eq.s32.totalorder %s4369_s14, 3 }
  0x18   : > { %p2220_p5 = scmp.ge.s32.totalorder %s3346_s12, 1  ;;  %p274_p7 = scmp.lt.s32.totalorder %s3346_s12, 5 }
  0x19   : > { %p3463_p4 = por %p4372_p1, %p67_p0  ;;  %p3468_p6 = por %p211_p3, %p67_p0 }
  0x1a   : > { %p3473_p8 = pnand %p2220_p5, %p274_p7  ;;  %s3348_s18 = smov [#allocation7]  }
  0x1b   : > { %s4389_s15 = scalar_select %p3463_p4, 1, 0 }
  0x1c   : > { %s4390_s16 = scalar_select %p3468_p6, 1, 0 }
  0x1d   : > { %s4392_s17 = scalar_select %p3473_p8, 1, 0 }
  0x1e   : > { %4391 = sst [smem:[#allocation25_spill]] %s4390_s16  ;;  %s287_s19 = sshll.u32 %s3348_s18, 4  ;;  %s288_s19 = int_to_ptr.vmem [resolvable:$true] %s287_s19 }
  0x1f   : > { %p2603_p9 = pneg %p3473_p8  ;;  %s3349_s20 = smov [#allocation8]  }
  0x20   : > { %s298_s21 = sshll.u32 %s3349_s20, 4  ;;  %s3350_s23 = smov [#allocation10]   ;;  %s3485_s21 = int_to_ptr.vmem [resolvable:$true] %s298_s21 }
  0x21   : > { %p3481_p10 = pnand %p2603_p9, %p4372_p1  ;;  %s308_s24 = sshll.u32 %s3350_s23, 4  ;;  %s3487_s24 = int_to_ptr.vmem [resolvable:$true] %s308_s24 }
  0x22   : > { %s4394_s2 = sld [smem:[#allocation31_spill]] }
  0x23   : > { %p3497_p12 = pneg %p3481_p10 }
  0x28   : > { %s3000_s18 = scalar_lea.hbm %s4394_s2, 16 }
  0x29   : > { %p3001_p11 = scmp.ne.s32.totalorder %s4394_s2, %s3000_s18  ;;  %p3007_p3 = scmp.lt.u32.totalorder %s3000_s18, %s4394_s2 }
  0x2b   : > { %p3003_p13 = pnand %p3497_p12, %p3001_p11 }
  0x2d   : > { %p3004_p0 = pneg %p3003_p13 }
  0x2f   : > { %p3009_p5 = pnand %p3007_p3, %p3004_p0 }
  0x31   : > { %3012 = shalt.err (!%p3009_p5)
}
  0x32   : > { %s3013_s25 = scalar_lea.vmem %s288_s19, 16  ;;  %s3020_s14 = scalar_lea.vmem %s288_s19, 32 }
  0x33   : > { %p3014_p7 = scmp.ne.s32.totalorder %s288_s19, %s3013_s25  ;;  %p3021_p2 = scmp.lt.s32.totalorder %s288_s19, %s288_s19 }
  0x34   : > { %p3022_p6 = scmp.lt.s32.totalorder %s3020_s14, %s3013_s25 }
  0x35   : > { %p3016_p9 = pnand %p3014_p7, %p3497_p12 }
  0x36   : > { %p3023_p4 = por %p3022_p6, %p3021_p2 }
  0x37   : > { %p3017_p1 = pneg %p3016_p9 }
  0x39   : > { %p3024_p8 = pnand %p3023_p4, %p3017_p1 }
  0x3b   : > { %3027 = shalt.err (!%p3024_p8)
}
  0x3c   : > { %2606 = dma.hbm_to_vmem [thread:$0]  (!%p3481_p10), %s4394_s2, 16, %s288_s19, [#allocation6]  }
  0x3d   : > { %s4396_s3 = sld [smem:[#allocation32_spill]] }
  0x43   : > { %s3028_s23 = scalar_lea.hbm %s4396_s3, 16 }
  0x44   : > { %p3029_p11 = scmp.ne.s32.totalorder %s4396_s3, %s3028_s23  ;;  %p3035_p1 = scmp.lt.u32.totalorder %s3028_s23, %s4396_s3 }
  0x46   : > { %p3031_p13 = pnand %p3029_p11, %p3497_p12 }
  0x48   : > { %p3032_p2 = pneg %p3031_p13 }
  0x4a   : > { %p3037_p4 = pnand %p3035_p1, %p3032_p2 }
  0x4c   : > { %3040 = shalt.err (!%p3037_p4)
}
  0x4d   : > { %s3041_s19 = scalar_lea.vmem %s3485_s21, 16  ;;  %s3048_s7 = scalar_lea.vmem %s3485_s21, 32 }
  0x4e   : > { %p3042_p6 = scmp.ne.s32.totalorder %s3485_s21, %s3041_s19  ;;  %p3049_p3 = scmp.lt.s32.totalorder %s3485_s21, %s3485_s21 }
  0x4f   : > { %p3050_p5 = scmp.lt.s32.totalorder %s3048_s7, %s3041_s19 }
  0x50   : > { %p3044_p8 = pnand %p3042_p6, %p3497_p12 }
  0x51   : > { %p3051_p7 = por %p3050_p5, %p3049_p3 }
  0x52   : > { %p3045_p0 = pneg %p3044_p8 }
  0x54   : > { %p3052_p9 = pnand %p3051_p7, %p3045_p0 }
  0x56   : > { %3055 = shalt.err (!%p3052_p9)
}
  0x57   : > { %2609 = dma.hbm_to_vmem [thread:$0]  (!%p3481_p10), %s4396_s3, 16, %s3485_s21, [#allocation9]  }
  0x58   : > { %s4397_s4 = sld [smem:[#allocation33_spill]] }
  0x5e   : > { %s3056_s18 = scalar_lea.hbm %s4397_s4, 5120 }
  0x5f   : > { %p3057_p11 = scmp.ne.s32.totalorder %s4397_s4, %s3056_s18  ;;  %p3063_p1 = scmp.lt.u32.totalorder %s3056_s18, %s4397_s4 }
  0x61   : > { %p3059_p13 = pnand %p3057_p11, %p3497_p12 }
  0x63   : > { %p3060_p2 = pneg %p3059_p13 }
  0x65   : > { %p3065_p4 = pnand %p3063_p1, %p3060_p2 }
  0x67   : > { %3068 = shalt.err (!%p3065_p4)
}
  0x68   : > { %s3069_s21 = scalar_lea.vmem %s3487_s24, 5120  ;;  %p3077_p3 = scmp.lt.s32.totalorder %s3487_s24, %s3487_s24 }
  0x69   : > { %p3070_p6 = scmp.ne.s32.totalorder %s3487_s24, %s3069_s21  ;;  %p3078_p5 = scmp.lt.s32.totalorder %s3069_s21, %s3069_s21 }
  0x6b   : > { %p3072_p8 = pnand %p3070_p6, %p3497_p12  ;;  %p3079_p7 = por %p3078_p5, %p3077_p3 }
  0x6d   : > { %p3073_p0 = pneg %p3072_p8 }
  0x6f   : > { %p3080_p9 = pnand %p3079_p7, %p3073_p0 }
  0x71   : > { %3083 = shalt.err (!%p3080_p9)
}
  0x72   : > { %s3351_s7 = smov 320   ;;  %s3352_s8 = smov 20  }
  0x73   : > { %2612 = dma.hbm_to_vmem [thread:$0]  (!%p3481_p10), %s4397_s4, 5120, %s3487_s24, [#allocation9], %s3351_s7, %s3351_s7, %s3352_s8  }
  0x74   : > { %s3353_s27 = smov [#allocation11]   ;;  %s4398_s5 = sld [smem:[#allocation34_spill]] }
  0x75   : > { %s322_s18 = sshll.u32 %s3353_s27, 4  ;;  %s323_s18 = int_to_ptr.vmem [resolvable:$true] %s322_s18 }
  0x7a   : > { %s3084_s14 = scalar_lea.hbm %s4398_s5, 80 }
  0x7b   : > { %p3085_p11 = scmp.ne.s32.totalorder %s4398_s5, %s3084_s14  ;;  %p3091_p1 = scmp.lt.u32.totalorder %s3084_s14, %s4398_s5 }
  0x7d   : > { %p3087_p13 = pnand %p3085_p11, %p3497_p12 }
  0x7f   : > { %p3088_p2 = pneg %p3087_p13 }
  0x81   : > { %p3093_p4 = pnand %p3091_p1, %p3088_p2 }
  0x83   : > { %3096 = shalt.err (!%p3093_p4)
}
  0x84   : > { %s3097_s24 = scalar_lea.vmem %s323_s18, 80  ;;  %s3104_s7 = scalar_lea.vmem %s323_s18, 96 }
  0x85   : > { %p3098_p6 = scmp.ne.s32.totalorder %s323_s18, %s3097_s24  ;;  %p3105_p3 = scmp.lt.s32.totalorder %s323_s18, %s323_s18 }
  0x86   : > { %p3106_p5 = scmp.lt.s32.totalorder %s3104_s7, %s3097_s24 }
  0x87   : > { %p3100_p8 = pnand %p3098_p6, %p3497_p12 }
  0x88   : > { %p3107_p7 = por %p3106_p5, %p3105_p3 }
  0x89   : > { %p3101_p0 = pneg %p3100_p8 }
  0x8b   : > { %p3108_p9 = pnand %p3107_p7, %p3101_p0 }
  0x8d   : > { %3111 = shalt.err (!%p3108_p9)
}
  0x8e   : > { %2615 = dma.hbm_to_vmem [thread:$0]  (!%p3481_p10), %s4398_s5, 80, %s323_s18, [#allocation12]  }
  0x8f   : > { %s42_s2 = sadd.s32 1, %s3338_s10  ;;  %s45_s3 = sadd.s32 1, %s3342_s11 }
  0x90   : > { %p43_p12 = scmp.ge.s32.totalorder %s42_s2, 2  ;;  %s54_s22 = sadd.s32 1, %s3326_s29 }
  0x91   : > { %p61_p11 = scmp.ne.s32.totalorder %s3326_s29, %s3322_s28  ;;  %p62_p13 = scmp.eq.s32.totalorder %s3346_s12, 0 }
  0x92   : > { %s4436_s2 = smov (%p43_p12, %s42_s2), 0  ;;  %s4438_s3 = smov (!%p43_p12, %s45_s3), %s3342_s11 }
  0x93   : > { %4399 = sst [smem:[#allocation26_spill]] %s4436_s2  ;;  %s50_s20 = ssub.s32 %s3338_s10, %s4436_s2 }
  0x94   : > { %p3589_p2 = por %p62_p13, %p61_p11  ;;  %p47_p10 = scmp.ge.s32.totalorder %s4438_s3, 2 }
  0x95   : > { %p4401_p1 = scmp.eq.s32.totalorder %s3452_s13, 3  ;;  %p2637_p6 = scmp.lt.s32.totalorder %s3346_s12, 4 }
  0x96   : > { %s3601_s18 = sand.u32 1, %s3326_s29   ;;  %s4440_s3 = smov (%p47_p10, %s4438_s3), 0 }
  0x97   : > { %p3595_p4 = por %p4401_p1, %p61_p11  ;;  %4404 = sst [smem:[#allocation28_spill]] %s4440_s3 }
  0x98   : > { %s2226_s23 = sshll.u32 %s3601_s18, 7  ;;  %s49_s25 = ssub.s32 %s3342_s11, %s4440_s3 }
  0x99   : > { %s4402_s27 = scalar_select %p3595_p4, 1, 0 }
  0x9a   : > { %s51_s14 = sor.u32 %s50_s20, %s49_s25  ;;  %s2383_s19 = sshll.u32 %s3338_s10, 4 }
  0x9b   : > { %4403 = sst [smem:[#allocation27_spill]] %s4402_s27  ;;  %p52_p8 = scmp.eq.s32.totalorder %s51_s14, 0 }
  0x9c   : > { %s2229_s21 = sshll.u32 %s3342_s11, 5  ;;  %s337_s7 = scalar_lea.vmem [#allocation2], %s2226_s23 }
  0x9d   : > { %s344_s24 = sadd.s32 %s2383_s19, %s2229_s21  ;;  %s347_s8 = sshll.u32 %s337_s7, 4  ;;  %s3613_s8 = int_to_ptr.vmem [resolvable:$true] %s347_s8 }
  0x9e   : > { %s3611_s16 = scalar_select %p52_p8, %s3326_s29, %s54_s22  }
  0x9f   : > { %s2230_s4 = sshll.u32 %s344_s24, 7  ;;  %s4406_s0 = sld [smem:[#allocation30_spill]] }
  0xa0   : > { %4405 = sst [smem:[#allocation29_spill]] %s3611_s16  ;;  %p3624_p0 = pnand %p2637_p6, %p3589_p2 }
  0xa1   : > { %s334_s23 = scalar_lea.sflag [#allocation3], %s3601_s18 }
  0xa2   : > { %p3114_p5 = pneg %p3624_p0 }
  0xa5   : > { %s3618_s27 = scalar_lea.hbm %s4406_s0, %s2230_s4  ;;  %s3117_s2 = scalar_lea.hbm %s4406_s0, 8192 }
  0xa6   : > { %s3112_s25 = scalar_lea.hbm %s3618_s27, 2048  ;;  %p3118_p12 = scmp.lt.u32.totalorder %s3618_s27, %s4406_s0 }
  0xa7   : > { %p3113_p3 = scmp.ne.s32.totalorder %s3618_s27, %s3112_s25  ;;  %p3119_p11 = scmp.lt.u32.totalorder %s3117_s2, %s3112_s25 }
  0xa8   : > { %p3121_p2 = scmp.lt.u32.totalorder %s3112_s25, %s3618_s27 }
  0xa9   : > { %p3115_p7 = pnand %p3114_p5, %p3113_p3  ;;  %p3120_p13 = por %p3119_p11, %p3118_p12 }
  0xab   : > { %p3116_p9 = pneg %p3115_p7  ;;  %p3122_p10 = por %p3121_p2, %p3120_p13 }
  0xad   : > { %p3123_p1 = pnand %p3122_p10, %p3116_p9 }
  0xaf   : > { %3126 = shalt.err (!%p3123_p1)
}
  0xb0   : > { %s3127_s19 = scalar_lea.vmem %s3613_s8, 2048  ;;  %s3354_s21 = smov [#allocation2]  }
  0xb1   : > { %p3128_p6 = scmp.ne.s32.totalorder %s3613_s8, %s3127_s19  ;;  %s3132_s24 = sshll.u32 %s3354_s21, 4  ;;  %s3133_s24 = int_to_ptr.vmem [resolvable:$false] %s3132_s24 }
  0xb2   : > { %s3134_s7 = scalar_lea.vmem %s3133_s24, 4096  ;;  %p3135_p7 = scmp.lt.s32.totalorder %s3613_s8, %s3133_s24 }
  0xb3   : > { %p3130_p8 = pnand %p3128_p6, %p3114_p5  ;;  %p3136_p12 = scmp.lt.s32.totalorder %s3134_s7, %s3127_s19 }
  0xb5   : > { %p3131_p3 = pneg %p3130_p8  ;;  %p3137_p11 = por %p3136_p12, %p3135_p7 }
  0xb7   : > { %p3138_p13 = pnand %p3137_p11, %p3131_p3 }
  0xb9   : > { %3141 = shalt.err (!%p3138_p13)
}
  0xba   : > { %s3355_s25 = smov 128   ;;  %s3356_s4 = smov 8  }
  0xbb   : > { %2619 = dma.hbm_to_vmem [thread:$0]  (!%p3624_p0), %s3618_s27, 2048, %s3613_s8, %s334_s23, %s3355_s25, %s3355_s25, %s3356_s4  }
  0xbc   : > { %s2231_s5 = sshll.u32 %s3601_s18, 3  ;;  %s2232_s2 = sshll.u32 %s3342_s11, 1 }
  0xbd   : > { %s366_s26 = sadd.s32 %s3338_s10, %s2232_s2  ;;  %s361_s14 = scalar_lea.vmem [#allocation5], %s2231_s5 }
  0xbe   : > { %s370_s19 = sshll.u32 %s361_s14, 4  ;;  %s2233_s21 = sshll.u32 %s366_s26, 7  ;;  %s3660_s19 = int_to_ptr.vmem [resolvable:$true] %s370_s19 }
  0xbf   : > { %s368_s22 = scalar_lea.hbm %s4361_s1, %s2233_s21  ;;  %s4408_s0 = sand.u32 1, %s3346_s12  }
  0xc0   : > { %s358_s3 = scalar_lea.sflag [#allocation6], %s4408_s0  ;;  %s3142_s16 = scalar_lea.hbm %s368_s22, 128 }
  0xc1   : > { %p3143_p9 = scmp.ne.s32.totalorder %s368_s22, %s3142_s16  ;;  %s3147_s8 = scalar_lea.hbm %s4361_s1, 512 }
  0xc2   : > { %p3148_p1 = scmp.lt.u32.totalorder %s368_s22, %s4361_s1  ;;  %p3149_p6 = scmp.lt.u32.totalorder %s3147_s8, %s3142_s16 }
  0xc3   : > { %p3145_p2 = pnand %p3143_p9, %p3114_p5  ;;  %p3151_p3 = scmp.lt.u32.totalorder %s3142_s16, %s368_s22 }
  0xc4   : > { %p3150_p8 = por %p3149_p6, %p3148_p1 }
  0xc5   : > { %p3146_p10 = pneg %p3145_p2 }
  0xc6   : > { %p3152_p7 = por %p3151_p3, %p3150_p8 }
  0xc8   : > { %p3153_p12 = pnand %p3152_p7, %p3146_p10 }
  0xca   : > { %3156 = shalt.err (!%p3153_p12)
}
  0xcb   : > { %s3157_s0 = scalar_lea.vmem %s3660_s19, 128  ;;  %s3357_s4 = smov [#allocation5]  }
  0xcc   : > { %p3158_p11 = scmp.ne.s32.totalorder %s3660_s19, %s3157_s0  ;;  %s3162_s5 = sshll.u32 %s3357_s4, 4  ;;  %s3163_s5 = int_to_ptr.vmem [resolvable:$false] %s3162_s5 }
  0xcd   : > { %s3164_s2 = scalar_lea.vmem %s3163_s5, 256  ;;  %p3165_p2 = scmp.lt.s32.totalorder %s3660_s19, %s3163_s5 }
  0xce   : > { %p3160_p13 = pnand %p3158_p11, %p3114_p5  ;;  %p3166_p1 = scmp.lt.s32.totalorder %s3164_s2, %s3157_s0 }
  0xd0   : > { %p3161_p9 = pneg %p3160_p13  ;;  %p3167_p6 = por %p3166_p1, %p3165_p2 }
  0xd2   : > { %p3168_p8 = pnand %p3167_p6, %p3161_p9 }
  0xd4   : > { %3171 = shalt.err (!%p3168_p8)
}
  0xd5   : > { %2622 = dma.hbm_to_vmem [thread:$0]  (!%p3624_p0), %s368_s22, 128, %s3660_s19, %s358_s3  }
  0xd6   : > { %p4409_p10 = scmp.ne.s32.totalorder %s4392_s17, 0 }
  0xd7   : > { %s3688_s16 = sand.u32 (!%p4409_p10), 1, %s3322_s28   ;;  %p4410_p5 = scmp.ne.s32.totalorder (!%p4409_p10), %s4389_s15, 0 }
  0xd8   : > { %379 = sbr.rel (%p4409_p10) target bundleno = 945 (0x3b1), region = 44  ;;  %s2235_s26 = sshll.u32 (!%p4409_p10), %s3688_s16, 7 }
  0xd9   : > { %s382_s14 = scalar_lea.sflag (!%p4409_p10), [#allocation3], %s3688_s16  ;;  %s3694_s21 = scalar_lea.vmem (!%p4409_p10), [#allocation2], %s2235_s26 }
  0xdf   : > { %3289 = dma.done.wait (%p4410_p5), %s382_s14, 2048  }
  0xe0   : > { %3291 = vsyncadd (%p4410_p5), %s382_s14, 4294965248  ;;  %s390_s17 = sand.u32 1, %s3452_s13   ;;  %s2236_s3 = sshll.u32 %s3688_s16, 3 }
  0xe1   : > { %s391_s20 = scalar_lea.sflag [#allocation6], %s390_s17  ;;  %s3704_s22 = scalar_lea.vmem [#allocation5], %s2236_s3 }
  0xe2   : > { %3293 = dma.done.wait (%p4410_p5), %s391_s20, 128  }
  0xe3   : > { %3295 = vsyncadd (%p4410_p5), %s391_s20, 4294967168  ;;  %p4411_p0 = scmp.eq.s32.totalorder %s3452_s13, 0 }
  0xe5   : > { %3297 = dma.done.wait (%p4411_p0), [#allocation6], 16   ;;  %p4412_p3 = pmov %p4411_p0 }
  0xe6   : > { %p4413_p7 = pmov %p4411_p0 }
  0xe7   : > { %3299 = vsyncadd (%p4412_p3), [#allocation6], 4294967280 }
  0xe8   : > { %3301 = dma.done.wait (%p4413_p7), [#allocation9], 5136   ;;  %p4414_p12 = pmov %p4411_p0 }
  0xe9   : > { %p4415_p11 = pmov %p4411_p0 }
  0xea   : > { %3303 = vsyncadd (%p4414_p12), [#allocation9], 4294962160 }
  0xeb   : > { %3305 = dma.done.wait (%p4415_p11), [#allocation12], 80   ;;  %p4416_p13 = pmov %p4411_p0 }
  0xec   : > { %v463_v0 = vld [vmem:[%s3694_s21] sm:$0xff]  ;;  %v465_v1 = vld [vmem:[%s3694_s21 + $0x10] sm:$0xff]  ;;  %v464_v2 = vld [vmem:[%s3694_s21 + $0x8] sm:$0xff]  ;;  %s2241_s15 = sshll.u32 %s3688_s16, 6  ;;  %s2416_s7 = sshll.u32 %s3330_s30, 4 }
  0xed   : > { %3307 = vsyncadd (%p4416_p13), [#allocation12], 4294967216  ;;  %479 = vadd.xlane.f32.xlu0 %v463_v0  ;;  %483 = vadd.xlane.f32.xlu1 %v465_v1  ;;  %v466_v3 = vld [vmem:[%s3694_s21 + $0x18] sm:$0xff]  ;;  %v467_v4 = vld [vmem:[%s3694_s21 + $0x20] sm:$0xff]  ;;  %s4060_s19 = scalar_lea.vmem [#allocation13], %s2241_s15  ;;  %s4069_s24 = scalar_lea.vmem [#allocation14], %s2241_s15 }
  0xee   : > { %v468_v5 = vld [vmem:[%s3694_s21 + $0x28] sm:$0xff]  ;;  %v3729_v6 = vld [vmem:[%s3694_s21 + $0x30] sm:$0xff]  ;;  %v3732_v7 = vld [vmem:[%s3694_s21 + $0x38] sm:$0xff]  ;;  %s2371_s27 = sshll.u32 %s3334_s9, 5  ;;  %s1979_s18 = sshll.u32 %s4069_s24, 4  ;;  %s4220_s18 = int_to_ptr.vmem [resolvable:$true] %s1979_s18 }
  0xef   : > { %v3735_v8 = vld [vmem:[%s3694_s21 + $0x40] sm:$0xff]  ;;  %v3738_v9 = vld [vmem:[%s3694_s21 + $0x48] sm:$0xff]  ;;  %v3743_v10 = vld [vmem:[%s3694_s21 + $0x50] sm:$0xff]  ;;  %s4187_s30 = sadd.s32 %s2416_s7, %s2371_s27  ;;  %s1960_s8 = sshll.u32 %s4060_s19, 4  ;;  %s4211_s8 = int_to_ptr.vmem [resolvable:$true] %s1960_s8 }
  0xf0   : > { %v3746_v11 = vld [vmem:[%s3694_s21 + $0x58] sm:$0xff]  ;;  %v3753_v12 = vld [vmem:[%s3694_s21 + $0x60] sm:$0xff]  ;;  %v3756_v13 = vld [vmem:[%s3694_s21 + $0x68] sm:$0xff]  ;;  %s2372_s9 = sshll.u32 %s4187_s30, 6  ;;  %s4200_s23 = scalar_lea.vmem [#allocation16], %s2235_s26 }
  0xf1   : > { %481 = vadd.xlane.f32.xlu0 %v464_v2  ;;  %485 = vadd.xlane.f32.xlu1 %v466_v3  ;;  %v3761_v14 = vld [vmem:[%s3694_s21 + $0x70] sm:$0xff]  ;;  %v3764_v15 = vld [vmem:[%s3694_s21 + $0x78] sm:$0xff]  ;;  %s4209_s4 = scalar_lea.hbm %s4366_s6, %s2372_s9  ;;  %s4418_s14 = sld [smem:[#allocation35_spill]] }
  0xf2   : > { %v2720_v16 = vld [vmem:[#allocation10 + $0x4] ss:$20 sps:$4 sm:$0xff]   ;;  %v2722_v17 = vld [vmem:[#allocation10 + $0xc] ss:$20 sps:$4 sm:$0xff]   ;;  %v2725_v19 = vld [vmem:[#allocation10 + $0x8] ss:$20 sps:$4 sm:$0xff]  }
  0xf3   : > { %v2724_v18 = vld [vmem:[#allocation10] ss:$20 sps:$4 sm:$0xff]   ;;  %993 = vmatprep.subr.bf16.mxu0 %v2720_v16  ;;  %1106 = vmatprep.subr.bf16.mxu1 %v2722_v17  ;;  %v2730_v22 = vld [vmem:[#allocation10 + $0x28] ss:$20 sps:$4 sm:$0xff]   ;;  %v2731_v23 = vld [vmem:[#allocation10 + $0x30] ss:$20 sps:$4 sm:$0xff]  }
  0xf4   : > { %v2726_v20 = vld [vmem:[#allocation10 + $0x2c] ss:$20 sps:$4 sm:$0xff]   ;;  %v2728_v21 = vld [vmem:[#allocation10 + $0x34] ss:$20 sps:$4 sm:$0xff]   ;;  %994 = vmatpush1.bf16.msra.mxu0 %v2724_v18  ;;  %1107 = vmatpush1.bf16.msra.mxu1 %v2725_v19  ;;  %s1934_s3 = scalar_lea.sflag [#allocation4], %s3688_s16  ;;  %s3172_s20 = scalar_lea.vmem %s4211_s8, 1024 }
  0xf5   : > { %487 = vadd.xlane.f32.xlu0 %v467_v4  ;;  %489 = vadd.xlane.f32.xlu1 %v468_v5  ;;  %p3173_p9 = scmp.ne.s32.totalorder %s4211_s8, %s3172_s20 }
  0xf6   : > { %995 = vmatprep.subr.bf16.mxu0 %v2726_v20  ;;  %1108 = vmatprep.subr.bf16.mxu1 %v2728_v21 }
  0xf7   : > { %s4218_s21 = scalar_lea.hbm %s4418_s14, %s2372_s9  ;;  %p3174_p2 = pnand %p3173_p9, %p3595_p4 }
  0xf8   : > { %996 = vmatpush1.bf16.msra.mxu0 %v2730_v22  ;;  %1109 = vmatpush1.bf16.msra.mxu1 %v2731_v23  ;;  %v2738_v22 = vld [vmem:[#allocation10 + $0x7c] ss:$20 sps:$4 sm:$0xff]   ;;  %v2740_v23 = vld [vmem:[#allocation10 + $0x84] ss:$20 sps:$4 sm:$0xff]  }
  0xf9   : > { %491 = vadd.xlane.f32.xlu0 %v3729_v6  ;;  %493 = vadd.xlane.f32.xlu1 %v3732_v7  ;;  %p3175_p1 = pneg %p3174_p2 }
  0xfd   : > { %495 = vadd.xlane.f32.xlu0 %v3735_v8  ;;  %497 = vadd.xlane.f32.xlu1 %v3738_v9 }
 0x101   : > { %499 = vadd.xlane.f32.xlu0 %v3743_v10  ;;  %501 = vadd.xlane.f32.xlu1 %v3746_v11 }
 0x105   : > { %503 = vadd.xlane.f32.xlu0 %v3753_v12  ;;  %505 = vadd.xlane.f32.xlu1 %v3756_v13 }
 0x109   : > { %507 = vadd.xlane.f32.xlu0 %v3761_v14  ;;  %509 = vadd.xlane.f32.xlu1 %v3764_v15 }
 0x17a   : > { %v480_v24 = vpop.xlane.xlu0 %479  ;;  %v484_v25 = vpop.xlane.xlu1 %483 }
 0x17b   : > { %v512_v26 = vmul.f32 0.0078125, %v480_v24  ;;  %v514_v27 = vmul.f32 0.0078125, %v484_v25 }
 0x17d   : > { %v3768_v28 = vsub.f32 %v463_v0, %v512_v26  ;;  %v3770_v29 = vsub.f32 %v465_v1, %v514_v27  ;;  %v2742_v26 = vld [vmem:[#allocation10 + $0x78] ss:$20 sps:$4 sm:$0xff]   ;;  %v2743_v27 = vld [vmem:[#allocation10 + $0x80] ss:$20 sps:$4 sm:$0xff]  }
 0x17e   : > { %v482_v30 = vpop.xlane.xlu0 %481  ;;  %v486_v31 = vpop.xlane.xlu1 %485 }
 0x17f   : > { %v513_v32 = vmul.f32 0.0078125, %v482_v30  ;;  %v544_v33 = vmul.f32 %v3768_v28, %v3768_v28  ;;  %v515_v34 = vmul.f32 0.0078125, %v486_v31  ;;  %v546_v37 = vmul.f32 %v3770_v29, %v3770_v29 }
 0x181   : > { %v3774_v35 = vsub.f32 %v464_v2, %v513_v32  ;;  %560 = vadd.xlane.f32.xlu0 %v544_v33  ;;  %v3776_v36 = vsub.f32 %v466_v3, %v515_v34  ;;  %v2732_v3 = vld [vmem:[#allocation10 + $0x54] ss:$20 sps:$4 sm:$0xff]   ;;  %v2744_v34 = vld [vmem:[#allocation10 + $0xa4] ss:$20 sps:$4 sm:$0xff]  }
 0x182   : > { %v488_v38 = vpop.xlane.xlu0 %487  ;;  %v490_v39 = vpop.xlane.xlu1 %489  ;;  %997 = vmatprep.subr.bf16.mxu0 %v2732_v3 }
 0x183   : > { %v516_v40 = vmul.f32 0.0078125, %v488_v38  ;;  %v545_v41 = vmul.f32 %v3774_v35, %v3774_v35  ;;  %v517_v42 = vmul.f32 0.0078125, %v490_v39  ;;  %v547_v45 = vmul.f32 %v3776_v36, %v3776_v36  ;;  %v2748_v38 = vld [vmem:[#allocation10 + $0xa0] ss:$20 sps:$4 sm:$0xff]   ;;  %v2749_v39 = vld [vmem:[#allocation10 + $0xa8] ss:$20 sps:$4 sm:$0xff]  }
 0x185   : > { %v3782_v43 = vsub.f32 %v467_v4, %v516_v40  ;;  %564 = vadd.xlane.f32.xlu0 %v546_v37  ;;  %562 = vadd.xlane.f32.xlu1 %v545_v41  ;;  %v3784_v44 = vsub.f32 %v468_v5, %v517_v42  ;;  %v2734_v4 = vld [vmem:[#allocation10 + $0x5c] ss:$20 sps:$4 sm:$0xff]   ;;  %v2746_v37 = vld [vmem:[#allocation10 + $0xac] ss:$20 sps:$4 sm:$0xff]   ;;  %v2752_v41 = vld [vmem:[#allocation10 + $0xd4] ss:$20 sps:$4 sm:$0xff]  }
 0x186   : > { %v492_v46 = vpop.xlane.xlu0 %491  ;;  %v494_v47 = vpop.xlane.xlu1 %493  ;;  %1110 = vmatprep.subr.bf16.mxu1 %v2734_v4  ;;  %v2754_v42 = vld [vmem:[#allocation10 + $0xc8] ss:$20 sps:$4 sm:$0xff]  }
 0x187   : > { %v518_v48 = vmul.f32 0.0078125, %v492_v46  ;;  %v548_v49 = vmul.f32 %v3782_v43, %v3782_v43  ;;  %v519_v50 = vmul.f32 0.0078125, %v494_v47  ;;  %v549_v53 = vmul.f32 %v3784_v44, %v3784_v44  ;;  %v2756_v46 = vld [vmem:[#allocation10 + $0xf4] ss:$20 sps:$4 sm:$0xff]   ;;  %v2758_v47 = vld [vmem:[#allocation10 + $0xfc] ss:$20 sps:$4 sm:$0xff]  }
 0x189   : > { %v3791_v51 = vsub.f32 %v3729_v6, %v518_v48  ;;  %566 = vadd.xlane.f32.xlu1 %v547_v45  ;;  %568 = vadd.xlane.f32.xlu0 %v548_v49  ;;  %v3794_v52 = vsub.f32 %v3732_v7, %v519_v50  ;;  %v2755_v45 = vld [vmem:[#allocation10 + $0xd0] ss:$20 sps:$4 sm:$0xff]   ;;  %v2761_v49 = vld [vmem:[#allocation10 + $0xf8] ss:$20 sps:$4 sm:$0xff]  }
 0x18a   : > { %v496_v54 = vpop.xlane.xlu0 %495  ;;  %v498_v55 = vpop.xlane.xlu1 %497  ;;  %v2760_v48 = vld [vmem:[#allocation10 + $0xf0] ss:$20 sps:$4 sm:$0xff]  }
 0x18b   : > { %v520_v56 = vmul.f32 0.0078125, %v496_v54  ;;  %v550_v57 = vmul.f32 %v3791_v51, %v3791_v51  ;;  %v521_v58 = vmul.f32 0.0078125, %v498_v55  ;;  %v551_v61 = vmul.f32 %v3794_v52, %v3794_v52  ;;  %v2762_v50 = vld [vmem:[#allocation10 + $0x11c] ss:$20 sps:$4 sm:$0xff]   ;;  %v2766_v54 = vld [vmem:[#allocation10 + $0x118] ss:$20 sps:$4 sm:$0xff]  }
 0x18c   : > { %v2767_v55 = vld [vmem:[#allocation10 + $0x120] ss:$20 sps:$4 sm:$0xff]  }
 0x18d   : > { %v3801_v59 = vsub.f32 %v3735_v8, %v520_v56  ;;  %570 = vadd.xlane.f32.xlu1 %v549_v53  ;;  %572 = vadd.xlane.f32.xlu0 %v550_v57  ;;  %v3804_v60 = vsub.f32 %v3738_v9, %v521_v58  ;;  %v2736_v8 = vld [vmem:[#allocation10 + $0x50] ss:$20 sps:$4 sm:$0xff]   ;;  %v2737_v9 = vld [vmem:[#allocation10 + $0x58] ss:$20 sps:$4 sm:$0xff]   ;;  %v3358_v56 = vmov 0   ;;  %v760_v58 = vlaneseq }
 0x18e   : > { %v500_v62 = vpop.xlane.xlu0 %499  ;;  %v502_v63 = vpop.xlane.xlu1 %501  ;;  %998 = vmatpush1.bf16.msra.mxu0 %v2736_v8  ;;  %1111 = vmatpush1.bf16.msra.mxu1 %v2737_v9  ;;  %v2764_v53 = vld [vmem:[#allocation10 + $0x124] ss:$20 sps:$4 sm:$0xff]  }
 0x18f   : > { %v522_v0 = vmul.f32 0.0078125, %v500_v62  ;;  %v552_v1 = vmul.f32 %v3801_v59, %v3801_v59  ;;  %v523_v2 = vmul.f32 0.0078125, %v502_v63  ;;  %v553_v7 = vmul.f32 %v3804_v60, %v3804_v60  ;;  %999 = vmatprep.subr.bf16.mxu0 %v2738_v22  ;;  %1112 = vmatprep.subr.bf16.mxu1 %v2740_v23  ;;  %v3844_v57 = vld [vmem:[#allocation10 + $0x10] ss:$20 sps:$4 sm:$0xff]  }
 0x190   : > { %1025 = vmatprep.mubr.bf16.mxu0 %v3358_v56  ;;  %1138 = vmatprep.mubr.bf16.mxu1 %v3358_v56  ;;  %v1540_v62 = vld [vmem:[%s3704_s22] sm:$0xff]  ;;  %s3359_s22 = smov [#allocation13]  }
 0x191   : > { %v3811_v5 = vsub.f32 %v3743_v10, %v522_v0  ;;  %574 = vadd.xlane.f32.xlu1 %v551_v61  ;;  %576 = vadd.xlane.f32.xlu0 %v552_v1  ;;  %v3814_v6 = vsub.f32 %v3746_v11, %v523_v2  ;;  %v3848_v61 = vshrl.u32 %v760_v58, 7  ;;  %s3176_s15 = sshll.u32 %s3359_s22, 4  ;;  %s3177_s15 = int_to_ptr.vmem [resolvable:$false] %s3176_s15 }
 0x192   : > { %v504_v16 = vpop.xlane.xlu0 %503  ;;  %v506_v17 = vpop.xlane.xlu1 %505  ;;  %1000 = vmatpush1.bf16.msra.mxu0 %v2742_v26  ;;  %1113 = vmatpush1.bf16.msra.mxu1 %v2743_v27  ;;  %s3178_s7 = scalar_lea.vmem %s3177_s15, 2048  ;;  %p3179_p6 = scmp.lt.s32.totalorder %s4211_s8, %s3177_s15 }
 0x193   : > { %v524_v18 = vmul.f32 0.0078125, %v504_v16  ;;  %v554_v19 = vmul.f32 %v3811_v5, %v3811_v5  ;;  %v525_v10 = vmul.f32 0.0078125, %v506_v17  ;;  %v555_v21 = vmul.f32 %v3814_v6, %v3814_v6  ;;  %1001 = vmatprep.subr.bf16.mxu0 %v2744_v34  ;;  %1114 = vmatprep.subr.bf16.mxu1 %v2746_v37  ;;  %p3180_p8 = scmp.lt.s32.totalorder %s3178_s7, %s3172_s20 }
 0x194   : > { %v762_v63 = vsub.s32 0, %v3848_v61  ;;  %v766_v0 = vsub.s32 1, %v3848_v61  ;;  %v770_v1 = vsub.s32 2, %v3848_v61  ;;  %v778_v9 = vsub.s32 4, %v3848_v61 }
 0x195   : > { %v3821_v20 = vsub.f32 %v3753_v12, %v524_v18  ;;  %578 = vadd.xlane.f32.xlu1 %v553_v7  ;;  %580 = vadd.xlane.f32.xlu0 %v554_v19  ;;  %v3824_v11 = vsub.f32 %v3756_v13, %v525_v10  ;;  %v774_v7 = vsub.s32 3, %v3848_v61  ;;  %v1598_v17 = vsub.s32 5, %v3848_v61  ;;  %p3181_p10 = por %p3180_p8, %p3179_p6 }
 0x196   : > { %v508_v24 = vpop.xlane.xlu0 %507  ;;  %v510_v25 = vpop.xlane.xlu1 %509  ;;  %1002 = vmatpush1.bf16.msra.mxu0 %v2748_v38  ;;  %1115 = vmatpush1.bf16.msra.mxu1 %v2749_v39  ;;  %v1544_v2 = vrot.slane %v1540_v62, %v762_v63  ;;  %v1555_v3 = vrot.slane %v1540_v62, %v766_v0  ;;  %v1566_v4 = vrot.slane %v1540_v62, %v770_v1  ;;  %v1609_v19 = vsub.s32 6, %v3848_v61 }
 0x197   : > { %v526_v30 = vmul.f32 0.0078125, %v508_v24  ;;  %v556_v31 = vmul.f32 %v3821_v20, %v3821_v20  ;;  %v527_v12 = vmul.f32 0.0078125, %v510_v25  ;;  %v557_v33 = vmul.f32 %v3824_v11, %v3824_v11  ;;  %1116 = vmatprep.subr.bf16.mxu1 %v2752_v41  ;;  %p3182_p5 = pnand %p3181_p10, %p3175_p1 }
 0x198   : > { %v1577_v8 = vrot.slane %v1540_v62, %v774_v7  ;;  %v1588_v16 = vrot.slane %v1540_v62, %v778_v9  ;;  %v1599_v18 = vrot.slane %v1540_v62, %v1598_v17  ;;  %v1610_v10 = vrot.slane %v1540_v62, %v1609_v19 }
 0x199   : > { %v3831_v13 = vsub.f32 %v3761_v14, %v526_v30  ;;  %582 = vadd.xlane.f32.xlu1 %v555_v21  ;;  %584 = vadd.xlane.f32.xlu0 %v556_v31  ;;  %v3834_v32 = vsub.f32 %v3764_v15, %v527_v12  ;;  %v2750_v15 = vld [vmem:[#allocation10 + $0xcc] ss:$20 sps:$4 sm:$0xff]   ;;  %v1620_v21 = vsub.s32 7, %v3848_v61 }
 0x19a   : > { %1003 = vmatprep.subr.bf16.mxu0 %v2750_v15  ;;  %1117 = vmatpush1.bf16.msra.mxu1 %v2755_v45 }
 0x19b   : > { %v558_v40 = vmul.f32 %v3831_v13, %v3831_v13  ;;  %v559_v14 = vmul.f32 %v3834_v32, %v3834_v32  ;;  %1004 = vmatpush1.bf16.msra.mxu0 %v2754_v42  ;;  %1118 = vmatprep.subr.bf16.mxu1 %v2758_v47  ;;  %v1621_v23 = vrot.slane %v1540_v62, %v1620_v21 }
 0x19c   : > { %1005 = vmatprep.subr.bf16.mxu0 %v2756_v46 }
 0x19d   : > { %586 = vadd.xlane.f32.xlu1 %v557_v33  ;;  %588 = vadd.xlane.f32.xlu0 %v558_v40 }
 0x19e   : > { %1119 = vmatpush1.bf16.msra.mxu1 %v2761_v49 }
 0x19f   : > { %1006 = vmatpush1.bf16.msra.mxu0 %v2760_v48  ;;  %1120 = vmatprep.subr.bf16.mxu1 %v2764_v53 }
 0x1a0   : > { %1007 = vmatprep.subr.bf16.mxu0 %v2762_v50  ;;  %v3870_v50 = vld [vmem:[#allocation7] ss:$0 sm:$0xff] }
 0x1a1   : > { %590 = vadd.xlane.f32.xlu1 %v559_v14 }
 0x1a2   : > { %1121 = vmatpush1.bf16.msra.mxu1 %v2767_v55 }
 0x1a3   : > { %1008 = vmatpush1.bf16.msra.mxu0 %v2766_v54  ;;  %2561 = vmatprep.subr.bf16.mxu1 %v3844_v57 }
 0x1a4   : > { %2529 = vmatprep.subr.bf16.mxu0 %v3844_v57 }
 0x1b2   : > { %1550 = vbcast.lane.b32.xlu1 %v1544_v2, 264 }
 0x1b3   : > { %1546 = vbcast.lane.b32.xlu0 %v1544_v2, 256 }
 0x1b6   : > { %1557 = vbcast.lane.b32.xlu1 %v1555_v3, 256 }
 0x1b7   : > { %1568 = vbcast.lane.b32.xlu0 %v1566_v4, 256 }
 0x1ba   : > { %1561 = vbcast.lane.b32.xlu1 %v1555_v3, 264  ;;  %v3874_v3 = vld [vmem:[#allocation8] ss:$0 sm:$0xff] }
 0x1bb   : > { %1579 = vbcast.lane.b32.xlu0 %v1577_v8, 256 }
 0x1be   : > { %1572 = vbcast.lane.b32.xlu1 %v1566_v4, 264 }
 0x1bf   : > { %1590 = vbcast.lane.b32.xlu0 %v1588_v16, 256 }
 0x1c2   : > { %1583 = vbcast.lane.b32.xlu1 %v1577_v8, 264 }
 0x1c3   : > { %1601 = vbcast.lane.b32.xlu0 %v1599_v18, 256 }
 0x1c6   : > { %1594 = vbcast.lane.b32.xlu1 %v1588_v16, 264 }
 0x1c7   : > { %1612 = vbcast.lane.b32.xlu0 %v1610_v10, 256 }
 0x1ca   : > { %1605 = vbcast.lane.b32.xlu1 %v1599_v18, 264 }
 0x1cb   : > { %1623 = vbcast.lane.b32.xlu0 %v1621_v23, 256 }
 0x1ce   : > { %1616 = vbcast.lane.b32.xlu1 %v1610_v10, 264 }
 0x1d2   : > { %1627 = vbcast.lane.b32.xlu1 %v1621_v23, 264 }
 0x20e   : > { %v561_v22 = vpop.xlane.xlu0 %560 }
 0x20f   : > { %v592_v24 = vmul.f32 0.0078125, %v561_v22 }
 0x211   : > { %v608_v25 = vadd.f32 1e-05, %v592_v24 }
 0x212   : > { %v563_v26 = vpop.xlane.xlu1 %562  ;;  %v565_v27 = vpop.xlane.xlu0 %564 }
 0x213   : > { %2776 = vrsqrt.f32 %v608_v25  ;;  %v593_v30 = vmul.f32 0.0078125, %v563_v26  ;;  %v594_v31 = vmul.f32 0.0078125, %v565_v27  ;;  %v2769_v26 = vld [vmem:[#allocation10 + $0x38] ss:$20 sps:$4 sm:$0xff]  }
 0x215   : > { %v609_v12 = vadd.f32 1e-05, %v593_v30  ;;  %v610_v33 = vadd.f32 1e-05, %v594_v31 }
 0x216   : > { %v567_v34 = vpop.xlane.xlu1 %566  ;;  %v569_v37 = vpop.xlane.xlu0 %568 }
 0x217   : > { %2778 = vrsqrt.f32 %v609_v12  ;;  %v595_v38 = vmul.f32 0.0078125, %v567_v34  ;;  %v596_v40 = vmul.f32 0.0078125, %v569_v37  ;;  %v2770_v12 = vld [vmem:[#allocation10 + $0x60] ss:$20 sps:$4 sm:$0xff]  }
 0x218   : > { %2780 = vrsqrt.f32 %v610_v33 }
 0x219   : > { %v611_v39 = vadd.f32 1e-05, %v595_v38  ;;  %v612_v42 = vadd.f32 1e-05, %v596_v40 }
 0x21a   : > { %v571_v14 = vpop.xlane.xlu1 %570  ;;  %v573_v46 = vpop.xlane.xlu0 %572 }
 0x21b   : > { %2782 = vrsqrt.f32 %v611_v39  ;;  %v597_v15 = vmul.f32 0.0078125, %v571_v14  ;;  %v598_v54 = vmul.f32 0.0078125, %v573_v46 }
 0x21d   : > { %v2777_v41 = vpop.eup %2776  ;;  %v613_v45 = vadd.f32 1e-05, %v597_v15 }
 0x21e   : > { %v575_v47 = vpop.xlane.xlu1 %574  ;;  %v640_v48 = vmul.f32 %v2777_v41, %v3768_v28  ;;  %v614_v28 = vadd.f32 1e-05, %v598_v54  ;;  %v577_v17 = vpop.xlane.xlu0 %576  ;;  %v2771_v41 = vld [vmem:[#allocation10 + $0x88] ss:$20 sps:$4 sm:$0xff]  }
 0x21f   : > { %2784 = vrsqrt.f32 %v613_v45  ;;  %v599_v49 = vmul.f32 0.0078125, %v575_v47  ;;  %v600_v25 = vmul.f32 0.0078125, %v577_v17 }
 0x220   : > { %2786 = vrsqrt.f32 %v612_v42  ;;  %v663_v58 = vmul.f32 %v3870_v50, %v640_v48 }
 0x221   : > { %v2779_v53 = vpop.eup %2778  ;;  %v615_v2 = vadd.f32 1e-05, %v599_v49  ;;  %v616_v34 = vadd.f32 1e-05, %v600_v25 }
 0x222   : > { %v641_v55 = vmul.f32 %v2779_v53, %v3774_v35  ;;  %v2781_v62 = vpop.eup %2780  ;;  %v579_v4 = vpop.xlane.xlu1 %578  ;;  %v686_v18 = vadd.f32 %v3874_v3, %v663_v58  ;;  %v2772_v53 = vld [vmem:[#allocation10 + $0xb0] ss:$20 sps:$4 sm:$0xff]  }
 0x223   : > { %v642_v10 = vmul.f32 %v2781_v62, %v3770_v29  ;;  %2788 = vrsqrt.f32 %v615_v2  ;;  %v601_v21 = vmul.f32 0.0078125, %v579_v4  ;;  %v581_v37 = vpop.xlane.xlu0 %580 }
 0x224   : > { %v664_v8 = vmul.f32 %v3870_v50, %v641_v55  ;;  %2790 = vrsqrt.f32 %v614_v28 }
 0x225   : > { %v2783_v16 = vpop.eup %2782  ;;  %v665_v27 = vmul.f32 %v3870_v50, %v642_v10  ;;  %v617_v29 = vadd.f32 1e-05, %v601_v21  ;;  %v2774_v21 = vld [vmem:[#allocation10 + $0x100] ss:$20 sps:$4 sm:$0xff]  }
 0x226   : > { %v687_v19 = vadd.f32 %v3874_v3, %v664_v8  ;;  %v643_v35 = vmul.f32 %v2783_v16, %v3776_v36  ;;  %v583_v36 = vpop.xlane.xlu1 %582  ;;  %v2773_v16 = vld [vmem:[#allocation10 + $0xd8] ss:$20 sps:$4 sm:$0xff]  }
 0x227   : > { %v688_v38 = vadd.f32 %v3874_v3, %v665_v27  ;;  %2792 = vrsqrt.f32 %v617_v29  ;;  %v585_v54 = vpop.xlane.xlu0 %584 }
 0x228   : > { %v3881_v22 = vpack.c.bf16 %v687_v19, %v686_v18  ;;  %v666_v23 = vmul.f32 %v3870_v50, %v643_v35  ;;  %2794 = vrsqrt.f32 %v616_v34 }
 0x229   : > { %v2785_v24 = vpop.eup %2784 }
 0x22a   : > { %1026 = vmatmul.mubr.bf16.vlgmr.msra.gmra.mrb[0].mxu0 %v3881_v22  ;;  %1139 = vmatmul.mubr.bf16.vlgmr.msra.gmra.mrb[0].mxu1 %v3881_v22  ;;  %v2787_v30 = vpop.eup %2786  ;;  %v689_v31 = vadd.f32 %v3874_v3, %v666_v23  ;;  %v645_v33 = vmul.f32 %v2785_v24, %v3784_v44  ;;  %v602_v44 = vmul.f32 0.0078125, %v581_v37  ;;  %v587_v46 = vpop.xlane.xlu1 %586 }
 0x22b   : > { %2530 = vmatpush3.bf16.msra.mxu0 %v3844_v57  ;;  %2569 = vmatpush3.bf16.msra.mxu1 %v3844_v57  ;;  %v644_v39 = vmul.f32 %v2787_v30, %v3782_v43  ;;  %v603_v57 = vmul.f32 0.0078125, %v583_v36  ;;  %v605_v62 = vmul.f32 0.0078125, %v587_v46  ;;  %v589_v23 = vpop.xlane.xlu0 %588  ;;  %v2775_v36 = vld [vmem:[#allocation10 + $0x128] ss:$20 sps:$4 sm:$0xff]  }
 0x22c   : > { %1035 = vmatprep.mubr.bf16.mxu0 %v3358_v56  ;;  %1148 = vmatprep.mubr.bf16.mxu1 %v3358_v56  ;;  %v3895_v40 = vpack.c.bf16 %v689_v31, %v688_v38  ;;  %v668_v14 = vmul.f32 %v3870_v50, %v645_v33  ;;  %v618_v49 = vadd.f32 1e-05, %v602_v44  ;;  %v606_v29 = vmul.f32 0.0078125, %v589_v23 }
 0x22d   : > { %2531 = vmatprep.subr.bf16.mxu0 %v2769_v26  ;;  %2562 = vmatprep.subr.bf16.mxu1 %v2769_v26  ;;  %v2789_v15 = vpop.eup %2788  ;;  %v667_v43 = vmul.f32 %v3870_v50, %v644_v39  ;;  %v619_v45 = vadd.f32 1e-05, %v603_v57  ;;  %v621_v17 = vadd.f32 1e-05, %v605_v62 }
 0x22e   : > { %v2791_v42 = vpop.eup %2790  ;;  %v691_v47 = vadd.f32 %v3874_v3, %v668_v14  ;;  %v647_v48 = vmul.f32 %v2789_v15, %v3794_v52  ;;  %v604_v52 = vmul.f32 0.0078125, %v585_v54  ;;  %v591_v18 = vpop.xlane.xlu1 %590  ;;  %v622_v37 = vadd.f32 1e-05, %v606_v29 }
 0x22f   : > { %2532 = vmatpush3.bf16.msra.mxu0 %v2769_v26  ;;  %2570 = vmatpush3.bf16.msra.mxu1 %v2769_v26  ;;  %v690_v55 = vadd.f32 %v3874_v3, %v667_v43  ;;  %v646_v58 = vmul.f32 %v2791_v42, %v3791_v51  ;;  %2796 = vrsqrt.f32 %v619_v45  ;;  %v607_v26 = vmul.f32 0.0078125, %v591_v18 }
 0x230   : > { %2533 = vmatprep.subr.bf16.mxu0 %v2770_v12  ;;  %2563 = vmatprep.subr.bf16.mxu1 %v2770_v12  ;;  %v670_v4 = vmul.f32 %v3870_v50, %v647_v48  ;;  %2798 = vrsqrt.f32 %v618_v49  ;;  %v620_v35 = vadd.f32 1e-05, %v604_v52 }
 0x231   : > { %v3907_v2 = vpack.c.bf16 %v691_v47, %v690_v55  ;;  %v2793_v8 = vpop.eup %2792  ;;  %v669_v51 = vmul.f32 %v3870_v50, %v646_v58  ;;  %2800 = vrsqrt.f32 %v621_v17 }
 0x232   : > { %1036 = vmatmul.mubr.bf16.gmra.mrb[4].mxu0 %v3895_v40  ;;  %1149 = vmatmul.mubr.bf16.gmra.mrb[4].mxu1 %v3895_v40  ;;  %v2795_v28 = vpop.eup %2794  ;;  %v693_v19 = vadd.f32 %v3874_v3, %v670_v4  ;;  %v649_v10 = vmul.f32 %v2793_v8, %v3804_v60  ;;  %2802 = vrsqrt.f32 %v620_v35 }
 0x233   : > { %1045 = vmatprep.mubr.bf16.mxu0 %v3358_v56  ;;  %1158 = vmatprep.mubr.bf16.mxu1 %v3358_v56  ;;  %v692_v24 = vadd.f32 %v3874_v3, %v669_v51  ;;  %v648_v25 = vmul.f32 %v2795_v28, %v3801_v59 }
 0x234   : > { %2534 = vmatpush3.bf16.msra.mxu0 %v2770_v12  ;;  %2571 = vmatpush3.bf16.msra.mxu1 %v2770_v12  ;;  %v672_v30 = vmul.f32 %v3870_v50, %v649_v10  ;;  %v623_v12 = vadd.f32 1e-05, %v607_v26 }
 0x235   : > { %2535 = vmatprep.subr.bf16.mxu0 %v2771_v41  ;;  %2564 = vmatprep.subr.bf16.mxu1 %v2771_v41  ;;  %v3919_v27 = vpack.c.bf16 %v693_v19, %v692_v24  ;;  %v671_v59 = vmul.f32 %v3870_v50, %v648_v25 }
 0x236   : > { %v695_v33 = vadd.f32 %v3874_v3, %v672_v30  ;;  %2804 = vrsqrt.f32 %v623_v12 }
 0x237   : > { %v694_v38 = vadd.f32 %v3874_v3, %v671_v59  ;;  %2806 = vrsqrt.f32 %v622_v37 }
 0x238   : > { %2536 = vmatpush3.bf16.msra.mxu0 %v2771_v41  ;;  %2572 = vmatpush3.bf16.msra.mxu1 %v2771_v41 }
 0x239   : > { %2537 = vmatprep.subr.bf16.mxu0 %v2772_v53  ;;  %2565 = vmatprep.subr.bf16.mxu1 %v2772_v53  ;;  %v2797_v60 = vpop.eup %2796  ;;  %v706_v57 = vpack.c.bf16 %v695_v33, %v694_v38 }
 0x23a   : > { %1046 = vmatmul.mubr.bf16.gmra.mrb[8].mxu0 %v3907_v2  ;;  %1159 = vmatmul.mubr.bf16.gmra.mrb[8].mxu1 %v3907_v2  ;;  %v2799_v31 = vpop.eup %2798  ;;  %v651_v34 = vmul.f32 %v2797_v60, %v3814_v6 }
 0x23b   : > { %1055 = vmatprep.mubr.bf16.mxu0 %v3358_v56  ;;  %1168 = vmatprep.mubr.bf16.mxu1 %v3358_v56  ;;  %v650_v39 = vmul.f32 %v2799_v31, %v3811_v5  ;;  %v2801_v15 = vpop.eup %2800 }
 0x23c   : > { %2538 = vmatpush3.bf16.msra.mxu0 %v2772_v53  ;;  %2573 = vmatpush3.bf16.msra.mxu1 %v2772_v53  ;;  %v674_v14 = vmul.f32 %v3870_v50, %v651_v34  ;;  %v2803_v44 = vpop.eup %2802  ;;  %v653_v5 = vmul.f32 %v2801_v15, %v3824_v11 }
 0x23d   : > { %2539 = vmatprep.subr.bf16.mxu0 %v2773_v16  ;;  %2566 = vmatprep.subr.bf16.mxu1 %v2773_v16  ;;  %v673_v6 = vmul.f32 %v3870_v50, %v650_v39  ;;  %v652_v42 = vmul.f32 %v2803_v44, %v3821_v20 }
 0x23e   : > { %v697_v41 = vadd.f32 %v3874_v3, %v674_v14  ;;  %v676_v46 = vmul.f32 %v3870_v50, %v653_v5 }
 0x23f   : > { %v696_v43 = vadd.f32 %v3874_v3, %v673_v6  ;;  %v675_v48 = vmul.f32 %v3870_v50, %v652_v42 }
 0x240   : > { %2540 = vmatpush3.bf16.msra.mxu0 %v2773_v16  ;;  %2574 = vmatpush3.bf16.msra.mxu1 %v2773_v16  ;;  %v2805_v47 = vpop.eup %2804  ;;  %v699_v53 = vadd.f32 %v3874_v3, %v676_v46 }
 0x241   : > { %2541 = vmatprep.subr.bf16.mxu0 %v2774_v21  ;;  %2567 = vmatprep.subr.bf16.mxu1 %v2774_v21  ;;  %v707_v45 = vpack.c.bf16 %v697_v41, %v696_v43  ;;  %v2807_v49 = vpop.eup %2806  ;;  %v655_v11 = vmul.f32 %v2805_v47, %v3834_v32  ;;  %v698_v54 = vadd.f32 %v3874_v3, %v675_v48 }
 0x242   : > { %1056 = vmatmul.mubr.bf16.gmra.mrb[12].mxu0 %v3919_v27  ;;  %1169 = vmatmul.mubr.bf16.gmra.mrb[12].mxu1 %v3919_v27  ;;  %v654_v20 = vmul.f32 %v2807_v49, %v3831_v13  ;;  %v3957_v13 = vld [vmem:[#allocation11] sm:$0x1f] }
 0x243   : > { %1065 = vmatprep.mubr.bf16.mxu0 %v3358_v56  ;;  %1178 = vmatprep.mubr.bf16.mxu1 %v3358_v56  ;;  %v708_v55 = vpack.c.bf16 %v699_v53, %v698_v54  ;;  %v678_v58 = vmul.f32 %v3870_v50, %v655_v11 }
 0x244   : > { %2542 = vmatpush3.bf16.msra.mxu0 %v2774_v21  ;;  %2575 = vmatpush3.bf16.msra.mxu1 %v2774_v21  ;;  %v677_v62 = vmul.f32 %v3870_v50, %v654_v20  ;;  %v3967_v50 = vrot.slane %v3957_v13, %v770_v1 }
 0x245   : > { %2543 = vmatprep.subr.bf16.mxu0 %v2775_v36  ;;  %2568 = vmatprep.subr.bf16.mxu1 %v2775_v36  ;;  %v701_v4 = vadd.f32 %v3874_v3, %v678_v58 }
 0x246   : > { %v700_v8 = vadd.f32 %v3874_v3, %v677_v62  ;;  %v3972_v3 = vrot.slane %v3957_v13, %v766_v0 }
 0x248   : > { %2544 = vmatpush3.bf16.msra.mxu0 %v2775_v36  ;;  %2576 = vmatpush3.bf16.msra.mxu1 %v2775_v36  ;;  %v709_v32 = vpack.c.bf16 %v701_v4, %v700_v8 }
 0x24a   : > { %1066 = vmatmul.mubr.bf16.gmra.mrb[16].mxu0 %v706_v57  ;;  %1179 = vmatmul.mubr.bf16.gmra.mrb[16].mxu1 %v706_v57 }
 0x24b   : > { %1075 = vmatprep.mubr.bf16.mxu0 %v3358_v56  ;;  %1188 = vmatprep.mubr.bf16.mxu1 %v3358_v56 }
 0x252   : > { %1076 = vmatmul.mubr.bf16.gmra.mrb[20].mxu0 %v707_v45  ;;  %1189 = vmatmul.mubr.bf16.gmra.mrb[20].mxu1 %v707_v45 }
 0x253   : > { %1085 = vmatprep.mubr.bf16.mxu0 %v3358_v56  ;;  %1198 = vmatprep.mubr.bf16.mxu1 %v3358_v56 }
 0x25a   : > { %1086 = vmatmul.mubr.bf16.gmra.mrb[24].mxu0 %v708_v55  ;;  %1199 = vmatmul.mubr.bf16.gmra.mrb[24].mxu1 %v708_v55 }
 0x25b   : > { %1095 = vmatprep.mubr.bf16.mxu0 %v3358_v56  ;;  %1208 = vmatprep.mubr.bf16.mxu1 %v3358_v56  ;;  %v3962_v56 = vrot.slane %v3957_v13, %v762_v63 }
 0x262   : > { %1096 = vmatmul.mubr.bf16.gmra.mrb[28].mxu0 %v709_v32  ;;  %1209 = vmatmul.mubr.bf16.gmra.mrb[28].mxu1 %v709_v32 }
 0x263   : > { %2545 = vmatprep.mubr.bf16.mxu0 %v3881_v22  ;;  %2553 = vmatprep.mubr.bf16.mxu1 %v706_v57  ;;  %v3977_v22 = vrot.slane %v3957_v13, %v774_v7 }
 0x26a   : > { %2546 = vmatmul.mubr.bf16.vlgmr.msra.gmra.mrb[32].mxu0 %v3895_v40  ;;  %2554 = vmatmul.mubr.bf16.vlgmr.msra.gmra.mrb[32].mxu1 %v707_v45 }
 0x26b   : > { %2549 = vmatprep.mubr.bf16.mxu0 %v3907_v2  ;;  %2557 = vmatprep.mubr.bf16.mxu1 %v708_v55 }
 0x272   : > { %2550 = vmatmul.mubr.bf16.gmra.mrb[36].mxu0 %v3919_v27  ;;  %2558 = vmatmul.mubr.bf16.gmra.mrb[36].mxu1 %v709_v32 }
 0x2fd   : > { %v1027_v40 = vpop.f32.mrb[0].mxu0  ;;  %v1140_v2 = vpop.f32.mrb[0].mxu1 }
 0x2fe   : > { %v3980_v63 = vadd.f32 %v1027_v40, %v3962_v56  ;;  %v1141_v52 = vadd.f32 %v1140_v2, %v3967_v50  ;;  %v1029_v16 = vpop.f32.mrb[1].mxu0  ;;  %v1142_v1 = vpop.f32.mrb[1].mxu1 }
 0x2ff   : > { %v3984_v51 = vadd.f32 %v1029_v16, %v3972_v3  ;;  %v1143_v0 = vadd.f32 %v1142_v1, %v3977_v22  ;;  %v1031_v28 = vpop.f32.mrb[2].mxu0  ;;  %v1144_v17 = vpop.f32.mrb[2].mxu1 }
 0x300   : > { %v2286_v18 = vmul.f32 -1.442695, %v1141_v52  ;;  %v3988_v7 = vadd.f32 %v1031_v28, %v3962_v56  ;;  %v1145_v19 = vadd.f32 %v1144_v17, %v3967_v50  ;;  %v1033_v10 = vpop.f32.mrb[3].mxu0  ;;  %v1146_v35 = vpop.f32.mrb[3].mxu1 }
 0x301   : > { %v2287_v21 = vmul.f32 -1.442695, %v1143_v0  ;;  %v3992_v23 = vadd.f32 %v1033_v10, %v3972_v3  ;;  %v1147_v24 = vadd.f32 %v1146_v35, %v3977_v22 }
 0x302   : > { %2808 = vpow2.f32 %v2286_v18  ;;  %v2288_v25 = vmul.f32 -1.442695, %v1145_v19 }
 0x303   : > { %2810 = vpow2.f32 %v2287_v21  ;;  %v2289_v26 = vmul.f32 -1.442695, %v1147_v24  ;;  %v1551_v21 = vpop.permute.xlu1 %1550 }
 0x304   : > { %2812 = vpow2.f32 %v2288_v25 }
 0x305   : > { %2814 = vpow2.f32 %v2289_v26  ;;  %v1037_v27 = vpop.f32.mrb[4].mxu0  ;;  %v1150_v30 = vpop.f32.mrb[4].mxu1 }
 0x306   : > { %v3996_v60 = vadd.f32 %v1037_v27, %v3962_v56  ;;  %v1151_v29 = vadd.f32 %v1150_v30, %v3967_v50  ;;  %v1039_v36 = vpop.f32.mrb[5].mxu0  ;;  %v1152_v59 = vpop.f32.mrb[5].mxu1 }
 0x307   : > { %v4000_v31 = vadd.f32 %v1039_v36, %v3972_v3  ;;  %v1153_v12 = vadd.f32 %v1152_v59, %v3977_v22  ;;  %v1041_v33 = vpop.f32.mrb[6].mxu0  ;;  %v1154_v34 = vpop.f32.mrb[6].mxu1 }
 0x308   : > { %v2290_v37 = vmul.f32 -1.442695, %v1151_v29  ;;  %v4004_v38 = vadd.f32 %v1041_v33, %v3962_v56  ;;  %v1155_v39 = vadd.f32 %v1154_v34, %v3967_v50  ;;  %v1043_v57 = vpop.f32.mrb[7].mxu0  ;;  %v1156_v14 = vpop.f32.mrb[7].mxu1 }
 0x309   : > { %v2291_v15 = vmul.f32 -1.442695, %v1153_v12  ;;  %v4008_v6 = vadd.f32 %v1043_v57, %v3972_v3  ;;  %v1157_v44 = vadd.f32 %v1156_v14, %v3977_v22 }
 0x30a   : > { %2816 = vpow2.f32 %v2290_v37  ;;  %v2292_v41 = vmul.f32 -1.442695, %v1155_v39 }
 0x30b   : > { %2818 = vpow2.f32 %v2291_v15  ;;  %v2293_v5 = vmul.f32 -1.442695, %v1157_v44 }
 0x30c   : > { %v2809_v43 = vpop.eup %2808  ;;  %2820 = vpow2.f32 %v2292_v41 }
 0x30d   : > { %v2811_v42 = vpop.eup %2810  ;;  %v1412_v45 = vadd.f32 1.0, %v2809_v43  ;;  %2822 = vpow2.f32 %v2293_v5  ;;  %v1047_v46 = vpop.f32.mrb[8].mxu0 }
 0x30e   : > { %v1160_v47 = vpop.f32.mrb[8].mxu1  ;;  %v2813_v48 = vpop.eup %2812  ;;  %v1413_v49 = vadd.f32 1.0, %v2811_v42  ;;  %v4012_v53 = vadd.f32 %v1047_v46, %v3962_v56 }
 0x30f   : > { %v1161_v11 = vadd.f32 %v1160_v47, %v3967_v50  ;;  %v1049_v54 = vpop.f32.mrb[9].mxu0  ;;  %v1162_v20 = vpop.f32.mrb[9].mxu1  ;;  %2824 = vrcp.f32 %v1412_v45  ;;  %v1414_v58 = vadd.f32 1.0, %v2813_v48 }
 0x310   : > { %v2815_v55 = vpop.eup %2814  ;;  %v4016_v62 = vadd.f32 %v1049_v54, %v3972_v3  ;;  %v1163_v4 = vadd.f32 %v1162_v20, %v3977_v22  ;;  %v1051_v8 = vpop.f32.mrb[10].mxu0  ;;  %2826 = vrcp.f32 %v1413_v49 }
 0x311   : > { %v1164_v32 = vpop.f32.mrb[10].mxu1  ;;  %v1415_v40 = vadd.f32 1.0, %v2815_v55  ;;  %v2294_v2 = vmul.f32 -1.442695, %v1161_v11  ;;  %v4020_v52 = vadd.f32 %v1051_v8, %v3962_v56  ;;  %v1053_v16 = vpop.f32.mrb[11].mxu0  ;;  %2828 = vrcp.f32 %v1414_v58 }
 0x312   : > { %v1166_v1 = vpop.f32.mrb[11].mxu1  ;;  %v2295_v0 = vmul.f32 -1.442695, %v1163_v4  ;;  %v1165_v28 = vadd.f32 %v1164_v32, %v3967_v50  ;;  %v4024_v17 = vadd.f32 %v1053_v16, %v3972_v3  ;;  %v1547_v20 = vpop.permute.xlu0 %1546 }
 0x313   : > { %2830 = vrcp.f32 %v1415_v40  ;;  %v1167_v18 = vadd.f32 %v1166_v1, %v3977_v22 }
 0x314   : > { %2832 = vpow2.f32 %v2294_v2  ;;  %v2296_v19 = vmul.f32 -1.442695, %v1165_v28  ;;  %v2817_v10 = vpop.eup %2816  ;;  %v4047_v2 = vpop.permute.xlu1 %1557 }
 0x315   : > { %2834 = vpow2.f32 %v2295_v0  ;;  %v2297_v35 = vmul.f32 -1.442695, %v1167_v18  ;;  %v2819_v24 = vpop.eup %2818  ;;  %v1416_v25 = vadd.f32 1.0, %v2817_v10  ;;  %v1057_v26 = vpop.f32.mrb[12].mxu0 }
 0x316   : > { %2836 = vpow2.f32 %v2296_v19  ;;  %v1170_v27 = vpop.f32.mrb[12].mxu1  ;;  %v2821_v30 = vpop.eup %2820  ;;  %v1417_v29 = vadd.f32 1.0, %v2819_v24  ;;  %v4028_v36 = vadd.f32 %v1057_v26, %v3962_v56 }
 0x317   : > { %2838 = vpow2.f32 %v2297_v35  ;;  %v1171_v59 = vadd.f32 %v1170_v27, %v3967_v50  ;;  %v1059_v12 = vpop.f32.mrb[13].mxu0  ;;  %v1172_v33 = vpop.f32.mrb[13].mxu1  ;;  %v1418_v37 = vadd.f32 1.0, %v2821_v30 }
 0x318   : > { %v2823_v34 = vpop.eup %2822  ;;  %2840 = vrcp.f32 %v1416_v25  ;;  %v4032_v39 = vadd.f32 %v1059_v12, %v3972_v3  ;;  %v1173_v57 = vadd.f32 %v1172_v33, %v3977_v22  ;;  %v1061_v14 = vpop.f32.mrb[14].mxu0 }
 0x319   : > { %v1174_v15 = vpop.f32.mrb[14].mxu1  ;;  %2842 = vrcp.f32 %v1417_v29  ;;  %v1419_v44 = vadd.f32 1.0, %v2823_v34  ;;  %v2298_v41 = vmul.f32 -1.442695, %v1171_v59  ;;  %v4036_v5 = vadd.f32 %v1061_v14, %v3962_v56  ;;  %v1063_v43 = vpop.f32.mrb[15].mxu0 }
 0x31a   : > { %v1176_v42 = vpop.f32.mrb[15].mxu1  ;;  %v2825_v45 = vpop.eup %2824  ;;  %2844 = vrcp.f32 %v1418_v37  ;;  %v2299_v46 = vmul.f32 -1.442695, %v1173_v57  ;;  %v1175_v47 = vadd.f32 %v1174_v15, %v3967_v50  ;;  %v4040_v48 = vadd.f32 %v1063_v43, %v3972_v3 }
 0x31b   : > { %v2827_v49 = vpop.eup %2826  ;;  %2846 = vrcp.f32 %v1419_v44  ;;  %v1177_v11 = vadd.f32 %v1176_v42, %v3977_v22  ;;  %v1508_v54 = vmul.f32 %v2825_v45, %v3980_v63 }
 0x31c   : > { %v2829_v55 = vpop.eup %2828  ;;  %2848 = vpow2.f32 %v2298_v41  ;;  %v2300_v58 = vmul.f32 -1.442695, %v1175_v47  ;;  %v1509_v4 = vmul.f32 %v2827_v49, %v3984_v51 }
 0x31d   : > { %v2831_v8 = vpop.eup %2830  ;;  %2850 = vpow2.f32 %v2299_v46  ;;  %v2301_v32 = vmul.f32 -1.442695, %v1177_v11  ;;  %v1510_v40 = vmul.f32 %v2829_v55, %v3988_v7  ;;  %v1629_v1 = vmul.f32 %v1547_v20, %v1508_v54  ;;  %v1067_v28 = vpop.f32.mrb[16].mxu0 }
 0x31e   : > { %v2833_v16 = vpop.eup %2832  ;;  %2852 = vpow2.f32 %v2300_v58  ;;  %v1630_v0 = vmul.f32 %v1547_v20, %v1509_v4  ;;  %v1511_v63 = vmul.f32 %v2831_v8, %v3992_v23  ;;  %v1180_v18 = vpop.f32.mrb[16].mxu1  ;;  %v4051_v35 = vadd.f32 %v1067_v28, %v3962_v56 }
 0x31f   : > { %v2835_v19 = vpop.eup %2834  ;;  %v1420_v10 = vadd.f32 1.0, %v2833_v16  ;;  %2854 = vpow2.f32 %v2301_v32  ;;  %v1631_v51 = vmul.f32 %v1551_v21, %v1510_v40  ;;  %v1069_v24 = vpop.f32.mrb[17].mxu0  ;;  %v1181_v30 = vadd.f32 %v1180_v18, %v3967_v50 }
 0x320   : > { %v1182_v25 = vpop.f32.mrb[17].mxu1  ;;  %v2837_v7 = vpop.eup %2836  ;;  %v1421_v26 = vadd.f32 1.0, %v2835_v19  ;;  %v1632_v27 = vmul.f32 %v1551_v21, %v1511_v63  ;;  %v4055_v29 = vadd.f32 %v1069_v24, %v3972_v3 }
 0x321   : > { %v1071_v23 = vpop.f32.mrb[18].mxu0  ;;  %v1184_v59 = vpop.f32.mrb[18].mxu1  ;;  %2856 = vrcp.f32 %v1420_v10  ;;  %v1422_v33 = vadd.f32 1.0, %v2837_v7  ;;  %v2422_v34 = vpack.c.bf16 %v1631_v51, %v1629_v1  ;;  %v1183_v37 = vadd.f32 %v1182_v25, %v3977_v22 }
 0x322   : > { %v2839_v12 = vpop.eup %2838  ;;  %v1073_v57 = vpop.f32.mrb[19].mxu0  ;;  %2858 = vrcp.f32 %v1421_v26  ;;  %v2462_v44 = vpack.c.bf16 %v1632_v27, %v1630_v0  ;;  %v2302_v41 = vmul.f32 -1.442695, %v1181_v30  ;;  %v4064_v45 = vadd.f32 %v1071_v23, %v3962_v56 }
 0x323   : > { %v1186_v14 = vpop.f32.mrb[19].mxu1  ;;  %v2841_v15 = vpop.eup %2840  ;;  %v1423_v21 = vadd.f32 1.0, %v2839_v12  ;;  %2860 = vrcp.f32 %v1422_v33  ;;  %2423 = vst [vmem:[%s4060_s19] sm:$0xff] %v2422_v34   ;;  %v2303_v42 = vmul.f32 -1.442695, %v1183_v37  ;;  %v1185_v46 = vadd.f32 %v1184_v59, %v3967_v50 }
 0x324   : > { %v2843_v43 = vpop.eup %2842  ;;  %2463 = vst [vmem:[%s4069_s24] sm:$0xff] %v2462_v44   ;;  %v4073_v49 = vadd.f32 %v1073_v57, %v3972_v3  ;;  %v1187_v11 = vadd.f32 %v1186_v14, %v3977_v22  ;;  %v1512_v54 = vmul.f32 %v2841_v15, %v3996_v60  ;;  %v1562_v20 = vpop.permute.xlu1 %1561 }
 0x325   : > { %v2845_v47 = vpop.eup %2844  ;;  %2862 = vrcp.f32 %v1423_v21  ;;  %v2304_v58 = vmul.f32 -1.442695, %v1185_v46  ;;  %v1513_v4 = vmul.f32 %v2843_v43, %v4000_v31  ;;  %v1077_v0 = vpop.f32.mrb[20].mxu0 }
 0x326   : > { %v2847_v55 = vpop.eup %2846  ;;  %2864 = vpow2.f32 %v2302_v41  ;;  %v1514_v8 = vmul.f32 %v2845_v47, %v4004_v38  ;;  %v2305_v40 = vmul.f32 -1.442695, %v1187_v11  ;;  %v1633_v16 = vmul.f32 %v4047_v2, %v1512_v54  ;;  %v1190_v63 = vpop.f32.mrb[20].mxu1 }
 0x327   : > { %v2849_v32 = vpop.eup %2848  ;;  %2866 = vpow2.f32 %v2303_v42  ;;  %v1515_v1 = vmul.f32 %v2847_v55, %v4008_v6  ;;  %v1634_v60 = vmul.f32 %v4047_v2, %v1513_v4  ;;  %v1079_v10 = vpop.f32.mrb[21].mxu0  ;;  %v4083_v25 = vadd.f32 %v1077_v0, %v3962_v56 }
 0x328   : > { %v2851_v28 = vpop.eup %2850  ;;  %v1424_v18 = vadd.f32 1.0, %v2849_v32  ;;  %2868 = vpow2.f32 %v2304_v58  ;;  %v1635_v19 = vmul.f32 %v1562_v20, %v1514_v8  ;;  %v1192_v51 = vpop.f32.mrb[21].mxu1  ;;  %v1191_v2 = vadd.f32 %v1190_v63, %v3967_v50 }
 0x329   : > { %v2853_v31 = vpop.eup %2852  ;;  %v1425_v24 = vadd.f32 1.0, %v2851_v28  ;;  %2870 = vpow2.f32 %v2305_v40  ;;  %v1636_v38 = vmul.f32 %v1562_v20, %v1515_v1  ;;  %v1081_v7 = vpop.f32.mrb[22].mxu0  ;;  %v4087_v34 = vadd.f32 %v1079_v10, %v3972_v3 }
 0x32a   : > { %v1194_v6 = vpop.f32.mrb[22].mxu1  ;;  %v2855_v26 = vpop.eup %2854  ;;  %2872 = vrcp.f32 %v1424_v18  ;;  %v1426_v27 = vadd.f32 1.0, %v2853_v31  ;;  %v2427_v30 = vpack.c.bf16 %v1635_v19, %v1633_v16  ;;  %v2306_v57 = vmul.f32 -1.442695, %v1191_v2 }
 0x32b   : > { %v1083_v23 = vpop.f32.mrb[23].mxu0  ;;  %v1196_v59 = vpop.f32.mrb[23].mxu1  ;;  %2874 = vrcp.f32 %v1425_v24  ;;  %v1427_v12 = vadd.f32 1.0, %v2855_v26  ;;  %v2467_v33 = vpack.c.bf16 %v1636_v38, %v1634_v60  ;;  %v1193_v14 = vadd.f32 %v1192_v51, %v3977_v22 }
 0x32c   : > { %v2857_v37 = vpop.eup %2856  ;;  %2876 = vrcp.f32 %v1426_v27  ;;  %2499 = vst [vmem:[%s4060_s19 + $0x8] sm:$0xff] %v2427_v30   ;;  %v4092_v15 = vadd.f32 %v1081_v7, %v3962_v56  ;;  %v1195_v44 = vadd.f32 %v1194_v6, %v3967_v50  ;;  %v4097_v41 = vadd.f32 %v1083_v23, %v3972_v3  ;;  %v1569_v42 = vpop.permute.xlu0 %1568 }
 0x32d   : > { %v2859_v21 = vpop.eup %2858  ;;  %2878 = vrcp.f32 %v1427_v12  ;;  %2506 = vst [vmem:[%s4069_s24 + $0x8] sm:$0xff] %v2467_v33   ;;  %v1197_v43 = vadd.f32 %v1196_v59, %v3977_v22  ;;  %v2307_v47 = vmul.f32 -1.442695, %v1193_v14  ;;  %v1516_v11 = vmul.f32 %v2857_v37, %v4012_v53  ;;  %v1573_v20 = vpop.permute.xlu1 %1572 }
 0x32e   : > { %v2861_v46 = vpop.eup %2860  ;;  %2880 = vpow2.f32 %v2306_v57  ;;  %v1517_v54 = vmul.f32 %v2859_v21, %v4016_v62  ;;  %v4105_v58 = vrot.slane %v3957_v13, %v778_v9  ;;  %v2308_v4 = vmul.f32 -1.442695, %v1195_v44  ;;  %v1087_v40 = vpop.f32.mrb[24].mxu0 }
 0x32f   : > { %v2863_v55 = vpop.eup %2862  ;;  %v2309_v8 = vmul.f32 -1.442695, %v1197_v43  ;;  %v1518_v32 = vmul.f32 %v2861_v46, %v4020_v52  ;;  %v1200_v16 = vpop.f32.mrb[24].mxu1  ;;  %2882 = vpow2.f32 %v2307_v47  ;;  %v1637_v0 = vmul.f32 %v1569_v42, %v1516_v11 }
 0x330   : > { %v2865_v1 = vpop.eup %2864  ;;  %v1638_v63 = vmul.f32 %v1569_v42, %v1517_v54  ;;  %v1519_v53 = vmul.f32 %v2863_v55, %v4024_v17  ;;  %v1089_v62 = vpop.f32.mrb[25].mxu0  ;;  %2884 = vpow2.f32 %v2308_v4  ;;  %v4110_v9 = vadd.f32 %v1087_v40, %v3962_v56 }
 0x331   : > { %v1202_v28 = vpop.f32.mrb[25].mxu1  ;;  %v2867_v18 = vpop.eup %2866  ;;  %v1428_v60 = vadd.f32 1.0, %v2865_v1  ;;  %v1639_v61 = vmul.f32 %v1573_v20, %v1518_v32  ;;  %2886 = vpow2.f32 %v2309_v8  ;;  %v1201_v31 = vadd.f32 %v1200_v16, %v3967_v50 }
 0x332   : > { %v1091_v13 = vpop.f32.mrb[26].mxu0  ;;  %v1204_v19 = vpop.f32.mrb[26].mxu1  ;;  %v1429_v10 = vadd.f32 1.0, %v2867_v18  ;;  %v1640_v51 = vmul.f32 %v1573_v20, %v1519_v53  ;;  %v4114_v26 = vadd.f32 %v1089_v62, %v3972_v3  ;;  %v1203_v12 = vadd.f32 %v1202_v28, %v3977_v22 }
 0x333   : > { %v2869_v52 = vpop.eup %2868  ;;  %v1093_v24 = vpop.f32.mrb[27].mxu0  ;;  %2888 = vrcp.f32 %v1428_v60  ;;  %v2432_v6 = vpack.c.bf16 %v1639_v61, %v1637_v0  ;;  %v2310_v23 = vmul.f32 -1.442695, %v1201_v31  ;;  %v4119_v33 = vadd.f32 %v1091_v13, %v3962_v56 }
 0x334   : > { %v1206_v17 = vpop.f32.mrb[27].mxu1  ;;  %v2871_v38 = vpop.eup %2870  ;;  %v1430_v7 = vadd.f32 1.0, %v2869_v52  ;;  %2890 = vrcp.f32 %v1429_v10  ;;  %v2472_v2 = vpack.c.bf16 %v1640_v51, %v1638_v63  ;;  %v1205_v37 = vadd.f32 %v1204_v19, %v3967_v50 }
 0x335   : > { %v2873_v27 = vpop.eup %2872  ;;  %v1431_v30 = vadd.f32 1.0, %v2871_v38  ;;  %2500 = vst [vmem:[%s4060_s19 + $0x10] sm:$0xff] %v2432_v6   ;;  %v1580_v57 = vpop.permute.xlu0 %1579  ;;  %v4124_v21 = vadd.f32 %v1093_v24, %v3972_v3  ;;  %v1207_v44 = vadd.f32 %v1206_v17, %v3977_v22  ;;  %v2311_v47 = vmul.f32 -1.442695, %v1203_v12 }
 0x336   : > { %v2875_v59 = vpop.eup %2874  ;;  %2892 = vrcp.f32 %v1430_v7  ;;  %2507 = vst [vmem:[%s4069_s24 + $0x10] sm:$0xff] %v2472_v2   ;;  %v1520_v43 = vmul.f32 %v2873_v27, %v4028_v36  ;;  %v1584_v42 = vpop.permute.xlu1 %1583  ;;  %v2312_v11 = vmul.f32 -1.442695, %v1205_v37 }
 0x337   : > { %v2877_v14 = vpop.eup %2876  ;;  %2894 = vrcp.f32 %v1431_v30  ;;  %v1521_v54 = vmul.f32 %v2875_v59, %v4032_v39  ;;  %v1097_v20 = vpop.f32.mrb[28].mxu0  ;;  %v2313_v8 = vmul.f32 -1.442695, %v1207_v44 }
 0x338   : > { %v2879_v46 = vpop.eup %2878  ;;  %2896 = vpow2.f32 %v2310_v23  ;;  %v1210_v55 = vpop.f32.mrb[28].mxu1  ;;  %v1641_v32 = vmul.f32 %v1580_v57, %v1520_v43  ;;  %v1522_v40 = vmul.f32 %v2877_v14, %v4036_v5  ;;  %v4132_v53 = vadd.f32 %v1097_v20, %v3962_v56 }
 0x339   : > { %v2881_v4 = vpop.eup %2880  ;;  %v1523_v16 = vmul.f32 %v2879_v46, %v4040_v48  ;;  %v1099_v1 = vpop.f32.mrb[29].mxu0  ;;  %2898 = vpow2.f32 %v2311_v47  ;;  %v1642_v36 = vmul.f32 %v1580_v57, %v1521_v54  ;;  %v1211_v61 = vadd.f32 %v1210_v55, %v3967_v50 }
 0x33a   : > { %v1212_v0 = vpop.f32.mrb[29].mxu1  ;;  %v1432_v63 = vadd.f32 1.0, %v2881_v4  ;;  %v1101_v62 = vpop.f32.mrb[30].mxu0  ;;  %2900 = vpow2.f32 %v2312_v11  ;;  %v1643_v18 = vmul.f32 %v1584_v42, %v1522_v40  ;;  %v4136_v52 = vadd.f32 %v1099_v1, %v3972_v3 }
 0x33b   : > { %v1214_v28 = vpop.f32.mrb[30].mxu1  ;;  %v2883_v39 = vpop.eup %2882  ;;  %v1644_v60 = vmul.f32 %v1584_v42, %v1523_v16  ;;  %v1213_v10 = vadd.f32 %v1212_v0, %v3977_v22  ;;  %v2314_v6 = vmul.f32 -1.442695, %v1211_v61  ;;  %v4142_v2 = vadd.f32 %v1101_v62, %v3962_v56 }
 0x33c   : > { %v1103_v13 = vpop.f32.mrb[31].mxu0  ;;  %v1216_v5 = vpop.f32.mrb[31].mxu1  ;;  %2902 = vrcp.f32 %v1432_v63  ;;  %v1433_v48 = vadd.f32 1.0, %v2883_v39  ;;  %v2437_v24 = vpack.c.bf16 %v1643_v18, %v1641_v32  ;;  %v1215_v23 = vadd.f32 %v1214_v28, %v3967_v50 }
 0x33d   : > { %v2885_v19 = vpop.eup %2884  ;;  %2904 = vpow2.f32 %v2313_v8  ;;  %v2477_v17 = vpack.c.bf16 %v1644_v60, %v1642_v36  ;;  %v2315_v27 = vmul.f32 -1.442695, %v1213_v10  ;;  %v4146_v59 = vadd.f32 %v1103_v13, %v3972_v3  ;;  %v1591_v12 = vpop.permute.xlu0 %1590 }
 0x33e   : > { %v2887_v51 = vpop.eup %2886  ;;  %v1434_v31 = vadd.f32 1.0, %v2885_v19  ;;  %2906 = vrcp.f32 %v1433_v48  ;;  %2501 = vst [vmem:[%s4060_s19 + $0x18] sm:$0xff] %v2437_v24   ;;  %v1595_v37 = vpop.permute.xlu1 %1594  ;;  %v1217_v14 = vadd.f32 %v1216_v5, %v3977_v22  ;;  %v2316_v56 = vmul.f32 -1.442695, %v1215_v23 }
 0x33f   : > { %v2889_v38 = vpop.eup %2888  ;;  %v1435_v7 = vadd.f32 1.0, %v2887_v51  ;;  %2508 = vst [vmem:[%s4069_s24 + $0x18] sm:$0xff] %v2477_v17   ;;  %v2547_v42 = vpop.f32.mrb[32].mxu0 }
 0x340   : > { %v2891_v30 = vpop.eup %2890  ;;  %2908 = vrcp.f32 %v1434_v31  ;;  %v1524_v44 = vmul.f32 %v2889_v38, %v4051_v35  ;;  %v2555_v46 = vpop.f32.mrb[32].mxu1  ;;  %v1262_v3 = vadd.f32 %v2547_v42, %v4105_v58  ;;  %v2317_v55 = vmul.f32 -1.442695, %v1217_v14 }
 0x341   : > { %v2893_v57 = vpop.eup %2892  ;;  %2910 = vrcp.f32 %v1435_v7  ;;  %v1525_v43 = vmul.f32 %v2891_v30, %v4055_v29  ;;  %v1253_v11 = vpop.f32.mrb[33].mxu0  ;;  %v1294_v63 = vadd.f32 %v2555_v46, %v4105_v58 }
 0x342   : > { %v2895_v47 = vpop.eup %2894  ;;  %2912 = vpow2.f32 %v2314_v6  ;;  %v1526_v50 = vmul.f32 %v2893_v57, %v4064_v45  ;;  %v1285_v54 = vpop.f32.mrb[33].mxu1  ;;  %v1645_v4 = vmul.f32 %v1591_v12, %v1524_v44  ;;  %v2352_v45 = vmul.f32 -1.442695, %v1262_v3 }
 0x343   : > { %v2897_v20 = vpop.eup %2896  ;;  %2914 = vpow2.f32 %v2315_v27  ;;  %v1646_v22 = vmul.f32 %v1591_v12, %v1525_v43  ;;  %v2548_v8 = vpop.f32.mrb[34].mxu0  ;;  %v1527_v29 = vmul.f32 %v2895_v47, %v4073_v49  ;;  %v1254_v36 = vadd.f32 %v1253_v11, %v4105_v58 }
 0x344   : > { %v2556_v35 = vpop.f32.mrb[34].mxu1  ;;  %v1436_v32 = vadd.f32 1.0, %v2897_v20  ;;  %2916 = vpow2.f32 %v2316_v56  ;;  %v1647_v40 = vmul.f32 %v1595_v37, %v1526_v50  ;;  %v1256_v16 = vpop.f32.mrb[35].mxu0  ;;  %v2360_v49 = vmul.f32 -1.442695, %v1294_v63 }
 0x345   : > { %v1288_v1 = vpop.f32.mrb[35].mxu1  ;;  %v2899_v0 = vpop.eup %2898  ;;  %2918 = vpow2.f32 %v2317_v55  ;;  %v1648_v39 = vmul.f32 %v1595_v37, %v1527_v29  ;;  %v2350_v13 = vmul.f32 -1.442695, %v1254_v36  ;;  %v1286_v48 = vadd.f32 %v1285_v54, %v4105_v58 }
 0x346   : > { %v2901_v62 = vpop.eup %2900  ;;  %2920 = vrcp.f32 %v1436_v32  ;;  %v1437_v28 = vadd.f32 1.0, %v2899_v0  ;;  %v2442_v18 = vpack.c.bf16 %v1647_v40, %v1645_v4  ;;  %v1265_v10 = vadd.f32 %v2548_v8, %v4105_v58  ;;  %v1602_v51 = vpop.permute.xlu0 %1601 }
 0x347   : > { %v2903_v60 = vpop.eup %2902  ;;  %v1438_v61 = vadd.f32 1.0, %v2901_v62  ;;  %2922 = vpow2.f32 %v2352_v45  ;;  %v2482_v19 = vpack.c.bf16 %v1648_v39, %v1646_v22  ;;  %v1606_v31 = vpop.permute.xlu1 %1605  ;;  %v1297_v38 = vadd.f32 %v2556_v35, %v4105_v58 }
 0x348   : > { %v2905_v5 = vpop.eup %2904  ;;  %2924 = vrcp.f32 %v1437_v28  ;;  %2502 = vst [vmem:[%s4060_s19 + $0x20] sm:$0xff] %v2442_v18   ;;  %v1257_v7 = vadd.f32 %v1256_v16, %v4105_v58  ;;  %v2551_v6 = vpop.f32.mrb[36].mxu0  ;;  %v2358_v23 = vmul.f32 -1.442695, %v1286_v48  ;;  %v2353_v12 = vmul.f32 -1.442695, %v1265_v10 }
 0x349   : > { %v2907_v24 = vpop.eup %2906  ;;  %2926 = vrcp.f32 %v1438_v61  ;;  %v1439_v17 = vadd.f32 1.0, %v2905_v5  ;;  %v2559_v27 = vpop.f32.mrb[36].mxu1  ;;  %2509 = vst [vmem:[%s4069_s24 + $0x20] sm:$0xff] %v2482_v19   ;;  %v1289_v37 = vadd.f32 %v1288_v1, %v4105_v58  ;;  %v1528_v43 = vmul.f32 %v2903_v60, %v4083_v25 }
 0x34a   : > { %v2909_v30 = vpop.eup %2908  ;;  %2928 = vpow2.f32 %v2360_v49  ;;  %v1269_v57 = vpop.f32.mrb[37].mxu0  ;;  %v2361_v56 = vmul.f32 -1.442695, %v1297_v38  ;;  %v1529_v50 = vmul.f32 %v2907_v24, %v4087_v34  ;;  %v1278_v34 = vadd.f32 %v2551_v6, %v4105_v58 }
 0x34b   : > { %v1301_v14 = vpop.f32.mrb[37].mxu1  ;;  %v2911_v44 = vpop.eup %2910  ;;  %2930 = vrcp.f32 %v1439_v17  ;;  %v1530_v3 = vmul.f32 %v2909_v30, %v4092_v15  ;;  %v1649_v4 = vmul.f32 %v1602_v51, %v1528_v43  ;;  %v1310_v45 = vadd.f32 %v2559_v27, %v4105_v58 }
 0x34c   : > { %v2552_v42 = vpop.f32.mrb[38].mxu0  ;;  %v2560_v46 = vpop.f32.mrb[38].mxu1  ;;  %2932 = vpow2.f32 %v2350_v13  ;;  %v1531_v22 = vmul.f32 %v2911_v44, %v4097_v41  ;;  %v1650_v25 = vmul.f32 %v1602_v51, %v1529_v50  ;;  %v2351_v63 = vmul.f32 -1.442695, %v1257_v7 }
 0x34d   : > { %v2913_v47 = vpop.eup %2912  ;;  %v1272_v11 = vpop.f32.mrb[39].mxu0  ;;  %2934 = vpow2.f32 %v2358_v23  ;;  %v1651_v32 = vmul.f32 %v1606_v31, %v1530_v3  ;;  %v1270_v62 = vadd.f32 %v1269_v57, %v4105_v58  ;;  %v2359_v18 = vmul.f32 -1.442695, %v1289_v37 }
 0x34e   : > { %v1304_v54 = vpop.f32.mrb[39].mxu1  ;;  %v2915_v20 = vpop.eup %2914  ;;  %v1440_v55 = vadd.f32 1.0, %v2913_v47  ;;  %2936 = vpow2.f32 %v2353_v12  ;;  %v1652_v16 = vmul.f32 %v1606_v31, %v1531_v22  ;;  %v1302_v60 = vadd.f32 %v1301_v14, %v4105_v58 }
 0x34f   : > { %v2917_v8 = vpop.eup %2916  ;;  %v1441_v35 = vadd.f32 1.0, %v2915_v20  ;;  %v2447_v0 = vpack.c.bf16 %v1651_v32, %v1649_v4  ;;  %v1281_v49 = vadd.f32 %v2552_v42, %v4105_v58  ;;  %v1313_v13 = vadd.f32 %v2560_v46, %v4105_v58  ;;  %v1613_v6 = vpop.permute.xlu0 %1612 }
 0x350   : > { %v2919_v29 = vpop.eup %2918  ;;  %2938 = vrcp.f32 %v1440_v55  ;;  %v1442_v40 = vadd.f32 1.0, %v2917_v8  ;;  %v2487_v36 = vpack.c.bf16 %v1652_v16, %v1650_v25  ;;  %v2356_v19 = vmul.f32 -1.442695, %v1278_v34  ;;  %v1617_v27 = vpop.permute.xlu1 %1616 }
 0x351   : > { %v2921_v15 = vpop.eup %2920  ;;  %2940 = vrcp.f32 %v1441_v35  ;;  %v1443_v1 = vadd.f32 1.0, %v2919_v29  ;;  %2503 = vst [vmem:[%s4060_s19 + $0x28] sm:$0xff] %v2447_v0   ;;  %v4176_v48 = vadd.f32 %v1272_v11, %v4105_v58  ;;  %v4179_v10 = vadd.f32 %v1304_v54, %v4105_v58 }
 0x352   : > { %v2923_v41 = vpop.eup %2922  ;;  %2942 = vrcp.f32 %v1442_v40  ;;  %2510 = vst [vmem:[%s4069_s24 + $0x28] sm:$0xff] %v2487_v36   ;;  %v2364_v17 = vmul.f32 -1.442695, %v1310_v45  ;;  %v2354_v38 = vmul.f32 -1.442695, %v1270_v62  ;;  %v1532_v7 = vmul.f32 %v2921_v15, %v4110_v9 }
 0x353   : > { %v2925_v28 = vpop.eup %2924  ;;  %2944 = vrcp.f32 %v1443_v1  ;;  %v1871_v39 = vadd.f32 1.0, %v2923_v41  ;;  %v2362_v14 = vmul.f32 -1.442695, %v1302_v60  ;;  %v2357_v3 = vmul.f32 -1.442695, %v1281_v49  ;;  %v1624_v54 = vpop.permute.xlu0 %1623 }
 0x354   : > { %v2927_v61 = vpop.eup %2926  ;;  %2946 = vpow2.f32 %v2361_v56  ;;  %v1533_v12 = vmul.f32 %v2925_v28, %v4114_v26  ;;  %v1653_v42 = vmul.f32 %v1613_v6, %v1532_v7  ;;  %v1628_v20 = vpop.permute.xlu1 %1627  ;;  %v2365_v8 = vmul.f32 -1.442695, %v1313_v13 }
 0x355   : > { %v2929_v5 = vpop.eup %2928  ;;  %2948 = vrcp.f32 %v1871_v39  ;;  %v1534_v58 = vmul.f32 %v2927_v61, %v4119_v33  ;;  %v2355_v15 = vmul.f32 -1.442695, %v4176_v48  ;;  %v4224_v36 = vmul.f32 -1.442695, %v4179_v10 }
 0x356   : > { %v2931_v51 = vpop.eup %2930  ;;  %v1879_v31 = vadd.f32 1.0, %v2929_v5  ;;  %2950 = vpow2.f32 %v2351_v63  ;;  %v1654_v56 = vmul.f32 %v1613_v6, %v1533_v12 }
 0x357   : > { %v2933_v24 = vpop.eup %2932  ;;  %2952 = vpow2.f32 %v2359_v18  ;;  %v1535_v44 = vmul.f32 %v2931_v51, %v4124_v21  ;;  %v1655_v46 = vmul.f32 %v1617_v27, %v1534_v58 }
 0x358   : > { %v2935_v30 = vpop.eup %2934  ;;  %2954 = vrcp.f32 %v1879_v31  ;;  %v1869_v23 = vadd.f32 1.0, %v2933_v24 }
 0x359   : > { %v2937_v37 = vpop.eup %2936  ;;  %v1877_v57 = vadd.f32 1.0, %v2935_v30  ;;  %2956 = vpow2.f32 %v2356_v19  ;;  %v1656_v26 = vmul.f32 %v1617_v27, %v1535_v44  ;;  %v2452_v21 = vpack.c.bf16 %v1655_v46, %v1653_v42 }
 0x35a   : > { %v2939_v43 = vpop.eup %2938  ;;  %2958 = vrcp.f32 %v1869_v23  ;;  %v1872_v9 = vadd.f32 1.0, %v2937_v37 }
 0x35b   : > { %v2941_v47 = vpop.eup %2940  ;;  %2960 = vrcp.f32 %v1877_v57  ;;  %v1536_v33 = vmul.f32 %v2939_v43, %v4132_v53  ;;  %v2492_v4 = vpack.c.bf16 %v1656_v26, %v1654_v56  ;;  %2504 = vst [vmem:[%s4060_s19 + $0x30] sm:$0xff] %v2452_v21  }
 0x35c   : > { %v2943_v50 = vpop.eup %2942  ;;  %2962 = vrcp.f32 %v1872_v9  ;;  %v1537_v11 = vmul.f32 %v2941_v47, %v4136_v52 }
 0x35d   : > { %v2945_v55 = vpop.eup %2944  ;;  %2964 = vpow2.f32 %v2364_v17  ;;  %v1538_v22 = vmul.f32 %v2943_v50, %v4142_v2  ;;  %2511 = vst [vmem:[%s4069_s24 + $0x30] sm:$0xff] %v2492_v4   ;;  %v1657_v32 = vmul.f32 %v1624_v54, %v1536_v33 }
 0x35e   : > { %v2947_v53 = vpop.eup %2946  ;;  %2966 = vpow2.f32 %v2354_v38  ;;  %v1539_v35 = vmul.f32 %v2945_v55, %v4146_v59  ;;  %v1658_v2 = vmul.f32 %v1624_v54, %v1537_v11 }
 0x35f   : > { %v2949_v25 = vpop.eup %2948  ;;  %v1880_v52 = vadd.f32 1.0, %v2947_v53  ;;  %2968 = vpow2.f32 %v2362_v14  ;;  %v1659_v29 = vmul.f32 %v1628_v20, %v1538_v22 }
 0x360   : > { %v2951_v40 = vpop.eup %2950  ;;  %1919 = vst [vmem:[%s4200_s23 + $0x10] sm:$0xff] %v2949_v25  ;;  %2970 = vpow2.f32 %v2357_v3  ;;  %v1660_v59 = vmul.f32 %v1628_v20, %v1539_v35 }
 0x361   : > { %v2953_v16 = vpop.eup %2952  ;;  %2972 = vrcp.f32 %v1880_v52  ;;  %v1870_v34 = vadd.f32 1.0, %v2951_v40  ;;  %v2457_v1 = vpack.c.bf16 %v1659_v29, %v1657_v32 }
 0x362   : > { %v2955_v0 = vpop.eup %2954  ;;  %v1878_v45 = vadd.f32 1.0, %v2953_v16  ;;  %2974 = vpow2.f32 %v2365_v8  ;;  %v2497_v41 = vpack.c.bf16 %v1660_v59, %v1658_v2 }
 0x363   : > { %v2957_v63 = vpop.eup %2956  ;;  %1927 = vst [vmem:[%s4200_s23 + $0x50] sm:$0xff] %v2955_v0  ;;  %2976 = vrcp.f32 %v1870_v34  ;;  %2505 = vst [vmem:[%s4060_s19 + $0x38] sm:$0xff] %v2457_v1  }
 0x364   : > { %v2959_v62 = vpop.eup %2958  ;;  %2978 = vrcp.f32 %v1878_v45  ;;  %v1875_v28 = vadd.f32 1.0, %v2957_v63  ;;  %2512 = vst [vmem:[%s4069_s24 + $0x38] sm:$0xff] %v2497_v41  }
 0x365   : > { %3185 = shalt.err (!%p3182_p5)
}
 0x366   : > { %s3186_s19 = scalar_lea.hbm %s4209_s4, 1024  ;;  %s3190_s9 = scalar_lea.hbm %s4366_s6, 4096 }
 0x367   : > { %p3187_p0 = scmp.ne.s32.totalorder %s4209_s4, %s3186_s19  ;;  %p3191_p12 = scmp.lt.u32.totalorder %s4209_s4, %s4366_s6 }
 0x368   : > { %p3192_p11 = scmp.lt.u32.totalorder %s3190_s9, %s3186_s19  ;;  %p3194_p9 = scmp.lt.u32.totalorder %s3186_s19, %s4209_s4 }
 0x369   : > { %p3188_p3 = pnand %p3187_p0, %p3595_p4 }
 0x36a   : > { %p3193_p13 = por %p3192_p11, %p3191_p12 }
 0x36b   : > { %p3189_p7 = pneg %p3188_p3 }
 0x36c   : > { %p3195_p2 = por %p3194_p9, %p3193_p13 }
 0x36e   : > { %p3196_p1 = pnand %p3195_p2, %p3189_p7 }
 0x370   : > { %3199 = shalt.err (!%p3196_p1)
}
 0x371   : > { %s3360_s2 = smov 64   ;;  %s3361_s26 = smov 4   ;;  %v2961_v39 = vpop.eup %2960  ;;  %1917 = vst [vmem:[%s4200_s23] sm:$0xff] %v2959_v62  ;;  %2980 = vpow2.f32 %v2355_v15 }
 0x372   : > { %2597 = dma.vmem_to_hbm [thread:$0]  (%p3595_p4), %s4211_s8, 1024, %s4209_s4, %s1934_s3, %s3360_s2, %s3360_s2, %s3361_s26  }
 0x373   : > { %s4258_s20 = scalar_lea.sflag [#allocation15], %s390_s17  ;;  %s3200_s22 = scalar_lea.vmem %s4220_s18, 1024 }
 0x374   : > { %p3201_p6 = scmp.ne.s32.totalorder %s4220_s18, %s3200_s22  ;;  %s3362_s15 = smov [#allocation14]  }
 0x375   : > { %s3204_s7 = sshll.u32 %s3362_s15, 4  ;;  %s3205_s7 = int_to_ptr.vmem [resolvable:$false] %s3204_s7 }
 0x376   : > { %p3202_p8 = pnand %p3201_p6, %p3595_p4  ;;  %s3206_s19 = scalar_lea.vmem %s3205_s7, 2048 }
 0x377   : > { %p3207_p5 = scmp.lt.s32.totalorder %s4220_s18, %s3205_s7  ;;  %p3208_p0 = scmp.lt.s32.totalorder %s3206_s19, %s3200_s22 }
 0x378   : > { %p3203_p10 = pneg %p3202_p8 }
 0x379   : > { %p3209_p3 = por %p3208_p0, %p3207_p5 }
 0x37b   : > { %p3210_p7 = pnand %p3209_p3, %p3203_p10 }
 0x37d   : > { %3213 = shalt.err (!%p3210_p7)
}
 0x37e   : > { %s3214_s13 = scalar_lea.hbm %s4218_s21, 1024  ;;  %s3218_s8 = scalar_lea.hbm %s4418_s14, 4096 }
 0x37f   : > { %p3215_p12 = scmp.ne.s32.totalorder %s4218_s21, %s3214_s13  ;;  %p3219_p9 = scmp.lt.u32.totalorder %s4218_s21, %s4418_s14 }
 0x380   : > { %p3220_p2 = scmp.lt.u32.totalorder %s3218_s8, %s3214_s13  ;;  %p3222_p6 = scmp.lt.u32.totalorder %s3214_s13, %s4218_s21 }
 0x381   : > { %p3216_p11 = pnand %p3215_p12, %p3595_p4 }
 0x382   : > { %p3221_p1 = por %p3220_p2, %p3219_p9 }
 0x383   : > { %p3217_p13 = pneg %p3216_p11 }
 0x384   : > { %p3223_p8 = por %p3222_p6, %p3221_p1 }
 0x386   : > { %p3224_p10 = pnand %p3223_p8, %p3217_p13 }
 0x388   : > { %3227 = shalt.err (!%p3224_p10)
}
 0x389   : > { %2598 = dma.vmem_to_hbm [thread:$0]  (%p3595_p4), %s4220_s18, 1024, %s4218_s21, %s4258_s20, %s3360_s2, %s3360_s2, %s3361_s26   ;;  %v2963_v18 = vpop.eup %2962  ;;  %2982 = vrcp.f32 %v1875_v28 }
 0x38a   : > { %1925 = vst [vmem:[%s4200_s23 + $0x40] sm:$0xff] %v2961_v39  ;;  %v2965_v60 = vpop.eup %2964  ;;  %1920 = vst [vmem:[%s4200_s23 + $0x18] sm:$0xff] %v2963_v18  ;;  %2984 = vpow2.f32 %v4224_v36  ;;  %s2380_s18 = sshll.u32 %s4187_s30, 7  ;;  %s1998_s21 = sshll.u32 %s4200_s23, 4  ;;  %s4304_s21 = int_to_ptr.vmem [resolvable:$true] %s1998_s21 }
 0x38b   : > { %v2967_v61 = vpop.eup %2966  ;;  %v1883_v49 = vadd.f32 1.0, %v2965_v60  ;;  %s4419_s9 = sld [smem:[#allocation36_spill]]  ;;  %s3228_s2 = scalar_lea.vmem %s4304_s21, 2048 }
 0x38c   : > { %v2969_v13 = vpop.eup %2968  ;;  %v1873_v5 = vadd.f32 1.0, %v2967_v61  ;;  %p3229_p5 = scmp.ne.s32.totalorder %s4304_s21, %s3228_s2  ;;  %s3363_s30 = smov [#allocation16]  }
 0x38d   : > { %v2971_v19 = vpop.eup %2970  ;;  %2986 = vrcp.f32 %v1883_v49  ;;  %v1881_v48 = vadd.f32 1.0, %v2969_v13  ;;  %s3232_s26 = sshll.u32 %s3363_s30, 4  ;;  %s3233_s26 = int_to_ptr.vmem [resolvable:$false] %s3232_s26 }
 0x38e   : > { %v2973_v10 = vpop.eup %2972  ;;  %2988 = vrcp.f32 %v1873_v5  ;;  %v1876_v51 = vadd.f32 1.0, %v2971_v19  ;;  %p3230_p0 = pnand %p3229_p5, %p3595_p4  ;;  %s3234_s22 = scalar_lea.vmem %s3233_s26, 4096 }
 0x38f   : > { %v2975_v31 = vpop.eup %2974  ;;  %1928 = vst [vmem:[%s4200_s23 + $0x58] sm:$0xff] %v2973_v10  ;;  %2990 = vrcp.f32 %v1881_v48  ;;  %p3235_p7 = scmp.lt.s32.totalorder %s4304_s21, %s3233_s26  ;;  %p3236_p12 = scmp.lt.s32.totalorder %s3234_s22, %s3228_s2 }
 0x390   : > { %v2977_v24 = vpop.eup %2976  ;;  %2992 = vrcp.f32 %v1876_v51  ;;  %v1884_v17 = vadd.f32 1.0, %v2975_v31  ;;  %p3231_p3 = pneg %p3230_p0 }
 0x391   : > { %v2979_v38 = vpop.eup %2978  ;;  %1918 = vst [vmem:[%s4200_s23 + $0x8] sm:$0xff] %v2977_v24  ;;  %s4420_s25 = smov %s4419_s9  ;;  %s4302_s0 = scalar_lea.hbm %s4419_s9, %s2380_s18 }
 0x392   : > { %v2981_v7 = vpop.eup %2980  ;;  %1926 = vst [vmem:[%s4200_s23 + $0x48] sm:$0xff] %v2979_v38  ;;  %2994 = vrcp.f32 %v1884_v17  ;;  %p3237_p11 = por %p3236_p12, %p3235_p7 }
 0x393   : > { %v2983_v6 = vpop.eup %2982  ;;  %v1874_v27 = vadd.f32 1.0, %v2981_v7 }
 0x394   : > { %v2985_v30 = vpop.eup %2984  ;;  %1923 = vst [vmem:[%s4200_s23 + $0x30] sm:$0xff] %v2983_v6  ;;  %p3238_p13 = pnand %p3237_p11, %p3231_p3 }
 0x395   : > { %2996 = vrcp.f32 %v1874_v27  ;;  %v1882_v23 = vadd.f32 1.0, %v2985_v30 }
 0x397   : > { %v2987_v12 = vpop.eup %2986  ;;  %2998 = vrcp.f32 %v1882_v23 }
 0x398   : > { %v2989_v58 = vpop.eup %2988  ;;  %1931 = vst [vmem:[%s4200_s23 + $0x70] sm:$0xff] %v2987_v12 }
 0x399   : > { %v2991_v37 = vpop.eup %2990  ;;  %1921 = vst [vmem:[%s4200_s23 + $0x20] sm:$0xff] %v2989_v58 }
 0x39a   : > { %v2993_v57 = vpop.eup %2992  ;;  %1929 = vst [vmem:[%s4200_s23 + $0x60] sm:$0xff] %v2991_v37 }
 0x39b   : > { %1924 = vst [vmem:[%s4200_s23 + $0x38] sm:$0xff] %v2993_v57 }
 0x39c   : > { %v2995_v14 = vpop.eup %2994 }
 0x39d   : > { %1932 = vst [vmem:[%s4200_s23 + $0x78] sm:$0xff] %v2995_v14 }
 0x39f   : > { %v2997_v44 = vpop.eup %2996 }
 0x3a0   : > { %1922 = vst [vmem:[%s4200_s23 + $0x28] sm:$0xff] %v2997_v44 }
 0x3a1   : > { %v2999_v43 = vpop.eup %2998 }
 0x3a2   : > { %1930 = vst [vmem:[%s4200_s23 + $0x68] sm:$0xff] %v2999_v43 }
 0x3a3   : > { %3241 = shalt.err (!%p3238_p13)
}
 0x3a4   : > { %s3242_s23 = scalar_lea.hbm %s4302_s0, 2048  ;;  %s3246_s19 = scalar_lea.hbm %s4420_s25, 8192 }
 0x3a5   : > { %p3243_p9 = scmp.ne.s32.totalorder %s4302_s0, %s3242_s23  ;;  %p3247_p6 = scmp.lt.u32.totalorder %s4302_s0, %s4420_s25 }
 0x3a6   : > { %p3248_p8 = scmp.lt.u32.totalorder %s3246_s19, %s3242_s23  ;;  %p3250_p5 = scmp.lt.u32.totalorder %s3242_s23, %s4302_s0 }
 0x3a7   : > { %p3244_p2 = pnand %p3243_p9, %p3595_p4 }
 0x3a8   : > { %p3249_p10 = por %p3248_p8, %p3247_p6 }
 0x3a9   : > { %p3245_p1 = pneg %p3244_p2 }
 0x3aa   : > { %p3251_p0 = por %p3250_p5, %p3249_p10 }
 0x3ac   : > { %p3252_p3 = pnand %p3251_p0, %p3245_p1 }
 0x3ae   : > { %3255 = shalt.err (!%p3252_p3)
}
 0x3af   : > { %s3364_s17 = smov 128   ;;  %s3365_s8 = smov 8  }
 0x3b0   : > { %2599 = dma.vmem_to_hbm [thread:$0]  (%p3595_p4), %s4304_s21, 2048, %s4302_s0, %s4258_s20, %s3364_s17, %s3364_s17, %s3365_s8  }
 0x3b1 PF: > { %s4421_s4 = sld [smem:[#allocation24_spill]]  ;;  %s4422_s3 = sld [smem:[#allocation25_spill]] }
 0x3b2   : > { %p2642_p7 = scmp.ge.s32.totalorder %s3346_s12, 2 }
 0x3b7   : > { %s2013_s18 = sand.u32 1, %s4421_s4   ;;  %p4423_p12 = scmp.ne.s32.totalorder %s4422_s3, 0 }
 0x3b8   : > { %s2014_s24 = scalar_lea.sflag [#allocation4], %s2013_s18 }
 0x3b9   : > { %p2624_p11 = pnand %p2642_p7, %p4423_p12 }
 0x3bb   : > { %3309 = dma.done.wait (!%p2624_p11), %s2014_s24, 1024  }
 0x3bc   : > { %3311 = vsyncadd (!%p2624_p11), %s2014_s24, 4294966272  ;;  %s4424_s27 = sadd.s32 4294967294, %s3346_s12  }
 0x3bd   : > { %s2022_s9 = sand.u32 1, %s4424_s27  }
 0x3be   : > { %s2023_s2 = scalar_lea.sflag [#allocation15], %s2022_s9 }
 0x3bf   : > { %3313 = dma.done.wait (!%p2624_p11), %s2023_s2, 3072  }
 0x3c0   : > { %3315 = vsyncadd (!%p2624_p11), %s2023_s2, 4294964224  ;;  %s33_s12 = sadd.s32 1, %s3346_s12   ;;  %s4425_s5 = sld [smem:[#allocation29_spill]] }
 0x3c1   : > { %p30_p4 = scmp.ge.s32.totalorder %s33_s12, 6   ;;  %s4426_s20 = sld [smem:[#allocation26_spill]] }
 0x3c2   : > { %s4427_s21 = sld [smem:[#allocation28_spill]]  ;;  %s4428_s27 = smov %s3322_s28 }
 0x3c3   : > { %s4429_s28 = smov %s3326_s29  ;;  %s4431_s30 = smov %s3338_s10 }
 0x3c4   : > { %s4432_s9 = smov %s3342_s11  ;;  %32 = sbr.rel (!%p30_p4) target bundleno = 21 (0x15), region = 150 }
 0x3c6   : > { %s4430_s29 = smov %s4425_s5 }
 0x3c7   : > { %s4433_s10 = smov %s4426_s20 }
 0x3c8   : > { %s4434_s11 = smov %s4427_s21 }
 0x3cb   :  { %2037 = vsyncpa [#allocation3], 1 }
 0x3cc   :  { %2039 = vsyncpa [#allocation3 + $0x1], 1 }
 0x3cd   :  { %2040 = vsyncpa [#allocation6], 1 }
 0x3ce   :  { %2042 = vsyncpa [#allocation6 + $0x1], 1 }
 0x3cf   :  { %2043 = vsyncpa [#allocation9], 1 }
 0x3d0   :  { %2044 = vsyncpa [#allocation12], 1 }
 0x3d1   :  { %2045 = vsyncpa [#allocation4], 1 }
 0x3d2   :  { %2047 = vsyncpa [#allocation4 + $0x1], 1 }
 0x3d3   :  { %2048 = vsyncpa [#allocation15], 1 }
 0x3d4   :  { %2050 = vsyncpa [#allocation15 + $0x1], 1 }

// kernel: triangle_multiplication_outgoing.3
= control target key start
LH: loop header
LB: loop body
LE: loop exit
PB: predicated region body
PF: predicated region fallthrough
CT: control target
= control target key end

     0   :  { %s15777_s0 = inlined_call_operand.hbm [shape: bf16[2,128,16,16], index: 0, kind: input, shape index: {}]   ;;  %s15778_s1 = inlined_call_operand.hbm [shape: bf16[2,128,16,16], index: 1, kind: input, shape index: {}]   ;;  %s15779_s2 = inlined_call_operand.hbm [shape: f32[2,16,16,128], index: 2, kind: input, shape index: {}]   ;;  %s15780_s3 = inlined_call_operand.hbm [shape: f32[2,16,16,128], index: 3, kind: input, shape index: {}]   ;;  %s15781_s4 = inlined_call_operand.hbm [shape: f32[1,128], index: 4, kind: input, shape index: {}]   ;;  %s15782_s5 = inlined_call_operand.hbm [shape: f32[1,128], index: 5, kind: input, shape index: {}]   ;;  %s15783_s6 = inlined_call_operand.hbm [shape: bf16[128,128], index: 6, kind: input, shape index: {}]   ;;  %s15784_s7 = inlined_call_operand.hbm [shape: f32[1,128], index: 7, kind: input, shape index: {}]   ;;  %s15785_s8 = inlined_call_operand.hbm [shape: f32[2,16,16,128], index: 8, kind: output, shape index: {}]  }
   0x1   :  { %15829 = sst [smem:[#allocation54_spill]] %s15777_s0 }
   0x2   :  { %15830 = sst [smem:[#allocation55_spill]] %s15778_s1 }
   0x3   :  { %15831 = sst [smem:[#allocation56_spill]] %s15779_s2 }
   0x4   :  { %15832 = sst [smem:[#allocation57_spill]] %s15780_s3 }
   0x5   :  { %15833 = sst [smem:[#allocation58_spill]] %s15781_s4 }
   0x6   :  { %15834 = sst [smem:[#allocation59_spill]] %s15782_s5 }
   0x7   :  { %15835 = sst [smem:[#allocation60_spill]] %s15783_s6 }
   0x8   :  { %15836 = sst [smem:[#allocation61_spill]] %s15784_s7 }
   0x9   :  { %15837 = sst [smem:[#allocation62_spill]] %s15785_s8 }
   0xa   :  { %13 = vsyncpa [#allocation4], 0 }
   0xb   :  { %15 = vsyncpa [#allocation4 + $0x1], 0 }
   0xc   :  { %16 = vsyncpa [#allocation7], 0 }
   0xd   :  { %18 = vsyncpa [#allocation7 + $0x1], 0 }
   0xe   :  { %19 = vsyncpa [#allocation10], 0 }
   0xf   :  { %21 = vsyncpa [#allocation10 + $0x1], 0 }
  0x10   :  { %22 = vsyncpa [#allocation13], 0 }
  0x11   :  { %23 = vsyncpa [#allocation16], 0 }
  0x12   :  { %24 = vsyncpa [#allocation5], 0 }
  0x13   :  { %26 = vsyncpa [#allocation5 + $0x1], 0  ;;  %s12773_s27 = smov 0   ;;  %s12775_s28 = smov 0  }
  0x14   :  { %s12777_s29 = smov 0   ;;  %s12779_s30 = smov 0  }
  0x15   :  { %s12781_s9 = smov 0   ;;  %s12783_s10 = smov 0  }
  0x16   :  { %s12785_s11 = smov 0   ;;  %s12787_s12 = smov 0  }
  0x17   :  { %s12789_s13 = smov 0   ;;  %s12791_s14 = smov 0  }
  0x18   :  { %s12793_s15 = smov 0   ;;  %s12795_s16 = smov 0  }
  0x19   :  { %s12797_s17 = smov 0   ;;  %s12799_s18 = smov 0  }
  0x1a   :  { %s12801_s19 = smov 0   ;;  %s12803_s20 = smov 0  }
  0x1b LB: > { %15838 = sst [smem:[#allocation26_spill]] %s12639_s27  ;;  %s12854_s21 = sadd.s32 4294967295, %s12699_s20   ;;  %s12699_s20 = sphi %s12803_s20, %s32_s20   ;;  %s12695_s19 = sphi %s12801_s19, %s15966_s19   ;;  %s12691_s18 = sphi %s12799_s18, %s15965_s18   ;;  %s12687_s17 = sphi %s12797_s17, %s15974_s17   ;;  %s12683_s16 = sphi %s12795_s16, %s15963_s16   ;;  %s12679_s15 = sphi %s12793_s15, %s15962_s15   ;;  %s12675_s14 = sphi %s12791_s14, %s15961_s14   ;;  %s12671_s13 = sphi %s12789_s13, %s15973_s13   ;;  %s12667_s12 = sphi %s12787_s12, %s15972_s12   ;;  %s12663_s11 = sphi %s12785_s11, %s15971_s11   ;;  %s12659_s10 = sphi %s12783_s10, %s15970_s10   ;;  %s12655_s9 = sphi %s12781_s9, %s15969_s9   ;;  %s12651_s30 = sphi %s12779_s30, %s15960_s30   ;;  %s12647_s29 = sphi %s12777_s29, %s15968_s29   ;;  %s12643_s28 = sphi %s12775_s28, %s15959_s28   ;;  %s12639_s27 = sphi %s12773_s27, %s15958_s27  }
  0x1c   : > { %15839 = sst [smem:[#allocation27_spill]] %s12643_s28  ;;  %p10656_p0 = scmp.ge.s32.totalorder %s12699_s20, 1 }
  0x1d   : > { %15840 = sst [smem:[#allocation28_spill]] %s12647_s29  ;;  %p15790_p1 = scmp.eq.s32.totalorder %s12854_s21, 0 }
  0x1e   : > { %15841 = sst [smem:[#allocation29_spill]] %s12655_s9  ;;  %p297_p3 = scmp.lt.s32.totalorder %s12699_s20, 9 }
  0x1f   : > { %15842 = sst [smem:[#allocation30_spill]] %s12675_s14  ;;  %s12701_s23 = smov [#allocation11]  }
  0x20   : > { %15843 = sst [smem:[#allocation31_spill]] %s12679_s15  ;;  %p12860_p4 = pnand %p10656_p0, %p297_p3 }
  0x21   : > { %15844 = sst [smem:[#allocation32_spill]] %s12683_s16  ;;  %s310_s24 = sshll.u32 %s12701_s23, 4  ;;  %s311_s24 = int_to_ptr.vmem [resolvable:$true] %s310_s24 }
  0x22   : > { %15845 = sst [smem:[#allocation33_spill]] %s12687_s17  ;;  %p11923_p5 = pneg %p12860_p4 }
  0x23   : > { %15846 = sst [smem:[#allocation34_spill]] %s12691_s18  ;;  %s12702_s25 = smov [#allocation12]  }
  0x24   : > { %15847 = sst [smem:[#allocation35_spill]] %s12695_s19  ;;  %s321_s26 = sshll.u32 %s12702_s25, 4  ;;  %s12866_s26 = int_to_ptr.vmem [resolvable:$true] %s321_s26 }
  0x25   : > { %s15848_s22 = scalar_select %p12860_p4, 1, 0 }
  0x26   : > { %p12870_p6 = pnand %p11923_p5, %p15790_p1  ;;  %s15851_s4 = sld [smem:[#allocation58_spill]] }
  0x27   : > { %15849 = sst [smem:[#allocation36_spill]] %s15848_s22 }
  0x28   : > { %s15850_s8 = scalar_select %p12870_p6, 1, 0 }
  0x29   : > { %p12882_p8 = pneg %p12870_p6 }
  0x2c   : > { %s12281_s15 = scalar_lea.hbm %s15851_s4, 16 }
  0x2d   : > { %p12282_p7 = scmp.ne.s32.totalorder %s15851_s4, %s12281_s15  ;;  %p12288_p11 = scmp.lt.u32.totalorder %s12281_s15, %s15851_s4 }
  0x2f   : > { %p12284_p9 = pnand %p12882_p8, %p12282_p7 }
  0x31   : > { %p12285_p10 = pneg %p12284_p9 }
  0x33   : > { %p12290_p12 = pnand %p12288_p11, %p12285_p10 }
  0x35   : > { %12293 = shalt.err (!%p12290_p12)
}
  0x36   : > { %s12294_s14 = scalar_lea.vmem %s311_s24, 16  ;;  %s12301_s2 = scalar_lea.vmem %s311_s24, 32 }
  0x37   : > { %p12295_p13 = scmp.ne.s32.totalorder %s311_s24, %s12294_s14  ;;  %p12302_p5 = scmp.lt.s32.totalorder %s311_s24, %s311_s24 }
  0x38   : > { %p12303_p2 = scmp.lt.s32.totalorder %s12301_s2, %s12294_s14 }
  0x39   : > { %p12297_p0 = pnand %p12295_p13, %p12882_p8 }
  0x3a   : > { %p12304_p1 = por %p12303_p2, %p12302_p5 }
  0x3b   : > { %p12298_p3 = pneg %p12297_p0 }
  0x3d   : > { %p12305_p4 = pnand %p12304_p1, %p12298_p3 }
  0x3f   : > { %12308 = shalt.err (!%p12305_p4)
}
  0x40   : > { %11926 = dma.hbm_to_vmem [thread:$0]  (!%p12870_p6), %s15851_s4, 16, %s311_s24, [#allocation10]  }
  0x41   : > { %s15853_s5 = sld [smem:[#allocation59_spill]] }
  0x47   : > { %s12309_s25 = scalar_lea.hbm %s15853_s5, 16 }
  0x48   : > { %p12310_p7 = scmp.ne.s32.totalorder %s15853_s5, %s12309_s25  ;;  %p12316_p1 = scmp.lt.u32.totalorder %s12309_s25, %s15853_s5 }
  0x4a   : > { %p12312_p9 = pnand %p12310_p7, %p12882_p8 }
  0x4c   : > { %p12313_p2 = pneg %p12312_p9 }
  0x4e   : > { %p12318_p4 = pnand %p12316_p1, %p12313_p2 }
  0x50   : > { %12321 = shalt.err (!%p12318_p4)
}
  0x51   : > { %s12322_s24 = scalar_lea.vmem %s12866_s26, 16  ;;  %s12329_s27 = scalar_lea.vmem %s12866_s26, 32 }
  0x52   : > { %p12323_p10 = scmp.ne.s32.totalorder %s12866_s26, %s12322_s24  ;;  %p12330_p13 = scmp.lt.s32.totalorder %s12866_s26, %s12866_s26 }
  0x53   : > { %p12331_p0 = scmp.lt.s32.totalorder %s12329_s27, %s12322_s24 }
  0x54   : > { %p12325_p11 = pnand %p12323_p10, %p12882_p8 }
  0x55   : > { %p12332_p3 = por %p12331_p0, %p12330_p13 }
  0x56   : > { %p12326_p12 = pneg %p12325_p11 }
  0x58   : > { %p12333_p5 = pnand %p12332_p3, %p12326_p12 }
  0x5a   : > { %12336 = shalt.err (!%p12333_p5)
}
  0x5b   : > { %11929 = dma.hbm_to_vmem [thread:$0]  (!%p12870_p6), %s15853_s5, 16, %s12866_s26, [#allocation13]  }
  0x5c   : > { %s50_s16 = sadd.s32 1, %s12687_s17  ;;  %p15800_p9 = scmp.eq.s32.totalorder %s12699_s20, 0 }
  0x5d   : > { %p12923_p7 = scmp.ge.s32.totalorder %s50_s16, 2  ;;  %p106_p2 = scmp.ne.s32.totalorder %s12659_s10, %s12655_s9 }
  0x5e   : > { %p112_p1 = scmp.ne.s32.totalorder %s12655_s9, %s12651_s30  ;;  %p15857_p10 = scmp.eq.s32.totalorder %s12854_s21, 0 }
  0x5f   : > { %s15854_s15 = scalar_select %p12923_p7, 1, 0 }
  0x60   : > { %s15976_s16 = smov (%p12923_p7, %s50_s16), 0  ;;  %p12944_p4 = por %p106_p2, %p15800_p9 }
  0x61   : > { %15855 = sst [smem:[#allocation37_spill]] %s15976_s16  ;;  %s12940_s14 = ssub.s32 %s12687_s17, %s15976_s16 }
  0x62   : > { %p12950_p11 = por %p112_p1, %p15857_p10  ;;  %p15799_p12 = scmp.lt.s32.totalorder %s12699_s20, 8 }
  0x63   : > { %s15796_s24 = sshll.u32 %s12695_s19, 8  ;;  %s15805_s27 = sand.u32 1, %s12699_s20  }
  0x64   : > { %s15858_s2 = scalar_select %p12950_p11, 1, 0 }
  0x65   : > { %s381_s28 = sand.u32 1, %s12659_s10   ;;  %s389_s30 = sadd.s32 %s12687_s17, %s15796_s24 }
  0x66   : > { %15859 = sst [smem:[#allocation38_spill]] %s15858_s2  ;;  %s10665_s3 = sshll.u32 %s381_s28, 9 }
  0x67   : > { %s10667_s25 = sshll.u32 %s389_s30, 6  ;;  %s383_s22 = scalar_lea.vmem [#allocation6], %s10665_s3 }
  0x68   : > { %s392_s4 = sshll.u32 %s383_s22, 4  ;;  %s15860_s1 = sld [smem:[#allocation55_spill]]  ;;  %s12966_s4 = int_to_ptr.vmem [resolvable:$true] %s392_s4 }
  0x69   : > { %p12972_p13 = pnand %p15799_p12, %p12944_p4  ;;  %s12703_s22 = smov [#allocation14]  }
  0x6a   : > { %s12976_s3 = sshll.u32 %s12703_s22, 4  ;;  %s12980_s5 = scalar_lea.sflag [#allocation7], %s15805_s27  ;;  %s332_s3 = int_to_ptr.vmem [resolvable:$true] %s12976_s3 }
  0x6b   : > { %p12339_p3 = pneg %p12972_p13 }
  0x6e   : > { %s12964_s9 = scalar_lea.hbm %s15860_s1, %s10667_s25  ;;  %s12342_s30 = scalar_lea.hbm %s15860_s1, 32768 }
  0x6f   : > { %s12337_s16 = scalar_lea.hbm %s12964_s9, 8192  ;;  %p12343_p1 = scmp.lt.u32.totalorder %s12964_s9, %s15860_s1 }
  0x70   : > { %p12338_p0 = scmp.ne.s32.totalorder %s12964_s9, %s12337_s16  ;;  %p12344_p4 = scmp.lt.u32.totalorder %s12342_s30, %s12337_s16 }
  0x71   : > { %p12346_p12 = scmp.lt.u32.totalorder %s12337_s16, %s12964_s9 }
  0x72   : > { %p12340_p5 = pnand %p12339_p3, %p12338_p0  ;;  %p12345_p10 = por %p12344_p4, %p12343_p1 }
  0x74   : > { %p12341_p2 = pneg %p12340_p5  ;;  %p12347_p9 = por %p12346_p12, %p12345_p10 }
  0x76   : > { %p12348_p11 = pnand %p12347_p9, %p12341_p2 }
  0x78   : > { %12351 = shalt.err (!%p12348_p11)
}
  0x79   : > { %s12352_s22 = scalar_lea.vmem %s12966_s4, 8192  ;;  %s12704_s25 = smov [#allocation6]  }
  0x7a   : > { %p12353_p0 = scmp.ne.s32.totalorder %s12966_s4, %s12352_s22  ;;  %s12357_s26 = sshll.u32 %s12704_s25, 4  ;;  %s12358_s26 = int_to_ptr.vmem [resolvable:$false] %s12357_s26 }
  0x7b   : > { %s12359_s2 = scalar_lea.vmem %s12358_s26, 16384  ;;  %p12360_p6 = scmp.lt.s32.totalorder %s12966_s4, %s12358_s26 }
  0x7c   : > { %p12355_p5 = pnand %p12353_p0, %p12339_p3  ;;  %p12361_p1 = scmp.lt.s32.totalorder %s12359_s2, %s12352_s22 }
  0x7e   : > { %p12356_p7 = pneg %p12355_p5  ;;  %p12362_p4 = por %p12361_p1, %p12360_p6 }
  0x80   : > { %p12363_p12 = pnand %p12362_p4, %p12356_p7 }
  0x82   : > { %12366 = shalt.err (!%p12363_p12)
}
  0x83   : > { %s15808_s24 = smov 128   ;;  %s15810_s16 = smov 64  }
  0x84   : > { %s15811_s30 = smov 4   ;;  %s12708_s25 = smov [#allocation15]  }
  0x85   : > { %11942 = dma.hbm_to_vmem [thread:$0]  (!%p12972_p13), %s12964_s9, 8192, %s12966_s4, %s12980_s5, %s15808_s24, %s15810_s16, %s15811_s30  }
  0x86   : > { %s345_s22 = sshll.u32 %s12708_s25, 4  ;;  %s15862_s6 = sld [smem:[#allocation60_spill]]  ;;  %s346_s22 = int_to_ptr.vmem [resolvable:$true] %s345_s22 }
  0x8c   : > { %s12367_s27 = scalar_lea.hbm %s15862_s6, 1024 }
  0x8d   : > { %p12368_p6 = scmp.ne.s32.totalorder %s15862_s6, %s12367_s27  ;;  %p12374_p11 = scmp.lt.u32.totalorder %s12367_s27, %s15862_s6 }
  0x8f   : > { %p12370_p7 = pnand %p12368_p6, %p12882_p8 }
  0x91   : > { %p12371_p9 = pneg %p12370_p7 }
  0x93   : > { %p12376_p3 = pnand %p12374_p11, %p12371_p9 }
  0x95   : > { %12379 = shalt.err (!%p12376_p3)
}
  0x96   : > { %s12380_s4 = scalar_lea.vmem %s332_s3, 1024  ;;  %p12388_p0 = scmp.lt.s32.totalorder %s332_s3, %s332_s3 }
  0x97   : > { %p12381_p13 = scmp.ne.s32.totalorder %s332_s3, %s12380_s4  ;;  %p12389_p5 = scmp.lt.s32.totalorder %s12380_s4, %s12380_s4 }
  0x99   : > { %p12383_p2 = pnand %p12381_p13, %p12882_p8  ;;  %p12390_p1 = por %p12389_p5, %p12388_p0 }
  0x9b   : > { %p12384_p10 = pneg %p12383_p2 }
  0x9d   : > { %p12391_p4 = pnand %p12390_p1, %p12384_p10 }
  0x9f   : > { %12394 = shalt.err (!%p12391_p4)
}
  0xa0   : > { %p15863_p12 = scmp.ne.s32.totalorder %s15850_s8, 0  ;;  %s15864_s7 = sld [smem:[#allocation61_spill]] }
  0xa2   : > { %11932 = dma.hbm_to_vmem [thread:$0]  (!%p15863_p12), %s15862_s6, 1024, %s332_s3, [#allocation13], %s15810_s16, %s15810_s16, %s15811_s30  }
  0xa6   : > { %s12395_s27 = scalar_lea.hbm %s15864_s7, 16 }
  0xa7   : > { %p12396_p6 = scmp.ne.s32.totalorder %s15864_s7, %s12395_s27  ;;  %p12402_p11 = scmp.lt.u32.totalorder %s12395_s27, %s15864_s7 }
  0xa9   : > { %p12398_p7 = pnand %p12396_p6, %p12882_p8 }
  0xab   : > { %p12399_p9 = pneg %p12398_p7 }
  0xad   : > { %p12404_p3 = pnand %p12402_p11, %p12399_p9 }
  0xaf   : > { %12407 = shalt.err (!%p12404_p3)
}
  0xb0   : > { %s12408_s4 = scalar_lea.vmem %s346_s22, 16  ;;  %s12415_s3 = scalar_lea.vmem %s346_s22, 32 }
  0xb1   : > { %p12409_p13 = scmp.ne.s32.totalorder %s346_s22, %s12408_s4  ;;  %p12416_p0 = scmp.lt.s32.totalorder %s346_s22, %s346_s22 }
  0xb2   : > { %p12417_p5 = scmp.lt.s32.totalorder %s12415_s3, %s12408_s4 }
  0xb3   : > { %p12411_p2 = pnand %p12409_p13, %p12882_p8 }
  0xb4   : > { %p12418_p1 = por %p12417_p5, %p12416_p0 }
  0xb5   : > { %p12412_p10 = pneg %p12411_p2 }
  0xb7   : > { %p12419_p4 = pnand %p12418_p1, %p12412_p10 }
  0xb9   : > { %12422 = shalt.err (!%p12419_p4)
}
  0xba   : > { %11935 = dma.hbm_to_vmem [thread:$0]  (!%p15863_p12), %s15864_s7, 16, %s346_s22, [#allocation16]  }
  0xbb   : > { %s54_s8 = sadd.s32 1, %s12691_s18  ;;  %p15865_p8 = scmp.ne.s32.totalorder %s15854_s15, 0 }
  0xbc   : > { %s69_s23 = sadd.s32 1, %s12671_s13  ;;  %p76_p6 = scmp.ne.s32.totalorder %s12671_s13, %s12667_s12 }
  0xbd   : > { %s15978_s8 = smov (!%p15865_p8, %s54_s8), %s12691_s18  ;;  %p82_p9 = scmp.ne.s32.totalorder %s12667_s12, %s12663_s11 }
  0xbe   : > { %p56_p7 = scmp.ge.s32.totalorder %s15978_s8, 2  ;;  %p15866_p11 = scmp.eq.s32.totalorder %s12699_s20, 0 }
  0xbf   : > { %s356_s17 = sand.u32 1, %s12671_s13   ;;  %s15869_s27 = sadd.s32 1, %s12695_s19 }
  0xc0   : > { %p13062_p3 = por %p15866_p11, %p76_p6  ;;  %s15980_s8 = smov (%p56_p7, %s15978_s8), 0 }
  0xc1   : > { %15868 = sst [smem:[#allocation39_spill]] %s15980_s8  ;;  %s15982_s27 = smov (!%p56_p7, %s15869_s27), %s12695_s19 }
  0xc2   : > { %s63_s15 = ssub.s32 %s12691_s18, %s15980_s8  ;;  %p15870_p12 = scmp.eq.s32.totalorder %s12854_s21, 0 }
  0xc3   : > { %p60_p2 = scmp.ge.s32.totalorder %s15982_s27, 2  ;;  %s10662_s11 = sshll.u32 %s356_s17, 9 }
  0xc4   : > { %p13076_p13 = por %p15870_p12, %p82_p9  ;;  %s15872_s25 = sshll.u32 %s12695_s19, 8 }
  0xc5   : > { %s366_s26 = sadd.s32 %s12691_s18, %s15872_s25  ;;  %s15984_s27 = smov (%p60_p2, %s15982_s27), 0 }
  0xc6   : > { %s15871_s22 = scalar_select %p13076_p13, 1, 0 }
  0xc7   : > { %15873 = sst [smem:[#allocation40_spill]] %s15984_s27  ;;  %s10664_s2 = sshll.u32 %s366_s26, 6 }
  0xc8   : > { %s62_s28 = ssub.s32 %s12695_s19, %s15984_s27  ;;  %s15874_s0 = sld [smem:[#allocation54_spill]] }
  0xc9   : > { %s64_s29 = sor.u32 %s63_s15, %s62_s28  ;;  %s94_s24 = sor.u32 %s12940_s14, %s62_s28 }
  0xca   : > { %p67_p10 = scmp.eq.s32.totalorder %s64_s29, 0  ;;  %p97_p0 = scmp.eq.s32.totalorder %s94_s24, 0 }
  0xcb   : > { %s126_s25 = sor.u32 %s12940_s14, %s64_s29  ;;  %s360_s16 = scalar_lea.vmem [#allocation3], %s10662_s11 }
  0xcc   : > { %s369_s30 = sshll.u32 %s360_s16, 4  ;;  %s15875_s26 = sadd.s32 1, %s12659_s10  ;;  %s13106_s30 = int_to_ptr.vmem [resolvable:$true] %s369_s30 }
  0xcd   : > { %s13095_s6 = scalar_select %p67_p10, %s12671_s13, %s69_s23  }
  0xce   : > { %s13090_s1 = scalar_lea.hbm %s15874_s0, %s10664_s2  ;;  %p13102_p5 = scmp.eq.s32.totalorder %s126_s25, 0 }
  0xcf   : > { %s13100_s7 = scalar_select %p97_p0, %s12659_s10, %s15875_s26  }
  0xd0   : > { %p15877_p1 = scmp.lt.s32.totalorder %s12699_s20, 8  ;;  %s13116_s14 = scalar_lea.sflag [#allocation4], %s356_s17 }
  0xd1   : > { %s12423_s16 = scalar_lea.hbm %s13090_s1, 8192  ;;  %s12428_s9 = scalar_lea.hbm %s15874_s0, 32768 }
  0xd2   : > { %p13112_p4 = pnand %p15877_p1, %p13062_p3  ;;  %p12424_p8 = scmp.ne.s32.totalorder %s13090_s1, %s12423_s16 }
  0xd3   : > { %p12429_p11 = scmp.lt.u32.totalorder %s13090_s1, %s15874_s0  ;;  %p12430_p3 = scmp.lt.u32.totalorder %s12428_s9, %s12423_s16 }
  0xd4   : > { %p12425_p6 = pneg %p13112_p4  ;;  %p12432_p2 = scmp.lt.u32.totalorder %s12423_s16, %s13090_s1 }
  0xd5   : > { %p12431_p12 = por %p12430_p3, %p12429_p11 }
  0xd6   : > { %p12426_p7 = pnand %p12425_p6, %p12424_p8 }
  0xd7   : > { %p12433_p10 = por %p12432_p2, %p12431_p12 }
  0xd8   : > { %p12427_p9 = pneg %p12426_p7 }
  0xda   : > { %p12434_p0 = pnand %p12433_p10, %p12427_p9 }
  0xdc   : > { %12437 = shalt.err (!%p12434_p0)
}
  0xdd   : > { %s12438_s17 = scalar_lea.vmem %s13106_s30, 8192  ;;  %s12709_s28 = smov [#allocation3]  }
  0xde   : > { %p12439_p1 = scmp.ne.s32.totalorder %s13106_s30, %s12438_s17  ;;  %s12443_s3 = sshll.u32 %s12709_s28, 4  ;;  %s12444_s3 = int_to_ptr.vmem [resolvable:$false] %s12443_s3 }
  0xdf   : > { %s12445_s29 = scalar_lea.vmem %s12444_s3, 16384  ;;  %p12446_p13 = scmp.lt.s32.totalorder %s13106_s30, %s12444_s3 }
  0xe0   : > { %p12441_p8 = pnand %p12439_p1, %p12425_p6  ;;  %p12447_p11 = scmp.lt.s32.totalorder %s12445_s29, %s12438_s17 }
  0xe2   : > { %p12442_p7 = pneg %p12441_p8  ;;  %p12448_p3 = por %p12447_p11, %p12446_p13 }
  0xe4   : > { %p12449_p12 = pnand %p12448_p3, %p12442_p7 }
  0xe6   : > { %12452 = shalt.err (!%p12449_p12)
}
  0xe7   : > { %s15879_s25 = smov 4   ;;  %s15880_s26 = smov 64  }
  0xe8   : > { %s15881_s16 = smov 128   ;;  %s15882_s23 = sld [smem:[#allocation28_spill]] }
  0xe9   : > { %s15883_s15 = sld [smem:[#allocation27_spill]]  ;;  %s15884_s9 = sld [smem:[#allocation26_spill]] }
  0xea   : > { %s15885_s24 = sld [smem:[#allocation33_spill]]  ;;  %s10655_s11 = sadd.s32 4294967294, %s12699_s20  }
  0xeb   : > { %11939 = dma.hbm_to_vmem [thread:$0]  (!%p13112_p4), %s13090_s1, 8192, %s13106_s30, %s13116_s14, %s15881_s16, %s15880_s26, %s15879_s25  }
  0xec   : > { %p290_p9 = scmp.eq.s32.totalorder %s10655_s11, 7  ;;  %p15886_p2 = scmp.eq.s32.totalorder %s12699_s20, 0 }
  0xed   : > { %p15888_p0 = scmp.eq.s32.totalorder %s12854_s21, 0  ;;  %p15890_p4 = scmp.eq.s32.totalorder %s12854_s21, 7 }
  0xee   : > { %s129_s2 = sadd.s32 1, %s15882_s23  ;;  %s404_s28 = sand.u32 1, %s15882_s23  }
  0xef   : > { %s13152_s17 = scalar_select %p13102_p5, %s15882_s23, %s129_s2  }
  0xf0   : > { %p136_p13 = scmp.ne.s32.totalorder %s15882_s23, %s15883_s15  ;;  %p142_p6 = scmp.ne.s32.totalorder %s15883_s15, %s15884_s9 }
  0xf1   : > { %s13181_s4 = sshll.u32 %s404_s28, 6  ;;  %s10834_s14 = sshll.u32 %s12691_s18, 4 }
  0xf2   : > { %p13161_p10 = por %p136_p13, %p15886_p2  ;;  %p13167_p1 = por %p142_p6, %p15888_p0 }
  0xf3   : > { %p13173_p8 = por %p15890_p4, %p136_p13  ;;  %p13177_p5 = por %p290_p9, %p142_p6 }
  0xf4   : > { %s412_s25 = sadd.s32 %s15885_s24, %s10834_s14  ;;  %s10671_s26 = sshll.u32 %s12695_s19, 5 }
  0xf5   : > { %s15891_s30 = scalar_select %p13173_p8, 1, 0 }
  0xf6   : > { %s15892_s1 = scalar_select %p13177_p5, 1, 0 }
  0xf7   : > { %s406_s23 = scalar_lea.vmem [#allocation8], %s13181_s4  ;;  %s13187_s9 = sadd.s32 %s10671_s26, %s412_s25 }
  0xf8   : > { %s417_s15 = sshll.u32 %s406_s23, 4  ;;  %s15813_s11 = sshll.u32 %s13187_s9, 7  ;;  %s13189_s15 = int_to_ptr.vmem [resolvable:$true] %s417_s15 }
  0xf9   : > { %p15893_p7 = scmp.lt.s32.totalorder %s12699_s20, 8  ;;  %s15895_s24 = sld [smem:[#allocation56_spill]] }
  0xfb   : > { %p13196_p11 = pnand %p15893_p7, %p13161_p10 }
  0xfd   : > { %p12455_p12 = pneg %p13196_p11 }
  0xff   : > { %s13205_s14 = scalar_lea.hbm %s15895_s24, %s15813_s11  ;;  %s12458_s0 = scalar_lea.hbm %s15895_s24, 8192 }
 0x100   : > { %s12453_s25 = scalar_lea.hbm %s13205_s14, 1024  ;;  %p12459_p9 = scmp.lt.u32.totalorder %s13205_s14, %s15895_s24 }
 0x101   : > { %p12454_p3 = scmp.ne.s32.totalorder %s13205_s14, %s12453_s25  ;;  %p12460_p2 = scmp.lt.u32.totalorder %s12458_s0, %s12453_s25 }
 0x102   : > { %p12462_p0 = scmp.lt.u32.totalorder %s12453_s25, %s13205_s14 }
 0x103   : > { %p12456_p13 = pnand %p12455_p12, %p12454_p3  ;;  %p12461_p10 = por %p12460_p2, %p12459_p9 }
 0x105   : > { %p12457_p6 = pneg %p12456_p13  ;;  %p12463_p4 = por %p12462_p0, %p12461_p10 }
 0x107   : > { %p12464_p7 = pnand %p12463_p4, %p12457_p6 }
 0x109   : > { %12467 = shalt.err (!%p12464_p7)
}
 0x10a   : > { %s12468_s11 = scalar_lea.vmem %s13189_s15, 1024  ;;  %s12710_s3 = smov [#allocation8]  }
 0x10b   : > { %p12469_p3 = scmp.ne.s32.totalorder %s13189_s15, %s12468_s11  ;;  %s12473_s26 = sshll.u32 %s12710_s3, 4  ;;  %s12474_s26 = int_to_ptr.vmem [resolvable:$false] %s12473_s26 }
 0x10c   : > { %s12475_s23 = scalar_lea.vmem %s12474_s26, 2048  ;;  %p12476_p8 = scmp.lt.s32.totalorder %s13189_s15, %s12474_s26 }
 0x10d   : > { %p12471_p13 = pnand %p12469_p3, %p12455_p12  ;;  %p12477_p9 = scmp.lt.s32.totalorder %s12475_s23, %s12468_s11 }
 0x10f   : > { %p12472_p5 = pneg %p12471_p13  ;;  %p12478_p2 = por %p12477_p9, %p12476_p8 }
 0x111   : > { %p12479_p10 = pnand %p12478_p2, %p12472_p5 }
 0x113   : > { %12482 = shalt.err (!%p12479_p10)
}
 0x114   : > { %s12711_s25 = smov 256   ;;  %s12712_s0 = smov 8  }
 0x115   : > { %11945 = dma.hbm_to_vmem [thread:$0]  (!%p13196_p11), %s13205_s14, 1024, %s13189_s15, %s12980_s5, %s12711_s25, %s15881_s16, %s12712_s0  }
 0x116   : > { %s15896_s28 = sshll.u32 %s13187_s9, 7  ;;  %s15897_s26 = sld [smem:[#allocation57_spill]] }
 0x117   : > { %s431_s24 = scalar_lea.vmem [#allocation9], %s13181_s4  ;;  %s15898_s8 = sand.u32 1, %s12699_s20  }
 0x118   : > { %s442_s27 = sshll.u32 %s431_s24, 4  ;;  %s13248_s19 = scalar_lea.sflag [#allocation10], %s15898_s8  ;;  %s13244_s27 = int_to_ptr.vmem [resolvable:$true] %s442_s27 }
 0x11c   : > { %s13241_s23 = scalar_lea.hbm %s15897_s26, %s15896_s28  ;;  %s12488_s9 = scalar_lea.hbm %s15897_s26, 8192 }
 0x11d   : > { %s12483_s18 = scalar_lea.hbm %s13241_s23, 1024  ;;  %p12489_p0 = scmp.lt.u32.totalorder %s13241_s23, %s15897_s26 }
 0x11e   : > { %p12484_p8 = scmp.ne.s32.totalorder %s13241_s23, %s12483_s18  ;;  %p12490_p4 = scmp.lt.u32.totalorder %s12488_s9, %s12483_s18 }
 0x11f   : > { %p12492_p3 = scmp.lt.u32.totalorder %s12483_s18, %s13241_s23 }
 0x120   : > { %p12486_p5 = pnand %p12484_p8, %p12455_p12  ;;  %p12491_p7 = por %p12490_p4, %p12489_p0 }
 0x122   : > { %p12487_p6 = pneg %p12486_p5  ;;  %p12493_p13 = por %p12492_p3, %p12491_p7 }
 0x124   : > { %p12494_p9 = pnand %p12493_p13, %p12487_p6 }
 0x126   : > { %12497 = shalt.err (!%p12494_p9)
}
 0x127   : > { %s12498_s8 = scalar_lea.vmem %s13244_s27, 1024  ;;  %s12713_s4 = smov [#allocation9]  }
 0x128   : > { %p12499_p2 = scmp.ne.s32.totalorder %s13244_s27, %s12498_s8  ;;  %s12503_s24 = sshll.u32 %s12713_s4, 4  ;;  %s12504_s24 = int_to_ptr.vmem [resolvable:$false] %s12503_s24 }
 0x129   : > { %s12505_s11 = scalar_lea.vmem %s12504_s24, 2048  ;;  %p12506_p5 = scmp.lt.s32.totalorder %s13244_s27, %s12504_s24 }
 0x12a   : > { %p12501_p10 = pnand %p12499_p2, %p12455_p12  ;;  %p12507_p0 = scmp.lt.s32.totalorder %s12505_s11, %s12498_s8 }
 0x12c   : > { %p12502_p8 = pneg %p12501_p10  ;;  %p12508_p4 = por %p12507_p0, %p12506_p5 }
 0x12e   : > { %p12509_p7 = pnand %p12508_p4, %p12502_p8 }
 0x130   : > { %12512 = shalt.err (!%p12509_p7)
}
 0x131   : > { %11948 = dma.hbm_to_vmem [thread:$0]  (!%p13196_p11), %s13241_s23, 1024, %s13244_s27, %s13248_s19, %s12711_s25, %s15881_s16, %s12712_s0  }
 0x132   : > { %s15899_s18 = sld [smem:[#allocation36_spill]] }
 0x138   : > { %p15900_p12 = scmp.ne.s32.totalorder %s15899_s18, 0 }
 0x13a   : > { %454 = sbr.rel (%p15900_p12) target bundleno = 1896 (0x768), region = 52 }
 0x141   : > { %s456_s3 = sand.u32 1, %s12667_s12   ;;  %p15901_p6 = scmp.ne.s32.totalorder %s15871_s22, 0 }
 0x142   : > { %s10679_s5 = sshll.u32 %s456_s3, 9  ;;  %s457_s15 = scalar_lea.sflag [#allocation4], %s456_s3 }
 0x143   : > { %s13280_s9 = scalar_lea.vmem [#allocation3], %s10679_s5 }
 0x144   : > { %12606 = dma.done.wait (%p15901_p6), %s457_s15, 8192  }
 0x145   : > { %12608 = vsyncadd (%p15901_p6), %s457_s15, 4294959104  ;;  %s15902_s2 = sld [smem:[#allocation29_spill]]  ;;  %s15903_s14 = sld [smem:[#allocation38_spill]] }
 0x146   : > { %s465_s28 = sand.u32 1, %s12854_s21  }
 0x147   : > { %s466_s16 = scalar_lea.sflag [#allocation7], %s465_s28 }
 0x14b   : > { %s467_s19 = sand.u32 1, %s15902_s2   ;;  %p15904_p11 = scmp.ne.s32.totalorder %s15903_s14, 0 }
 0x14c   : > { %s10680_s27 = sshll.u32 %s467_s19, 9 }
 0x14d   : > { %s13288_s25 = scalar_lea.vmem [#allocation6], %s10680_s27 }
 0x14e   : > { %12610 = dma.done.wait (%p15904_p11), %s466_s16, 8192  }
 0x14f   : > { %12612 = vsyncadd (%p15904_p11), %s466_s16, 4294959104  ;;  %s15905_s0 = sld [smem:[#allocation27_spill]] }
 0x155   : > { %s476_s23 = sand.u32 1, %s15905_s0  }
 0x156   : > { %s13297_s22 = sshll.u32 %s476_s23, 6 }
 0x157   : > { %s13300_s8 = scalar_lea.vmem [#allocation8], %s13297_s22 }
 0x158   : > { %12614 = dma.done.wait (%p13167_p1), %s466_s16, 1024  }
 0x159   : > { %12616 = vsyncadd (%p13167_p1), %s466_s16, 4294966272  ;;  %s484_s4 = scalar_lea.sflag [#allocation10], %s465_s28  ;;  %s13307_s24 = scalar_lea.vmem [#allocation9], %s13297_s22 }
 0x15a   : > { %12618 = dma.done.wait (%p13167_p1), %s484_s4, 1024  }
 0x15b   : > { %12620 = vsyncadd (%p13167_p1), %s484_s4, 4294966272  ;;  %p15906_p3 = scmp.eq.s32.totalorder %s12854_s21, 0 }
 0x15d   : > { %12622 = dma.done.wait (%p15906_p3), [#allocation10], 16   ;;  %p15907_p13 = pmov %p15906_p3 }
 0x15e   : > { %p15908_p9 = pmov %p15906_p3 }
 0x15f   : > { %12624 = vsyncadd (%p15907_p13), [#allocation10], 4294967280 }
 0x160   : > { %12626 = dma.done.wait (%p15908_p9), [#allocation13], 1040   ;;  %p15909_p2 = pmov %p15906_p3 }
 0x162   : > { %12628 = vsyncadd (%p15909_p2), [#allocation13], 4294966256  ;;  %p15910_p10 = pmov %p15909_p2 }
 0x163   : > { %p15911_p8 = pmov %p15909_p2 }
 0x164   : > { %12630 = dma.done.wait (%p15910_p10), [#allocation16], 16  }
 0x165   : > { %12632 = vsyncadd (%p15911_p8), [#allocation16], 4294967280  ;;  %v12714_v0 = vmov 0.0   ;;  %vm12715_vm0 = vmmov 0   ;;  %vm1072_vm1 = vcmask 130048   ;;  %vm559_vm2 = vcmask 64512  }
 0x166   : > { %11105 = vmatprep.subr.bf16.mxu1 %v12714_v0  ;;  %11107 = vmatprep.mubr.msk.bf16.mxu1 %vm12715_vm0, %v12714_v0  ;;  %v816_v1 = vld [vmem:[%s13288_s25] sm:$0xf]  ;;  %v820_v3 = vld [vmem:[%s13288_s25 + $0x10] sm:$0xf]  ;;  %v817_v4 = vld [vmem:[%s13288_s25 + $0x4] sm:$0xf] }
 0x167   : > { %11129 = vmatprep.subr.bf16.mxu0 %v12714_v0  ;;  %11131 = vmatprep.mubr.msk.bf16.mxu0 %vm12715_vm0, %v12714_v0  ;;  %v1077_v2 = vsel %vm1072_vm1, %v816_v1, 0  ;;  %v1261_v5 = vsel %vm1072_vm1, %v820_v3, 0  ;;  %v688_v6 = vld [vmem:[%s13280_s9] sm:$0xf]  ;;  %v1123_v7 = vsel %vm1072_vm1, %v817_v4, 0  ;;  %560 = vst.msk [vmem:[#allocation2] sm:$0xff] %vm559_vm2, %v12714_v0 }
 0x168   : > { %11106 = vmatpush3.bf16.xpose.msra.mxu1 %v1077_v2  ;;  %11130 = vmatpush3.bf16.xpose.msra.mxu0 %v1261_v5  ;;  %v822_v8 = vld [vmem:[%s13288_s25 + $0x18] sm:$0xf]  ;;  %v692_v9 = vld [vmem:[%s13280_s9 + $0x10] sm:$0xf]  ;;  %v818_v11 = vld [vmem:[%s13288_s25 + $0x8] sm:$0xf] }
 0x169   : > { %11111 = vmatprep.subr.bf16.mxu1 %v12714_v0  ;;  %11141 = vmatprep.subr.bf16.mxu0 %v12714_v0  ;;  %v1353_v10 = vsel %vm1072_vm1, %v822_v8, 0  ;;  %v689_v12 = vld [vmem:[%s13280_s9 + $0x4] sm:$0xf]  ;;  %v1169_v13 = vsel %vm1072_vm1, %v818_v11, 0  ;;  %v824_v14 = vld [vmem:[%s13288_s25 + $0x20] sm:$0xf] }
 0x16a   : > { %v694_v15 = vld [vmem:[%s13280_s9 + $0x18] sm:$0xf]  ;;  %v1445_v16 = vsel %vm1072_vm1, %v824_v14, 0  ;;  %v819_v17 = vld [vmem:[%s13288_s25 + $0xc] sm:$0xf]  ;;  %561 = vst.msk [vmem:[#allocation2 + $0x8] sm:$0xff] %vm559_vm2, %v12714_v0 }
 0x16b   : > { %v690_v18 = vld [vmem:[%s13280_s9 + $0x8] sm:$0xf]  ;;  %v1215_v19 = vsel %vm1072_vm1, %v819_v17, 0  ;;  %v696_v21 = vld [vmem:[%s13280_s9 + $0x20] sm:$0xf]  ;;  %562 = vst.msk [vmem:[#allocation2 + $0x10] sm:$0xff] %vm559_vm2, %v12714_v0 }
 0x16c   : > { %v826_v20 = vld [vmem:[%s13288_s25 + $0x28] sm:$0xf]  ;;  %v821_v23 = vld [vmem:[%s13288_s25 + $0x14] sm:$0xf]  ;;  %v691_v24 = vld [vmem:[%s13280_s9 + $0xc] sm:$0xf] }
 0x16d   : > { %v1537_v22 = vsel %vm1072_vm1, %v826_v20, 0  ;;  %v1307_v25 = vsel %vm1072_vm1, %v821_v23, 0  ;;  %v828_v26 = vld [vmem:[%s13288_s25 + $0x30] sm:$0xf]  ;;  %v698_v27 = vld [vmem:[%s13280_s9 + $0x28] sm:$0xf] }
 0x16e   : > { %v823_v28 = vld [vmem:[%s13288_s25 + $0x1c] sm:$0xf]  ;;  %v1629_v29 = vsel %vm1072_vm1, %v828_v26, 0  ;;  %v693_v30 = vld [vmem:[%s13280_s9 + $0x14] sm:$0xf]  ;;  %563 = vst.msk [vmem:[#allocation2 + $0x18] sm:$0xff] %vm559_vm2, %v12714_v0 }
 0x16f   : > { %11108 = vmatmul.mubr.msk.bf16.vlgmr.msra.gmra.mrb[0].mxu1 %vm1072_vm1, %v688_v6  ;;  %11132 = vmatmul.mubr.msk.bf16.vlgmr.msra.gmra.mrb[0].mxu0 %vm1072_vm1, %v692_v9  ;;  %v1399_v31 = vsel %vm1072_vm1, %v823_v28, 0  ;;  %v830_v32 = vld [vmem:[%s13288_s25 + $0x38] sm:$0xf]  ;;  %v700_v33 = vld [vmem:[%s13280_s9 + $0x30] sm:$0xf]  ;;  %564 = vst.msk [vmem:[#allocation2 + $0x20] sm:$0xff] %vm559_vm2, %v12714_v0 }
 0x170   : > { %11112 = vmatpush3.bf16.xpose.msra.mxu1 %v1123_v7  ;;  %11113 = vmatprep.mubr.msk.bf16.mxu1 %vm12715_vm0, %v12714_v0  ;;  %v825_v34 = vld [vmem:[%s13288_s25 + $0x24] sm:$0xf]  ;;  %v1721_v35 = vsel %vm1072_vm1, %v830_v32, 0  ;;  %v695_v36 = vld [vmem:[%s13280_s9 + $0x1c] sm:$0xf]  ;;  %565 = vst.msk [vmem:[#allocation2 + $0x28] sm:$0xff] %vm559_vm2, %v12714_v0 }
 0x171   : > { %11117 = vmatprep.subr.bf16.mxu1 %v12714_v0  ;;  %11142 = vmatpush3.bf16.xpose.msra.mxu0 %v1353_v10  ;;  %v1491_v37 = vsel %vm1072_vm1, %v825_v34, 0  ;;  %v832_v38 = vld [vmem:[%s13288_s25 + $0x40] sm:$0xf]  ;;  %v702_v39 = vld [vmem:[%s13280_s9 + $0x38] sm:$0xf]  ;;  %566 = vst.msk [vmem:[#allocation2 + $0x30] sm:$0xff] %vm559_vm2, %v12714_v0 }
 0x172   : > { %11143 = vmatprep.mubr.msk.bf16.mxu0 %vm12715_vm0, %v12714_v0  ;;  %11153 = vmatprep.subr.bf16.mxu0 %v12714_v0  ;;  %v1813_v40 = vsel %vm1072_vm1, %v832_v38, 0  ;;  %v827_v41 = vld [vmem:[%s13288_s25 + $0x2c] sm:$0xf]  ;;  %v697_v42 = vld [vmem:[%s13280_s9 + $0x24] sm:$0xf]  ;;  %567 = vst.msk [vmem:[#allocation2 + $0x38] sm:$0xff] %vm559_vm2, %v12714_v0 }
 0x173   : > { %v1583_v43 = vsel %vm1072_vm1, %v827_v41, 0  ;;  %v834_v44 = vld [vmem:[%s13288_s25 + $0x48] sm:$0xf]  ;;  %v704_v45 = vld [vmem:[%s13280_s9 + $0x40] sm:$0xf]  ;;  %568 = vst.msk [vmem:[#allocation2 + $0x40] sm:$0xff] %vm559_vm2, %v12714_v0 }
 0x174   : > { %v1905_v46 = vsel %vm1072_vm1, %v834_v44, 0  ;;  %v829_v47 = vld [vmem:[%s13288_s25 + $0x34] sm:$0xf]  ;;  %v699_v48 = vld [vmem:[%s13280_s9 + $0x2c] sm:$0xf]  ;;  %569 = vst.msk [vmem:[#allocation2 + $0x48] sm:$0xff] %vm559_vm2, %v12714_v0 }
 0x175   : > { %v1675_v49 = vsel %vm1072_vm1, %v829_v47, 0  ;;  %v836_v50 = vld [vmem:[%s13288_s25 + $0x50] sm:$0xf]  ;;  %v706_v51 = vld [vmem:[%s13280_s9 + $0x48] sm:$0xf]  ;;  %570 = vst.msk [vmem:[#allocation2 + $0x50] sm:$0xff] %vm559_vm2, %v12714_v0 }
 0x176   : > { %v1997_v52 = vsel %vm1072_vm1, %v836_v50, 0  ;;  %v831_v53 = vld [vmem:[%s13288_s25 + $0x3c] sm:$0xf]  ;;  %v701_v54 = vld [vmem:[%s13280_s9 + $0x34] sm:$0xf]  ;;  %571 = vst.msk [vmem:[#allocation2 + $0x58] sm:$0xff] %vm559_vm2, %v12714_v0 }
 0x177   : > { %11114 = vmatmul.mubr.msk.bf16.vlgmr.msra.gmra.mrb[4].mxu1 %vm1072_vm1, %v689_v12  ;;  %v1767_v55 = vsel %vm1072_vm1, %v831_v53, 0  ;;  %v838_v56 = vld [vmem:[%s13288_s25 + $0x58] sm:$0xf]  ;;  %v708_v57 = vld [vmem:[%s13280_s9 + $0x50] sm:$0xf]  ;;  %572 = vst.msk [vmem:[#allocation2 + $0x60] sm:$0xff] %vm559_vm2, %v12714_v0 }
 0x178   : > { %11118 = vmatpush3.bf16.xpose.msra.mxu1 %v1169_v13  ;;  %11119 = vmatprep.mubr.msk.bf16.mxu1 %vm12715_vm0, %v12714_v0  ;;  %v2089_v58 = vsel %vm1072_vm1, %v838_v56, 0  ;;  %v833_v59 = vld [vmem:[%s13288_s25 + $0x44] sm:$0xf]  ;;  %v703_v60 = vld [vmem:[%s13280_s9 + $0x3c] sm:$0xf]  ;;  %573 = vst.msk [vmem:[#allocation2 + $0x68] sm:$0xff] %vm559_vm2, %v12714_v0 }
 0x179   : > { %11123 = vmatprep.subr.bf16.mxu1 %v12714_v0  ;;  %11144 = vmatmul.mubr.msk.bf16.vlgmr.msra.gmra.mrb[4].mxu0 %vm1072_vm1, %v694_v15  ;;  %v1859_v61 = vsel %vm1072_vm1, %v833_v59, 0  ;;  %v840_v62 = vld [vmem:[%s13288_s25 + $0x60] sm:$0xf]  ;;  %v710_v63 = vld [vmem:[%s13280_s9 + $0x58] sm:$0xf]  ;;  %574 = vst.msk [vmem:[#allocation2 + $0x70] sm:$0xff] %vm559_vm2, %v12714_v0 }
 0x17a   : > { %11154 = vmatpush3.bf16.xpose.msra.mxu0 %v1445_v16  ;;  %11155 = vmatprep.mubr.msk.bf16.mxu0 %vm12715_vm0, %v12714_v0  ;;  %v2181_v1 = vsel %vm1072_vm1, %v840_v62, 0  ;;  %v13474_v2 = vld [vmem:[%s13288_s25 + $0x4c] sm:$0xf]  ;;  %575 = vst.msk [vmem:[#allocation2 + $0x78] sm:$0xff] %vm559_vm2, %v12714_v0  ;;  %576 = vst.msk [vmem:[#allocation2 + $0x80] sm:$0xff] %vm559_vm2, %v12714_v0  ;;  %s12718_s21 = smov 24  }
 0x17b   : > { %11165 = vmatprep.subr.bf16.mxu0 %v12714_v0  ;;  %577 = vst.msk [vmem:[#allocation2 + $0x88] sm:$0xff] %vm559_vm2, %v12714_v0  ;;  %578 = vst.msk [vmem:[#allocation2 + $0x90] sm:$0xff] %vm559_vm2, %v12714_v0  ;;  %v705_v3 = vld [vmem:[%s13280_s9 + $0x44] sm:$0xf]  ;;  %v1951_v4 = vsel %vm1072_vm1, %v13474_v2, 0  ;;  %s12719_s29 = smov 8  }
 0x17c   : > { %579 = vst.msk [vmem:[#allocation2 + $0x98] sm:$0xff] %vm559_vm2, %v12714_v0  ;;  %580 = vst.msk [vmem:[#allocation2 + $0xa0] sm:$0xff] %vm559_vm2, %v12714_v0  ;;  %v842_v5 = vld [vmem:[%s13288_s25 + $0x68] sm:$0xf]  ;;  %v712_v6 = vld [vmem:[%s13280_s9 + $0x60] sm:$0xf] }
 0x17d   : > { %581 = vst.msk [vmem:[#allocation2 + $0xa8] sm:$0xff] %vm559_vm2, %v12714_v0  ;;  %582 = vst.msk [vmem:[#allocation2 + $0xb0] sm:$0xff] %vm559_vm2, %v12714_v0  ;;  %v2273_v7 = vsel %vm1072_vm1, %v842_v5, 0  ;;  %v837_v8 = vld [vmem:[%s13288_s25 + $0x54] sm:$0xf]  ;;  %s12720_s11 = smov 32  }
 0x17e   : > { %583 = vst.msk [vmem:[#allocation2 + $0xb8] sm:$0xff] %vm559_vm2, %v12714_v0  ;;  %584 = vst.msk [vmem:[#allocation2 + $0xc0] sm:$0xff] %vm559_vm2, %v12714_v0  ;;  %v707_v9 = vld [vmem:[%s13280_s9 + $0x4c] sm:$0xf]  ;;  %v2043_v10 = vsel %vm1072_vm1, %v837_v8, 0  ;;  %s12721_s18 = smov 16  }
 0x17f   : > { %11120 = vmatmul.mubr.msk.bf16.vlgmr.msra.gmra.mrb[8].mxu1 %vm1072_vm1, %v690_v18  ;;  %585 = vst.msk [vmem:[#allocation2 + $0xc8] sm:$0xff] %vm559_vm2, %v12714_v0  ;;  %586 = vst.msk [vmem:[#allocation2 + $0xd0] sm:$0xff] %vm559_vm2, %v12714_v0  ;;  %v844_v11 = vld [vmem:[%s13288_s25 + $0x70] sm:$0xf]  ;;  %v714_v12 = vld [vmem:[%s13280_s9 + $0x68] sm:$0xf] }
 0x180   : > { %11124 = vmatpush3.bf16.xpose.msra.mxu1 %v1215_v19  ;;  %11125 = vmatprep.mubr.msk.bf16.mxu1 %vm12715_vm0, %v12714_v0  ;;  %587 = vst.msk [vmem:[#allocation2 + $0xd8] sm:$0xff] %vm559_vm2, %v12714_v0  ;;  %588 = vst.msk [vmem:[#allocation2 + $0xe0] sm:$0xff] %vm559_vm2, %v12714_v0  ;;  %v2365_v13 = vsel %vm1072_vm1, %v844_v11, 0  ;;  %v839_v14 = vld [vmem:[%s13288_s25 + $0x5c] sm:$0xf]  ;;  %s12722_s3 = smov 48  }
 0x181   : > { %11135 = vmatprep.subr.bf16.mxu1 %v12714_v0  ;;  %11156 = vmatmul.mubr.msk.bf16.vlgmr.msra.gmra.mrb[8].mxu0 %vm1072_vm1, %v696_v21  ;;  %589 = vst.msk [vmem:[#allocation2 + $0xe8] sm:$0xff] %vm559_vm2, %v12714_v0  ;;  %590 = vst.msk [vmem:[#allocation2 + $0xf0] sm:$0xff] %vm559_vm2, %v12714_v0  ;;  %v709_v15 = vld [vmem:[%s13280_s9 + $0x54] sm:$0xf]  ;;  %v2135_v16 = vsel %vm1072_vm1, %v839_v14, 0  ;;  %s12723_s5 = smov 40  }
 0x182   : > { %11166 = vmatpush3.bf16.xpose.msra.mxu0 %v1537_v22  ;;  %11167 = vmatprep.mubr.msk.bf16.mxu0 %vm12715_vm0, %v12714_v0  ;;  %591 = vst.msk [vmem:[#allocation2 + $0xf8] sm:$0xff] %vm559_vm2, %v12714_v0  ;;  %592 = vst.msk [vmem:[#allocation2 + $0x100] sm:$0xff] %vm559_vm2, %v12714_v0  ;;  %v846_v17 = vld [vmem:[%s13288_s25 + $0x78] sm:$0xf]  ;;  %v716_v18 = vld [vmem:[%s13280_s9 + $0x70] sm:$0xf] }
 0x183   : > { %11177 = vmatprep.subr.bf16.mxu0 %v12714_v0  ;;  %593 = vst.msk [vmem:[#allocation2 + $0x108] sm:$0xff] %vm559_vm2, %v12714_v0  ;;  %594 = vst.msk [vmem:[#allocation2 + $0x110] sm:$0xff] %vm559_vm2, %v12714_v0  ;;  %v2457_v19 = vsel %vm1072_vm1, %v846_v17, 0  ;;  %v841_v20 = vld [vmem:[%s13288_s25 + $0x64] sm:$0xf]  ;;  %s12724_s15 = smov 56  }
 0x184   : > { %595 = vst.msk [vmem:[#allocation2 + $0x118] sm:$0xff] %vm559_vm2, %v12714_v0  ;;  %596 = vst.msk [vmem:[#allocation2 + $0x120] sm:$0xff] %vm559_vm2, %v12714_v0  ;;  %v711_v21 = vld [vmem:[%s13280_s9 + $0x5c] sm:$0xf]  ;;  %v2227_v22 = vsel %vm1072_vm1, %v841_v20, 0  ;;  %vm10005_vm3 = vcmask 195584  }
 0x185   : > { %597 = vst.msk [vmem:[#allocation2 + $0x128] sm:$0xff] %vm559_vm2, %v12714_v0  ;;  %598 = vst.msk [vmem:[#allocation2 + $0x130] sm:$0xff] %vm559_vm2, %v12714_v0  ;;  %v848_v23 = vld [vmem:[%s13288_s25 + $0x80] sm:$0xf]  ;;  %v843_v26 = vld [vmem:[%s13288_s25 + $0x6c] sm:$0xf] }
 0x186   : > { %599 = vst.msk [vmem:[#allocation2 + $0x138] sm:$0xff] %vm559_vm2, %v12714_v0  ;;  %600 = vst.msk [vmem:[#allocation2 + $0x140] sm:$0xff] %vm559_vm2, %v12714_v0  ;;  %v2319_v28 = vsel %vm1072_vm1, %v843_v26, 0  ;;  %v845_v32 = vld [vmem:[%s13288_s25 + $0x74] sm:$0xf]  ;;  %vm10022_vm4 = vcmask 261120  }
 0x187   : > { %11126 = vmatmul.mubr.msk.bf16.vlgmr.msra.gmra.mrb[12].mxu1 %vm1072_vm1, %v691_v24  ;;  %601 = vst.msk [vmem:[#allocation2 + $0x148] sm:$0xff] %vm559_vm2, %v12714_v0  ;;  %602 = vst.msk [vmem:[#allocation2 + $0x150] sm:$0xff] %vm559_vm2, %v12714_v0  ;;  %v718_v24 = vld [vmem:[%s13280_s9 + $0x78] sm:$0xf]  ;;  %v2411_v34 = vsel %vm1072_vm1, %v845_v32, 0  ;;  %vm10039_vm5 = vcmask 326656  }
 0x188   : > { %11136 = vmatpush3.bf16.xpose.msra.mxu1 %v1307_v25  ;;  %11137 = vmatprep.mubr.msk.bf16.mxu1 %vm12715_vm0, %v12714_v0  ;;  %603 = vst.msk [vmem:[#allocation2 + $0x158] sm:$0xff] %vm559_vm2, %v12714_v0  ;;  %604 = vst.msk [vmem:[#allocation2 + $0x160] sm:$0xff] %vm559_vm2, %v12714_v0  ;;  %v2549_v25 = vsel %vm1072_vm1, %v848_v23, 0  ;;  %v847_v38 = vld [vmem:[%s13288_s25 + $0x7c] sm:$0xf]  ;;  %vm10056_vm6 = vcmask 392192  }
 0x189   : > { %11147 = vmatprep.subr.bf16.mxu1 %v12714_v0  ;;  %11168 = vmatmul.mubr.msk.bf16.vlgmr.msra.gmra.mrb[12].mxu0 %vm1072_vm1, %v698_v27  ;;  %605 = vst.msk [vmem:[#allocation2 + $0x168] sm:$0xff] %vm559_vm2, %v12714_v0  ;;  %606 = vst.msk [vmem:[#allocation2 + $0x170] sm:$0xff] %vm559_vm2, %v12714_v0  ;;  %v713_v27 = vld [vmem:[%s13280_s9 + $0x64] sm:$0xf]  ;;  %v854_v41 = vld [vmem:[%s13288_s25 + $0x98] sm:$0xf] }
 0x18a   : > { %11178 = vmatpush3.bf16.xpose.msra.mxu0 %v1629_v29  ;;  %11179 = vmatprep.mubr.msk.bf16.mxu0 %vm12715_vm0, %v12714_v0  ;;  %607 = vst.msk [vmem:[#allocation2 + $0x178] sm:$0xff] %vm559_vm2, %v12714_v0  ;;  %608 = vst.msk [vmem:[#allocation2 + $0x180] sm:$0xff] %vm559_vm2, %v12714_v0  ;;  %v850_v29 = vld [vmem:[%s13288_s25 + $0x88] sm:$0xf]  ;;  %v849_v44 = vld [vmem:[%s13288_s25 + $0x84] sm:$0xf] }
 0x18b   : > { %11189 = vmatprep.subr.bf16.mxu0 %v12714_v0  ;;  %609 = vst.msk [vmem:[#allocation2 + $0x188] sm:$0xff] %vm559_vm2, %v12714_v0  ;;  %610 = vst.msk [vmem:[#allocation2 + $0x190] sm:$0xff] %vm559_vm2, %v12714_v0  ;;  %v856_v47 = vld [vmem:[%s13288_s25 + $0xa0] sm:$0xf]  ;;  %v851_v50 = vld [vmem:[%s13288_s25 + $0x8c] sm:$0xf] }
 0x18c   : > { %611 = vst.msk [vmem:[#allocation2 + $0x198] sm:$0xff] %vm559_vm2, %v12714_v0  ;;  %612 = vst.msk [vmem:[#allocation2 + $0x1a0] sm:$0xff] %vm559_vm2, %v12714_v0  ;;  %v858_v53 = vld [vmem:[%s13288_s25 + $0xa8] sm:$0xf]  ;;  %v853_v56 = vld [vmem:[%s13288_s25 + $0x94] sm:$0xf] }
 0x18d   : > { %613 = vst.msk [vmem:[#allocation2 + $0x1a8] sm:$0xff] %vm559_vm2, %v12714_v0  ;;  %614 = vst.msk [vmem:[#allocation2 + $0x1b0] sm:$0xff] %vm559_vm2, %v12714_v0  ;;  %v860_v59 = vld [vmem:[%s13288_s25 + $0xb0] sm:$0xf]  ;;  %v855_v62 = vld [vmem:[%s13288_s25 + $0x9c] sm:$0xf] }
 0x18e   : > { %615 = vst.msk [vmem:[#allocation2 + $0x1b8] sm:$0xff] %vm559_vm2, %v12714_v0  ;;  %616 = vst.msk [vmem:[#allocation2 + $0x1c0] sm:$0xff] %vm559_vm2, %v12714_v0  ;;  %v862_v2 = vld [vmem:[%s13288_s25 + $0xb8] sm:$0xf]  ;;  %v857_v5 = vld [vmem:[%s13288_s25 + $0xa4] sm:$0xf] }
 0x18f   : > { %11138 = vmatmul.mubr.msk.bf16.vlgmr.msra.gmra.mrb[16].mxu1 %vm1072_vm1, %v693_v30  ;;  %617 = vst.msk [vmem:[#allocation2 + $0x1c8] sm:$0xff] %vm559_vm2, %v12714_v0  ;;  %618 = vst.msk [vmem:[#allocation2 + $0x1d0] sm:$0xff] %vm559_vm2, %v12714_v0  ;;  %v720_v30 = vld [vmem:[%s13280_s9 + $0x80] sm:$0xf]  ;;  %v859_v11 = vld [vmem:[%s13288_s25 + $0xac] sm:$0xf] }
 0x190   : > { %11148 = vmatpush3.bf16.xpose.msra.mxu1 %v1399_v31  ;;  %11149 = vmatprep.mubr.msk.bf16.mxu1 %vm12715_vm0, %v12714_v0  ;;  %619 = vst.msk [vmem:[#allocation2 + $0x1d8] sm:$0xff] %vm559_vm2, %v12714_v0  ;;  %620 = vst.msk [vmem:[#allocation2 + $0x1e0] sm:$0xff] %vm559_vm2, %v12714_v0  ;;  %v2641_v31 = vsel %vm1072_vm1, %v850_v29, 0  ;;  %v864_v8 = vld [vmem:[%s13288_s25 + $0xc0] sm:$0xf]  ;;  %vm10073_vm7 = vcmask 457728  }
 0x191   : > { %11159 = vmatprep.subr.bf16.mxu1 %v12714_v0  ;;  %11180 = vmatmul.mubr.msk.bf16.vlgmr.msra.gmra.mrb[16].mxu0 %vm1072_vm1, %v700_v33  ;;  %621 = vst.msk [vmem:[#allocation2 + $0x1e8] sm:$0xff] %vm559_vm2, %v12714_v0  ;;  %622 = vst.msk [vmem:[#allocation2 + $0x1f0] sm:$0xff] %vm559_vm2, %v12714_v0  ;;  %v715_v33 = vld [vmem:[%s13280_s9 + $0x6c] sm:$0xf]  ;;  %v866_v14 = vld [vmem:[%s13288_s25 + $0xc8] sm:$0xf] }
 0x192   : > { %11190 = vmatpush3.bf16.xpose.msra.mxu0 %v1721_v35  ;;  %11191 = vmatprep.mubr.msk.bf16.mxu0 %vm12715_vm0, %v12714_v0  ;;  %623 = vst.msk [vmem:[#allocation2 + $0x1f8] sm:$0xff] %vm559_vm2, %v12714_v0  ;;  %624 = vst.msk [vmem:[#allocation2 + $0x200] sm:$0xff] %vm559_vm2, %v12714_v0  ;;  %v852_v35 = vld [vmem:[%s13288_s25 + $0x90] sm:$0xf]  ;;  %v861_v17 = vld [vmem:[%s13288_s25 + $0xb4] sm:$0xf] }
 0x193   : > { %11201 = vmatprep.subr.bf16.mxu0 %v12714_v0  ;;  %625 = vst.msk [vmem:[#allocation2 + $0x208] sm:$0xff] %vm559_vm2, %v12714_v0  ;;  %626 = vst.msk [vmem:[#allocation2 + $0x210] sm:$0xff] %vm559_vm2, %v12714_v0  ;;  %v868_v20 = vld [vmem:[%s13288_s25 + $0xd0] sm:$0xf]  ;;  %v863_v23 = vld [vmem:[%s13288_s25 + $0xbc] sm:$0xf] }
 0x194   : > { %627 = vst.msk [vmem:[#allocation2 + $0x218] sm:$0xff] %vm559_vm2, %v12714_v0  ;;  %628 = vst.msk [vmem:[#allocation2 + $0x220] sm:$0xff] %vm559_vm2, %v12714_v0  ;;  %v870_v26 = vld [vmem:[%s13288_s25 + $0xd8] sm:$0xf]  ;;  %v865_v29 = vld [vmem:[%s13288_s25 + $0xc4] sm:$0xf] }
 0x195   : > { %629 = vst.msk [vmem:[#allocation2 + $0x228] sm:$0xff] %vm559_vm2, %v12714_v0  ;;  %630 = vst.msk [vmem:[#allocation2 + $0x230] sm:$0xff] %vm559_vm2, %v12714_v0  ;;  %v872_v32 = vld [vmem:[%s13288_s25 + $0xe0] sm:$0xf]  ;;  %s15950_s2 = sld [smem:[#allocation30_spill]]  ;;  %s15951_s14 = sld [smem:[#allocation32_spill]] }
 0x196   : > { %631 = vst.msk [vmem:[#allocation2 + $0x238] sm:$0xff] %vm559_vm2, %v12714_v0  ;;  %632 = vst.msk [vmem:[#allocation2 + $0x240] sm:$0xff] %vm559_vm2, %v12714_v0  ;;  %s15663_s28 = scalar_lea.vmem [#allocation17], %s13297_s22  ;;  %p15954_p5 = scmp.ne.s32.totalorder %s15891_s30, 0 }
 0x197   : > { %11150 = vmatmul.mubr.msk.bf16.vlgmr.msra.gmra.mrb[20].mxu1 %vm1072_vm1, %v695_v36  ;;  %633 = vst.msk [vmem:[#allocation2 + $0x248] sm:$0xff] %vm559_vm2, %v12714_v0  ;;  %634 = vst.msk [vmem:[#allocation2 + $0x250] sm:$0xff] %vm559_vm2, %v12714_v0  ;;  %v722_v36 = vld [vmem:[%s13280_s9 + $0x88] sm:$0xf]  ;;  %s10439_s22 = sshll.u32 %s15663_s28, 4  ;;  %s15681_s22 = int_to_ptr.vmem [resolvable:$true] %s10439_s22 }
 0x198   : > { %11160 = vmatpush3.bf16.xpose.msra.mxu1 %v1491_v37  ;;  %11161 = vmatprep.mubr.msk.bf16.mxu1 %vm12715_vm0, %v12714_v0  ;;  %635 = vst.msk [vmem:[#allocation2 + $0x258] sm:$0xff] %vm559_vm2, %v12714_v0  ;;  %636 = vst.msk [vmem:[#allocation2 + $0x260] sm:$0xff] %vm559_vm2, %v12714_v0  ;;  %v2733_v37 = vsel %vm1072_vm1, %v852_v35, 0  ;;  %v867_v35 = vld [vmem:[%s13288_s25 + $0xcc] sm:$0xf] }
 0x199   : > { %11171 = vmatprep.subr.bf16.mxu1 %v12714_v0  ;;  %11192 = vmatmul.mubr.msk.bf16.vlgmr.msra.gmra.mrb[20].mxu0 %vm1072_vm1, %v702_v39  ;;  %637 = vst.msk [vmem:[#allocation2 + $0x268] sm:$0xff] %vm559_vm2, %v12714_v0  ;;  %638 = vst.msk [vmem:[#allocation2 + $0x270] sm:$0xff] %vm559_vm2, %v12714_v0  ;;  %v717_v39 = vld [vmem:[%s13280_s9 + $0x74] sm:$0xf] }
 0x19a   : > { %11202 = vmatpush3.bf16.xpose.msra.mxu0 %v1813_v40  ;;  %11203 = vmatprep.mubr.msk.bf16.mxu0 %vm12715_vm0, %v12714_v0  ;;  %639 = vst.msk [vmem:[#allocation2 + $0x278] sm:$0xff] %vm559_vm2, %v12714_v0  ;;  %640 = vst.msk [vmem:[#allocation2 + $0x280] sm:$0xff] %vm559_vm2, %v12714_v0  ;;  %v2503_v40 = vsel %vm1072_vm1, %v847_v38, 0  ;;  %v874_v38 = vld [vmem:[%s13288_s25 + $0xe8] sm:$0xf] }
 0x19b   : > { %11213 = vmatprep.subr.bf16.mxu0 %v12714_v0  ;;  %641 = vst.msk [vmem:[#allocation2 + $0x288] sm:$0xff] %vm559_vm2, %v12714_v0  ;;  %642 = vst.msk [vmem:[#allocation2 + $0x290] sm:$0xff] %vm559_vm2, %v12714_v0  ;;  %s10830_s16 = sshll.u32 %s15951_s14, 5 }
 0x19c   : > { %643 = vst.msk [vmem:[#allocation2 + $0x298] sm:$0xff] %vm559_vm2, %v12714_v0  ;;  %644 = vst.msk [vmem:[#allocation2 + $0x2a0] sm:$0xff] %vm559_vm2, %v12714_v0 }
 0x19d   : > { %645 = vst.msk [vmem:[#allocation2 + $0x2a8] sm:$0xff] %vm559_vm2, %v12714_v0  ;;  %646 = vst.msk [vmem:[#allocation2 + $0x2b0] sm:$0xff] %vm559_vm2, %v12714_v0 }
 0x19e   : > { %647 = vst.msk [vmem:[#allocation2 + $0x2b8] sm:$0xff] %vm559_vm2, %v12714_v0  ;;  %648 = vst.msk [vmem:[#allocation2 + $0x2c0] sm:$0xff] %vm559_vm2, %v12714_v0 }
 0x19f   : > { %11162 = vmatmul.mubr.msk.bf16.vlgmr.msra.gmra.mrb[24].mxu1 %vm1072_vm1, %v697_v42  ;;  %649 = vst.msk [vmem:[#allocation2 + $0x2c8] sm:$0xff] %vm559_vm2, %v12714_v0  ;;  %650 = vst.msk [vmem:[#allocation2 + $0x2d0] sm:$0xff] %vm559_vm2, %v12714_v0  ;;  %v724_v42 = vld [vmem:[%s13280_s9 + $0x90] sm:$0xf] }
 0x1a0   : > { %11172 = vmatpush3.bf16.xpose.msra.mxu1 %v1583_v43  ;;  %11173 = vmatprep.mubr.msk.bf16.mxu1 %vm12715_vm0, %v12714_v0  ;;  %651 = vst.msk [vmem:[#allocation2 + $0x2d8] sm:$0xff] %vm559_vm2, %v12714_v0  ;;  %652 = vst.msk [vmem:[#allocation2 + $0x2e0] sm:$0xff] %vm559_vm2, %v12714_v0  ;;  %v2825_v43 = vsel %vm1072_vm1, %v854_v41, 0  ;;  %v3745_v41 = vsel %vm1072_vm1, %v874_v38, 0 }
 0x1a1   : > { %11183 = vmatprep.subr.bf16.mxu1 %v12714_v0  ;;  %11204 = vmatmul.mubr.msk.bf16.vlgmr.msra.gmra.mrb[24].mxu0 %vm1072_vm1, %v704_v45  ;;  %653 = vst.msk [vmem:[#allocation2 + $0x2e8] sm:$0xff] %vm559_vm2, %v12714_v0  ;;  %654 = vst.msk [vmem:[#allocation2 + $0x2f0] sm:$0xff] %vm559_vm2, %v12714_v0  ;;  %v719_v45 = vld [vmem:[%s13280_s9 + $0x7c] sm:$0xf] }
 0x1a2   : > { %11214 = vmatpush3.bf16.xpose.msra.mxu0 %v1905_v46  ;;  %11215 = vmatprep.mubr.msk.bf16.mxu0 %vm12715_vm0, %v12714_v0  ;;  %655 = vst.msk [vmem:[#allocation2 + $0x2f8] sm:$0xff] %vm559_vm2, %v12714_v0  ;;  %656 = vst.msk [vmem:[#allocation2 + $0x300] sm:$0xff] %vm559_vm2, %v12714_v0  ;;  %v2595_v46 = vsel %vm1072_vm1, %v849_v44, 0 }
 0x1a3   : > { %11225 = vmatprep.subr.bf16.mxu0 %v12714_v0  ;;  %657 = vst.msk [vmem:[#allocation2 + $0x308] sm:$0xff] %vm559_vm2, %v12714_v0  ;;  %658 = vst.msk [vmem:[#allocation2 + $0x310] sm:$0xff] %vm559_vm2, %v12714_v0 }
 0x1a4   : > { %659 = vst.msk [vmem:[#allocation2 + $0x318] sm:$0xff] %vm559_vm2, %v12714_v0  ;;  %660 = vst.msk [vmem:[#allocation2 + $0x320] sm:$0xff] %vm559_vm2, %v12714_v0 }
 0x1a5   : > { %661 = vst.msk [vmem:[#allocation2 + $0x328] sm:$0xff] %vm559_vm2, %v12714_v0  ;;  %662 = vst.msk [vmem:[#allocation2 + $0x330] sm:$0xff] %vm559_vm2, %v12714_v0 }
 0x1a6   : > { %663 = vst.msk [vmem:[#allocation2 + $0x338] sm:$0xff] %vm559_vm2, %v12714_v0  ;;  %664 = vst.msk [vmem:[#allocation2 + $0x340] sm:$0xff] %vm559_vm2, %v12714_v0 }
 0x1a7   : > { %11174 = vmatmul.mubr.msk.bf16.vlgmr.msra.gmra.mrb[28].mxu1 %vm1072_vm1, %v699_v48  ;;  %665 = vst.msk [vmem:[#allocation2 + $0x348] sm:$0xff] %vm559_vm2, %v12714_v0  ;;  %666 = vst.msk [vmem:[#allocation2 + $0x350] sm:$0xff] %vm559_vm2, %v12714_v0  ;;  %v726_v48 = vld [vmem:[%s13280_s9 + $0x98] sm:$0xf] }
 0x1a8   : > { %11184 = vmatpush3.bf16.xpose.msra.mxu1 %v1675_v49  ;;  %11185 = vmatprep.mubr.msk.bf16.mxu1 %vm12715_vm0, %v12714_v0  ;;  %667 = vst.msk [vmem:[#allocation2 + $0x358] sm:$0xff] %vm559_vm2, %v12714_v0  ;;  %668 = vst.msk [vmem:[#allocation2 + $0x360] sm:$0xff] %vm559_vm2, %v12714_v0  ;;  %v2917_v49 = vsel %vm1072_vm1, %v856_v47, 0 }
 0x1a9   : > { %11195 = vmatprep.subr.bf16.mxu1 %v12714_v0  ;;  %11216 = vmatmul.mubr.msk.bf16.vlgmr.msra.gmra.mrb[28].mxu0 %vm1072_vm1, %v706_v51  ;;  %669 = vst.msk [vmem:[#allocation2 + $0x368] sm:$0xff] %vm559_vm2, %v12714_v0  ;;  %670 = vst.msk [vmem:[#allocation2 + $0x370] sm:$0xff] %vm559_vm2, %v12714_v0  ;;  %v721_v51 = vld [vmem:[%s13280_s9 + $0x84] sm:$0xf] }
 0x1aa   : > { %11226 = vmatpush3.bf16.xpose.msra.mxu0 %v1997_v52  ;;  %11227 = vmatprep.mubr.msk.bf16.mxu0 %vm12715_vm0, %v12714_v0  ;;  %671 = vst.msk [vmem:[#allocation2 + $0x378] sm:$0xff] %vm559_vm2, %v12714_v0  ;;  %672 = vst.msk [vmem:[#allocation2 + $0x380] sm:$0xff] %vm559_vm2, %v12714_v0  ;;  %v2687_v52 = vsel %vm1072_vm1, %v851_v50, 0 }
 0x1ab   : > { %11237 = vmatprep.subr.bf16.mxu0 %v12714_v0  ;;  %673 = vst.msk [vmem:[#allocation2 + $0x388] sm:$0xff] %vm559_vm2, %v12714_v0  ;;  %674 = vst.msk [vmem:[#allocation2 + $0x390] sm:$0xff] %vm559_vm2, %v12714_v0 }
 0x1ac   : > { %675 = vst.msk [vmem:[#allocation2 + $0x398] sm:$0xff] %vm559_vm2, %v12714_v0  ;;  %676 = vst.msk [vmem:[#allocation2 + $0x3a0] sm:$0xff] %vm559_vm2, %v12714_v0 }
 0x1ad   : > { %677 = vst.msk [vmem:[#allocation2 + $0x3a8] sm:$0xff] %vm559_vm2, %v12714_v0  ;;  %678 = vst.msk [vmem:[#allocation2 + $0x3b0] sm:$0xff] %vm559_vm2, %v12714_v0 }
 0x1ae   : > { %679 = vst.msk [vmem:[#allocation2 + $0x3b8] sm:$0xff] %vm559_vm2, %v12714_v0  ;;  %680 = vst.msk [vmem:[#allocation2 + $0x3c0] sm:$0xff] %vm559_vm2, %v12714_v0 }
 0x1af   : > { %11186 = vmatmul.mubr.msk.bf16.vlgmr.msra.gmra.mrb[32].mxu1 %vm1072_vm1, %v701_v54  ;;  %681 = vst.msk [vmem:[#allocation2 + $0x3c8] sm:$0xff] %vm559_vm2, %v12714_v0  ;;  %682 = vst.msk [vmem:[#allocation2 + $0x3d0] sm:$0xff] %vm559_vm2, %v12714_v0  ;;  %v728_v54 = vld [vmem:[%s13280_s9 + $0xa0] sm:$0xf] }
 0x1b0   : > { %11196 = vmatpush3.bf16.xpose.msra.mxu1 %v1767_v55  ;;  %11197 = vmatprep.mubr.msk.bf16.mxu1 %vm12715_vm0, %v12714_v0  ;;  %683 = vst.msk [vmem:[#allocation2 + $0x3d8] sm:$0xff] %vm559_vm2, %v12714_v0  ;;  %684 = vst.msk [vmem:[#allocation2 + $0x3e0] sm:$0xff] %vm559_vm2, %v12714_v0  ;;  %v3009_v55 = vsel %vm1072_vm1, %v858_v53, 0 }
 0x1b1   : > { %11207 = vmatprep.subr.bf16.mxu1 %v12714_v0  ;;  %11228 = vmatmul.mubr.msk.bf16.vlgmr.msra.gmra.mrb[32].mxu0 %vm1072_vm1, %v708_v57  ;;  %685 = vst.msk [vmem:[#allocation2 + $0x3e8] sm:$0xff] %vm559_vm2, %v12714_v0  ;;  %686 = vst.msk [vmem:[#allocation2 + $0x3f0] sm:$0xff] %vm559_vm2, %v12714_v0  ;;  %v723_v57 = vld [vmem:[%s13280_s9 + $0x8c] sm:$0xf] }
 0x1b2   : > { %11238 = vmatpush3.bf16.xpose.msra.mxu0 %v2089_v58  ;;  %11239 = vmatprep.mubr.msk.bf16.mxu0 %vm12715_vm0, %v12714_v0  ;;  %687 = vst.msk [vmem:[#allocation2 + $0x3f8] sm:$0xff] %vm559_vm2, %v12714_v0  ;;  %v2779_v58 = vsel %vm1072_vm1, %v853_v56, 0 }
 0x1b3   : > { %11249 = vmatprep.subr.bf16.mxu0 %v12714_v0 }
 0x1b7   : > { %11198 = vmatmul.mubr.msk.bf16.vlgmr.msra.gmra.mrb[36].mxu1 %vm1072_vm1, %v703_v60  ;;  %v730_v60 = vld [vmem:[%s13280_s9 + $0xa8] sm:$0xf] }
 0x1b8   : > { %11208 = vmatpush3.bf16.xpose.msra.mxu1 %v1859_v61  ;;  %11209 = vmatprep.mubr.msk.bf16.mxu1 %vm12715_vm0, %v12714_v0  ;;  %v3101_v61 = vsel %vm1072_vm1, %v860_v59, 0 }
 0x1b9   : > { %11219 = vmatprep.subr.bf16.mxu1 %v12714_v0  ;;  %11240 = vmatmul.mubr.msk.bf16.vlgmr.msra.gmra.mrb[36].mxu0 %vm1072_vm1, %v710_v63  ;;  %v725_v63 = vld [vmem:[%s13280_s9 + $0x94] sm:$0xf] }
 0x1ba   : > { %11250 = vmatpush3.bf16.xpose.msra.mxu0 %v2181_v1  ;;  %11251 = vmatprep.mubr.msk.bf16.mxu0 %vm12715_vm0, %v12714_v0  ;;  %v2871_v1 = vsel %vm1072_vm1, %v855_v62, 0 }
 0x1bb   : > { %11261 = vmatprep.subr.bf16.mxu0 %v12714_v0 }
 0x1bf   : > { %11210 = vmatmul.mubr.msk.bf16.vlgmr.msra.gmra.mrb[40].mxu1 %vm1072_vm1, %v705_v3  ;;  %v732_v3 = vld [vmem:[%s13280_s9 + $0xb0] sm:$0xf] }
 0x1c0   : > { %11220 = vmatpush3.bf16.xpose.msra.mxu1 %v1951_v4  ;;  %11221 = vmatprep.mubr.msk.bf16.mxu1 %vm12715_vm0, %v12714_v0  ;;  %v3193_v4 = vsel %vm1072_vm1, %v862_v2, 0 }
 0x1c1   : > { %11231 = vmatprep.subr.bf16.mxu1 %v12714_v0  ;;  %11252 = vmatmul.mubr.msk.bf16.vlgmr.msra.gmra.mrb[40].mxu0 %vm1072_vm1, %v712_v6  ;;  %v727_v6 = vld [vmem:[%s13280_s9 + $0x9c] sm:$0xf] }
 0x1c2   : > { %11262 = vmatpush3.bf16.xpose.msra.mxu0 %v2273_v7  ;;  %11263 = vmatprep.mubr.msk.bf16.mxu0 %vm12715_vm0, %v12714_v0  ;;  %v2963_v7 = vsel %vm1072_vm1, %v857_v5, 0 }
 0x1c3   : > { %11273 = vmatprep.subr.bf16.mxu0 %v12714_v0 }
 0x1c7   : > { %11222 = vmatmul.mubr.msk.bf16.vlgmr.msra.gmra.mrb[44].mxu1 %vm1072_vm1, %v707_v9  ;;  %v734_v9 = vld [vmem:[%s13280_s9 + $0xb8] sm:$0xf] }
 0x1c8   : > { %11232 = vmatpush3.bf16.xpose.msra.mxu1 %v2043_v10  ;;  %11233 = vmatprep.mubr.msk.bf16.mxu1 %vm12715_vm0, %v12714_v0  ;;  %v3285_v10 = vsel %vm1072_vm1, %v864_v8, 0 }
 0x1c9   : > { %11243 = vmatprep.subr.bf16.mxu1 %v12714_v0  ;;  %11264 = vmatmul.mubr.msk.bf16.vlgmr.msra.gmra.mrb[44].mxu0 %vm1072_vm1, %v714_v12  ;;  %v729_v12 = vld [vmem:[%s13280_s9 + $0xa4] sm:$0xf] }
 0x1ca   : > { %11274 = vmatpush3.bf16.xpose.msra.mxu0 %v2365_v13  ;;  %11275 = vmatprep.mubr.msk.bf16.mxu0 %vm12715_vm0, %v12714_v0  ;;  %v3055_v13 = vsel %vm1072_vm1, %v859_v11, 0 }
 0x1cb   : > { %11285 = vmatprep.subr.bf16.mxu0 %v12714_v0 }
 0x1cf   : > { %11234 = vmatmul.mubr.msk.bf16.vlgmr.msra.gmra.mrb[48].mxu1 %vm1072_vm1, %v709_v15  ;;  %v736_v15 = vld [vmem:[%s13280_s9 + $0xc0] sm:$0xf] }
 0x1d0   : > { %11244 = vmatpush3.bf16.xpose.msra.mxu1 %v2135_v16  ;;  %11245 = vmatprep.mubr.msk.bf16.mxu1 %vm12715_vm0, %v12714_v0  ;;  %v3377_v16 = vsel %vm1072_vm1, %v866_v14, 0 }
 0x1d1   : > { %11255 = vmatprep.subr.bf16.mxu1 %v12714_v0  ;;  %11276 = vmatmul.mubr.msk.bf16.vlgmr.msra.gmra.mrb[48].mxu0 %vm1072_vm1, %v716_v18  ;;  %v731_v18 = vld [vmem:[%s13280_s9 + $0xac] sm:$0xf] }
 0x1d2   : > { %11286 = vmatpush3.bf16.xpose.msra.mxu0 %v2457_v19  ;;  %11287 = vmatprep.mubr.msk.bf16.mxu0 %vm12715_vm0, %v12714_v0  ;;  %v3147_v19 = vsel %vm1072_vm1, %v861_v17, 0 }
 0x1d3   : > { %11297 = vmatprep.subr.bf16.mxu0 %v12714_v0 }
 0x1d7   : > { %11246 = vmatmul.mubr.msk.bf16.vlgmr.msra.gmra.mrb[52].mxu1 %vm1072_vm1, %v711_v21  ;;  %v738_v21 = vld [vmem:[%s13280_s9 + $0xc8] sm:$0xf] }
 0x1d8   : > { %11256 = vmatpush3.bf16.xpose.msra.mxu1 %v2227_v22  ;;  %11257 = vmatprep.mubr.msk.bf16.mxu1 %vm12715_vm0, %v12714_v0  ;;  %v3469_v22 = vsel %vm1072_vm1, %v868_v20, 0 }
 0x1d9   : > { %11267 = vmatprep.subr.bf16.mxu1 %v12714_v0  ;;  %11288 = vmatmul.mubr.msk.bf16.vlgmr.msra.gmra.mrb[52].mxu0 %vm1072_vm1, %v718_v24  ;;  %v733_v24 = vld [vmem:[%s13280_s9 + $0xb4] sm:$0xf] }
 0x1da   : > { %11298 = vmatpush3.bf16.xpose.msra.mxu0 %v2549_v25  ;;  %11299 = vmatprep.mubr.msk.bf16.mxu0 %vm12715_vm0, %v12714_v0  ;;  %v3239_v25 = vsel %vm1072_vm1, %v863_v23, 0 }
 0x1db   : > { %11309 = vmatprep.subr.bf16.mxu0 %v12714_v0 }
 0x1df   : > { %11258 = vmatmul.mubr.msk.bf16.vlgmr.msra.gmra.mrb[56].mxu1 %vm1072_vm1, %v713_v27  ;;  %v740_v27 = vld [vmem:[%s13280_s9 + $0xd0] sm:$0xf] }
 0x1e0   : > { %11268 = vmatpush3.bf16.xpose.msra.mxu1 %v2319_v28  ;;  %11269 = vmatprep.mubr.msk.bf16.mxu1 %vm12715_vm0, %v12714_v0  ;;  %v3561_v28 = vsel %vm1072_vm1, %v870_v26, 0 }
 0x1e1   : > { %11279 = vmatprep.subr.bf16.mxu1 %v12714_v0  ;;  %11300 = vmatmul.mubr.msk.bf16.vlgmr.msra.gmra.mrb[56].mxu0 %vm1072_vm1, %v720_v30  ;;  %v735_v30 = vld [vmem:[%s13280_s9 + $0xbc] sm:$0xf] }
 0x1e2   : > { %11310 = vmatpush3.bf16.xpose.msra.mxu0 %v2641_v31  ;;  %11311 = vmatprep.mubr.msk.bf16.mxu0 %vm12715_vm0, %v12714_v0  ;;  %v3331_v31 = vsel %vm1072_vm1, %v865_v29, 0 }
 0x1e3   : > { %11321 = vmatprep.subr.bf16.mxu0 %v12714_v0 }
 0x1e7   : > { %11270 = vmatmul.mubr.msk.bf16.vlgmr.msra.gmra.mrb[60].mxu1 %vm1072_vm1, %v715_v33  ;;  %v742_v33 = vld [vmem:[%s13280_s9 + $0xd8] sm:$0xf] }
 0x1e8   : > { %11280 = vmatpush3.bf16.xpose.msra.mxu1 %v2411_v34  ;;  %11281 = vmatprep.mubr.msk.bf16.mxu1 %vm12715_vm0, %v12714_v0  ;;  %v3653_v34 = vsel %vm1072_vm1, %v872_v32, 0 }
 0x1e9   : > { %11291 = vmatprep.subr.bf16.mxu1 %v12714_v0  ;;  %11312 = vmatmul.mubr.msk.bf16.vlgmr.msra.gmra.mrb[60].mxu0 %vm1072_vm1, %v722_v36  ;;  %v737_v36 = vld [vmem:[%s13280_s9 + $0xc4] sm:$0xf] }
 0x1ea   : > { %11322 = vmatpush3.bf16.xpose.msra.mxu0 %v2733_v37  ;;  %11323 = vmatprep.mubr.msk.bf16.mxu0 %vm12715_vm0, %v12714_v0  ;;  %v3423_v37 = vsel %vm1072_vm1, %v867_v35, 0 }
 0x1eb   : > { %11333 = vmatprep.subr.bf16.mxu0 %v12714_v0 }
 0x1ef   : > { %11282 = vmatmul.mubr.msk.bf16.vlgmr.msra.gmra.mrb[64].mxu1 %vm1072_vm1, %v717_v39  ;;  %v744_v39 = vld [vmem:[%s13280_s9 + $0xe0] sm:$0xf] }
 0x1f0   : > { %11292 = vmatpush3.bf16.xpose.msra.mxu1 %v2503_v40  ;;  %11293 = vmatprep.mubr.msk.bf16.mxu1 %vm12715_vm0, %v12714_v0  ;;  %v944_v40 = vld [vmem:[#allocation2] sm:$0xff] }
 0x1f1   : > { %11303 = vmatprep.subr.bf16.mxu1 %v12714_v0  ;;  %11324 = vmatmul.mubr.msk.bf16.vlgmr.msra.gmra.mrb[64].mxu0 %vm1072_vm1, %v724_v42 }
 0x1f2   : > { %11334 = vmatpush3.bf16.xpose.msra.mxu0 %v2825_v43  ;;  %11335 = vmatprep.mubr.msk.bf16.mxu0 %vm12715_vm0, %v12714_v0  ;;  %v869_v43 = vld [vmem:[%s13288_s25 + $0xd4] sm:$0xf] }
 0x1f3   : > { %11345 = vmatprep.subr.bf16.mxu0 %v12714_v0  ;;  %v3515_v50 = vsel %vm1072_vm1, %v869_v43, 0  ;;  %v882_v43 = vld [vmem:[%s13288_s25 + $0x108] sm:$0xf] }
 0x1f7   : > { %11294 = vmatmul.mubr.msk.bf16.vlgmr.msra.gmra.mrb[68].mxu1 %vm1072_vm1, %v719_v45 }
 0x1f8   : > { %11304 = vmatpush3.bf16.xpose.msra.mxu1 %v2595_v46  ;;  %11305 = vmatprep.mubr.msk.bf16.mxu1 %vm12715_vm0, %v12714_v0  ;;  %v948_v46 = vld [vmem:[#allocation2 + $0x20] sm:$0xff] }
 0x1f9   : > { %11315 = vmatprep.subr.bf16.mxu1 %v12714_v0  ;;  %11336 = vmatmul.mubr.msk.bf16.vlgmr.msra.gmra.mrb[68].mxu0 %vm1072_vm1, %v726_v48  ;;  %v739_v48 = vld [vmem:[%s13280_s9 + $0xcc] sm:$0xf] }
 0x1fa   : > { %11346 = vmatpush3.bf16.xpose.msra.mxu0 %v2917_v49  ;;  %11347 = vmatprep.mubr.msk.bf16.mxu0 %vm12715_vm0, %v12714_v0 }
 0x1fb   : > { %11357 = vmatprep.subr.bf16.mxu0 %v12714_v0 }
 0x1ff   : > { %11306 = vmatmul.mubr.msk.bf16.vlgmr.msra.gmra.mrb[72].mxu1 %vm1072_vm1, %v721_v51 }
 0x200   : > { %11316 = vmatpush3.bf16.xpose.msra.mxu1 %v2687_v52  ;;  %11317 = vmatprep.mubr.msk.bf16.mxu1 %vm12715_vm0, %v12714_v0  ;;  %v876_v52 = vld [vmem:[%s13288_s25 + $0xf0] sm:$0xf] }
 0x201   : > { %11327 = vmatprep.subr.bf16.mxu1 %v12714_v0  ;;  %11348 = vmatmul.mubr.msk.bf16.vlgmr.msra.gmra.mrb[72].mxu0 %vm1072_vm1, %v728_v54 }
 0x202   : > { %11358 = vmatpush3.bf16.xpose.msra.mxu0 %v3009_v55  ;;  %11359 = vmatprep.mubr.msk.bf16.mxu0 %vm12715_vm0, %v12714_v0  ;;  %v746_v55 = vld [vmem:[%s13280_s9 + $0xe8] sm:$0xf] }
 0x203   : > { %11369 = vmatprep.subr.bf16.mxu0 %v12714_v0 }
 0x207   : > { %11318 = vmatmul.mubr.msk.bf16.vlgmr.msra.gmra.mrb[76].mxu1 %vm1072_vm1, %v723_v57  ;;  %v945_v57 = vld [vmem:[#allocation2 + $0x8] sm:$0xff] }
 0x208   : > { %11328 = vmatpush3.bf16.xpose.msra.mxu1 %v2779_v58  ;;  %11329 = vmatprep.mubr.msk.bf16.mxu1 %vm12715_vm0, %v12714_v0  ;;  %v3837_v58 = vsel %vm1072_vm1, %v876_v52, 0  ;;  %v877_v52 = vld [vmem:[%s13288_s25 + $0xf4] sm:$0xf] }
 0x209   : > { %11339 = vmatprep.subr.bf16.mxu1 %v12714_v0  ;;  %11360 = vmatmul.mubr.msk.bf16.vlgmr.msra.gmra.mrb[76].mxu0 %vm1072_vm1, %v730_v60 }
 0x20a   : > { %11370 = vmatpush3.bf16.xpose.msra.mxu0 %v3101_v61  ;;  %11371 = vmatprep.mubr.msk.bf16.mxu0 %vm12715_vm0, %v12714_v0  ;;  %v871_v61 = vld [vmem:[%s13288_s25 + $0xdc] sm:$0xf] }
 0x20b   : > { %11381 = vmatprep.subr.bf16.mxu0 %v12714_v0  ;;  %v3607_v5 = vsel %vm1072_vm1, %v871_v61, 0  ;;  %v884_v61 = vld [vmem:[%s13288_s25 + $0x110] sm:$0xf] }
 0x20f   : > { %11330 = vmatmul.mubr.msk.bf16.vlgmr.msra.gmra.mrb[80].mxu1 %vm1072_vm1, %v725_v63 }
 0x210   : > { %11340 = vmatpush3.bf16.xpose.msra.mxu1 %v2871_v1  ;;  %11341 = vmatprep.mubr.msk.bf16.mxu1 %vm12715_vm0, %v12714_v0  ;;  %v950_v1 = vld [vmem:[#allocation2 + $0x30] sm:$0xff] }
 0x211   : > { %11351 = vmatprep.subr.bf16.mxu1 %v12714_v0  ;;  %11372 = vmatmul.mubr.msk.bf16.vlgmr.msra.gmra.mrb[80].mxu0 %vm1072_vm1, %v732_v3  ;;  %v741_v3 = vld [vmem:[%s13280_s9 + $0xd4] sm:$0xf] }
 0x212   : > { %11382 = vmatpush3.bf16.xpose.msra.mxu0 %v3193_v4  ;;  %11383 = vmatprep.mubr.msk.bf16.mxu0 %vm12715_vm0, %v12714_v0 }
 0x213   : > { %11393 = vmatprep.subr.bf16.mxu0 %v12714_v0 }
 0x217   : > { %11342 = vmatmul.mubr.msk.bf16.vlgmr.msra.gmra.mrb[84].mxu1 %vm1072_vm1, %v727_v6 }
 0x218   : > { %11352 = vmatpush3.bf16.xpose.msra.mxu1 %v2963_v7  ;;  %11353 = vmatprep.mubr.msk.bf16.mxu1 %vm12715_vm0, %v12714_v0  ;;  %v878_v7 = vld [vmem:[%s13288_s25 + $0xf8] sm:$0xf] }
 0x219   : > { %11363 = vmatprep.subr.bf16.mxu1 %v12714_v0  ;;  %11384 = vmatmul.mubr.msk.bf16.vlgmr.msra.gmra.mrb[84].mxu0 %vm1072_vm1, %v734_v9 }
 0x21a   : > { %11394 = vmatpush3.bf16.xpose.msra.mxu0 %v3285_v10  ;;  %11395 = vmatprep.mubr.msk.bf16.mxu0 %vm12715_vm0, %v12714_v0  ;;  %v748_v10 = vld [vmem:[%s13280_s9 + $0xf0] sm:$0xf] }
 0x21b   : > { %11405 = vmatprep.subr.bf16.mxu0 %v12714_v0 }
 0x21f   : > { %11354 = vmatmul.mubr.msk.bf16.vlgmr.msra.gmra.mrb[88].mxu1 %vm1072_vm1, %v729_v12  ;;  %v946_v12 = vld [vmem:[#allocation2 + $0x10] sm:$0xff] }
 0x220   : > { %11364 = vmatpush3.bf16.xpose.msra.mxu1 %v3055_v13  ;;  %11365 = vmatprep.mubr.msk.bf16.mxu1 %vm12715_vm0, %v12714_v0  ;;  %v3929_v13 = vsel %vm1072_vm1, %v878_v7, 0  ;;  %v4205_v7 = vsel %vm1072_vm1, %v884_v61, 0 }
 0x221   : > { %11375 = vmatprep.subr.bf16.mxu1 %v12714_v0  ;;  %11396 = vmatmul.mubr.msk.bf16.vlgmr.msra.gmra.mrb[88].mxu0 %vm1072_vm1, %v736_v15 }
 0x222   : > { %11406 = vmatpush3.bf16.xpose.msra.mxu0 %v3377_v16  ;;  %11407 = vmatprep.mubr.msk.bf16.mxu0 %vm12715_vm0, %v12714_v0  ;;  %v873_v16 = vld [vmem:[%s13288_s25 + $0xe4] sm:$0xf] }
 0x223   : > { %11417 = vmatprep.subr.bf16.mxu0 %v12714_v0  ;;  %v3699_v23 = vsel %vm1072_vm1, %v873_v16, 0 }
 0x227   : > { %11366 = vmatmul.mubr.msk.bf16.vlgmr.msra.gmra.mrb[92].mxu1 %vm1072_vm1, %v731_v18 }
 0x228   : > { %11376 = vmatpush3.bf16.xpose.msra.mxu1 %v3147_v19  ;;  %11377 = vmatprep.mubr.msk.bf16.mxu1 %vm12715_vm0, %v12714_v0  ;;  %v952_v19 = vld [vmem:[#allocation2 + $0x40] sm:$0xff] }
 0x229   : > { %11387 = vmatprep.subr.bf16.mxu1 %v12714_v0  ;;  %11408 = vmatmul.mubr.msk.bf16.vlgmr.msra.gmra.mrb[92].mxu0 %vm1072_vm1, %v738_v21  ;;  %v743_v21 = vld [vmem:[%s13280_s9 + $0xdc] sm:$0xf] }
 0x22a   : > { %11418 = vmatpush3.bf16.xpose.msra.mxu0 %v3469_v22  ;;  %11419 = vmatprep.mubr.msk.bf16.mxu0 %vm12715_vm0, %v12714_v0 }
 0x22b   : > { %11429 = vmatprep.subr.bf16.mxu0 %v12714_v0 }
 0x22f   : > { %11378 = vmatmul.mubr.msk.bf16.vlgmr.msra.gmra.mrb[96].mxu1 %vm1072_vm1, %v733_v24 }
 0x230   : > { %11388 = vmatpush3.bf16.xpose.msra.mxu1 %v3239_v25  ;;  %11389 = vmatprep.mubr.msk.bf16.mxu1 %vm12715_vm0, %v12714_v0  ;;  %v880_v25 = vld [vmem:[%s13288_s25 + $0x100] sm:$0xf] }
 0x231   : > { %11399 = vmatprep.subr.bf16.mxu1 %v12714_v0  ;;  %11420 = vmatmul.mubr.msk.bf16.vlgmr.msra.gmra.mrb[96].mxu0 %vm1072_vm1, %v740_v27 }
 0x232   : > { %11430 = vmatpush3.bf16.xpose.msra.mxu0 %v3561_v28  ;;  %11431 = vmatprep.mubr.msk.bf16.mxu0 %vm12715_vm0, %v12714_v0  ;;  %v750_v28 = vld [vmem:[%s13280_s9 + $0xf8] sm:$0xf] }
 0x233   : > { %11441 = vmatprep.subr.bf16.mxu0 %v12714_v0 }
 0x237   : > { %11390 = vmatmul.mubr.msk.bf16.vlgmr.msra.gmra.mrb[100].mxu1 %vm1072_vm1, %v735_v30  ;;  %v947_v30 = vld [vmem:[#allocation2 + $0x18] sm:$0xff] }
 0x238   : > { %11400 = vmatpush3.bf16.xpose.msra.mxu1 %v3331_v31  ;;  %11401 = vmatprep.mubr.msk.bf16.mxu1 %vm12715_vm0, %v12714_v0  ;;  %v4021_v31 = vsel %vm1072_vm1, %v880_v25, 0 }
 0x239   : > { %11411 = vmatprep.subr.bf16.mxu1 %v12714_v0  ;;  %11432 = vmatmul.mubr.msk.bf16.vlgmr.msra.gmra.mrb[100].mxu0 %vm1072_vm1, %v742_v33 }
 0x23a   : > { %11442 = vmatpush3.bf16.xpose.msra.mxu0 %v3653_v34  ;;  %11443 = vmatprep.mubr.msk.bf16.mxu0 %vm12715_vm0, %v12714_v0  ;;  %v875_v34 = vld [vmem:[%s13288_s25 + $0xec] sm:$0xf] }
 0x23b   : > { %11453 = vmatprep.subr.bf16.mxu0 %v12714_v0 }
 0x23f   : > { %11402 = vmatmul.mubr.msk.bf16.vlgmr.msra.gmra.mrb[104].mxu1 %vm1072_vm1, %v737_v36 }
 0x240   : > { %11412 = vmatpush3.bf16.xpose.msra.mxu1 %v3423_v37  ;;  %11413 = vmatprep.mubr.msk.bf16.mxu1 %vm12715_vm0, %v12714_v0  ;;  %v954_v37 = vld [vmem:[#allocation2 + $0x50] sm:$0xff] }
 0x241   : > { %11423 = vmatprep.subr.bf16.mxu1 %v12714_v0  ;;  %11444 = vmatmul.mubr.msk.bf16.vlgmr.msra.gmra.mrb[104].mxu0 %vm1072_vm1, %v744_v39  ;;  %v745_v39 = vld [vmem:[%s13280_s9 + $0xe4] sm:$0xf] }
 0x242   : > { %v1113_v42 = vpop.f32.mrb[0].mxu1  ;;  %11454 = vmatpush3.bf16.xpose.msra.mxu0 %v3745_v41  ;;  %11455 = vmatprep.mubr.msk.bf16.mxu0 %vm12715_vm0, %v12714_v0  ;;  %v1297_v51 = vpop.f32.mrb[0].mxu0  ;;  %v3791_v41 = vsel %vm1072_vm1, %v875_v34, 0 }
 0x243   : > { %v6961_v44 = vadd.f32 %v1113_v42, %v944_v40  ;;  %v11109_v45 = vpop.f32.mrb[1].mxu1  ;;  %11465 = vmatprep.subr.bf16.mxu0 %v12714_v0  ;;  %v6965_v53 = vadd.f32 %v1297_v51, %v948_v46  ;;  %v11133_v54 = vpop.f32.mrb[1].mxu0  ;;  %v752_v46 = vld [vmem:[%s13280_s9 + $0x100] sm:$0xf] }
 0x244   : > { %v1116_v47 = vpop.f32.mrb[2].mxu1  ;;  %v1300_v56 = vpop.f32.mrb[2].mxu0 }
 0x245   : > { %7090 = vst.msk [vmem:[#allocation2] sm:$0xff] %vm559_vm2, %v6961_v44  ;;  %v11110_v49 = vpop.f32.mrb[3].mxu1  ;;  %7094 = vst.msk [vmem:[#allocation2 + $0x20] sm:$0xff] %vm559_vm2, %v6965_v53  ;;  %v11134_v59 = vpop.f32.mrb[3].mxu0 }
 0x246   : > { %v4113_v49 = vsel %vm1072_vm1, %v882_v43, 0  ;;  %v3883_v59 = vsel %vm1072_vm1, %v877_v52, 0 }
 0x247   : > { %11414 = vmatmul.mubr.msk.bf16.vlgmr.msra.gmra.mrb[108].mxu1 %vm1072_vm1, %v739_v48  ;;  %v949_v48 = vld [vmem:[#allocation2 + $0x28] sm:$0xff] }
 0x248   : > { %11424 = vmatpush3.bf16.xpose.msra.mxu1 %v3515_v50  ;;  %11425 = vmatprep.mubr.msk.bf16.mxu1 %vm12715_vm0, %v12714_v0 }
 0x249   : > { %11435 = vmatprep.subr.bf16.mxu1 %v12714_v0  ;;  %11456 = vmatmul.mubr.msk.bf16.vlgmr.msra.gmra.mrb[108].mxu0 %vm1072_vm1, %v746_v55  ;;  %v956_v55 = vld [vmem:[#allocation2 + $0x60] sm:$0xff] }
 0x24a   : > { %v1159_v60 = vpop.f32.mrb[4].mxu1  ;;  %11466 = vmatpush3.bf16.xpose.msra.mxu0 %v3837_v58  ;;  %11467 = vmatprep.mubr.msk.bf16.mxu0 %vm12715_vm0, %v12714_v0 }
 0x24b   : > { %v6962_v62 = vadd.f32 %v1159_v60, %v945_v57  ;;  %v11115_v63 = vpop.f32.mrb[5].mxu1  ;;  %11477 = vmatprep.subr.bf16.mxu0 %v12714_v0  ;;  %v747_v57 = vld [vmem:[%s13280_s9 + $0xec] sm:$0xf] }
 0x24c   : > { %v1162_v2 = vpop.f32.mrb[6].mxu1  ;;  %v1389_v6 = vpop.f32.mrb[4].mxu0 }
 0x24d   : > { %7091 = vst.msk [vmem:[#allocation2 + $0x8] sm:$0xff] %vm559_vm2, %v6962_v62  ;;  %v11116_v4 = vpop.f32.mrb[7].mxu1  ;;  %v6967_v8 = vadd.f32 %v1389_v6, %v950_v1  ;;  %v11145_v9 = vpop.f32.mrb[5].mxu0  ;;  %v12716_v1 = vmov 1983009808   ;;  %v951_v6 = vld [vmem:[#allocation2 + $0x38] sm:$0xff] }
 0x24e   : > { %v1392_v11 = vpop.f32.mrb[6].mxu0  ;;  %v7352_v2 = vunpack.c.l.s4 %v12716_v1  ;;  %v754_v4 = vld [vmem:[%s13280_s9 + $0x108] sm:$0xf]  ;;  %v879_v9 = vld [vmem:[%s13288_s25 + $0xfc] sm:$0xf] }
 0x24f   : > { %11426 = vmatmul.mubr.msk.bf16.vlgmr.msra.gmra.mrb[112].mxu1 %vm1072_vm1, %v741_v3  ;;  %7096 = vst.msk [vmem:[#allocation2 + $0x30] sm:$0xff] %vm559_vm2, %v6967_v8  ;;  %v11146_v14 = vpop.f32.mrb[7].mxu0  ;;  %v7354_v3 = vlaneseq }
 0x250   : > { %11436 = vmatpush3.bf16.xpose.msra.mxu1 %v3607_v5  ;;  %11437 = vmatprep.mubr.msk.bf16.mxu1 %vm12715_vm0, %v12714_v0 }
 0x251   : > { %11447 = vmatprep.subr.bf16.mxu1 %v12714_v0  ;;  %11468 = vmatmul.mubr.msk.bf16.vlgmr.msra.gmra.mrb[112].mxu0 %vm1072_vm1, %v748_v10  ;;  %v7355_v14 = vshrl.u32 %v7354_v3, 7 }
 0x252   : > { %v1205_v15 = vpop.f32.mrb[8].mxu1  ;;  %11478 = vmatpush3.bf16.xpose.msra.mxu0 %v3929_v13  ;;  %11479 = vmatprep.mubr.msk.bf16.mxu0 %vm12715_vm0, %v12714_v0  ;;  %v7353_v13 = vunpack.c.0.s8 %v7352_v2  ;;  %v758_v2 = vld [vmem:[%s13280_s9 + $0x118] sm:$0xf] }
 0x253   : > { %v6963_v17 = vadd.f32 %v1205_v15, %v946_v12  ;;  %v11121_v18 = vpop.f32.mrb[9].mxu1  ;;  %11489 = vmatprep.subr.bf16.mxu0 %v12714_v0  ;;  %v958_v15 = vld [vmem:[#allocation2 + $0x70] sm:$0xff] }
 0x254   : > { %v1208_v20 = vpop.f32.mrb[10].mxu1  ;;  %v1481_v24 = vpop.f32.mrb[8].mxu0  ;;  %v3975_v18 = vsel %vm1072_vm1, %v879_v9, 0 }
 0x255   : > { %7092 = vst.msk [vmem:[#allocation2 + $0x10] sm:$0xff] %vm559_vm2, %v6963_v17  ;;  %v11122_v22 = vpop.f32.mrb[11].mxu1  ;;  %v6969_v26 = vadd.f32 %v1481_v24, %v952_v19  ;;  %v11157_v27 = vpop.f32.mrb[9].mxu0  ;;  %v749_v17 = vld [vmem:[%s13280_s9 + $0xf4] sm:$0xf] }
 0x256   : > { %v1484_v29 = vpop.f32.mrb[10].mxu0  ;;  %v12717_v19 = vmov 1934713408   ;;  %v886_v24 = vld [vmem:[%s13288_s25 + $0x118] sm:$0xf] }
 0x257   : > { %11438 = vmatmul.mubr.msk.bf16.vlgmr.msra.gmra.mrb[116].mxu1 %vm1072_vm1, %v743_v21  ;;  %7098 = vst.msk [vmem:[#allocation2 + $0x40] sm:$0xff] %vm559_vm2, %v6969_v26  ;;  %v11158_v32 = vpop.f32.mrb[11].mxu0  ;;  %v7416_v20 = vunpack.c.l.s4 %v12717_v19  ;;  %v756_v29 = vld [vmem:[%s13280_s9 + $0x110] sm:$0xf]  ;;  %v4297_v34 = vsel %vm1072_vm1, %v886_v24, 0 }
 0x258   : > { %11448 = vmatpush3.bf16.xpose.msra.mxu1 %v3699_v23  ;;  %11449 = vmatprep.mubr.msk.bf16.mxu1 %vm12715_vm0, %v12714_v0  ;;  %v881_v32 = vld [vmem:[%s13288_s25 + $0x104] sm:$0xf] }
 0x259   : > { %11459 = vmatprep.subr.bf16.mxu1 %v12714_v0  ;;  %11480 = vmatmul.mubr.msk.bf16.vlgmr.msra.gmra.mrb[116].mxu0 %vm1072_vm1, %v750_v28  ;;  %v14060_v28 = vsub.s32 %v7353_v13, %v7355_v14 }
 0x25a   : > { %v1251_v33 = vpop.f32.mrb[12].mxu1  ;;  %11490 = vmatpush3.bf16.xpose.msra.mxu0 %v4021_v31  ;;  %11491 = vmatprep.mubr.msk.bf16.mxu0 %vm12715_vm0, %v12714_v0  ;;  %v953_v31 = vld [vmem:[#allocation2 + $0x48] sm:$0xff] }
 0x25b   : > { %v6964_v35 = vadd.f32 %v1251_v33, %v947_v30  ;;  %v11127_v36 = vpop.f32.mrb[13].mxu1  ;;  %11501 = vmatprep.subr.bf16.mxu0 %v12714_v0  ;;  %v7417_v33 = vunpack.c.0.s8 %v7416_v20  ;;  %v962_v20 = vld [vmem:[#allocation2 + $0x90] sm:$0xff] }
 0x25c   : > { %v1254_v38 = vpop.f32.mrb[14].mxu1  ;;  %v1573_v42 = vpop.f32.mrb[12].mxu0  ;;  %v12113_v27 = vld [vmem:[#allocation2] ss:$16 sps:$4 sm:$0xff]  }
 0x25d   : > { %7093 = vst.msk [vmem:[#allocation2 + $0x18] sm:$0xff] %vm559_vm2, %v6964_v35  ;;  %v11128_v40 = vpop.f32.mrb[15].mxu1  ;;  %v6971_v44 = vadd.f32 %v1573_v42, %v954_v37  ;;  %v11169_v45 = vpop.f32.mrb[13].mxu0  ;;  %v12119_v38 = vld [vmem:[#allocation2 + $0x20] ss:$16 sps:$4 sm:$0xff]  }
 0x25e   : > { %v1576_v47 = vpop.f32.mrb[14].mxu0  ;;  %v12115_v45 = vld [vmem:[#allocation2 + $0x4] ss:$16 sps:$4 sm:$0xff]  }
 0x25f   : > { %11450 = vmatmul.mubr.msk.bf16.vlgmr.msra.gmra.mrb[120].mxu1 %vm1072_vm1, %v745_v39  ;;  %7100 = vst.msk [vmem:[#allocation2 + $0x50] sm:$0xff] %vm559_vm2, %v6971_v44  ;;  %v11170_v50 = vpop.f32.mrb[15].mxu0  ;;  %v12121_v39 = vld [vmem:[#allocation2 + $0x24] ss:$16 sps:$4 sm:$0xff]   ;;  %v4067_v44 = vsel %vm1072_vm1, %v881_v32, 0  ;;  %v14092_v1 = vrot.slane %v12115_v45, %v14060_v28 }
 0x260   : > { %11460 = vmatpush3.bf16.xpose.msra.mxu1 %v3791_v41  ;;  %11461 = vmatprep.mubr.msk.bf16.mxu1 %vm12715_vm0, %v12714_v0  ;;  %v751_v41 = vld [vmem:[%s13280_s9 + $0xfc] sm:$0xf]  ;;  %v960_v47 = vld [vmem:[#allocation2 + $0x80] sm:$0xff] }
 0x261   : > { %11471 = vmatprep.subr.bf16.mxu1 %v12714_v0  ;;  %11492 = vmatmul.mubr.msk.bf16.vlgmr.msra.gmra.mrb[120].mxu0 %vm1072_vm1, %v752_v46  ;;  %v7357_v46 = vrot.slane %v12113_v27, %v14060_v28 }
 0x262   : > { %v1343_v51 = vpop.f32.mrb[16].mxu1  ;;  %11502 = vmatpush3.bf16.xpose.msra.mxu0 %v4113_v49  ;;  %11503 = vmatprep.mubr.msk.bf16.mxu0 %vm12715_vm0, %v12714_v0 }
 0x263   : > { %v6966_v53 = vadd.f32 %v1343_v51, %v949_v48  ;;  %v11139_v54 = vpop.f32.mrb[17].mxu1  ;;  %11513 = vmatprep.subr.bf16.mxu0 %v12714_v0  ;;  %v14076_v51 = vsub.s32 %v7417_v33, %v7355_v14 }
 0x264   : > { %v1346_v56 = vpop.f32.mrb[18].mxu1  ;;  %v1665_v60 = vpop.f32.mrb[16].mxu0  ;;  %v12116_v22 = vld [vmem:[#allocation2 + $0x8] ss:$16 sps:$4 sm:$0xff]   ;;  %v12118_v36 = vld [vmem:[#allocation2 + $0xc] ss:$16 sps:$4 sm:$0xff]  }
 0x265   : > { %7095 = vst.msk [vmem:[#allocation2 + $0x28] sm:$0xff] %vm559_vm2, %v6966_v53  ;;  %v11140_v58 = vpop.f32.mrb[19].mxu1  ;;  %v6973_v62 = vadd.f32 %v1665_v60, %v956_v55  ;;  %v11181_v63 = vpop.f32.mrb[17].mxu0  ;;  %v7373_v37 = vrot.slane %v12116_v22, %v14060_v28  ;;  %v7389_v53 = vrot.slane %v12119_v38, %v14060_v28  ;;  %v14082_v55 = vrot.slane %v12118_v36, %v14060_v28  ;;  %v753_v22 = vld [vmem:[%s13280_s9 + $0x104] sm:$0xf] }
 0x266   : > { %v1668_v5 = vpop.f32.mrb[18].mxu0  ;;  %v14085_v56 = vrot.slane %v12121_v39, %v14060_v28  ;;  %v888_v58 = vld [vmem:[%s13288_s25 + $0x120] sm:$0xf] }
 0x267   : > { %11462 = vmatmul.mubr.msk.bf16.vlgmr.msra.gmra.mrb[124].mxu1 %vm1072_vm1, %v747_v57  ;;  %7102 = vst.msk [vmem:[#allocation2 + $0x60] sm:$0xff] %vm559_vm2, %v6973_v62  ;;  %v11182_v8 = vpop.f32.mrb[19].mxu0  ;;  %v7414_v54 = vcombine.high %v7357_v46, %v7373_v37  ;;  %v7413_v60 = vcombine.low %v7357_v46, %v7373_v37  ;;  %v7430_v32 = vcombine.high %v14092_v1, %v14082_v55  ;;  %v957_v37 = vld [vmem:[#allocation2 + $0x68] sm:$0xff]  ;;  %v885_v46 = vld [vmem:[%s13288_s25 + $0x114] sm:$0xf] }
 0x268   : > { %11472 = vmatpush3.bf16.xpose.msra.mxu1 %v3883_v59  ;;  %11473 = vmatprep.mubr.msk.bf16.mxu1 %vm12715_vm0, %v12714_v0  ;;  %v4389_v8 = vsel %vm1072_vm1, %v888_v58, 0 }
 0x269   : > { %11483 = vmatprep.subr.bf16.mxu1 %v12714_v0  ;;  %11504 = vmatmul.mubr.msk.bf16.vlgmr.msra.gmra.mrb[124].mxu0 %vm1072_vm1, %v754_v4  ;;  %v955_v4 = vld [vmem:[#allocation2 + $0x58] sm:$0xff]  ;;  %v14106_v14 = vrot.slane %v7413_v60, %v14076_v51  ;;  %v7444_v45 = vrot.slane %v7430_v32, %v14076_v51  ;;  %v892_v60 = vld [vmem:[%s13288_s25 + $0x130] sm:$0xf] }
 0x26a   : > { %v1435_v10 = vpop.f32.mrb[20].mxu1  ;;  %11514 = vmatpush3.bf16.xpose.msra.mxu0 %v4205_v7  ;;  %11515 = vmatprep.mubr.msk.bf16.mxu0 %vm12715_vm0, %v12714_v0 }
 0x26b   : > { %v6968_v11 = vadd.f32 %v1435_v10, %v951_v6  ;;  %v11151_v12 = vpop.f32.mrb[21].mxu1  ;;  %11525 = vmatprep.subr.bf16.mxu0 %v12714_v0  ;;  %v7429_v10 = vcombine.low %v14092_v1, %v14082_v55  ;;  %v762_v1 = vld [vmem:[%s13280_s9 + $0x128] sm:$0xf] }
 0x26c   : > { %v1438_v16 = vpop.f32.mrb[22].mxu1  ;;  %v1757_v23 = vpop.f32.mrb[20].mxu0  ;;  %v7428_v12 = vrot.slane %v7414_v54, %v14076_v51 }
 0x26d   : > { %7097 = vst.msk [vmem:[#allocation2 + $0x38] sm:$0xff] %vm559_vm2, %v6968_v11  ;;  %v11152_v21 = vpop.f32.mrb[23].mxu1  ;;  %v6975_v25 = vadd.f32 %v1757_v23, %v958_v15  ;;  %v11193_v26 = vpop.f32.mrb[21].mxu0  ;;  %v883_v16 = vld [vmem:[%s13288_s25 + $0x10c] sm:$0xf] }
 0x26e   : > { %v1760_v30 = vpop.f32.mrb[22].mxu0 }
 0x26f   : > { %11474 = vmatmul.mubr.msk.bf16.vlgmr.msra.gmra.mrb[128].mxu1 %vm1072_vm1, %v749_v17  ;;  %7104 = vst.msk [vmem:[#allocation2 + $0x70] sm:$0xff] %vm559_vm2, %v6975_v25  ;;  %v11194_v35 = vpop.f32.mrb[23].mxu0 }
 0x270   : > { %11484 = vmatpush3.bf16.xpose.msra.mxu1 %v3975_v18  ;;  %11485 = vmatprep.mubr.msk.bf16.mxu1 %vm12715_vm0, %v12714_v0  ;;  %v890_v35 = vld [vmem:[%s13288_s25 + $0x128] sm:$0xf] }
 0x271   : > { %11495 = vmatprep.subr.bf16.mxu1 %v12714_v0  ;;  %11516 = vmatmul.mubr.msk.bf16.vlgmr.msra.gmra.mrb[128].mxu0 %vm1072_vm1, %v756_v29  ;;  %v4159_v29 = vsel %vm1072_vm1, %v883_v16, 0  ;;  %v961_v16 = vld [vmem:[#allocation2 + $0x88] sm:$0xff] }
 0x272   : > { %v1527_v40 = vpop.f32.mrb[24].mxu1  ;;  %11526 = vmatpush3.bf16.xpose.msra.mxu0 %v4297_v34  ;;  %11527 = vmatprep.mubr.msk.bf16.mxu0 %vm12715_vm0, %v12714_v0 }
 0x273   : > { %v6970_v42 = vadd.f32 %v1527_v40, %v953_v31  ;;  %v11163_v43 = vpop.f32.mrb[25].mxu1  ;;  %11537 = vmatprep.subr.bf16.mxu0 %v12714_v0  ;;  %v7437_v31 = vrot.slane %v7429_v10, %v14076_v51  ;;  %v757_v10 = vld [vmem:[%s13280_s9 + $0x114] sm:$0xf] }
 0x274   : > { %v1530_v48 = vpop.f32.mrb[26].mxu1  ;;  %v12122_v49 = vld [vmem:[#allocation2 + $0x28] ss:$16 sps:$4 sm:$0xff]   ;;  %v12124_v50 = vld [vmem:[#allocation2 + $0x2c] ss:$16 sps:$4 sm:$0xff]   ;;  %v1849_v57 = vpop.f32.mrb[24].mxu0 }
 0x275   : > { %7099 = vst.msk [vmem:[#allocation2 + $0x48] sm:$0xff] %vm559_vm2, %v6970_v42  ;;  %v11164_v52 = vpop.f32.mrb[27].mxu1  ;;  %v7405_v59 = vrot.slane %v12122_v49, %v14060_v28  ;;  %v7412_v61 = vrot.slane %v12124_v50, %v14060_v28  ;;  %v6977_v62 = vadd.f32 %v1849_v57, %v960_v47  ;;  %v11205_v63 = vpop.f32.mrb[25].mxu0  ;;  %v4481_v43 = vsel %vm1072_vm1, %v890_v35, 0  ;;  %v964_v49 = vld [vmem:[#allocation2 + $0xa0] sm:$0xff] }
 0x276   : > { %v1852_v3 = vpop.f32.mrb[26].mxu0  ;;  %v755_v52 = vld [vmem:[%s13280_s9 + $0x10c] sm:$0xf] }
 0x277   : > { %11486 = vmatmul.mubr.msk.bf16.vlgmr.msra.gmra.mrb[132].mxu1 %vm1072_vm1, %v751_v41  ;;  %v7446_v5 = vcombine.high %v7389_v53, %v7405_v59  ;;  %v7445_v6 = vcombine.low %v7389_v53, %v7405_v59  ;;  %v7461_v7 = vcombine.low %v14085_v56, %v7412_v61  ;;  %7106 = vst.msk [vmem:[#allocation2 + $0x80] sm:$0xff] %vm559_vm2, %v6977_v62  ;;  %v11206_v9 = vpop.f32.mrb[27].mxu0  ;;  %v760_v41 = vld [vmem:[%s13280_s9 + $0x120] sm:$0xf]  ;;  %v959_v62 = vld [vmem:[#allocation2 + $0x78] sm:$0xff]  ;;  %v4573_v3 = vsel %vm1072_vm1, %v892_v60, 0 }
 0x278   : > { %11496 = vmatpush3.bf16.xpose.msra.mxu1 %v4067_v44  ;;  %11497 = vmatprep.mubr.msk.bf16.mxu1 %vm12715_vm0, %v12714_v0  ;;  %v7462_v19 = vcombine.high %v14085_v56, %v7412_v61  ;;  %v4251_v56 = vsel %vm1072_vm1, %v885_v46, 0 }
 0x279   : > { %11507 = vmatprep.subr.bf16.mxu1 %v12714_v0  ;;  %v7460_v13 = vrot.slane %v7446_v5, %v14076_v51  ;;  %v14109_v15 = vrot.slane %v7445_v6, %v14076_v51  ;;  %11528 = vmatmul.mubr.msk.bf16.vlgmr.msra.gmra.mrb[132].mxu0 %vm1072_vm1, %v758_v2  ;;  %v7469_v26 = vrot.slane %v7461_v7, %v14076_v51  ;;  %v887_v5 = vld [vmem:[%s13288_s25 + $0x11c] sm:$0xf] }
 0x27a   : > { %v1619_v11 = vpop.f32.mrb[28].mxu1  ;;  %11538 = vmatpush3.bf16.xpose.msra.mxu0 %v4389_v8  ;;  %11539 = vmatprep.mubr.msk.bf16.mxu0 %vm12715_vm0, %v12714_v0  ;;  %v7476_v40 = vrot.slane %v7462_v19, %v14076_v51  ;;  %v966_v8 = vld [vmem:[#allocation2 + $0xb0] sm:$0xff] }
 0x27b   : > { %v6972_v17 = vadd.f32 %v1619_v11, %v955_v4  ;;  %v11175_v18 = vpop.f32.mrb[29].mxu1  ;;  %v7480_v23 = vcombine.high %v7428_v12, %v7460_v13  ;;  %v7478_v24 = vcombine.high %v14106_v14, %v14109_v15  ;;  %11549 = vmatprep.subr.bf16.mxu0 %v12714_v0  ;;  %v7481_v38 = vcombine.low %v7437_v31, %v7469_v26 }
 0x27c   : > { %v1622_v21 = vpop.f32.mrb[30].mxu1  ;;  %v1941_v30 = vpop.f32.mrb[28].mxu0  ;;  %v7479_v39 = vcombine.low %v7428_v12, %v7460_v13  ;;  %v7483_v53 = vcombine.low %v7444_v45, %v7476_v40  ;;  %v7482_v54 = vcombine.high %v7437_v31, %v7469_v26  ;;  %v7484_v63 = vcombine.high %v7444_v45, %v7476_v40  ;;  %v12125_v26 = vld [vmem:[#allocation2 + $0x40] ss:$16 sps:$4 sm:$0xff]  }
 0x27d   : > { %7101 = vst.msk [vmem:[#allocation2 + $0x58] sm:$0xff] %vm559_vm2, %v6972_v17  ;;  %v11176_v27 = vpop.f32.mrb[31].mxu1  ;;  %9669 = vrot.lane.b32.xlu1 %v7480_v23, %s12718_s21  ;;  %9541 = vrot.lane.b32.xlu0 %v7478_v24, %s12719_s29  ;;  %v6979_v33 = vadd.f32 %v1941_v30, %v962_v20  ;;  %v11217_v34 = vpop.f32.mrb[29].mxu0  ;;  %v4343_v12 = vsel %vm1072_vm1, %v887_v5, 0  ;;  %v764_v20 = vld [vmem:[%s13280_s9 + $0x130] sm:$0xf] }
 0x27e   : > { %v1944_v36 = vpop.f32.mrb[30].mxu0  ;;  %v7229_v23 = vld [vmem:[#allocation2 + $0x40] sm:$0xff]  ;;  %v7231_v24 = vld [vmem:[#allocation2 + $0x50] sm:$0xff] }
 0x27f   : > { %11498 = vmatmul.mubr.msk.bf16.vlgmr.msra.gmra.mrb[136].mxu1 %vm1072_vm1, %v753_v22  ;;  %7108 = vst.msk [vmem:[#allocation2 + $0x90] sm:$0xff] %vm559_vm2, %v6979_v33  ;;  %v11218_v42 = vpop.f32.mrb[31].mxu0  ;;  %v894_v22 = vld [vmem:[%s13288_s25 + $0x138] sm:$0xf]  ;;  %v7233_v30 = vld [vmem:[#allocation2 + $0x60] sm:$0xff]  ;;  %v7235_v31 = vld [vmem:[#allocation2 + $0x70] sm:$0xff] }
 0x280   : > { %11508 = vmatpush3.bf16.xpose.msra.mxu1 %v4159_v29  ;;  %11509 = vmatprep.mubr.msk.bf16.mxu1 %vm12715_vm0, %v12714_v0  ;;  %v7230_v29 = vld [vmem:[#allocation2 + $0x48] sm:$0xff]  ;;  %v12129_v33 = vld [vmem:[#allocation2 + $0x60] ss:$16 sps:$4 sm:$0xff]   ;;  %v4665_v35 = vsel %vm1072_vm1, %v894_v22, 0  ;;  %v7486_v42 = vcombine.high %v7229_v23, %v7231_v24  ;;  %v761_v24 = vld [vmem:[%s13280_s9 + $0x124] sm:$0xf] }
 0x281   : > { %11519 = vmatprep.subr.bf16.mxu1 %v12714_v0  ;;  %9733 = vrot.lane.b32.xlu1 %v7481_v38, %s12720_s11  ;;  %v970_v22 = vld [vmem:[#allocation2 + $0xd0] sm:$0xff] }
 0x282   : > { %v1711_v44 = vpop.f32.mrb[32].mxu1  ;;  %9605 = vrot.lane.b32.xlu0 %v7479_v39, %s12721_s18  ;;  %11540 = vmatmul.mubr.msk.bf16.vlgmr.msra.gmra.mrb[136].mxu0 %vm1072_vm1, %v760_v41  ;;  %v759_v41 = vld [vmem:[%s13280_s9 + $0x11c] sm:$0xf] }
 0x283   : > { %v6974_v47 = vadd.f32 %v1711_v44, %v957_v37  ;;  %v11187_v48 = vpop.f32.mrb[33].mxu1  ;;  %11550 = vmatpush3.bf16.xpose.msra.mxu0 %v4481_v43  ;;  %11551 = vmatprep.mubr.msk.bf16.mxu0 %vm12715_vm0, %v12714_v0  ;;  %v889_v37 = vld [vmem:[%s13288_s25 + $0x124] sm:$0xf]  ;;  %v7518_v43 = vcombine.high %v7233_v30, %v7235_v31 }
 0x284   : > { %v1714_v50 = vpop.f32.mrb[34].mxu1  ;;  %v2033_v57 = vpop.f32.mrb[32].mxu0  ;;  %11561 = vmatprep.subr.bf16.mxu0 %v12714_v0  ;;  %v7232_v17 = vld [vmem:[#allocation2 + $0x58] sm:$0xff]  ;;  %v968_v44 = vld [vmem:[#allocation2 + $0xc0] sm:$0xff]  ;;  %v7493_v48 = vrot.slane %v12125_v26, %v14060_v28 }
 0x285   : > { %7103 = vst.msk [vmem:[#allocation2 + $0x68] sm:$0xff] %vm559_vm2, %v6974_v47  ;;  %v11188_v55 = vpop.f32.mrb[35].mxu1  ;;  %9861 = vrot.lane.b32.xlu1 %v7483_v53, %s12722_s3  ;;  %v6981_v58 = vadd.f32 %v2033_v57, %v964_v49  ;;  %v11229_v59 = vpop.f32.mrb[33].mxu0  ;;  %v12127_v18 = vld [vmem:[#allocation2 + $0x48] ss:$16 sps:$4 sm:$0xff]   ;;  %v7502_v34 = vcombine.high %v7230_v29, %v7232_v17  ;;  %v7525_v53 = vrot.slane %v12129_v33, %v14060_v28 }
 0x286   : > { %9797 = vrot.lane.b32.xlu0 %v7482_v54, %s12723_s5  ;;  %v2036_v61 = vpop.f32.mrb[34].mxu0  ;;  %v7509_v38 = vrot.slane %v12127_v18, %v14060_v28 }
 0x287   : > { %11510 = vmatmul.mubr.msk.bf16.vlgmr.msra.gmra.mrb[140].mxu1 %vm1072_vm1, %v755_v52  ;;  %7110 = vst.msk [vmem:[#allocation2 + $0xa0] sm:$0xff] %vm559_vm2, %v6981_v58  ;;  %v11230_v2 = vpop.f32.mrb[35].mxu0  ;;  %v4435_v52 = vsel %vm1072_vm1, %v889_v37, 0  ;;  %v14188_v54 = vrot.slane %v7502_v34, %v14060_v28 }
 0x288   : > { %11520 = vmatpush3.bf16.xpose.msra.mxu1 %v4251_v56  ;;  %11521 = vmatprep.mubr.msk.bf16.mxu1 %vm12715_vm0, %v12714_v0  ;;  %v7549_v58 = vcombine.low %v7493_v48, %v7509_v38  ;;  %v7550_v59 = vcombine.high %v7493_v48, %v7509_v38 }
 0x289   : > { %11531 = vmatprep.subr.bf16.mxu1 %v12714_v0  ;;  %9925 = vrot.lane.b32.xlu1 %v7484_v63, %s12724_s15  ;;  %v14195_v63 = vrot.slane %v7486_v42, %v14060_v28 }
 0x28a   : > { %v1803_v4 = vpop.f32.mrb[36].mxu1  ;;  %11552 = vmatmul.mubr.msk.bf16.vlgmr.msra.gmra.mrb[140].mxu0 %vm1072_vm1, %v762_v1  ;;  %v14198_v1 = vrot.slane %v7518_v43, %v14060_v28  ;;  %v7564_v17 = vrot.slane %v7550_v59, %v14076_v51  ;;  %v768_v43 = vld [vmem:[%s13280_s9 + $0x140] sm:$0xf] }
 0x28b   : > { %v6976_v6 = vadd.f32 %v1803_v4, %v959_v62  ;;  %v11199_v7 = vpop.f32.mrb[37].mxu1  ;;  %11562 = vmatpush3.bf16.xpose.msra.mxu0 %v4573_v3  ;;  %11563 = vmatprep.mubr.msk.bf16.mxu0 %vm12715_vm0, %v12714_v0  ;;  %v896_v62 = vld [vmem:[%s13288_s25 + $0x140] sm:$0xf]  ;;  %v963_v4 = vld [vmem:[#allocation2 + $0x98] sm:$0xff]  ;;  %v7566_v48 = vcombine.high %v14195_v63, %v14188_v54 }
 0x28c   : > { %v1806_v9 = vpop.f32.mrb[38].mxu1  ;;  %v2125_v13 = vpop.f32.mrb[36].mxu0  ;;  %11573 = vmatprep.subr.bf16.mxu0 %v12714_v0  ;;  %v7234_v46 = vld [vmem:[#allocation2 + $0x68] sm:$0xff]  ;;  %v766_v7 = vld [vmem:[%s13280_s9 + $0x138] sm:$0xf] }
 0x28d   : > { %7105 = vst.msk [vmem:[#allocation2 + $0x78] sm:$0xff] %vm559_vm2, %v6976_v6  ;;  %v11200_v11 = vpop.f32.mrb[39].mxu1  ;;  %v6983_v19 = vadd.f32 %v2125_v13, %v966_v8  ;;  %v11241_v21 = vpop.f32.mrb[37].mxu0  ;;  %v7565_v9 = vcombine.low %v14195_v63, %v14188_v54  ;;  %v14214_v13 = vrot.slane %v7549_v58, %v14076_v51  ;;  %v900_v63 = vld [vmem:[%s13288_s25 + $0x150] sm:$0xf] }
 0x28e   : > { %v2128_v27 = vpop.f32.mrb[38].mxu0  ;;  %v4757_v11 = vsel %vm1072_vm1, %v896_v62, 0 }
 0x28f   : > { %11522 = vmatmul.mubr.msk.bf16.vlgmr.msra.gmra.mrb[144].mxu1 %vm1072_vm1, %v757_v10  ;;  %7112 = vst.msk [vmem:[#allocation2 + $0xb0] sm:$0xff] %vm559_vm2, %v6983_v19  ;;  %v11242_v32 = vpop.f32.mrb[39].mxu0  ;;  %v891_v19 = vld [vmem:[%s13288_s25 + $0x12c] sm:$0xf]  ;;  %v7573_v33 = vrot.slane %v7565_v9, %v14076_v51 }
 0x290   : > { %11532 = vmatpush3.bf16.xpose.msra.mxu1 %v4343_v12  ;;  %11533 = vmatprep.mubr.msk.bf16.mxu1 %vm12715_vm0, %v12714_v0  ;;  %v4527_v31 = vsel %vm1072_vm1, %v891_v19, 0 }
 0x291   : > { %11543 = vmatprep.subr.bf16.mxu1 %v12714_v0 }
 0x292   : > { %v1895_v36 = vpop.f32.mrb[40].mxu1  ;;  %11564 = vmatmul.mubr.msk.bf16.vlgmr.msra.gmra.mrb[144].mxu0 %vm1072_vm1, %v764_v20 }
 0x293   : > { %v6978_v39 = vadd.f32 %v1895_v36, %v961_v16  ;;  %v11211_v40 = vpop.f32.mrb[41].mxu1  ;;  %11574 = vmatpush3.bf16.xpose.msra.mxu0 %v4665_v35  ;;  %11575 = vmatprep.mubr.msk.bf16.mxu0 %vm12715_vm0, %v12714_v0  ;;  %v898_v36 = vld [vmem:[%s13288_s25 + $0x148] sm:$0xf] }
 0x294   : > { %v1898_v45 = vpop.f32.mrb[42].mxu1  ;;  %v7236_v47 = vld [vmem:[#allocation2 + $0x78] sm:$0xff]  ;;  %v2217_v56 = vpop.f32.mrb[40].mxu0  ;;  %11585 = vmatprep.subr.bf16.mxu0 %v12714_v0 }
 0x295   : > { %v12131_v49 = vld [vmem:[#allocation2 + $0x68] ss:$16 sps:$4 sm:$0xff]   ;;  %7107 = vst.msk [vmem:[#allocation2 + $0x88] sm:$0xff] %vm559_vm2, %v6978_v39  ;;  %v11212_v50 = vpop.f32.mrb[43].mxu1  ;;  %v7534_v55 = vcombine.high %v7234_v46, %v7236_v47  ;;  %v6985_v60 = vadd.f32 %v2217_v56, %v968_v44  ;;  %v11253_v61 = vpop.f32.mrb[41].mxu0  ;;  %v4849_v45 = vsel %vm1072_vm1, %v898_v36, 0 }
 0x296   : > { %v7541_v57 = vrot.slane %v12131_v49, %v14060_v28  ;;  %v2220_v3 = vpop.f32.mrb[42].mxu0  ;;  %v965_v39 = vld [vmem:[#allocation2 + $0xa8] sm:$0xff]  ;;  %v893_v47 = vld [vmem:[%s13288_s25 + $0x134] sm:$0xf]  ;;  %v976_v36 = vld [vmem:[#allocation2 + $0x100] sm:$0xff] }
 0x297   : > { %11534 = vmatmul.mubr.msk.bf16.vlgmr.msra.gmra.mrb[148].mxu1 %vm1072_vm1, %v759_v41  ;;  %v14201_v2 = vrot.slane %v7534_v55, %v14060_v28  ;;  %7114 = vst.msk [vmem:[#allocation2 + $0xc0] sm:$0xff] %vm559_vm2, %v6985_v60  ;;  %v11254_v8 = vpop.f32.mrb[43].mxu0  ;;  %v763_v55 = vld [vmem:[%s13280_s9 + $0x12c] sm:$0xf]  ;;  %v4619_v54 = vsel %vm1072_vm1, %v893_v47, 0  ;;  %v7580_v60 = vrot.slane %v7566_v48, %v14076_v51  ;;  %v7239_v48 = vld [vmem:[#allocation2 + $0x90] sm:$0xff] }
 0x298   : > { %11544 = vmatpush3.bf16.xpose.msra.mxu1 %v4435_v52  ;;  %11545 = vmatprep.mubr.msk.bf16.mxu1 %vm12715_vm0, %v12714_v0  ;;  %v7581_v5 = vcombine.low %v7525_v53, %v7541_v57  ;;  %v7582_v6 = vcombine.high %v7525_v53, %v7541_v57  ;;  %v972_v52 = vld [vmem:[#allocation2 + $0xe0] sm:$0xff]  ;;  %v895_v8 = vld [vmem:[%s13288_s25 + $0x13c] sm:$0xf] }
 0x299   : > { %11555 = vmatprep.subr.bf16.mxu1 %v12714_v0  ;;  %v7597_v10 = vcombine.low %v14198_v1, %v14201_v2  ;;  %v7598_v42 = vcombine.high %v14198_v1, %v14201_v2  ;;  %v967_v2 = vld [vmem:[#allocation2 + $0xb8] sm:$0xff] }
 0x29a   : > { %v1987_v12 = vpop.f32.mrb[44].mxu1  ;;  %v14217_v16 = vrot.slane %v7581_v5, %v14076_v51  ;;  %v7596_v18 = vrot.slane %v7582_v6, %v14076_v51  ;;  %11576 = vmatmul.mubr.msk.bf16.vlgmr.msra.gmra.mrb[148].mxu0 %vm1072_vm1, %v766_v7  ;;  %v4941_v6 = vsel %vm1072_vm1, %v900_v63, 0 }
 0x29b   : > { %v6980_v20 = vadd.f32 %v1987_v12, %v963_v4  ;;  %v11223_v21 = vpop.f32.mrb[45].mxu1  ;;  %v7605_v29 = vrot.slane %v7597_v10, %v14076_v51  ;;  %11586 = vmatpush3.bf16.xpose.msra.mxu0 %v4757_v11  ;;  %11587 = vmatprep.mubr.msk.bf16.mxu0 %vm12715_vm0, %v12714_v0  ;;  %v7612_v57 = vrot.slane %v7598_v42, %v14076_v51  ;;  %v770_v4 = vld [vmem:[%s13280_s9 + $0x148] sm:$0xf]  ;;  %v974_v11 = vld [vmem:[#allocation2 + $0xf0] sm:$0xff] }
 0x29c   : > { %v1990_v23 = vpop.f32.mrb[46].mxu1  ;;  %v7614_v26 = vcombine.high %v14214_v13, %v14217_v16  ;;  %v7615_v27 = vcombine.low %v7564_v17, %v7596_v18  ;;  %v2309_v32 = vpop.f32.mrb[44].mxu0  ;;  %11597 = vmatprep.subr.bf16.mxu0 %v12714_v0  ;;  %v7613_v37 = vcombine.low %v14214_v13, %v14217_v16  ;;  %v7616_v40 = vcombine.high %v7564_v17, %v7596_v18  ;;  %v765_v17 = vld [vmem:[%s13280_s9 + $0x134] sm:$0xf]  ;;  %v7238_v47 = vld [vmem:[#allocation2 + $0x88] sm:$0xff] }
 0x29d   : > { %7109 = vst.msk [vmem:[#allocation2 + $0x98] sm:$0xff] %vm559_vm2, %v6980_v20  ;;  %v11224_v30 = vpop.f32.mrb[47].mxu1  ;;  %v6987_v34 = vadd.f32 %v2309_v32, %v970_v22  ;;  %v11265_v35 = vpop.f32.mrb[45].mxu0  ;;  %v7617_v41 = vcombine.low %v7573_v33, %v7605_v29  ;;  %v7618_v56 = vcombine.high %v7573_v33, %v7605_v29  ;;  %v7619_v3 = vcombine.low %v7580_v60, %v7612_v57  ;;  %v969_v29 = vld [vmem:[#allocation2 + $0xc8] sm:$0xff]  ;;  %v897_v33 = vld [vmem:[%s13288_s25 + $0x144] sm:$0xf] }
 0x29e   : > { %9543 = vrot.lane.b32.xlu1 %v7614_v26, %s12719_s29  ;;  %9607 = vrot.lane.b32.xlu0 %v7615_v27, %s12721_s18  ;;  %v2312_v38 = vpop.f32.mrb[46].mxu0  ;;  %v7620_v18 = vcombine.high %v7580_v60, %v7612_v57  ;;  %v4711_v20 = vsel %vm1072_vm1, %v895_v8, 0  ;;  %v902_v26 = vld [vmem:[%s13288_s25 + $0x158] sm:$0xf]  ;;  %v12133_v30 = vld [vmem:[#allocation2 + $0x80] ss:$16 sps:$4 sm:$0xff]  }
 0x29f   : > { %11546 = vmatmul.mubr.msk.bf16.vlgmr.msra.gmra.mrb[152].mxu1 %vm1072_vm1, %v761_v24  ;;  %7116 = vst.msk [vmem:[#allocation2 + $0xd0] sm:$0xff] %vm559_vm2, %v6987_v34  ;;  %v11266_v44 = vpop.f32.mrb[47].mxu0  ;;  %v12137_v34 = vld [vmem:[#allocation2 + $0xa0] ss:$16 sps:$4 sm:$0xff]   ;;  %v5033_v35 = vsel %vm1072_vm1, %v902_v26, 0 }
 0x2a0   : > { %11556 = vmatpush3.bf16.xpose.msra.mxu1 %v4527_v31  ;;  %11557 = vmatprep.mubr.msk.bf16.mxu1 %vm12715_vm0, %v12714_v0  ;;  %v772_v31 = vld [vmem:[%s13280_s9 + $0x150] sm:$0xf]  ;;  %v899_v26 = vld [vmem:[%s13288_s25 + $0x14c] sm:$0xf] }
 0x2a1   : > { %11567 = vmatprep.subr.bf16.mxu1 %v12714_v0  ;;  %v7243_v42 = vld [vmem:[#allocation2 + $0xb0] sm:$0xff] }
 0x2a2   : > { %v2079_v46 = vpop.f32.mrb[48].mxu1  ;;  %9671 = vrot.lane.b32.xlu1 %v7616_v40, %s12718_s21  ;;  %9735 = vrot.lane.b32.xlu0 %v7617_v41, %s12720_s11  ;;  %v7241_v41 = vld [vmem:[#allocation2 + $0xa0] sm:$0xff] }
 0x2a3   : > { %v6982_v49 = vadd.f32 %v2079_v46, %v965_v39  ;;  %v11235_v50 = vpop.f32.mrb[49].mxu1  ;;  %11588 = vmatmul.mubr.msk.bf16.vlgmr.msra.gmra.mrb[152].mxu0 %vm1072_vm1, %v768_v43  ;;  %v767_v39 = vld [vmem:[%s13280_s9 + $0x13c] sm:$0xf]  ;;  %v7237_v46 = vld [vmem:[#allocation2 + $0x80] sm:$0xff] }
 0x2a4   : > { %v2082_v53 = vpop.f32.mrb[50].mxu1  ;;  %11598 = vmatpush3.bf16.xpose.msra.mxu0 %v4849_v45  ;;  %11599 = vmatprep.mubr.msk.bf16.mxu0 %vm12715_vm0, %v12714_v0  ;;  %v2401_v59 = vpop.f32.mrb[48].mxu0  ;;  %v12135_v22 = vld [vmem:[#allocation2 + $0x88] ss:$16 sps:$4 sm:$0xff]   ;;  %v4803_v50 = vsel %vm1072_vm1, %v897_v33, 0 }
 0x2a5   : > { %7111 = vst.msk [vmem:[#allocation2 + $0xa8] sm:$0xff] %vm559_vm2, %v6982_v49  ;;  %v11236_v58 = vpop.f32.mrb[51].mxu1  ;;  %11609 = vmatprep.subr.bf16.mxu0 %v12714_v0  ;;  %v6989_v61 = vadd.f32 %v2401_v59, %v972_v52  ;;  %v11277_v62 = vpop.f32.mrb[49].mxu0  ;;  %v7240_v40 = vld [vmem:[#allocation2 + $0x98] sm:$0xff]  ;;  %v7645_v43 = vrot.slane %v12135_v22, %v14060_v28  ;;  %v7654_v59 = vcombine.high %v7241_v41, %v7243_v42  ;;  %v769_v33 = vld [vmem:[%s13280_s9 + $0x144] sm:$0xf] }
 0x2a6   : > { %9799 = vrot.lane.b32.xlu0 %v7618_v56, %s12723_s5  ;;  %v2404_v1 = vpop.f32.mrb[50].mxu0  ;;  %v7661_v58 = vrot.slane %v12137_v34, %v14060_v28 }
 0x2a7   : > { %11558 = vmatmul.mubr.msk.bf16.vlgmr.msra.gmra.mrb[156].mxu1 %vm1072_vm1, %v763_v55  ;;  %7118 = vst.msk [vmem:[#allocation2 + $0xe0] sm:$0xff] %vm559_vm2, %v6989_v61  ;;  %v11278_v5 = vpop.f32.mrb[51].mxu0  ;;  %v7629_v55 = vrot.slane %v12133_v30, %v14060_v28 }
 0x2a8   : > { %11568 = vmatpush3.bf16.xpose.msra.mxu1 %v4619_v54  ;;  %11569 = vmatprep.mubr.msk.bf16.mxu1 %vm12715_vm0, %v12714_v0  ;;  %v7638_v54 = vcombine.high %v7238_v47, %v7240_v40  ;;  %v7622_v5 = vcombine.high %v7237_v46, %v7239_v48  ;;  %v973_v47 = vld [vmem:[#allocation2 + $0xe8] sm:$0xff] }
 0x2a9   : > { %11579 = vmatprep.subr.bf16.mxu1 %v12714_v0  ;;  %v7686_v63 = vcombine.high %v7629_v55, %v7645_v43  ;;  %v7685_v1 = vcombine.low %v7629_v55, %v7645_v43 }
 0x2aa   : > { %v2171_v7 = vpop.f32.mrb[52].mxu1  ;;  %9863 = vrot.lane.b32.xlu0 %v7619_v3, %s12722_s3  ;;  %v14327_v30 = vrot.slane %v7622_v5, %v14060_v28 }
 0x2ab   : > { %v6984_v9 = vadd.f32 %v2171_v7, %v967_v2  ;;  %v11247_v10 = vpop.f32.mrb[53].mxu1  ;;  %11600 = vmatmul.mubr.msk.bf16.vlgmr.msra.gmra.mrb[156].mxu0 %vm1072_vm1, %v770_v4  ;;  %v904_v4 = vld [vmem:[%s13288_s25 + $0x160] sm:$0xf]  ;;  %v971_v7 = vld [vmem:[#allocation2 + $0xd8] sm:$0xff] }
 0x2ac   : > { %v2174_v12 = vpop.f32.mrb[54].mxu1  ;;  %11610 = vmatpush3.bf16.xpose.msra.mxu0 %v4941_v6  ;;  %11611 = vmatprep.mubr.msk.bf16.mxu0 %vm12715_vm0, %v12714_v0  ;;  %v2493_v21 = vpop.f32.mrb[52].mxu0  ;;  %v7242_v52 = vld [vmem:[#allocation2 + $0xa8] sm:$0xff] }
 0x2ad   : > { %7113 = vst.msk [vmem:[#allocation2 + $0xb8] sm:$0xff] %vm559_vm2, %v6984_v9  ;;  %v11248_v19 = vpop.f32.mrb[55].mxu1  ;;  %11621 = vmatprep.subr.bf16.mxu0 %v12714_v0  ;;  %v6991_v23 = vadd.f32 %v2493_v21, %v974_v11  ;;  %v11289_v24 = vpop.f32.mrb[53].mxu0  ;;  %v774_v11 = vld [vmem:[%s13280_s9 + $0x158] sm:$0xf]  ;;  %v7700_v21 = vrot.slane %v7686_v63, %v14076_v51 }
 0x2ae   : > { %9927 = vrot.lane.b32.xlu0 %v7620_v18, %s12724_s15  ;;  %v2496_v27 = vpop.f32.mrb[54].mxu0  ;;  %v14314_v18 = vrot.slane %v7654_v59, %v14060_v28  ;;  %v5125_v19 = vsel %vm1072_vm1, %v904_v4, 0  ;;  %v980_v59 = vld [vmem:[#allocation2 + $0x120] sm:$0xff] }
 0x2af   : > { %11570 = vmatmul.mubr.msk.bf16.vlgmr.msra.gmra.mrb[160].mxu1 %vm1072_vm1, %v765_v17  ;;  %7120 = vst.msk [vmem:[#allocation2 + $0xf0] sm:$0xff] %vm559_vm2, %v6991_v23  ;;  %v11290_v32 = vpop.f32.mrb[55].mxu0  ;;  %v14311_v17 = vrot.slane %v7638_v54, %v14060_v28  ;;  %v14320_v23 = vrot.slane %v7685_v1, %v14076_v51 }
 0x2b0   : > { %11580 = vmatpush3.bf16.xpose.msra.mxu1 %v4711_v20  ;;  %11581 = vmatprep.mubr.msk.bf16.mxu1 %vm12715_vm0, %v12714_v0 }
 0x2b1   : > { %11591 = vmatprep.subr.bf16.mxu1 %v12714_v0  ;;  %v7701_v41 = vcombine.low %v14327_v30, %v14311_v17  ;;  %v7702_v4 = vcombine.high %v14327_v30, %v14311_v17  ;;  %v773_v30 = vld [vmem:[%s13280_s9 + $0x154] sm:$0xf] }
 0x2b2   : > { %v2263_v38 = vpop.f32.mrb[56].mxu1 }
 0x2b3   : > { %v6986_v44 = vadd.f32 %v2263_v38, %v969_v29  ;;  %v11259_v45 = vpop.f32.mrb[57].mxu1  ;;  %11612 = vmatmul.mubr.msk.bf16.vlgmr.msra.gmra.mrb[160].mxu0 %vm1072_vm1, %v772_v31  ;;  %v978_v31 = vld [vmem:[#allocation2 + $0x110] sm:$0xff] }
 0x2b4   : > { %v2266_v49 = vpop.f32.mrb[58].mxu1  ;;  %v7244_v53 = vld [vmem:[#allocation2 + $0xb8] sm:$0xff]  ;;  %11622 = vmatpush3.bf16.xpose.msra.mxu0 %v5033_v35  ;;  %11623 = vmatprep.mubr.msk.bf16.mxu0 %vm12715_vm0, %v12714_v0  ;;  %v2585_v61 = vpop.f32.mrb[56].mxu0 }
 0x2b5   : > { %v12139_v56 = vld [vmem:[#allocation2 + $0xa8] ss:$16 sps:$4 sm:$0xff]   ;;  %7115 = vst.msk [vmem:[#allocation2 + $0xc8] sm:$0xff] %vm559_vm2, %v6986_v44  ;;  %v11260_v57 = vpop.f32.mrb[59].mxu1  ;;  %v7670_v60 = vcombine.high %v7242_v52, %v7244_v53  ;;  %11633 = vmatprep.subr.bf16.mxu0 %v12714_v0  ;;  %v6993_v2 = vadd.f32 %v2585_v61, %v976_v36  ;;  %v11301_v3 = vpop.f32.mrb[57].mxu0 }
 0x2b6   : > { %v7677_v62 = vrot.slane %v12139_v56, %v14060_v28  ;;  %v2588_v6 = vpop.f32.mrb[58].mxu0  ;;  %v906_v44 = vld [vmem:[%s13288_s25 + $0x168] sm:$0xf]  ;;  %v7709_v56 = vrot.slane %v7701_v41, %v14076_v51  ;;  %v901_v57 = vld [vmem:[%s13288_s25 + $0x154] sm:$0xf] }
 0x2b7   : > { %11582 = vmatmul.mubr.msk.bf16.vlgmr.msra.gmra.mrb[164].mxu1 %vm1072_vm1, %v767_v39  ;;  %v14305_v10 = vrot.slane %v7670_v60, %v14060_v28  ;;  %7122 = vst.msk [vmem:[#allocation2 + $0x100] sm:$0xff] %vm559_vm2, %v6993_v2  ;;  %v11302_v12 = vpop.f32.mrb[59].mxu0  ;;  %v4895_v39 = vsel %vm1072_vm1, %v899_v26, 0  ;;  %v5217_v53 = vsel %vm1072_vm1, %v906_v44, 0  ;;  %v771_v61 = vld [vmem:[%s13280_s9 + $0x14c] sm:$0xf] }
 0x2b8   : > { %11592 = vmatpush3.bf16.xpose.msra.mxu1 %v4803_v50  ;;  %11593 = vmatprep.mubr.msk.bf16.mxu1 %vm12715_vm0, %v12714_v0  ;;  %v7718_v8 = vcombine.high %v7661_v58, %v7677_v62  ;;  %v7717_v9 = vcombine.low %v7661_v58, %v7677_v62  ;;  %v776_v50 = vld [vmem:[%s13280_s9 + $0x160] sm:$0xf]  ;;  %v4987_v2 = vsel %vm1072_vm1, %v901_v57, 0  ;;  %v778_v12 = vld [vmem:[%s13280_s9 + $0x168] sm:$0xf] }
 0x2b9   : > { %11603 = vmatprep.subr.bf16.mxu1 %v12714_v0  ;;  %v7733_v36 = vcombine.low %v14314_v18, %v14305_v10  ;;  %v7734_v63 = vcombine.high %v14314_v18, %v14305_v10  ;;  %v977_v41 = vld [vmem:[#allocation2 + $0x108] sm:$0xff]  ;;  %v780_v44 = vld [vmem:[%s13280_s9 + $0x170] sm:$0xf] }
 0x2ba   : > { %v2355_v20 = vpop.f32.mrb[60].mxu1  ;;  %v7732_v22 = vrot.slane %v7718_v8, %v14076_v51  ;;  %v14323_v24 = vrot.slane %v7717_v9, %v14076_v51  ;;  %v975_v9 = vld [vmem:[#allocation2 + $0xf8] sm:$0xff] }
 0x2bb   : > { %v6988_v27 = vadd.f32 %v2355_v20, %v971_v7  ;;  %v11271_v29 = vpop.f32.mrb[61].mxu1  ;;  %11624 = vmatmul.mubr.msk.bf16.vlgmr.msra.gmra.mrb[164].mxu0 %vm1072_vm1, %v774_v11  ;;  %v7741_v49 = vrot.slane %v7733_v36, %v14076_v51  ;;  %v908_v7 = vld [vmem:[%s13288_s25 + $0x170] sm:$0xf]  ;;  %v7748_v11 = vrot.slane %v7734_v63, %v14076_v51  ;;  %v7716_v20 = vrot.slane %v7702_v4, %v14076_v51 }
 0x2bc   : > { %v2358_v32 = vpop.f32.mrb[62].mxu1  ;;  %v7751_v34 = vcombine.low %v7700_v21, %v7732_v22  ;;  %v7750_v35 = vcombine.high %v14320_v23, %v14323_v24  ;;  %11634 = vmatpush3.bf16.xpose.msra.mxu0 %v5125_v19  ;;  %11635 = vmatprep.mubr.msk.bf16.mxu0 %vm12715_vm0, %v12714_v0  ;;  %v2677_v40 = vpop.f32.mrb[60].mxu0  ;;  %v7749_v45 = vcombine.low %v14320_v23, %v14323_v24  ;;  %v5309_v18 = vsel %vm1072_vm1, %v908_v7, 0  ;;  %v1008_v23 = vld [vmem:[#allocation2 + $0x200] sm:$0xff] }
 0x2bd   : > { %7117 = vst.msk [vmem:[#allocation2 + $0xd8] sm:$0xff] %vm559_vm2, %v6988_v27  ;;  %v11272_v38 = vpop.f32.mrb[63].mxu1  ;;  %11645 = vmatprep.subr.bf16.mxu0 %v12714_v0  ;;  %v6995_v42 = vadd.f32 %v2677_v40, %v978_v31  ;;  %v11313_v43 = vpop.f32.mrb[61].mxu0  ;;  %v7752_v48 = vcombine.high %v7700_v21, %v7732_v22  ;;  %v7753_v62 = vcombine.low %v7709_v56, %v7741_v49  ;;  %v903_v21 = vld [vmem:[%s13288_s25 + $0x15c] sm:$0xf]  ;;  %v982_v27 = vld [vmem:[#allocation2 + $0x130] sm:$0xff] }
 0x2be   : > { %9609 = vrot.lane.b32.xlu1 %v7751_v34, %s12721_s18  ;;  %9545 = vrot.lane.b32.xlu0 %v7750_v35, %s12719_s29  ;;  %v2680_v46 = vpop.f32.mrb[62].mxu0  ;;  %v7754_v10 = vcombine.high %v7709_v56, %v7741_v49  ;;  %v7755_v31 = vcombine.low %v7716_v20, %v7748_v11  ;;  %v12141_v43 = vld [vmem:[#allocation2 + $0xc0] ss:$16 sps:$4 sm:$0xff]   ;;  %v905_v49 = vld [vmem:[%s13288_s25 + $0x164] sm:$0xf] }
 0x2bf   : > { %11594 = vmatmul.mubr.msk.bf16.vlgmr.msra.gmra.mrb[168].mxu1 %vm1072_vm1, %v769_v33  ;;  %7124 = vst.msk [vmem:[#allocation2 + $0x110] sm:$0xff] %vm559_vm2, %v6995_v42  ;;  %v11314_v52 = vpop.f32.mrb[63].mxu0  ;;  %v5079_v33 = vsel %vm1072_vm1, %v903_v21, 0  ;;  %v7756_v42 = vcombine.high %v7716_v20, %v7748_v11  ;;  %v984_v56 = vld [vmem:[#allocation2 + $0x140] sm:$0xff] }
 0x2c0   : > { %11604 = vmatpush3.bf16.xpose.msra.mxu1 %v4895_v39  ;;  %11605 = vmatprep.mubr.msk.bf16.mxu1 %vm12715_vm0, %v12714_v0  ;;  %v910_v39 = vld [vmem:[%s13288_s25 + $0x178] sm:$0xf]  ;;  %v12145_v52 = vld [vmem:[#allocation2 + $0xe0] ss:$16 sps:$4 sm:$0xff]  }
 0x2c1   : > { %11615 = vmatprep.subr.bf16.mxu1 %v12714_v0 }
 0x2c2   : > { %v2447_v55 = vpop.f32.mrb[64].mxu1  ;;  %9673 = vrot.lane.b32.xlu1 %v7752_v48, %s12718_s21 }
 0x2c3   : > { %v6990_v58 = vadd.f32 %v2447_v55, %v973_v47  ;;  %v11283_v54 = vpop.f32.mrb[65].mxu1  ;;  %11636 = vmatmul.mubr.msk.bf16.vlgmr.msra.gmra.mrb[168].mxu0 %vm1072_vm1, %v776_v50  ;;  %v5401_v47 = vsel %vm1072_vm1, %v910_v39, 0 }
 0x2c4   : > { %v2450_v60 = vpop.f32.mrb[66].mxu1  ;;  %11646 = vmatpush3.bf16.xpose.msra.mxu0 %v5217_v53  ;;  %11647 = vmatprep.mubr.msk.bf16.mxu0 %vm12715_vm0, %v12714_v0  ;;  %v2769_v3 = vpop.f32.mrb[64].mxu0  ;;  %v12143_v35 = vld [vmem:[#allocation2 + $0xc8] ss:$16 sps:$4 sm:$0xff]   ;;  %v14406_v54 = vrot.slane %v12141_v43, %v14060_v28  ;;  %v777_v43 = vld [vmem:[%s13280_s9 + $0x164] sm:$0xf] }
 0x2c5   : > { %7119 = vst.msk [vmem:[#allocation2 + $0xe8] sm:$0xff] %vm559_vm2, %v6990_v58  ;;  %v11284_v1 = vpop.f32.mrb[67].mxu1  ;;  %11657 = vmatprep.subr.bf16.mxu0 %v12714_v0  ;;  %v6997_v5 = vadd.f32 %v2769_v3, %v980_v59  ;;  %v11325_v6 = vpop.f32.mrb[65].mxu0  ;;  %v14401_v50 = vrot.slane %v12143_v35, %v14060_v28  ;;  %v775_v58 = vld [vmem:[%s13280_s9 + $0x15c] sm:$0xf]  ;;  %v7797_v3 = vrot.slane %v12145_v52, %v14060_v28 }
 0x2c6   : > { %9737 = vrot.lane.b32.xlu1 %v7753_v62, %s12720_s11  ;;  %v2772_v8 = vpop.f32.mrb[66].mxu0  ;;  %v7249_v1 = vld [vmem:[#allocation2 + $0xe0] sm:$0xff] }
 0x2c7   : > { %11606 = vmatmul.mubr.msk.bf16.vlgmr.msra.gmra.mrb[172].mxu1 %vm1072_vm1, %v771_v61  ;;  %7126 = vst.msk [vmem:[#allocation2 + $0x120] sm:$0xff] %vm559_vm2, %v6997_v5  ;;  %v11326_v17 = vpop.f32.mrb[67].mxu0  ;;  %v5171_v61 = vsel %vm1072_vm1, %v905_v49, 0  ;;  %v7821_v5 = vcombine.low %v14406_v54, %v14401_v50  ;;  %v912_v8 = vld [vmem:[%s13288_s25 + $0x180] sm:$0xf]  ;;  %v7822_v35 = vcombine.high %v14406_v54, %v14401_v50 }
 0x2c8   : > { %11616 = vmatpush3.bf16.xpose.msra.mxu1 %v4987_v2  ;;  %11617 = vmatprep.mubr.msk.bf16.mxu1 %vm12715_vm0, %v12714_v0  ;;  %v7251_v2 = vld [vmem:[#allocation2 + $0xf0] sm:$0xff]  ;;  %v7245_v17 = vld [vmem:[#allocation2 + $0xc0] sm:$0xff] }
 0x2c9   : > { %11627 = vmatprep.subr.bf16.mxu1 %v12714_v0 }
 0x2ca   : > { %v2539_v19 = vpop.f32.mrb[68].mxu1  ;;  %9801 = vrot.lane.b32.xlu1 %v7754_v10, %s12723_s5  ;;  %v7248_v10 = vld [vmem:[#allocation2 + $0xd8] sm:$0xff] }
 0x2cb   : > { %v6992_v22 = vadd.f32 %v2539_v19, %v975_v9  ;;  %v11295_v26 = vpop.f32.mrb[69].mxu1  ;;  %11648 = vmatmul.mubr.msk.bf16.vlgmr.msra.gmra.mrb[172].mxu0 %vm1072_vm1, %v778_v12  ;;  %v979_v9 = vld [vmem:[#allocation2 + $0x118] sm:$0xff] }
 0x2cc   : > { %v2542_v29 = vpop.f32.mrb[70].mxu1  ;;  %11658 = vmatpush3.bf16.xpose.msra.mxu0 %v5309_v18  ;;  %11659 = vmatprep.mubr.msk.bf16.mxu0 %vm12715_vm0, %v12714_v0  ;;  %v2861_v34 = vpop.f32.mrb[68].mxu0  ;;  %v7250_v11 = vld [vmem:[#allocation2 + $0xe8] sm:$0xff]  ;;  %v7247_v18 = vld [vmem:[#allocation2 + $0xd0] sm:$0xff] }
 0x2cd   : > { %7121 = vst.msk [vmem:[#allocation2 + $0xf8] sm:$0xff] %vm559_vm2, %v6992_v22  ;;  %v11296_v32 = vpop.f32.mrb[71].mxu1  ;;  %11669 = vmatprep.subr.bf16.mxu0 %v12714_v0  ;;  %v6999_v36 = vadd.f32 %v2861_v34, %v982_v27  ;;  %v11337_v38 = vpop.f32.mrb[69].mxu0  ;;  %v782_v22 = vld [vmem:[%s13280_s9 + $0x178] sm:$0xf]  ;;  %v7246_v27 = vld [vmem:[#allocation2 + $0xc8] sm:$0xff]  ;;  %v7790_v29 = vcombine.high %v7249_v1, %v7251_v2 }
 0x2ce   : > { %9865 = vrot.lane.b32.xlu1 %v7755_v31, %s12722_s3  ;;  %v2864_v40 = vpop.f32.mrb[70].mxu0  ;;  %v14426_v32 = vrot.slane %v7821_v5, %v14076_v51  ;;  %v907_v34 = vld [vmem:[%s13288_s25 + $0x16c] sm:$0xf]  ;;  %v784_v1 = vld [vmem:[%s13280_s9 + $0x180] sm:$0xf] }
 0x2cf   : > { %11618 = vmatmul.mubr.msk.bf16.vlgmr.msra.gmra.mrb[176].mxu1 %vm1072_vm1, %v773_v30  ;;  %7128 = vst.msk [vmem:[#allocation2 + $0x130] sm:$0xff] %vm559_vm2, %v6999_v36  ;;  %v11338_v46 = vpop.f32.mrb[71].mxu0  ;;  %v5493_v30 = vsel %vm1072_vm1, %v912_v8, 0  ;;  %v7774_v36 = vcombine.high %v7246_v27, %v7248_v10  ;;  %v7758_v40 = vcombine.high %v7245_v17, %v7247_v18  ;;  %v5263_v49 = vsel %vm1072_vm1, %v907_v34, 0  ;;  %v909_v5 = vld [vmem:[%s13288_s25 + $0x174] sm:$0xf] }
 0x2d0   : > { %11628 = vmatpush3.bf16.xpose.msra.mxu1 %v5079_v33  ;;  %11629 = vmatprep.mubr.msk.bf16.mxu1 %vm12715_vm0, %v12714_v0  ;;  %v14447_v50 = vrot.slane %v7790_v29, %v14060_v28  ;;  %v916_v27 = vld [vmem:[%s13288_s25 + $0x190] sm:$0xf] }
 0x2d1   : > { %11639 = vmatprep.subr.bf16.mxu1 %v12714_v0 }
 0x2d2   : > { %v2631_v48 = vpop.f32.mrb[72].mxu1  ;;  %9929 = vrot.lane.b32.xlu1 %v7756_v42, %s12724_s15 }
 0x2d3   : > { %v6994_v53 = vadd.f32 %v2631_v48, %v977_v41  ;;  %v11307_v55 = vpop.f32.mrb[73].mxu1  ;;  %11660 = vmatmul.mubr.msk.bf16.vlgmr.msra.gmra.mrb[176].mxu0 %vm1072_vm1, %v780_v44  ;;  %v986_v41 = vld [vmem:[#allocation2 + $0x150] sm:$0xff] }
 0x2d4   : > { %v2634_v57 = vpop.f32.mrb[74].mxu1  ;;  %v12147_v59 = vld [vmem:[#allocation2 + $0xe8] ss:$16 sps:$4 sm:$0xff]   ;;  %11670 = vmatpush3.bf16.xpose.msra.mxu0 %v5401_v47  ;;  %11671 = vmatprep.mubr.msk.bf16.mxu0 %vm12715_vm0, %v12714_v0  ;;  %v2953_v63 = vpop.f32.mrb[72].mxu0  ;;  %v14453_v55 = vrot.slane %v7774_v36, %v14060_v28 }
 0x2d5   : > { %7123 = vst.msk [vmem:[#allocation2 + $0x108] sm:$0xff] %vm559_vm2, %v6994_v53  ;;  %v11308_v60 = vpop.f32.mrb[75].mxu1  ;;  %v7252_v62 = vld [vmem:[#allocation2 + $0xf8] sm:$0xff]  ;;  %11681 = vmatprep.subr.bf16.mxu0 %v12714_v0  ;;  %v7813_v4 = vrot.slane %v12147_v59, %v14060_v28  ;;  %v7001_v6 = vadd.f32 %v2953_v63, %v984_v56  ;;  %v11349_v7 = vpop.f32.mrb[73].mxu0  ;;  %v7836_v53 = vrot.slane %v7822_v35, %v14076_v51  ;;  %v786_v35 = vld [vmem:[%s13280_s9 + $0x188] sm:$0xf] }
 0x2d6   : > { %v2956_v12 = vpop.f32.mrb[74].mxu0  ;;  %v7806_v21 = vcombine.high %v7250_v11, %v7252_v62  ;;  %v981_v60 = vld [vmem:[#allocation2 + $0x128] sm:$0xff]  ;;  %v14462_v62 = vrot.slane %v7758_v40, %v14060_v28  ;;  %v911_v40 = vld [vmem:[%s13288_s25 + $0x17c] sm:$0xf] }
 0x2d7   : > { %11630 = vmatmul.mubr.msk.bf16.vlgmr.msra.gmra.mrb[180].mxu1 %vm1072_vm1, %v775_v58  ;;  %v7853_v19 = vcombine.low %v7797_v3, %v7813_v4  ;;  %v7854_v20 = vcombine.high %v7797_v3, %v7813_v4  ;;  %7130 = vst.msk [vmem:[#allocation2 + $0x140] sm:$0xff] %vm559_vm2, %v7001_v6  ;;  %v11350_v26 = vpop.f32.mrb[75].mxu0  ;;  %v914_v58 = vld [vmem:[%s13288_s25 + $0x188] sm:$0xf]  ;;  %v779_v11 = vld [vmem:[%s13280_s9 + $0x16c] sm:$0xf] }
 0x2d8   : > { %11640 = vmatpush3.bf16.xpose.msra.mxu1 %v5171_v61  ;;  %11641 = vmatprep.mubr.msk.bf16.mxu1 %vm12715_vm0, %v12714_v0  ;;  %v14440_v47 = vrot.slane %v7806_v21, %v14060_v28  ;;  %v5585_v3 = vsel %vm1072_vm1, %v914_v58, 0  ;;  %v7837_v6 = vcombine.low %v14462_v62, %v14453_v55 }
 0x2d9   : > { %11651 = vmatprep.subr.bf16.mxu1 %v12714_v0  ;;  %v14429_v33 = vrot.slane %v7853_v19, %v14076_v51  ;;  %v7868_v46 = vrot.slane %v7854_v20, %v14076_v51  ;;  %v5355_v19 = vsel %vm1072_vm1, %v909_v5, 0  ;;  %v913_v5 = vld [vmem:[%s13288_s25 + $0x184] sm:$0xf] }
 0x2da   : > { %v2723_v31 = vpop.f32.mrb[76].mxu1  ;;  %v7869_v63 = vcombine.low %v14447_v50, %v14440_v47  ;;  %v7845_v21 = vrot.slane %v7837_v6, %v14076_v51  ;;  %v7870_v34 = vcombine.high %v14447_v50, %v14440_v47  ;;  %v781_v47 = vld [vmem:[%s13280_s9 + $0x174] sm:$0xf] }
 0x2db   : > { %v6996_v38 = vadd.f32 %v2723_v31, %v979_v9  ;;  %v11319_v39 = vpop.f32.mrb[77].mxu1  ;;  %11672 = vmatmul.mubr.msk.bf16.vlgmr.msra.gmra.mrb[180].mxu0 %vm1072_vm1, %v782_v22  ;;  %v7886_v44 = vcombine.high %v14426_v32, %v14429_v33  ;;  %v7885_v54 = vcombine.low %v14426_v32, %v14429_v33  ;;  %v7887_v61 = vcombine.low %v7836_v53, %v7868_v46  ;;  %v988_v9 = vld [vmem:[#allocation2 + $0x160] sm:$0xff]  ;;  %v807_v33 = vld [vmem:[%s13280_s9 + $0x1dc] sm:$0xf] }
 0x2dc   : > { %v2726_v42 = vpop.f32.mrb[78].mxu1  ;;  %11682 = vmatpush3.bf16.xpose.msra.mxu0 %v5493_v30  ;;  %11683 = vmatprep.mubr.msk.bf16.mxu0 %vm12715_vm0, %v12714_v0  ;;  %v3045_v52 = vpop.f32.mrb[76].mxu0  ;;  %v7888_v12 = vcombine.high %v7836_v53, %v7868_v46  ;;  %v7877_v17 = vrot.slane %v7869_v63, %v14076_v51  ;;  %v983_v30 = vld [vmem:[#allocation2 + $0x138] sm:$0xff]  ;;  %v12149_v63 = vld [vmem:[#allocation2 + $0x100] ss:$16 sps:$4 sm:$0xff]  }
 0x2dd   : > { %7125 = vst.msk [vmem:[#allocation2 + $0x118] sm:$0xff] %vm559_vm2, %v6996_v38  ;;  %v11320_v48 = vpop.f32.mrb[79].mxu1  ;;  %11693 = vmatprep.subr.bf16.mxu0 %v12714_v0  ;;  %9547 = vrot.lane.b32.xlu0 %v7886_v44, %s12719_s29  ;;  %v7003_v56 = vadd.f32 %v3045_v52, %v986_v41  ;;  %v11361_v57 = vpop.f32.mrb[77].mxu0  ;;  %v5677_v38 = vsel %vm1072_vm1, %v916_v27, 0  ;;  %v7838_v41 = vcombine.high %v14462_v62, %v14453_v55  ;;  %v990_v44 = vld [vmem:[#allocation2 + $0x170] sm:$0xff]  ;;  %v5447_v52 = vsel %vm1072_vm1, %v911_v40, 0 }
 0x2de   : > { %v3048_v59 = vpop.f32.mrb[78].mxu0  ;;  %v7889_v31 = vcombine.low %v7845_v21, %v7877_v17  ;;  %v7890_v48 = vcombine.high %v7845_v21, %v7877_v17  ;;  %v14524_v17 = vrot.slane %v12149_v63, %v14060_v28  ;;  %v5539_v21 = vsel %vm1072_vm1, %v913_v5, 0  ;;  %v7259_v27 = vld [vmem:[#allocation2 + $0x130] sm:$0xff]  ;;  %v785_v5 = vld [vmem:[%s13280_s9 + $0x184] sm:$0xf] }
 0x2df   : > { %11642 = vmatmul.mubr.msk.bf16.vlgmr.msra.gmra.mrb[184].mxu1 %vm1072_vm1, %v777_v43  ;;  %7132 = vst.msk [vmem:[#allocation2 + $0x150] sm:$0xff] %vm559_vm2, %v7003_v56  ;;  %v11362_v2 = vpop.f32.mrb[79].mxu0  ;;  %v7852_v55 = vrot.slane %v7838_v41, %v14076_v51  ;;  %v918_v59 = vld [vmem:[%s13288_s25 + $0x198] sm:$0xf] }
 0x2e0   : > { %11652 = vmatpush3.bf16.xpose.msra.mxu1 %v5263_v49  ;;  %11653 = vmatprep.mubr.msk.bf16.mxu1 %vm12715_vm0, %v12714_v0  ;;  %v7884_v49 = vrot.slane %v7870_v34, %v14076_v51  ;;  %v5769_v2 = vsel %vm1072_vm1, %v918_v59, 0  ;;  %v915_v59 = vld [vmem:[%s13288_s25 + $0x18c] sm:$0xf] }
 0x2e1   : > { %11663 = vmatprep.subr.bf16.mxu1 %v12714_v0  ;;  %9611 = vrot.lane.b32.xlu0 %v7887_v61, %s12721_s18  ;;  %v985_v61 = vld [vmem:[#allocation2 + $0x148] sm:$0xff] }
 0x2e2   : > { %v2815_v4 = vpop.f32.mrb[80].mxu1  ;;  %v7891_v62 = vcombine.low %v7852_v55, %v7884_v49 }
 0x2e3   : > { %v6998_v7 = vadd.f32 %v2815_v4, %v981_v60  ;;  %v11331_v8 = vpop.f32.mrb[81].mxu1  ;;  %11684 = vmatmul.mubr.msk.bf16.vlgmr.msra.gmra.mrb[184].mxu0 %vm1072_vm1, %v784_v1  ;;  %v788_v1 = vld [vmem:[%s13280_s9 + $0x190] sm:$0xf] }
 0x2e4   : > { %v2818_v10 = vpop.f32.mrb[82].mxu1  ;;  %11694 = vmatpush3.bf16.xpose.msra.mxu0 %v5585_v3  ;;  %11695 = vmatprep.mubr.msk.bf16.mxu0 %vm12715_vm0, %v12714_v0  ;;  %v3137_v20 = vpop.f32.mrb[80].mxu0  ;;  %v12151_v56 = vld [vmem:[#allocation2 + $0x108] ss:$16 sps:$4 sm:$0xff]  }
 0x2e5   : > { %7127 = vst.msk [vmem:[#allocation2 + $0x128] sm:$0xff] %vm559_vm2, %v6998_v7  ;;  %v11332_v18 = vpop.f32.mrb[83].mxu1  ;;  %11705 = vmatprep.subr.bf16.mxu0 %v12714_v0  ;;  %9675 = vrot.lane.b32.xlu0 %v7888_v12, %s12718_s21  ;;  %v7005_v22 = vadd.f32 %v3137_v20, %v988_v9  ;;  %v11373_v26 = vpop.f32.mrb[81].mxu0  ;;  %v14519_v6 = vrot.slane %v12151_v56, %v14060_v28  ;;  %v12153_v7 = vld [vmem:[#allocation2 + $0x120] ss:$16 sps:$4 sm:$0xff]  }
 0x2e6   : > { %v3140_v29 = vpop.f32.mrb[82].mxu0  ;;  %v7892_v12 = vcombine.high %v7852_v55, %v7884_v49  ;;  %v7257_v26 = vld [vmem:[#allocation2 + $0x120] sm:$0xff] }
 0x2e7   : > { %11654 = vmatmul.mubr.msk.bf16.vlgmr.msra.gmra.mrb[188].mxu1 %vm1072_vm1, %v779_v11  ;;  %7134 = vst.msk [vmem:[#allocation2 + $0x160] sm:$0xff] %vm559_vm2, %v7005_v22  ;;  %v11374_v36 = vpop.f32.mrb[83].mxu0  ;;  %v783_v11 = vld [vmem:[%s13280_s9 + $0x17c] sm:$0xf]  ;;  %v7933_v29 = vrot.slane %v12153_v7, %v14060_v28 }
 0x2e8   : > { %11664 = vmatpush3.bf16.xpose.msra.mxu1 %v5355_v19  ;;  %11665 = vmatprep.mubr.msk.bf16.mxu1 %vm12715_vm0, %v12714_v0  ;;  %v992_v19 = vld [vmem:[#allocation2 + $0x180] sm:$0xff]  ;;  %v987_v36 = vld [vmem:[#allocation2 + $0x158] sm:$0xff] }
 0x2e9   : > { %11675 = vmatprep.subr.bf16.mxu1 %v12714_v0  ;;  %9739 = vrot.lane.b32.xlu0 %v7889_v31, %s12720_s11  ;;  %v7957_v31 = vcombine.low %v14524_v17, %v14519_v6 }
 0x2ea   : > { %v2907_v39 = vpop.f32.mrb[84].mxu1 }
 0x2eb   : > { %v7000_v42 = vadd.f32 %v2907_v39, %v983_v30  ;;  %v11343_v43 = vpop.f32.mrb[85].mxu1  ;;  %11696 = vmatmul.mubr.msk.bf16.vlgmr.msra.gmra.mrb[188].mxu0 %vm1072_vm1, %v786_v35  ;;  %v920_v35 = vld [vmem:[%s13288_s25 + $0x1a0] sm:$0xf] }
 0x2ec   : > { %v2910_v46 = vpop.f32.mrb[86].mxu1  ;;  %11706 = vmatpush3.bf16.xpose.msra.mxu0 %v5677_v38  ;;  %11707 = vmatprep.mubr.msk.bf16.mxu0 %vm12715_vm0, %v12714_v0  ;;  %v3229_v53 = vpop.f32.mrb[84].mxu0  ;;  %v7256_v38 = vld [vmem:[#allocation2 + $0x118] sm:$0xff]  ;;  %v7258_v39 = vld [vmem:[#allocation2 + $0x128] sm:$0xff]  ;;  %v7255_v43 = vld [vmem:[#allocation2 + $0x110] sm:$0xff] }
 0x2ed   : > { %7129 = vst.msk [vmem:[#allocation2 + $0x138] sm:$0xff] %vm559_vm2, %v7000_v42  ;;  %v11344_v50 = vpop.f32.mrb[87].mxu1  ;;  %11717 = vmatprep.subr.bf16.mxu0 %v12714_v0  ;;  %9803 = vrot.lane.b32.xlu0 %v7890_v48, %s12723_s5  ;;  %v7007_v57 = vadd.f32 %v3229_v53, %v990_v44  ;;  %v11385_v58 = vpop.f32.mrb[85].mxu0  ;;  %v7253_v42 = vld [vmem:[#allocation2 + $0x100] sm:$0xff]  ;;  %v790_v48 = vld [vmem:[%s13280_s9 + $0x198] sm:$0xf] }
 0x2ee   : > { %v3232_v60 = vpop.f32.mrb[86].mxu0  ;;  %v7254_v50 = vld [vmem:[#allocation2 + $0x108] sm:$0xff]  ;;  %v5861_v53 = vsel %vm1072_vm1, %v920_v35, 0  ;;  %v792_v35 = vld [vmem:[%s13280_s9 + $0x1a0] sm:$0xf] }
 0x2ef   : > { %11666 = vmatmul.mubr.msk.bf16.vlgmr.msra.gmra.mrb[192].mxu1 %vm1072_vm1, %v781_v47  ;;  %7136 = vst.msk [vmem:[#allocation2 + $0x170] sm:$0xff] %vm559_vm2, %v7007_v57  ;;  %v11386_v3 = vpop.f32.mrb[87].mxu0  ;;  %v14545_v57 = vrot.slane %v7957_v31, %v14076_v51  ;;  %v7958_v60 = vcombine.high %v14524_v17, %v14519_v6 }
 0x2f0   : > { %11676 = vmatpush3.bf16.xpose.msra.mxu1 %v5447_v52  ;;  %11677 = vmatprep.mubr.msk.bf16.mxu1 %vm12715_vm0, %v12714_v0  ;;  %v7926_v52 = vcombine.high %v7257_v26, %v7259_v27  ;;  %v14554_v3 = vpop.permute.xlu1 %9669  ;;  %v14580_v27 = vpop.permute.xlu0 %9541 }
 0x2f1   : > { %11687 = vmatprep.subr.bf16.mxu1 %v12714_v0  ;;  %9867 = vrot.lane.b32.xlu0 %v7891_v62, %s12722_s3  ;;  %v7972_v17 = vrot.slane %v7958_v60, %v14076_v51 }
 0x2f2   : > { %v2999_v4 = vpop.f32.mrb[88].mxu1 }
 0x2f3   : > { %v7002_v8 = vadd.f32 %v2999_v4, %v985_v61  ;;  %v11355_v9 = vpop.f32.mrb[89].mxu1  ;;  %11708 = vmatmul.mubr.msk.bf16.vlgmr.msra.gmra.mrb[192].mxu0 %vm1072_vm1, %v788_v1  ;;  %v7910_v61 = vcombine.high %v7254_v50, %v7256_v38  ;;  %v7894_v1 = vcombine.high %v7253_v42, %v7255_v43 }
 0x2f4   : > { %v3002_v10 = vpop.f32.mrb[90].mxu1  ;;  %v12155_v18 = vld [vmem:[#allocation2 + $0x128] ss:$16 sps:$4 sm:$0xff]   ;;  %11718 = vmatpush3.bf16.xpose.msra.mxu0 %v5769_v2  ;;  %11719 = vmatprep.mubr.msk.bf16.mxu0 %vm12715_vm0, %v12714_v0  ;;  %v3321_v34 = vpop.f32.mrb[88].mxu0  ;;  %v994_v2 = vld [vmem:[#allocation2 + $0x190] sm:$0xff] }
 0x2f5   : > { %7131 = vst.msk [vmem:[#allocation2 + $0x148] sm:$0xff] %vm559_vm2, %v7002_v8  ;;  %v11356_v20 = vpop.f32.mrb[91].mxu1  ;;  %v7260_v22 = vld [vmem:[#allocation2 + $0x138] sm:$0xff]  ;;  %11729 = vmatprep.subr.bf16.mxu0 %v12714_v0  ;;  %9931 = vrot.lane.b32.xlu0 %v7892_v12, %s12724_s15  ;;  %v7949_v30 = vrot.slane %v12155_v18, %v14060_v28  ;;  %v7009_v40 = vadd.f32 %v3321_v34, %v992_v19  ;;  %v11397_v41 = vpop.f32.mrb[89].mxu0  ;;  %v5631_v10 = vsel %vm1072_vm1, %v915_v59, 0 }
 0x2f6   : > { %v7942_v47 = vcombine.high %v7258_v39, %v7260_v22  ;;  %v3324_v49 = vpop.f32.mrb[90].mxu0  ;;  %v14574_v18 = vrot.slane %v7910_v61, %v14060_v28  ;;  %v14585_v31 = vrot.slane %v7894_v1, %v14060_v28  ;;  %v14593_v39 = vpop.permute.xlu1 %9733  ;;  %v917_v41 = vld [vmem:[%s13288_s25 + $0x194] sm:$0xf] }
 0x2f7   : > { %11678 = vmatmul.mubr.msk.bf16.vlgmr.msra.gmra.mrb[196].mxu1 %vm1072_vm1, %v783_v11  ;;  %v7989_v44 = vcombine.low %v7933_v29, %v7949_v30  ;;  %v7990_v46 = vcombine.high %v7933_v29, %v7949_v30  ;;  %7138 = vst.msk [vmem:[#allocation2 + $0x180] sm:$0xff] %vm559_vm2, %v7009_v40  ;;  %v11398_v55 = vpop.f32.mrb[91].mxu0  ;;  %v14568_v11 = vrot.slane %v7926_v52, %v14060_v28  ;;  %v989_v29 = vld [vmem:[#allocation2 + $0x168] sm:$0xff] }
 0x2f8   : > { %11688 = vmatpush3.bf16.xpose.msra.mxu1 %v5539_v21  ;;  %11689 = vmatprep.mubr.msk.bf16.mxu1 %vm12715_vm0, %v12714_v0  ;;  %v14561_v9 = vrot.slane %v7942_v47, %v14060_v28  ;;  %v922_v21 = vld [vmem:[%s13288_s25 + $0x1a8] sm:$0xf]  ;;  %v7973_v42 = vcombine.low %v14585_v31, %v14574_v18 }
 0x2f9   : > { %11699 = vmatprep.subr.bf16.mxu1 %v12714_v0  ;;  %v14548_v58 = vrot.slane %v7989_v44, %v14076_v51  ;;  %v8004_v8 = vrot.slane %v7990_v46, %v14076_v51  ;;  %v5953_v38 = vsel %vm1072_vm1, %v922_v21, 0  ;;  %v996_v46 = vld [vmem:[#allocation2 + $0x1a0] sm:$0xff] }
 0x2fa   : > { %v3091_v56 = vpop.f32.mrb[92].mxu1  ;;  %v8005_v34 = vcombine.low %v14568_v11, %v14561_v9  ;;  %v7981_v59 = vrot.slane %v7973_v42, %v14076_v51  ;;  %v14613_v1 = vpop.permute.xlu1 %9861  ;;  %v926_v42 = vld [vmem:[%s13288_s25 + $0x1b8] sm:$0xf] }
 0x2fb   : > { %v7004_v62 = vadd.f32 %v3091_v56, %v987_v36  ;;  %v11367_v63 = vpop.f32.mrb[93].mxu1  ;;  %11720 = vmatmul.mubr.msk.bf16.vlgmr.msra.gmra.mrb[196].mxu0 %vm1072_vm1, %v790_v48  ;;  %v8022_v7 = vcombine.high %v14545_v57, %v14548_v58  ;;  %v8023_v30 = vcombine.low %v7972_v17, %v8004_v8  ;;  %v787_v48 = vld [vmem:[%s13280_s9 + $0x18c] sm:$0xf]  ;;  %v8024_v49 = vcombine.high %v7972_v17, %v8004_v8  ;;  %v14607_v56 = vpop.permute.xlu0 %9605 }
 0x2fc   : > { %v3094_v4 = vpop.f32.mrb[94].mxu1  ;;  %11730 = vmatpush3.bf16.xpose.msra.mxu0 %v5861_v53  ;;  %11731 = vmatprep.mubr.msk.bf16.mxu0 %vm12715_vm0, %v12714_v0  ;;  %v3413_v12 = vpop.f32.mrb[92].mxu0  ;;  %v8013_v50 = vrot.slane %v8005_v34, %v14076_v51  ;;  %v5723_v53 = vsel %vm1072_vm1, %v917_v41, 0  ;;  %v7974_v17 = vcombine.high %v14585_v31, %v14574_v18 }
 0x2fd   : > { %7133 = vst.msk [vmem:[#allocation2 + $0x158] sm:$0xff] %vm559_vm2, %v7004_v62  ;;  %v11368_v6 = vpop.f32.mrb[95].mxu1  ;;  %11741 = vmatprep.subr.bf16.mxu0 %v12714_v0  ;;  %9549 = vrot.lane.b32.xlu1 %v8022_v7, %s12719_s29  ;;  %v7011_v19 = vadd.f32 %v3413_v12, %v994_v2  ;;  %v11409_v20 = vpop.f32.mrb[93].mxu0  ;;  %v924_v62 = vld [vmem:[%s13288_s25 + $0x1b0] sm:$0xf]  ;;  %v991_v2 = vld [vmem:[#allocation2 + $0x178] sm:$0xff] }
 0x2fe   : > { %v3416_v26 = vpop.f32.mrb[94].mxu0  ;;  %v8025_v4 = vcombine.low %v7981_v59, %v8013_v50  ;;  %v794_v7 = vld [vmem:[%s13280_s9 + $0x1a8] sm:$0xf]  ;;  %v6045_v6 = vsel %vm1072_vm1, %v924_v62, 0  ;;  %v919_v12 = vld [vmem:[%s13288_s25 + $0x19c] sm:$0xf] }
 0x2ff   : > { %11690 = vmatmul.mubr.msk.bf16.vlgmr.msra.gmra.mrb[200].mxu1 %vm1072_vm1, %v785_v5  ;;  %7140 = vst.msk [vmem:[#allocation2 + $0x190] sm:$0xff] %vm559_vm2, %v7011_v19  ;;  %v11410_v36 = vpop.f32.mrb[95].mxu0  ;;  %v8006_v5 = vcombine.high %v14568_v11, %v14561_v9  ;;  %v998_v9 = vld [vmem:[#allocation2 + $0x1b0] sm:$0xff]  ;;  %v14628_v11 = vpop.permute.xlu0 %9797  ;;  %v5815_v31 = vsel %vm1072_vm1, %v919_v12, 0 }
 0x300   : > { %11700 = vmatpush3.bf16.xpose.msra.mxu1 %v5631_v10  ;;  %11701 = vmatprep.mubr.msk.bf16.mxu1 %vm12715_vm0, %v12714_v0  ;;  %v789_v26 = vld [vmem:[%s13280_s9 + $0x194] sm:$0xf]  ;;  %v7988_v36 = vrot.slane %v7974_v17, %v14076_v51 }
 0x301   : > { %11711 = vmatprep.subr.bf16.mxu1 %v12714_v0  ;;  %9613 = vrot.lane.b32.xlu1 %v8023_v30, %s12721_s18  ;;  %v8020_v30 = vrot.slane %v8006_v5, %v14076_v51 }
 0x302   : > { %v3183_v40 = vpop.f32.mrb[96].mxu1 }
 0x303   : > { %v7006_v43 = vadd.f32 %v3183_v40, %v989_v29  ;;  %v11379_v44 = vpop.f32.mrb[97].mxu1  ;;  %11732 = vmatmul.mubr.msk.bf16.vlgmr.msra.gmra.mrb[200].mxu0 %vm1072_vm1, %v792_v35  ;;  %v8026_v29 = vcombine.high %v7981_v59, %v8013_v50  ;;  %v14637_v35 = vpop.permute.xlu1 %9925  ;;  %v6137_v50 = vsel %vm1072_vm1, %v926_v42, 0  ;;  %v921_v59 = vld [vmem:[%s13288_s25 + $0x1a4] sm:$0xf]  ;;  %v8028_v5 = vcombine.high %v7988_v36, %v8020_v30  ;;  %v798_v42 = vld [vmem:[%s13280_s9 + $0x1b8] sm:$0xf] }
 0x304   : > { %v3186_v47 = vpop.f32.mrb[98].mxu1  ;;  %11742 = vmatpush3.bf16.xpose.msra.mxu0 %v5953_v38  ;;  %11743 = vmatprep.mubr.msk.bf16.mxu0 %vm12715_vm0, %v12714_v0  ;;  %v3505_v55 = vpop.f32.mrb[96].mxu0  ;;  %v12159_v38 = vld [vmem:[#allocation2 + $0x148] ss:$16 sps:$4 sm:$0xff]   ;;  %v5907_v17 = vsel %vm1072_vm1, %v921_v59, 0 }
 0x305   : > { %7135 = vst.msk [vmem:[#allocation2 + $0x168] sm:$0xff] %vm559_vm2, %v7006_v43  ;;  %v11380_v52 = vpop.f32.mrb[99].mxu1  ;;  %11753 = vmatprep.subr.bf16.mxu0 %v12714_v0  ;;  %9677 = vrot.lane.b32.xlu1 %v8024_v49, %s12718_s21  ;;  %v7013_v60 = vadd.f32 %v3505_v55, %v996_v46  ;;  %v11421_v61 = vpop.f32.mrb[97].mxu0  ;;  %v993_v46 = vld [vmem:[#allocation2 + $0x188] sm:$0xff]  ;;  %v8027_v47 = vcombine.low %v7988_v36, %v8020_v30  ;;  %v796_v49 = vld [vmem:[%s13280_s9 + $0x1b0] sm:$0xf] }
 0x306   : > { %v3508_v63 = vpop.f32.mrb[98].mxu0  ;;  %v12161_v61 = vld [vmem:[#allocation2 + $0x160] ss:$16 sps:$4 sm:$0xff]   ;;  %v995_v36 = vld [vmem:[#allocation2 + $0x198] sm:$0xff] }
 0x307   : > { %11702 = vmatmul.mubr.msk.bf16.vlgmr.msra.gmra.mrb[204].mxu1 %vm1072_vm1, %v787_v48  ;;  %7142 = vst.msk [vmem:[#allocation2 + $0x1a0] sm:$0xff] %vm559_vm2, %v7013_v60  ;;  %v11422_v8 = vpop.f32.mrb[99].mxu0  ;;  %v12157_v48 = vld [vmem:[#allocation2 + $0x140] ss:$16 sps:$4 sm:$0xff]   ;;  %v14654_v60 = vrot.slane %v12159_v38, %v14060_v28 }
 0x308   : > { %11712 = vmatpush3.bf16.xpose.msra.mxu1 %v5723_v53  ;;  %11713 = vmatprep.mubr.msk.bf16.mxu1 %vm12715_vm0, %v12714_v0 }
 0x309   : > { %11723 = vmatprep.subr.bf16.mxu1 %v12714_v0  ;;  %9741 = vrot.lane.b32.xlu1 %v8025_v4, %s12720_s11  ;;  %v791_v4 = vld [vmem:[%s13280_s9 + $0x19c] sm:$0xf] }
 0x30a   : > { %v3275_v10 = vpop.f32.mrb[100].mxu1 }
 0x30b   : > { %v7008_v19 = vadd.f32 %v3275_v10, %v991_v2  ;;  %v11391_v20 = vpop.f32.mrb[101].mxu1  ;;  %11744 = vmatmul.mubr.msk.bf16.vlgmr.msra.gmra.mrb[204].mxu0 %vm1072_vm1, %v794_v7  ;;  %v14659_v7 = vrot.slane %v12157_v48, %v14060_v28  ;;  %v7263_v48 = vld [vmem:[#allocation2 + $0x150] sm:$0xff] }
 0x30c   : > { %v3278_v21 = vpop.f32.mrb[102].mxu1  ;;  %11754 = vmatpush3.bf16.xpose.msra.mxu0 %v6045_v6  ;;  %11755 = vmatprep.mubr.msk.bf16.mxu0 %vm12715_vm0, %v12714_v0  ;;  %v3597_v34 = vpop.f32.mrb[100].mxu0  ;;  %v1000_v6 = vld [vmem:[#allocation2 + $0x1c0] sm:$0xff]  ;;  %v7266_v38 = vld [vmem:[#allocation2 + $0x168] sm:$0xff] }
 0x30d   : > { %7137 = vst.msk [vmem:[#allocation2 + $0x178] sm:$0xff] %vm559_vm2, %v7008_v19  ;;  %v11392_v18 = vpop.f32.mrb[103].mxu1  ;;  %11765 = vmatprep.subr.bf16.mxu0 %v12714_v0  ;;  %9805 = vrot.lane.b32.xlu1 %v8026_v29, %s12723_s5  ;;  %v7015_v40 = vadd.f32 %v3597_v34, %v998_v9  ;;  %v11433_v41 = vpop.f32.mrb[101].mxu0  ;;  %v928_v20 = vld [vmem:[%s13288_s25 + $0x1c0] sm:$0xf]  ;;  %v7264_v9 = vld [vmem:[#allocation2 + $0x158] sm:$0xff]  ;;  %v8069_v29 = vrot.slane %v12161_v61, %v14060_v28 }
 0x30e   : > { %v3600_v43 = vpop.f32.mrb[102].mxu0  ;;  %v7265_v21 = vld [vmem:[#allocation2 + $0x160] sm:$0xff]  ;;  %v8093_v18 = vcombine.low %v14659_v7, %v14654_v60 }
 0x30f   : > { %11714 = vmatmul.mubr.msk.bf16.vlgmr.msra.gmra.mrb[208].mxu1 %vm1072_vm1, %v789_v26  ;;  %7144 = vst.msk [vmem:[#allocation2 + $0x1b0] sm:$0xff] %vm559_vm2, %v7015_v40  ;;  %v11434_v52 = vpop.f32.mrb[103].mxu0  ;;  %v7267_v26 = vld [vmem:[#allocation2 + $0x170] sm:$0xff] }
 0x310   : > { %11724 = vmatpush3.bf16.xpose.msra.mxu1 %v5815_v31  ;;  %v14643_v44 = vpop.permute.xlu0 %9607  ;;  %11725 = vmatprep.mubr.msk.bf16.mxu1 %vm12715_vm0, %v12714_v0  ;;  %v9544_v53 = vpop.permute.xlu1 %9543 }
 0x311   : > { %11735 = vmatprep.subr.bf16.mxu1 %v12714_v0  ;;  %9869 = vrot.lane.b32.xlu1 %v8027_v47, %s12722_s3  ;;  %v9974_v34 = vsel %vm559_vm2, %v7613_v37, %v9544_v53  ;;  %v7262_v47 = vld [vmem:[#allocation2 + $0x148] sm:$0xff]  ;;  %v8062_v53 = vcombine.high %v7265_v21, %v7267_v26 }
 0x312   : > { %v3367_v55 = vpop.f32.mrb[104].mxu1  ;;  %v8046_v52 = vcombine.high %v7262_v47, %v7264_v9  ;;  %v9990_v61 = vsel %vm1072_vm1, %v9974_v34, %v14643_v44  ;;  %v793_v44 = vld [vmem:[%s13280_s9 + $0x1a4] sm:$0xf]  ;;  %v997_v47 = vld [vmem:[#allocation2 + $0x1a8] sm:$0xff] }
 0x313   : > { %v7010_v62 = vadd.f32 %v3367_v55, %v993_v46  ;;  %v11403_v63 = vpop.f32.mrb[105].mxu1  ;;  %11756 = vmatmul.mubr.msk.bf16.vlgmr.msra.gmra.mrb[208].mxu0 %vm1072_vm1, %v796_v49  ;;  %v7261_v46 = vld [vmem:[#allocation2 + $0x140] sm:$0xff]  ;;  %v6229_v55 = vsel %vm1072_vm1, %v928_v20, 0 }
 0x314   : > { %v3370_v2 = vpop.f32.mrb[106].mxu1  ;;  %v12163_v8 = vld [vmem:[#allocation2 + $0x168] ss:$16 sps:$4 sm:$0xff]   ;;  %11766 = vmatpush3.bf16.xpose.msra.mxu0 %v6137_v50  ;;  %11767 = vmatprep.mubr.msk.bf16.mxu0 %vm12715_vm0, %v12714_v0  ;;  %v14664_v12 = vpop.permute.xlu0 %9735  ;;  %v14688_v63 = vrot.slane %v8093_v18, %v14076_v51  ;;  %v14713_v18 = vrot.slane %v8046_v52, %v14060_v28 }
 0x315   : > { %7139 = vst.msk [vmem:[#allocation2 + $0x188] sm:$0xff] %vm559_vm2, %v7010_v62  ;;  %v11404_v10 = vpop.f32.mrb[107].mxu1  ;;  %v7268_v19 = vld [vmem:[#allocation2 + $0x178] sm:$0xff]  ;;  %11777 = vmatprep.subr.bf16.mxu0 %v12714_v0  ;;  %9933 = vrot.lane.b32.xlu1 %v8028_v5, %s12724_s15  ;;  %v8085_v30 = vrot.slane %v12163_v8, %v14060_v28  ;;  %v3689_v31 = vpop.f32.mrb[104].mxu0  ;;  %v8094_v5 = vcombine.high %v14659_v7, %v14654_v60  ;;  %v1002_v60 = vld [vmem:[#allocation2 + $0x1d0] sm:$0xff] }
 0x316   : > { %v7017_v40 = vadd.f32 %v3689_v31, %v1000_v6  ;;  %v11445_v41 = vpop.f32.mrb[105].mxu0  ;;  %v9672_v43 = vpop.permute.xlu1 %9671  ;;  %v8078_v16 = vcombine.high %v7266_v38, %v7268_v19  ;;  %v14716_v31 = vrot.slane %v8062_v53, %v14060_v28 }
 0x317   : > { %11726 = vmatmul.mubr.msk.bf16.vlgmr.msra.gmra.mrb[212].mxu1 %vm1072_vm1, %v791_v4  ;;  %v8125_v49 = vcombine.low %v8069_v29, %v8085_v30  ;;  %v8126_v13 = vcombine.high %v8069_v29, %v8085_v30  ;;  %v3692_v37 = vpop.f32.mrb[106].mxu0  ;;  %v923_v4 = vld [vmem:[%s13288_s25 + $0x1ac] sm:$0xf]  ;;  %v10007_v8 = vsel %vm10005_vm3, %v9990_v61, %v9672_v43  ;;  %v8108_v30 = vrot.slane %v8094_v5, %v14076_v51  ;;  %v1004_v5 = vld [vmem:[#allocation2 + $0x1e0] sm:$0xff] }
 0x318   : > { %11736 = vmatpush3.bf16.xpose.msra.mxu1 %v5907_v17  ;;  %11737 = vmatprep.mubr.msk.bf16.mxu1 %vm12715_vm0, %v12714_v0  ;;  %v9800_v50 = vpop.permute.xlu0 %9799  ;;  %7146 = vst.msk [vmem:[#allocation2 + $0x1c0] sm:$0xff] %vm559_vm2, %v7017_v40  ;;  %v11446_v59 = vpop.f32.mrb[107].mxu0  ;;  %v8030_v17 = vcombine.high %v7261_v46, %v7263_v48  ;;  %v14703_v21 = vrot.slane %v8078_v16, %v14060_v28  ;;  %v5999_v29 = vsel %vm1072_vm1, %v923_v4, 0 }
 0x319   : > { %11747 = vmatprep.subr.bf16.mxu1 %v12714_v0  ;;  %v14691_v2 = vrot.slane %v8125_v49, %v14076_v51  ;;  %v8140_v9 = vrot.slane %v8126_v13, %v14076_v51  ;;  %v10024_v40 = vsel %vm10022_vm4, %v10007_v8, %v14664_v12  ;;  %v800_v49 = vld [vmem:[%s13280_s9 + $0x1c0] sm:$0xf] }
 0x31a   : > { %v3459_v62 = vpop.f32.mrb[108].mxu1  ;;  %v14725_v41 = vrot.slane %v8030_v17, %v14060_v28  ;;  %v10041_v46 = vsel %vm10039_vm5, %v10024_v40, %v9800_v50  ;;  %v8141_v12 = vcombine.low %v14716_v31, %v14703_v21  ;;  %v802_v40 = vld [vmem:[%s13280_s9 + $0x1c8] sm:$0xf] }
 0x31b   : > { %v7012_v6 = vadd.f32 %v3459_v62, %v995_v36  ;;  %v11415_v10 = vpop.f32.mrb[109].mxu1  ;;  %11768 = vmatmul.mubr.msk.bf16.vlgmr.msra.gmra.mrb[212].mxu0 %vm1072_vm1, %v798_v42  ;;  %v8158_v20 = vcombine.high %v14688_v63, %v14691_v2  ;;  %v930_v36 = vld [vmem:[%s13288_s25 + $0x1c8] sm:$0xf]  ;;  %v8157_v38 = vcombine.low %v14688_v63, %v14691_v2  ;;  %v8159_v48 = vcombine.low %v8108_v30, %v8140_v9 }
 0x31c   : > { %v3462_v19 = vpop.f32.mrb[110].mxu1  ;;  %11778 = vmatpush3.bf16.xpose.msra.mxu0 %v6229_v55  ;;  %11779 = vmatprep.mubr.msk.bf16.mxu0 %vm12715_vm0, %v12714_v0  ;;  %v9864_v26 = vpop.permute.xlu0 %9863  ;;  %v6321_v50 = vsel %vm1072_vm1, %v930_v36, 0  ;;  %v925_v55 = vld [vmem:[%s13288_s25 + $0x1b4] sm:$0xf]  ;;  %v8109_v59 = vcombine.low %v14725_v41, %v14713_v18  ;;  %v8160_v10 = vcombine.high %v8108_v30, %v8140_v9  ;;  %v8149_v17 = vrot.slane %v8141_v12, %v14076_v51  ;;  %v999_v30 = vld [vmem:[#allocation2 + $0x1b8] sm:$0xff] }
 0x31d   : > { %7141 = vst.msk [vmem:[#allocation2 + $0x198] sm:$0xff] %vm559_vm2, %v7012_v6  ;;  %v11416_v7 = vpop.f32.mrb[111].mxu1  ;;  %11789 = vmatprep.subr.bf16.mxu0 %v12714_v0  ;;  %9551 = vrot.lane.b32.xlu0 %v8158_v20, %s12719_s29  ;;  %v3781_v34 = vpop.f32.mrb[108].mxu0  ;;  %v10058_v16 = vsel %vm10056_vm6, %v10041_v46, %v9864_v26  ;;  %v795_v6 = vld [vmem:[%s13280_s9 + $0x1ac] sm:$0xf]  ;;  %v8142_v36 = vcombine.high %v14716_v31, %v14703_v21  ;;  %v1006_v21 = vld [vmem:[#allocation2 + $0x1f0] sm:$0xff] }
 0x31e   : > { %v7019_v42 = vadd.f32 %v3781_v34, %v1002_v60  ;;  %v11457_v43 = vpop.f32.mrb[109].mxu0  ;;  %v8117_v60 = vrot.slane %v8109_v59, %v14076_v51  ;;  %v932_v26 = vld [vmem:[%s13288_s25 + $0x1d0] sm:$0xf] }
 0x31f   : > { %11738 = vmatmul.mubr.msk.bf16.vlgmr.msra.gmra.mrb[216].mxu1 %vm1072_vm1, %v793_v44  ;;  %v3784_v13 = vpop.f32.mrb[110].mxu0  ;;  %v6091_v44 = vsel %vm1072_vm1, %v925_v55, 0  ;;  %v6413_v43 = vsel %vm1072_vm1, %v932_v26, 0  ;;  %v12169_v26 = vld [vmem:[#allocation2 + $0x1a0] ss:$16 sps:$4 sm:$0xff]  }
 0x320   : > { %11748 = vmatpush3.bf16.xpose.msra.mxu1 %v5999_v29  ;;  %11749 = vmatprep.mubr.msk.bf16.mxu1 %vm12715_vm0, %v12714_v0  ;;  %v9928_v37 = vpop.permute.xlu0 %9927  ;;  %7148 = vst.msk [vmem:[#allocation2 + $0x1d0] sm:$0xff] %vm559_vm2, %v7019_v42  ;;  %v11458_v52 = vpop.f32.mrb[111].mxu0  ;;  %v8161_v34 = vcombine.low %v8117_v60, %v8149_v17  ;;  %v797_v13 = vld [vmem:[%s13280_s9 + $0x1b4] sm:$0xf] }
 0x321   : > { %11759 = vmatprep.subr.bf16.mxu1 %v12714_v0  ;;  %9615 = vrot.lane.b32.xlu0 %v8159_v48, %s12721_s18  ;;  %v14742_v61 = vsel %vm10073_vm7, %v10058_v16, %v9928_v37  ;;  %v8110_v48 = vcombine.high %v14725_v41, %v14713_v18  ;;  %v8162_v16 = vcombine.high %v8117_v60, %v8149_v17  ;;  %v804_v17 = vld [vmem:[%s13280_s9 + $0x1d0] sm:$0xf] }
 0x322   : > { %v3551_v53 = vpop.f32.mrb[112].mxu1  ;;  %v8156_v37 = vrot.slane %v8142_v36, %v14076_v51 }
 0x323   : > { %v7014_v62 = vadd.f32 %v3551_v53, %v997_v47  ;;  %v11427_v4 = vpop.f32.mrb[113].mxu1  ;;  %11780 = vmatmul.mubr.msk.bf16.vlgmr.msra.gmra.mrb[216].mxu0 %vm1072_vm1, %v800_v49  ;;  %v927_v47 = vld [vmem:[%s13288_s25 + $0x1bc] sm:$0xf]  ;;  %v8124_v52 = vrot.slane %v8110_v48, %v14076_v51  ;;  %v7273_v48 = vld [vmem:[#allocation2 + $0x1a0] sm:$0xff] }
 0x324   : > { %v3554_v8 = vpop.f32.mrb[114].mxu1  ;;  %11790 = vmatpush3.bf16.xpose.msra.mxu0 %v6321_v50  ;;  %11791 = vmatprep.mubr.msk.bf16.mxu0 %vm12715_vm0, %v12714_v0  ;;  %v3873_v20 = vpop.f32.mrb[112].mxu0  ;;  %v6183_v18 = vsel %vm1072_vm1, %v927_v47, 0  ;;  %v12167_v53 = vld [vmem:[#allocation2 + $0x188] ss:$16 sps:$4 sm:$0xff]  }
 0x325   : > { %7143 = vst.msk [vmem:[#allocation2 + $0x1a8] sm:$0xff] %vm559_vm2, %v7014_v62  ;;  %v11428_v19 = vpop.f32.mrb[115].mxu1  ;;  %11801 = vmatprep.subr.bf16.mxu0 %v12714_v0  ;;  %9679 = vrot.lane.b32.xlu0 %v8160_v10, %s12718_s21  ;;  %v7021_v9 = vadd.f32 %v3873_v20, %v1004_v5  ;;  %v11469_v7 = vpop.f32.mrb[113].mxu0  ;;  %v934_v62 = vld [vmem:[%s13288_s25 + $0x1d8] sm:$0xf]  ;;  %v1001_v8 = vld [vmem:[#allocation2 + $0x1c8] sm:$0xff] }
 0x326   : > { %v3876_v29 = vpop.f32.mrb[114].mxu0  ;;  %v12165_v10 = vld [vmem:[#allocation2 + $0x180] ss:$16 sps:$4 sm:$0xff]   ;;  %v14795_v7 = vrot.slane %v12167_v53, %v14060_v28 }
 0x327   : > { %11750 = vmatmul.mubr.msk.bf16.vlgmr.msra.gmra.mrb[220].mxu1 %vm1072_vm1, %v795_v6  ;;  %7150 = vst.msk [vmem:[#allocation2 + $0x1e0] sm:$0xff] %vm559_vm2, %v7021_v9  ;;  %v11470_v42 = vpop.f32.mrb[115].mxu0  ;;  %v8163_v6 = vcombine.low %v8124_v52, %v8156_v37  ;;  %v929_v9 = vld [vmem:[%s13288_s25 + $0x1c4] sm:$0xf]  ;;  %v14800_v36 = vrot.slane %v12165_v10, %v14060_v28 }
 0x328   : > { %11760 = vmatpush3.bf16.xpose.msra.mxu1 %v6091_v44  ;;  %11761 = vmatprep.mubr.msk.bf16.mxu1 %vm12715_vm0, %v12714_v0  ;;  %v6505_v44 = vsel %vm1072_vm1, %v934_v62, 0  ;;  %v7269_v53 = vld [vmem:[#allocation2 + $0x180] sm:$0xff] }
 0x329   : > { %11771 = vmatprep.subr.bf16.mxu1 %v12714_v0  ;;  %9743 = vrot.lane.b32.xlu0 %v8161_v34, %s12720_s11  ;;  %v8164_v34 = vcombine.high %v8124_v52, %v8156_v37  ;;  %v936_v37 = vld [vmem:[%s13288_s25 + $0x1e0] sm:$0xf] }
 0x32a   : > { %v3643_v46 = vpop.f32.mrb[116].mxu1 }
 0x32b   : > { %v7016_v12 = vadd.f32 %v3643_v46, %v999_v30  ;;  %v11439_v49 = vpop.f32.mrb[117].mxu1  ;;  %11792 = vmatmul.mubr.msk.bf16.vlgmr.msra.gmra.mrb[220].mxu0 %vm1072_vm1, %v802_v40 }
 0x32c   : > { %v3646_v31 = vpop.f32.mrb[118].mxu1  ;;  %11802 = vmatpush3.bf16.xpose.msra.mxu0 %v6413_v43  ;;  %11803 = vmatprep.mubr.msk.bf16.mxu0 %vm12715_vm0, %v12714_v0  ;;  %v3965_v41 = vpop.f32.mrb[116].mxu0  ;;  %v6275_v43 = vsel %vm1072_vm1, %v929_v9, 0  ;;  %v8205_v49 = vrot.slane %v12169_v26, %v14060_v28  ;;  %v931_v9 = vld [vmem:[%s13288_s25 + $0x1cc] sm:$0xf]  ;;  %v8230_v26 = vcombine.high %v14800_v36, %v14795_v7 }
 0x32d   : > { %7145 = vst.msk [vmem:[#allocation2 + $0x1b8] sm:$0xff] %vm559_vm2, %v7016_v12  ;;  %v11440_v50 = vpop.f32.mrb[119].mxu1  ;;  %11813 = vmatprep.subr.bf16.mxu0 %v12714_v0  ;;  %9807 = vrot.lane.b32.xlu0 %v8162_v16, %s12723_s5  ;;  %v7023_v55 = vadd.f32 %v3965_v41, %v1006_v21  ;;  %v11481_v59 = vpop.f32.mrb[117].mxu0  ;;  %v7275_v12 = vld [vmem:[#allocation2 + $0x1b0] sm:$0xff]  ;;  %v8229_v31 = vcombine.low %v14800_v36, %v14795_v7  ;;  %v7274_v41 = vld [vmem:[#allocation2 + $0x1a8] sm:$0xff]  ;;  %v6367_v36 = vsel %vm1072_vm1, %v931_v9, 0 }
 0x32e   : > { %v3968_v4 = vpop.f32.mrb[118].mxu0  ;;  %v1003_v50 = vld [vmem:[#allocation2 + $0x1d8] sm:$0xff]  ;;  %v8198_v10 = vcombine.high %v7273_v48, %v7275_v12  ;;  %v8244_v12 = vrot.slane %v8230_v26, %v14076_v51 }
 0x32f   : > { %11762 = vmatmul.mubr.msk.bf16.vlgmr.msra.gmra.mrb[224].mxu1 %vm1072_vm1, %v797_v13  ;;  %7152 = vst.msk [vmem:[#allocation2 + $0x1f0] sm:$0xff] %vm559_vm2, %v7023_v55  ;;  %v11482_v20 = vpop.f32.mrb[119].mxu0  ;;  %v7271_v55 = vld [vmem:[#allocation2 + $0x190] sm:$0xff] }
 0x330   : > { %11772 = vmatpush3.bf16.xpose.msra.mxu1 %v6183_v18  ;;  %v9546_v5 = vpop.permute.xlu0 %9545  ;;  %11773 = vmatprep.mubr.msk.bf16.mxu1 %vm12715_vm0, %v12714_v0  ;;  %v7272_v18 = vld [vmem:[#allocation2 + $0x198] sm:$0xff]  ;;  %v14821_v20 = vrot.slane %v8229_v31, %v14076_v51 }
 0x331   : > { %v14788_v19 = vsel %vm559_vm2, %v7749_v45, %v9546_v5  ;;  %11783 = vmatprep.subr.bf16.mxu1 %v12714_v0  ;;  %9871 = vrot.lane.b32.xlu0 %v8163_v6, %s12722_s3  ;;  %v799_v45 = vld [vmem:[%s13280_s9 + $0x1bc] sm:$0xf]  ;;  %v806_v5 = vld [vmem:[%s13280_s9 + $0x1d8] sm:$0xf]  ;;  %v7270_v6 = vld [vmem:[#allocation2 + $0x188] sm:$0xff] }
 0x332   : > { %v3735_v60 = vpop.f32.mrb[120].mxu1 }
 0x333   : > { %v7018_v29 = vadd.f32 %v3735_v60, %v1001_v8  ;;  %v11451_v30 = vpop.f32.mrb[121].mxu1  ;;  %11804 = vmatmul.mubr.msk.bf16.vlgmr.msra.gmra.mrb[224].mxu0 %vm1072_vm1, %v804_v17  ;;  %v6597_v17 = vsel %vm1072_vm1, %v936_v37, 0 }
 0x334   : > { %v3738_v24 = vpop.f32.mrb[122].mxu1  ;;  %v12171_v40 = vld [vmem:[#allocation2 + $0x1a8] ss:$16 sps:$4 sm:$0xff]   ;;  %11814 = vmatpush3.bf16.xpose.msra.mxu0 %v6505_v44  ;;  %11815 = vmatprep.mubr.msk.bf16.mxu0 %vm12715_vm0, %v12714_v0  ;;  %v4057_v47 = vpop.f32.mrb[120].mxu0 }
 0x335   : > { %7147 = vst.msk [vmem:[#allocation2 + $0x1c8] sm:$0xff] %vm559_vm2, %v7018_v29  ;;  %v11452_v42 = vpop.f32.mrb[123].mxu1  ;;  %v7276_v46 = vld [vmem:[#allocation2 + $0x1b8] sm:$0xff]  ;;  %11825 = vmatprep.subr.bf16.mxu0 %v12714_v0  ;;  %9935 = vrot.lane.b32.xlu0 %v8164_v34, %s12724_s15  ;;  %v8221_v21 = vrot.slane %v12171_v40, %v14060_v28  ;;  %v7025_v13 = vadd.f32 %v4057_v47, %v1008_v23  ;;  %v11493_v16 = vpop.f32.mrb[121].mxu0  ;;  %v801_v40 = vld [vmem:[%s13280_s9 + $0x1c4] sm:$0xf] }
 0x336   : > { %v4060_v52 = vpop.f32.mrb[122].mxu0  ;;  %v8214_v4 = vcombine.high %v7274_v41, %v7276_v46  ;;  %v8182_v29 = vcombine.high %v7270_v6, %v7272_v18  ;;  %v8166_v24 = vcombine.high %v7269_v53, %v7271_v55  ;;  %v14842_v47 = vrot.slane %v8198_v10, %v14060_v28  ;;  %v808_v53 = vld [vmem:[%s13280_s9 + $0x1e0] sm:$0xf] }
 0x337   : > { %11774 = vmatmul.mubr.msk.bf16.vlgmr.msra.gmra.mrb[228].mxu1 %vm1072_vm1, %v799_v45  ;;  %v8261_v59 = vcombine.low %v8205_v49, %v8221_v21  ;;  %v8262_v62 = vcombine.high %v8205_v49, %v8221_v21  ;;  %7154 = vst.msk [vmem:[#allocation2 + $0x200] sm:$0xff] %vm559_vm2, %v7025_v13  ;;  %v11494_v8 = vpop.f32.mrb[123].mxu0  ;;  %v1010_v45 = vld [vmem:[#allocation2 + $0x210] sm:$0xff]  ;;  %v938_v13 = vld [vmem:[%s13288_s25 + $0x1e8] sm:$0xf]  ;;  %v1012_v10 = vld [vmem:[#allocation2 + $0x220] sm:$0xff] }
 0x338   : > { %11784 = vmatpush3.bf16.xpose.msra.mxu1 %v6275_v43  ;;  %11785 = vmatprep.mubr.msk.bf16.mxu1 %vm12715_vm0, %v12714_v0  ;;  %v14835_v46 = vrot.slane %v8214_v4, %v14060_v28  ;;  %v14848_v49 = vrot.slane %v8182_v29, %v14060_v28  ;;  %v14857_v41 = vrot.slane %v8166_v24, %v14060_v28  ;;  %v933_v4 = vld [vmem:[%s13288_s25 + $0x1d4] sm:$0xf] }
 0x339   : > { %11795 = vmatprep.subr.bf16.mxu1 %v12714_v0  ;;  %v14824_v60 = vrot.slane %v8261_v59, %v14076_v51  ;;  %v8276_v43 = vrot.slane %v8262_v62, %v14076_v51  ;;  %v6689_v59 = vsel %vm1072_vm1, %v938_v13, 0  ;;  %v935_v13 = vld [vmem:[%s13288_s25 + $0x1dc] sm:$0xf] }
 0x33a   : > { %v3827_v44 = vpop.f32.mrb[124].mxu1  ;;  %v8277_v52 = vcombine.low %v14842_v47, %v14835_v46 }
 0x33b   : > { %v7020_v30 = vadd.f32 %v3827_v44, %v1003_v50  ;;  %v11463_v23 = vpop.f32.mrb[125].mxu1  ;;  %11816 = vmatmul.mubr.msk.bf16.vlgmr.msra.gmra.mrb[228].mxu0 %vm1072_vm1, %v806_v5  ;;  %v8294_v42 = vcombine.high %v14821_v20, %v14824_v60  ;;  %v1005_v50 = vld [vmem:[#allocation2 + $0x1e8] sm:$0xff]  ;;  %v8295_v18 = vcombine.low %v8244_v12, %v8276_v43  ;;  %v8245_v5 = vcombine.low %v14857_v41, %v14848_v49 }
 0x33c   : > { %v3830_v34 = vpop.f32.mrb[126].mxu1  ;;  %11826 = vmatpush3.bf16.xpose.msra.mxu0 %v6597_v17  ;;  %11827 = vmatprep.mubr.msk.bf16.mxu0 %vm12715_vm0, %v12714_v0  ;;  %v4149_v48 = vpop.f32.mrb[124].mxu0  ;;  %v803_v44 = vld [vmem:[%s13280_s9 + $0x1cc] sm:$0xf]  ;;  %v8296_v9 = vcombine.high %v8244_v12, %v8276_v43  ;;  %v8285_v26 = vrot.slane %v8277_v52, %v14076_v51  ;;  %v1007_v43 = vld [vmem:[#allocation2 + $0x1f8] sm:$0xff] }
 0x33d   : > { %7149 = vst.msk [vmem:[#allocation2 + $0x1d8] sm:$0xff] %vm559_vm2, %v7020_v30  ;;  %v11464_v7 = vpop.f32.mrb[127].mxu1  ;;  %11837 = vmatprep.subr.bf16.mxu0 %v12714_v0  ;;  %9553 = vrot.lane.b32.xlu1 %v8294_v42, %s12719_s29  ;;  %v7027_v21 = vadd.f32 %v4149_v48, %v1010_v45  ;;  %v11505_v31 = vpop.f32.mrb[125].mxu0  ;;  %v6459_v30 = vsel %vm1072_vm1, %v933_v4, 0  ;;  %v8253_v24 = vrot.slane %v8245_v5, %v14076_v51  ;;  %v810_v48 = vld [vmem:[%s13280_s9 + $0x1e8] sm:$0xf] }
 0x33e   : > { %v4152_v37 = vpop.f32.mrb[126].mxu0  ;;  %v805_v52 = vld [vmem:[%s13280_s9 + $0x1d4] sm:$0xf] }
 0x33f   : > { %11786 = vmatmul.mubr.msk.bf16.vlgmr.msra.gmra.mrb[232].mxu1 %vm1072_vm1, %v801_v40  ;;  %7156 = vst.msk [vmem:[#allocation2 + $0x210] sm:$0xff] %vm559_vm2, %v7027_v21  ;;  %v11506_v55 = vpop.f32.mrb[127].mxu0  ;;  %v940_v40 = vld [vmem:[%s13288_s25 + $0x1f0] sm:$0xf]  ;;  %v8297_v7 = vcombine.low %v8253_v24, %v8285_v26  ;;  %v8246_v37 = vcombine.high %v14857_v41, %v14848_v49  ;;  %v6551_v49 = vsel %vm1072_vm1, %v935_v13, 0 }
 0x340   : > { %11796 = vmatpush3.bf16.xpose.msra.mxu1 %v6367_v36  ;;  %11797 = vmatprep.mubr.msk.bf16.mxu1 %vm12715_vm0, %v12714_v0  ;;  %v8278_v36 = vcombine.high %v14842_v47, %v14835_v46  ;;  %v6781_v21 = vsel %vm1072_vm1, %v940_v40, 0  ;;  %v1014_v46 = vld [vmem:[#allocation2 + $0x230] sm:$0xff] }
 0x341   : > { %11807 = vmatprep.subr.bf16.mxu1 %v12714_v0  ;;  %9617 = vrot.lane.b32.xlu1 %v8295_v18, %s12721_s18 }
 0x342   : > { %v3919_v62 = vpop.f32.mrb[128].mxu1  ;;  %v8292_v55 = vrot.slane %v8278_v36, %v14076_v51 }
 0x343   : > { %v7022_v8 = vadd.f32 %v3919_v62, %v1005_v50  ;;  %v11475_v6 = vpop.f32.mrb[129].mxu1  ;;  %11828 = vmatmul.mubr.msk.bf16.vlgmr.msra.gmra.mrb[232].mxu0 %vm1072_vm1, %v808_v53  ;;  %v8298_v53 = vcombine.high %v8253_v24, %v8285_v26  ;;  %v8260_v62 = vrot.slane %v8246_v37, %v14076_v51  ;;  %v12173_v26 = vld [vmem:[#allocation2 + $0x1c0] ss:$16 sps:$4 sm:$0xff]  }
 0x344   : > { %v3922_v17 = vpop.f32.mrb[130].mxu1  ;;  %11838 = vmatpush3.bf16.xpose.msra.mxu0 %v6689_v59  ;;  %11839 = vmatprep.mubr.msk.bf16.mxu0 %vm12715_vm0, %v12714_v0  ;;  %v4241_v23 = vpop.f32.mrb[128].mxu0  ;;  %v12175_v4 = vld [vmem:[#allocation2 + $0x1c8] ss:$16 sps:$4 sm:$0xff]  }
 0x345   : > { %7151 = vst.msk [vmem:[#allocation2 + $0x1e8] sm:$0xff] %vm559_vm2, %v7022_v8  ;;  %v11476_v29 = vpop.f32.mrb[131].mxu1  ;;  %11849 = vmatprep.subr.bf16.mxu0 %v12714_v0  ;;  %9681 = vrot.lane.b32.xlu1 %v8296_v9, %s12718_s21  ;;  %v7029_v45 = vadd.f32 %v4241_v23, %v1012_v10  ;;  %v11517_v34 = vpop.f32.mrb[129].mxu0  ;;  %v942_v6 = vld [vmem:[%s13288_s25 + $0x1f8] sm:$0xf]  ;;  %v8299_v9 = vcombine.low %v8260_v62, %v8292_v55 }
 0x346   : > { %v4244_v42 = vpop.f32.mrb[130].mxu0  ;;  %v812_v29 = vld [vmem:[%s13280_s9 + $0x1f0] sm:$0xf]  ;;  %v6873_v24 = vsel %vm1072_vm1, %v942_v6, 0  ;;  %v937_v34 = vld [vmem:[%s13288_s25 + $0x1e4] sm:$0xf]  ;;  %v14918_v40 = vrot.slane %v12175_v4, %v14060_v28 }
 0x347   : > { %11798 = vmatmul.mubr.msk.bf16.vlgmr.msra.gmra.mrb[236].mxu1 %vm1072_vm1, %v803_v44  ;;  %7158 = vst.msk [vmem:[#allocation2 + $0x220] sm:$0xff] %vm559_vm2, %v7029_v45  ;;  %v11518_v12 = vpop.f32.mrb[131].mxu0  ;;  %v1009_v44 = vld [vmem:[#allocation2 + $0x208] sm:$0xff]  ;;  %v12177_v42 = vld [vmem:[#allocation2 + $0x1e0] ss:$16 sps:$4 sm:$0xff]   ;;  %v6643_v37 = vsel %vm1072_vm1, %v937_v34, 0 }
 0x348   : > { %11808 = vmatpush3.bf16.xpose.msra.mxu1 %v6459_v30  ;;  %11809 = vmatprep.mubr.msk.bf16.mxu1 %vm12715_vm0, %v12714_v0  ;;  %v7279_v6 = vld [vmem:[#allocation2 + $0x1d0] sm:$0xff] }
 0x349   : > { %11819 = vmatprep.subr.bf16.mxu1 %v12714_v0  ;;  %9745 = vrot.lane.b32.xlu1 %v8297_v7, %s12720_s11 }
 0x34a   : > { %v4011_v31 = vpop.f32.mrb[132].mxu1 }
 0x34b   : > { %v7024_v50 = vadd.f32 %v4011_v31, %v1007_v43  ;;  %v11487_v18 = vpop.f32.mrb[133].mxu1  ;;  %11840 = vmatmul.mubr.msk.bf16.vlgmr.msra.gmra.mrb[236].mxu0 %vm1072_vm1, %v810_v48  ;;  %v14923_v48 = vrot.slane %v12173_v26, %v14060_v28 }
 0x34c   : > { %v4014_v47 = vpop.f32.mrb[134].mxu1  ;;  %11850 = vmatpush3.bf16.xpose.msra.mxu0 %v6781_v21  ;;  %11851 = vmatprep.mubr.msk.bf16.mxu0 %vm12715_vm0, %v12714_v0  ;;  %v4333_v41 = vpop.f32.mrb[132].mxu0  ;;  %v1016_v21 = vld [vmem:[#allocation2 + $0x240] sm:$0xff] }
 0x34d   : > { %7153 = vst.msk [vmem:[#allocation2 + $0x1f8] sm:$0xff] %vm559_vm2, %v7024_v50  ;;  %v11488_v59 = vpop.f32.mrb[135].mxu1  ;;  %11861 = vmatprep.subr.bf16.mxu0 %v12714_v0  ;;  %9809 = vrot.lane.b32.xlu1 %v8298_v53, %s12723_s5  ;;  %v7031_v5 = vadd.f32 %v4333_v41, %v1014_v46  ;;  %v11529_v8 = vpop.f32.mrb[133].mxu0  ;;  %v7281_v18 = vld [vmem:[#allocation2 + $0x1e0] sm:$0xff]  ;;  %v7283_v46 = vld [vmem:[#allocation2 + $0x1f0] sm:$0xff]  ;;  %v8341_v47 = vrot.slane %v12177_v42, %v14060_v28  ;;  %v7282_v41 = vld [vmem:[#allocation2 + $0x1e8] sm:$0xff] }
 0x34e   : > { %v4336_v10 = vpop.f32.mrb[134].mxu0  ;;  %v8365_v53 = vcombine.low %v14923_v48, %v14918_v40  ;;  %v1011_v59 = vld [vmem:[#allocation2 + $0x218] sm:$0xff]  ;;  %v7277_v8 = vld [vmem:[#allocation2 + $0x1c0] sm:$0xff] }
 0x34f   : > { %11810 = vmatmul.mubr.msk.bf16.vlgmr.msra.gmra.mrb[240].mxu1 %vm1072_vm1, %v805_v52  ;;  %v9548_v17 = vpop.permute.xlu0 %9547  ;;  %7160 = vst.msk [vmem:[#allocation2 + $0x230] sm:$0xff] %vm559_vm2, %v7031_v5  ;;  %v11530_v30 = vpop.f32.mrb[135].mxu0 }
 0x350   : > { %11820 = vmatpush3.bf16.xpose.msra.mxu1 %v6551_v49  ;;  %11821 = vmatprep.mubr.msk.bf16.mxu1 %vm12715_vm0, %v12714_v0  ;;  %v9976_v23 = vsel %vm559_vm2, %v7885_v54, %v9548_v17  ;;  %v8300_v54 = vcombine.high %v8260_v62, %v8292_v55  ;;  %v7280_v49 = vld [vmem:[#allocation2 + $0x1d8] sm:$0xff]  ;;  %v7278_v30 = vld [vmem:[#allocation2 + $0x1c8] sm:$0xff]  ;;  %v14943_v34 = vrot.slane %v8365_v53, %v14076_v51 }
 0x351   : > { %11831 = vmatprep.subr.bf16.mxu1 %v12714_v0  ;;  %9873 = vrot.lane.b32.xlu1 %v8299_v9, %s12722_s3  ;;  %v814_v9 = vld [vmem:[%s13280_s9 + $0x1f8] sm:$0xf] }
 0x352   : > { %v4103_v45 = vpop.f32.mrb[136].mxu1 }
 0x353   : > { %v7026_v43 = vadd.f32 %v4103_v45, %v1009_v44  ;;  %v11499_v7 = vpop.f32.mrb[137].mxu1  ;;  %11852 = vmatmul.mubr.msk.bf16.vlgmr.msra.gmra.mrb[240].mxu0 %vm1072_vm1, %v812_v29  ;;  %v9612_v32 = vpop.permute.xlu0 %9611 }
 0x354   : > { %v4106_v36 = vpop.f32.mrb[138].mxu1  ;;  %v12179_v12 = vld [vmem:[#allocation2 + $0x1e8] ss:$16 sps:$4 sm:$0xff]   ;;  %11862 = vmatpush3.bf16.xpose.msra.mxu0 %v6873_v24  ;;  %11863 = vmatprep.mubr.msk.bf16.mxu0 %vm12715_vm0, %v12714_v0  ;;  %v9992_v13 = vsel %vm1072_vm1, %v9976_v23, %v9612_v32  ;;  %v8334_v23 = vcombine.high %v7281_v18, %v7283_v46  ;;  %v8366_v7 = vcombine.high %v14923_v48, %v14918_v40  ;;  %v1018_v18 = vld [vmem:[#allocation2 + $0x250] sm:$0xff] }
 0x355   : > { %7155 = vst.msk [vmem:[#allocation2 + $0x208] sm:$0xff] %vm559_vm2, %v7026_v43  ;;  %v11500_v31 = vpop.f32.mrb[139].mxu1  ;;  %v7284_v50 = vld [vmem:[#allocation2 + $0x1f8] sm:$0xff]  ;;  %9937 = vrot.lane.b32.xlu1 %v8300_v54, %s12724_s15  ;;  %v8357_v52 = vrot.slane %v12179_v12, %v14060_v28  ;;  %v4425_v55 = vpop.f32.mrb[136].mxu0  ;;  %v939_v43 = vld [vmem:[%s13288_s25 + $0x1ec] sm:$0xf]  ;;  %v8318_v36 = vcombine.high %v7278_v30, %v7280_v49  ;;  %v8302_v54 = vcombine.high %v7277_v8, %v7279_v6 }
 0x356   : > { %v7033_v62 = vadd.f32 %v4425_v55, %v1016_v21  ;;  %v11541_v4 = vpop.f32.mrb[137].mxu0  ;;  %v8350_v44 = vcombine.high %v7282_v41, %v7284_v50  ;;  %v809_v31 = vld [vmem:[%s13280_s9 + $0x1e4] sm:$0xf]  ;;  %v8348_v55 = vrot.slane %v8334_v23, %v14060_v28 }
 0x357   : > { %11822 = vmatmul.mubr.msk.bf16.vlgmr.msra.gmra.mrb[244].mxu1 %vm1072_vm1, %v807_v33  ;;  %v9676_v5 = vpop.permute.xlu0 %9675  ;;  %v8397_v10 = vcombine.low %v8341_v47, %v8357_v52  ;;  %v8398_v17 = vcombine.high %v8341_v47, %v8357_v52  ;;  %v4428_v26 = vpop.f32.mrb[138].mxu0  ;;  %v6735_v47 = vsel %vm1072_vm1, %v939_v43, 0  ;;  %v8380_v52 = vrot.slane %v8366_v7, %v14076_v51  ;;  %v1013_v4 = vld [vmem:[#allocation2 + $0x228] sm:$0xff] }
 0x358   : > { %11832 = vmatpush3.bf16.xpose.msra.mxu1 %v6643_v37  ;;  %11833 = vmatprep.mubr.msk.bf16.mxu1 %vm12715_vm0, %v12714_v0  ;;  %v10009_v29 = vsel %vm10005_vm3, %v9992_v13, %v9676_v5  ;;  %7162 = vst.msk [vmem:[#allocation2 + $0x240] sm:$0xff] %vm559_vm2, %v7033_v62  ;;  %v11542_v24 = vpop.f32.mrb[139].mxu0  ;;  %v14957_v50 = vrot.slane %v8350_v44, %v14060_v28  ;;  %v941_v26 = vld [vmem:[%s13288_s25 + $0x1f4] sm:$0xf] }
 0x359   : > { %11843 = vmatprep.subr.bf16.mxu1 %v12714_v0  ;;  %v14946_v42 = vrot.slane %v8397_v10, %v14076_v51  ;;  %v8412_v37 = vrot.slane %v8398_v17, %v14076_v51  ;;  %v14967_v53 = vrot.slane %v8318_v36, %v14060_v28  ;;  %v8316_v8 = vrot.slane %v8302_v54, %v14060_v28  ;;  %v1020_v36 = vld [vmem:[#allocation2 + $0x260] sm:$0xff] }
 0x35a   : > { %v4195_v45 = vpop.f32.mrb[140].mxu1  ;;  %v8413_v6 = vcombine.low %v8348_v55, %v14957_v50  ;;  %v6827_v54 = vsel %vm1072_vm1, %v941_v26, 0 }
 0x35b   : > { %v7028_v32 = vadd.f32 %v4195_v45, %v1011_v59  ;;  %v11511_v33 = vpop.f32.mrb[141].mxu1  ;;  %11864 = vmatmul.mubr.msk.bf16.vlgmr.msra.gmra.mrb[244].mxu0 %vm1072_vm1, %v814_v9  ;;  %v9740_v21 = vpop.permute.xlu0 %9739  ;;  %v8430_v13 = vcombine.high %v14943_v34, %v14946_v42  ;;  %v8431_v5 = vcombine.low %v8380_v52, %v8412_v37  ;;  %v811_v45 = vld [vmem:[%s13280_s9 + $0x1ec] sm:$0xf]  ;;  %v8432_v43 = vcombine.high %v8380_v52, %v8412_v37  ;;  %v1015_v37 = vld [vmem:[#allocation2 + $0x238] sm:$0xff] }
 0x35c   : > { %v4198_v12 = vpop.f32.mrb[142].mxu1  ;;  %v10026_v46 = vsel %vm10022_vm4, %v10009_v29, %v9740_v21  ;;  %v8381_v29 = vcombine.low %v8316_v8, %v14967_v53  ;;  %v8421_v7 = vrot.slane %v8413_v6, %v14076_v51  ;;  %v813_v6 = vld [vmem:[%s13280_s9 + $0x1f4] sm:$0xf] }
 0x35d   : > { %7157 = vst.msk [vmem:[#allocation2 + $0x218] sm:$0xff] %vm559_vm2, %v7028_v32  ;;  %v11512_v48 = vpop.f32.mrb[143].mxu1  ;;  %9555 = vrot.lane.b32.xlu0 %v8430_v13, %s12719_s29  ;;  %v4517_v59 = vpop.f32.mrb[140].mxu0 }
 0x35e   : > { %v7035_v49 = vadd.f32 %v4517_v59, %v1018_v18  ;;  %v11553_v41 = vpop.f32.mrb[141].mxu0  ;;  %v14985_v32 = vpop.permute.xlu1 %9609  ;;  %v8389_v12 = vrot.slane %v8381_v29, %v14076_v51  ;;  %v8414_v48 = vcombine.high %v8348_v55, %v14957_v50  ;;  %v943_v59 = vld [vmem:[%s13288_s25 + $0x1fc] sm:$0xf]  ;;  %v1022_v55 = vld [vmem:[#allocation2 + $0x270] sm:$0xff] }
 0x35f   : > { %11834 = vmatmul.mubr.msk.bf16.vlgmr.msra.gmra.mrb[248].mxu1 %vm1072_vm1, %v809_v31  ;;  %v9804_v62 = vpop.permute.xlu0 %9803  ;;  %v4520_v10 = vpop.f32.mrb[142].mxu0 }
 0x360   : > { %11844 = vmatpush3.bf16.xpose.msra.mxu1 %v6735_v47  ;;  %11845 = vmatprep.mubr.msk.bf16.mxu1 %vm12715_vm0, %v12714_v0  ;;  %v14976_v17 = vsel %vm10039_vm5, %v10026_v46, %v9804_v62  ;;  %7164 = vst.msk [vmem:[#allocation2 + $0x250] sm:$0xff] %vm559_vm2, %v7035_v49  ;;  %v11554_v44 = vpop.f32.mrb[143].mxu0  ;;  %v8433_v18 = vcombine.low %v8389_v12, %v8421_v7 }
 0x361   : > { %11855 = vmatprep.subr.bf16.mxu1 %v12714_v0  ;;  %9619 = vrot.lane.b32.xlu0 %v8431_v5, %s12721_s18  ;;  %v8382_v49 = vcombine.high %v8316_v8, %v14967_v53  ;;  %v8434_v10 = vcombine.high %v8389_v12, %v8421_v7  ;;  %v8428_v50 = vrot.slane %v8414_v48, %v14076_v51  ;;  %v12185_v12 = vld [vmem:[#allocation2 + $0x220] ss:$16 sps:$4 sm:$0xff]  }
 0x362   : > { %v4287_v9 = vpop.f32.mrb[144].mxu1  ;;  %v15000_v41 = vpop.permute.xlu1 %9673 }
 0x363   : > { %v7030_v30 = vadd.f32 %v4287_v9, %v1013_v4  ;;  %v11523_v23 = vpop.f32.mrb[145].mxu1  ;;  %v6919_v9 = vsel %vm1072_vm1, %v943_v59, 0  ;;  %v8396_v26 = vrot.slane %v8382_v49, %v14076_v51  ;;  %v7289_v59 = vld [vmem:[#allocation2 + $0x220] sm:$0xff]  ;;  %v7291_v49 = vld [vmem:[#allocation2 + $0x230] sm:$0xff] }
 0x364   : > { %v4290_v24 = vpop.f32.mrb[146].mxu1  ;;  %v12183_v53 = vld [vmem:[#allocation2 + $0x208] ss:$16 sps:$4 sm:$0xff]  }
 0x365   : > { %7159 = vst.msk [vmem:[#allocation2 + $0x228] sm:$0xff] %vm559_vm2, %v7030_v30  ;;  %v11524_v33 = vpop.f32.mrb[147].mxu1  ;;  %9683 = vrot.lane.b32.xlu0 %v8432_v43, %s12718_s21  ;;  %v4609_v21 = vpop.f32.mrb[144].mxu0  ;;  %v1017_v23 = vld [vmem:[#allocation2 + $0x248] sm:$0xff]  ;;  %v8435_v24 = vcombine.low %v8396_v26, %v8428_v50 }
 0x366   : > { %v7037_v31 = vadd.f32 %v4609_v21, %v1020_v36  ;;  %v11565_v13 = vpop.f32.mrb[145].mxu0  ;;  %v15011_v7 = vpop.permute.xlu1 %9737 }
 0x367   : > { %11846 = vmatmul.mubr.msk.bf16.vlgmr.msra.gmra.mrb[252].mxu1 %vm1072_vm1, %v811_v45  ;;  %v4612_v46 = vpop.f32.mrb[146].mxu0  ;;  %v12181_v45 = vld [vmem:[#allocation2 + $0x200] ss:$16 sps:$4 sm:$0xff]  }
 0x368   : > { %11856 = vmatpush3.bf16.xpose.msra.mxu1 %v6827_v54  ;;  %11857 = vmatprep.mubr.msk.bf16.mxu1 %vm12715_vm0, %v12714_v0  ;;  %7166 = vst.msk [vmem:[#allocation2 + $0x260] sm:$0xff] %vm559_vm2, %v7037_v31  ;;  %v11566_v47 = vpop.f32.mrb[147].mxu0  ;;  %v8461_v54 = vrot.slane %v12183_v53, %v14060_v28  ;;  %v1024_v46 = vld [vmem:[#allocation2 + $0x280] sm:$0xff] }
 0x369   : > { %11867 = vmatprep.subr.bf16.mxu1 %v12714_v0  ;;  %9747 = vrot.lane.b32.xlu0 %v8433_v18, %s12720_s11  ;;  %v8436_v18 = vcombine.high %v8396_v26, %v8428_v50  ;;  %v7288_v50 = vld [vmem:[#allocation2 + $0x218] sm:$0xff]  ;;  %v7285_v53 = vld [vmem:[#allocation2 + $0x200] sm:$0xff] }
 0x36a   : > { %v4379_v52 = vpop.f32.mrb[148].mxu1  ;;  %v1019_v26 = vld [vmem:[#allocation2 + $0x258] sm:$0xff] }
 0x36b   : > { %v7032_v62 = vadd.f32 %v4379_v52, %v1015_v37  ;;  %v11535_v4 = vpop.f32.mrb[149].mxu1  ;;  %v815_v37 = vld [vmem:[%s13280_s9 + $0x1fc] sm:$0xf]  ;;  %s15949_s9 = sld [smem:[#allocation31_spill]] }
 0x36c   : > { %v4382_v5 = vpop.f32.mrb[150].mxu1 }
 0x36d   : > { %7161 = vst.msk [vmem:[#allocation2 + $0x238] sm:$0xff] %vm559_vm2, %v7032_v62  ;;  %v11536_v44 = vpop.f32.mrb[151].mxu1  ;;  %9811 = vrot.lane.b32.xlu0 %v8434_v10, %s12723_s5  ;;  %v4701_v8 = vpop.f32.mrb[148].mxu0  ;;  %v8477_v62 = vrot.slane %v12185_v12, %v14060_v28 }
 0x36e   : > { %v7039_v29 = vadd.f32 %v4701_v8, %v1022_v55  ;;  %v11577_v30 = vpop.f32.mrb[149].mxu0  ;;  %v15022_v10 = vpop.permute.xlu1 %9801  ;;  %v7290_v55 = vld [vmem:[#allocation2 + $0x228] sm:$0xff]  ;;  %v7287_v8 = vld [vmem:[#allocation2 + $0x210] sm:$0xff] }
 0x36f   : > { %11858 = vmatmul.mubr.msk.bf16.vlgmr.msra.gmra.mrb[0].mxu1 %vm1072_vm1, %v813_v6  ;;  %v4704_v43 = vpop.f32.mrb[150].mxu0 }
 0x370   : > { %11868 = vmatpush3.bf16.xpose.msra.mxu1 %v6919_v9  ;;  %11869 = vmatprep.mubr.msk.bf16.mxu1 %vm12715_vm0, %v12714_v0  ;;  %7168 = vst.msk [vmem:[#allocation2 + $0x270] sm:$0xff] %vm559_vm2, %v7039_v29  ;;  %v11578_v36 = vpop.f32.mrb[151].mxu0  ;;  %v8445_v0 = vrot.slane %v12181_v45, %v14060_v28  ;;  %v7286_v45 = vld [vmem:[#allocation2 + $0x208] sm:$0xff]  ;;  %v8470_v43 = vcombine.high %v7289_v59, %v7291_v49  ;;  %v1026_v49 = vld [vmem:[#allocation2 + $0x290] sm:$0xff] }
 0x371   : > { %9875 = vrot.lane.b32.xlu0 %v8435_v24, %s12722_s3  ;;  %s10836_s19 = sshll.u32 %s15949_s9, 4 }
 0x372   : > { %v4471_v33 = vpop.f32.mrb[152].mxu1  ;;  %v8501_v5 = vcombine.low %v8445_v0, %v8461_v54  ;;  %s10434_s27 = sadd.s32 %s15950_s2, %s10836_s19 }
 0x373   : > { %v7034_v21 = vadd.f32 %v4471_v33, %v1017_v23  ;;  %v11547_v31 = vpop.f32.mrb[153].mxu1  ;;  %s10436_s25 = sadd.s32 %s10830_s16, %s10434_s27 }
 0x374   : > { %v4474_v13 = vpop.f32.mrb[154].mxu1  ;;  %v12187_v48 = vld [vmem:[#allocation2 + $0x228] ss:$16 sps:$4 sm:$0xff]   ;;  %v15027_v12 = vrot.slane %v8501_v5, %v14076_v51  ;;  %v8502_v31 = vcombine.high %v8445_v0, %v8461_v54  ;;  %s10831_s4 = sshll.u32 %s10436_s25, 7 }
 0x375   : > { %7163 = vst.msk [vmem:[#allocation2 + $0x248] sm:$0xff] %vm559_vm2, %v7034_v21  ;;  %v11548_v47 = vpop.f32.mrb[155].mxu1  ;;  %v7292_v52 = vld [vmem:[#allocation2 + $0x238] sm:$0xff]  ;;  %9939 = vrot.lane.b32.xlu0 %v8436_v18, %s12724_s15  ;;  %v8493_v4 = vrot.slane %v12187_v48, %v14060_v28  ;;  %v8454_v13 = vcombine.high %v7286_v45, %v7288_v50  ;;  %v8438_v48 = vcombine.high %v7285_v53, %v7287_v8 }
 0x376   : > { %v4793_v6 = vpop.f32.mrb[152].mxu0  ;;  %v8486_v23 = vcombine.high %v7290_v55, %v7292_v52  ;;  %v8516_v0 = vrot.slane %v8502_v31, %v14076_v51 }
 0x377   : > { %11870 = vmatmul.mubr.msk.bf16.vlgmr.msra.gmra.mrb[4].mxu1 %vm1072_vm1, %v815_v37  ;;  %v7041_v44 = vadd.f32 %v4793_v6, %v1024_v46  ;;  %v11589_v9 = vpop.f32.mrb[153].mxu0  ;;  %v8533_v29 = vcombine.low %v8477_v62, %v8493_v4  ;;  %v8534_v30 = vcombine.high %v8477_v62, %v8493_v4  ;;  %v15038_v4 = vpop.permute.xlu1 %9865  ;;  %v8468_v5 = vrot.slane %v8454_v13, %v14060_v28 }
 0x378   : > { %v4796_v24 = vpop.f32.mrb[154].mxu0  ;;  %v8500_v59 = vrot.slane %v8486_v23, %v14060_v28  ;;  %v8484_v6 = vrot.slane %v8470_v43, %v14060_v28  ;;  %v1021_v9 = vld [vmem:[#allocation2 + $0x268] sm:$0xff]  ;;  %v8452_v53 = vrot.slane %v8438_v48, %v14060_v28  ;;  %v15052_v48 = vpop.permute.xlu0 %9867 }
 0x379   : > { %7170 = vst.msk [vmem:[#allocation2 + $0x280] sm:$0xff] %vm559_vm2, %v7041_v44  ;;  %v11590_v36 = vpop.f32.mrb[155].mxu0  ;;  %v15030_v21 = vrot.slane %v8533_v29, %v14076_v51  ;;  %v8548_v52 = vrot.slane %v8534_v30, %v14076_v51 }
 0x37a   : > { %v4563_v33 = vpop.f32.mrb[156].mxu1  ;;  %v8549_v8 = vcombine.low %v8484_v6, %v8500_v59  ;;  %v8517_v24 = vcombine.low %v8452_v53, %v8468_v5 }
 0x37b   : > { %v7036_v37 = vadd.f32 %v4563_v33, %v1019_v26  ;;  %v11559_v18 = vpop.f32.mrb[157].mxu1  ;;  %v8566_v47 = vcombine.high %v15027_v12, %v15030_v21  ;;  %v8567_v26 = vcombine.low %v8516_v0, %v8548_v52  ;;  %v15048_v45 = vpop.permute.xlu1 %9929  ;;  %v8568_v31 = vcombine.high %v8516_v0, %v8548_v52 }
 0x37c   : > { %v4566_v46 = vpop.f32.mrb[158].mxu1  ;;  %v8557_v13 = vrot.slane %v8549_v8, %v14076_v51  ;;  %v8550_v52 = vcombine.high %v8484_v6, %v8500_v59  ;;  %v8518_v8 = vcombine.high %v8452_v53, %v8468_v5  ;;  %v7294_v22 = vld [vmem:[#allocation2 + $0x248] sm:$0xff] }
 0x37d   : > { %7165 = vst.msk [vmem:[#allocation2 + $0x258] sm:$0xff] %vm559_vm2, %v7036_v37  ;;  %v11560_v54 = vpop.f32.mrb[159].mxu1  ;;  %9557 = vrot.lane.b32.xlu1 %v8566_v47, %s12719_s29  ;;  %v1028_v37 = vld [vmem:[#allocation2 + $0x2a0] sm:$0xff]  ;;  %v8525_v46 = vrot.slane %v8517_v24, %v14076_v51 }
 0x37e   : > { %v4885_v50 = vpop.f32.mrb[156].mxu0  ;;  %v8532_v6 = vrot.slane %v8518_v8, %v14076_v51 }
 0x37f   : > { %v7043_v55 = vadd.f32 %v4885_v50, %v1026_v49  ;;  %v11601_v44 = vpop.f32.mrb[157].mxu0  ;;  %v15056_v49 = vpop.permute.xlu1 %9549 }
 0x380   : > { %v4888_v29 = vpop.f32.mrb[158].mxu0  ;;  %v8569_v44 = vcombine.low %v8525_v46, %v8557_v13 }
 0x381   : > { %7172 = vst.msk [vmem:[#allocation2 + $0x290] sm:$0xff] %vm559_vm2, %v7043_v55  ;;  %v11602_v30 = vpop.f32.mrb[159].mxu0  ;;  %9621 = vrot.lane.b32.xlu1 %v8567_v26, %s12721_s18  ;;  %v1023_v55 = vld [vmem:[#allocation2 + $0x278] sm:$0xff] }
 0x382   : > { %v4655_v23 = vpop.f32.mrb[160].mxu1 }
 0x383   : > { %v7038_v36 = vadd.f32 %v4655_v23, %v1021_v9  ;;  %v11571_v43 = vpop.f32.mrb[161].mxu1  ;;  %v15060_v23 = vpop.permute.xlu0 %9931 }
 0x384   : > { %v4658_v33 = vpop.f32.mrb[162].mxu1  ;;  %v8564_v43 = vrot.slane %v8550_v52, %v14076_v51 }
 0x385   : > { %7167 = vst.msk [vmem:[#allocation2 + $0x268] sm:$0xff] %vm559_vm2, %v7038_v36  ;;  %v11572_v18 = vpop.f32.mrb[163].mxu1  ;;  %9685 = vrot.lane.b32.xlu1 %v8568_v31, %s12718_s21  ;;  %v8570_v36 = vcombine.high %v8525_v46, %v8557_v13  ;;  %v1030_v33 = vld [vmem:[#allocation2 + $0x2b0] sm:$0xff]  ;;  %v15063_v31 = vpop.permute.xlu1 %9613 }
 0x386   : > { %v4977_v47 = vpop.f32.mrb[160].mxu0  ;;  %v12189_v13 = vld [vmem:[#allocation2 + $0x240] ss:$16 sps:$4 sm:$0xff]  }
 0x387   : > { %v7045_v54 = vadd.f32 %v4977_v47, %v1028_v37  ;;  %v11613_v50 = vpop.f32.mrb[161].mxu0  ;;  %v12191_v37 = vld [vmem:[#allocation2 + $0x248] ss:$16 sps:$4 sm:$0xff]   ;;  %v8581_v63 = vrot.slane %v12189_v13, %v14060_v28 }
 0x388   : > { %v4980_v0 = vpop.f32.mrb[162].mxu0  ;;  %v8571_v50 = vcombine.low %v8532_v6, %v8564_v43 }
 0x389   : > { %7174 = vst.msk [vmem:[#allocation2 + $0x2a0] sm:$0xff] %vm559_vm2, %v7045_v54  ;;  %v11614_v9 = vpop.f32.mrb[163].mxu0  ;;  %9749 = vrot.lane.b32.xlu1 %v8569_v44, %s12720_s11  ;;  %v1025_v54 = vld [vmem:[#allocation2 + $0x288] sm:$0xff]  ;;  %v8597_v0 = vrot.slane %v12191_v37, %v14060_v28  ;;  %v7297_v37 = vld [vmem:[#allocation2 + $0x260] sm:$0xff] }
 0x38a   : > { %v4747_v26 = vpop.f32.mrb[164].mxu1  ;;  %v12193_v9 = vld [vmem:[#allocation2 + $0x260] ss:$16 sps:$4 sm:$0xff]  }
 0x38b   : > { %v7040_v29 = vadd.f32 %v4747_v26, %v1023_v55  ;;  %v11583_v30 = vpop.f32.mrb[165].mxu1  ;;  %v15075_v26 = vpop.permute.xlu1 %9677 }
 0x38c   : > { %v4750_v24 = vpop.f32.mrb[166].mxu1 }
 0x38d   : > { %7169 = vst.msk [vmem:[#allocation2 + $0x278] sm:$0xff] %vm559_vm2, %v7040_v29  ;;  %v11584_v59 = vpop.f32.mrb[167].mxu1  ;;  %9813 = vrot.lane.b32.xlu1 %v8570_v36, %s12723_s5  ;;  %v8572_v36 = vcombine.high %v8532_v6, %v8564_v43  ;;  %v7296_v6 = vld [vmem:[#allocation2 + $0x258] sm:$0xff] }
 0x38e   : > { %v5069_v5 = vpop.f32.mrb[164].mxu0 }
 0x38f   : > { %v7047_v53 = vadd.f32 %v5069_v5, %v1030_v33  ;;  %v11625_v18 = vpop.f32.mrb[165].mxu0  ;;  %v9552_v47 = vpop.permute.xlu0 %9551 }
 0x390   : > { %v5072_v46 = vpop.f32.mrb[166].mxu0  ;;  %v9978_v55 = vsel %vm559_vm2, %v8157_v38, %v9552_v47  ;;  %v1032_v38 = vld [vmem:[#allocation2 + $0x2c0] sm:$0xff]  ;;  %v8613_v18 = vrot.slane %v12193_v9, %v14060_v28 }
 0x391   : > { %7176 = vst.msk [vmem:[#allocation2 + $0x2b0] sm:$0xff] %vm559_vm2, %v7047_v53  ;;  %v11626_v44 = vpop.f32.mrb[167].mxu0  ;;  %9877 = vrot.lane.b32.xlu1 %v8571_v50, %s12722_s3  ;;  %v7299_v53 = vld [vmem:[#allocation2 + $0x270] sm:$0xff]  ;;  %v7298_v50 = vld [vmem:[#allocation2 + $0x268] sm:$0xff] }
 0x392   : > { %v4839_v52 = vpop.f32.mrb[168].mxu1 }
 0x393   : > { %v7042_v8 = vadd.f32 %v4839_v52, %v1025_v54  ;;  %v11595_v29 = vpop.f32.mrb[169].mxu1  ;;  %v9616_v24 = vpop.permute.xlu0 %9615  ;;  %v8637_v54 = vcombine.low %v8581_v63, %v8597_v0  ;;  %v1027_v52 = vld [vmem:[#allocation2 + $0x298] sm:$0xff] }
 0x394   : > { %v4842_v30 = vpop.f32.mrb[170].mxu1  ;;  %v12195_v2 = vld [vmem:[#allocation2 + $0x268] ss:$16 sps:$4 sm:$0xff]   ;;  %v9994_v59 = vsel %vm1072_vm1, %v9978_v55, %v9616_v24  ;;  %v7295_v29 = vld [vmem:[#allocation2 + $0x250] sm:$0xff] }
 0x395   : > { %7171 = vst.msk [vmem:[#allocation2 + $0x288] sm:$0xff] %vm559_vm2, %v7042_v8  ;;  %v11596_v33 = vpop.f32.mrb[171].mxu1  ;;  %v7300_v5 = vld [vmem:[#allocation2 + $0x278] sm:$0xff]  ;;  %9941 = vrot.lane.b32.xlu1 %v8572_v36, %s12724_s15  ;;  %v8629_v47 = vrot.slane %v12195_v2, %v14060_v28  ;;  %v7293_v8 = vld [vmem:[#allocation2 + $0x240] sm:$0xff]  ;;  %v8606_v2 = vcombine.high %v7297_v37, %v7299_v53  ;;  %v1034_v53 = vld [vmem:[#allocation2 + $0x2d0] sm:$0xff] }
 0x396   : > { %v5161_v43 = vpop.f32.mrb[168].mxu0  ;;  %v8622_v24 = vcombine.high %v7298_v50, %v7300_v5  ;;  %v15083_v33 = vpop.permute.xlu1 %9741  ;;  %v8574_v50 = vcombine.high %v7293_v8, %v7295_v29 }
 0x397   : > { %v7049_v13 = vadd.f32 %v5161_v43, %v1032_v38  ;;  %v11637_v46 = vpop.f32.mrb[169].mxu0  ;;  %v9680_v44 = vpop.permute.xlu0 %9679  ;;  %v8669_v55 = vcombine.low %v8613_v18, %v8629_v47  ;;  %v8670_v30 = vcombine.high %v8613_v18, %v8629_v47  ;;  %v15088_v38 = vrot.slane %v8637_v54, %v14076_v51 }
 0x398   : > { %v5164_v36 = vpop.f32.mrb[170].mxu0  ;;  %v10011_v9 = vsel %vm10005_vm3, %v9994_v59, %v9680_v44  ;;  %v8638_v46 = vcombine.high %v8581_v63, %v8597_v0  ;;  %v8590_v18 = vcombine.high %v7294_v22, %v7296_v6  ;;  %v8620_v6 = vrot.slane %v8606_v2, %v14060_v28 }
 0x399   : > { %7178 = vst.msk [vmem:[#allocation2 + $0x2c0] sm:$0xff] %vm559_vm2, %v7049_v13  ;;  %v11638_v25 = vpop.f32.mrb[171].mxu0  ;;  %15912 = vst [vmem:[#allocation41_spill] sm:$0xff] %v15088_v38  ;;  %v15091_v43 = vrot.slane %v8669_v55, %v14076_v51  ;;  %v8684_v37 = vrot.slane %v8670_v30, %v14076_v51  ;;  %v1029_v55 = vld [vmem:[#allocation2 + $0x2a8] sm:$0xff] }
 0x39a   : > { %v4931_v62 = vpop.f32.mrb[172].mxu1  ;;  %v8636_v25 = vrot.slane %v8622_v24, %v14060_v28  ;;  %v8604_v63 = vrot.slane %v8590_v18, %v14060_v28  ;;  %v15105_v44 = vpop.permute.xlu1 %9805  ;;  %v8588_v24 = vrot.slane %v8574_v50, %v14060_v28 }
 0x39b   : > { %15913 = vst [vmem:[#allocation42_spill] sm:$0xff] %v15091_v43  ;;  %v7044_v5 = vadd.f32 %v4931_v62, %v1027_v52  ;;  %v11607_v47 = vpop.f32.mrb[173].mxu1  ;;  %v9744_v40 = vpop.permute.xlu0 %9743  ;;  %v8702_v59 = vcombine.high %v15088_v38, %v15091_v43  ;;  %v8652_v62 = vrot.slane %v8638_v46, %v14076_v51  ;;  %15914 = vst [vmem:[#allocation43_spill] sm:$0xff] %v15105_v44  ;;  %v7301_v43 = vld [vmem:[#allocation2 + $0x280] sm:$0xff] }
 0x39c   : > { %v4934_v36 = vpop.f32.mrb[174].mxu1  ;;  %v10028_v22 = vsel %vm10022_vm4, %v10011_v9, %v9744_v40  ;;  %v8653_v2 = vcombine.low %v8588_v24, %v8604_v63 }
 0x39d   : > { %7173 = vst.msk [vmem:[#allocation2 + $0x298] sm:$0xff] %vm559_vm2, %v7044_v5  ;;  %v11608_v0 = vpop.f32.mrb[175].mxu1  ;;  %9559 = vrot.lane.b32.xlu0 %v8702_v59, %s12719_s29  ;;  %v8703_v30 = vcombine.low %v8652_v62, %v8684_v37  ;;  %v8685_v5 = vcombine.low %v8620_v6, %v8636_v25 }
 0x39e   : > { %v5253_v13 = vpop.f32.mrb[172].mxu0  ;;  %v8704_v0 = vcombine.high %v8652_v62, %v8684_v37  ;;  %v8686_v62 = vcombine.high %v8620_v6, %v8636_v25  ;;  %v1038_v25 = vld [vmem:[#allocation2 + $0x2f0] sm:$0xff] }
 0x39f   : > { %v7051_v52 = vadd.f32 %v5253_v13, %v1034_v53  ;;  %v11649_v8 = vpop.f32.mrb[173].mxu0  ;;  %v9808_v29 = vpop.permute.xlu0 %9807  ;;  %v8693_v13 = vrot.slane %v8685_v5, %v14076_v51 }
 0x3a0   : > { %v5256_v40 = vpop.f32.mrb[174].mxu0  ;;  %v10045_v9 = vsel %vm10039_vm5, %v10028_v22, %v9808_v29  ;;  %v1036_v8 = vld [vmem:[#allocation2 + $0x2e0] sm:$0xff]  ;;  %v15114_v29 = vpop.permute.xlu1 %9869 }
 0x3a1   : > { %7180 = vst.msk [vmem:[#allocation2 + $0x2d0] sm:$0xff] %vm559_vm2, %v7051_v52  ;;  %v11650_v46 = vpop.f32.mrb[175].mxu0  ;;  %9623 = vrot.lane.b32.xlu0 %v8703_v30, %s12721_s18  ;;  %15915 = vst [vmem:[#allocation44_spill] sm:$0xff] %v15114_v29  ;;  %v8661_v52 = vrot.slane %v8653_v2, %v14076_v51 }
 0x3a2   : > { %v5023_v18 = vpop.f32.mrb[176].mxu1 }
 0x3a3   : > { %v7046_v47 = vadd.f32 %v5023_v18, %v1029_v55  ;;  %v11619_v36 = vpop.f32.mrb[177].mxu1  ;;  %v9872_v53 = vpop.permute.xlu0 %9871  ;;  %v1031_v18 = vld [vmem:[#allocation2 + $0x2b8] sm:$0xff]  ;;  %v8705_v37 = vcombine.low %v8661_v52, %v8693_v13 }
 0x3a4   : > { %v5026_v59 = vpop.f32.mrb[178].mxu1  ;;  %v10062_v22 = vsel %vm10056_vm6, %v10045_v9, %v9872_v53 }
 0x3a5   : > { %7175 = vst.msk [vmem:[#allocation2 + $0x2a8] sm:$0xff] %vm559_vm2, %v7046_v47  ;;  %v11620_v50 = vpop.f32.mrb[179].mxu1  ;;  %9687 = vrot.lane.b32.xlu0 %v8704_v0, %s12718_s21  ;;  %v8654_v59 = vcombine.high %v8588_v24, %v8604_v63  ;;  %v15123_v0 = vpop.permute.xlu1 %9933 }
 0x3a6   : > { %v5345_v30 = vpop.f32.mrb[176].mxu0  ;;  %15917 = vst [vmem:[#allocation46_spill] sm:$0xff] %v15123_v0  ;;  %v8706_v50 = vcombine.high %v8661_v52, %v8693_v13 }
 0x3a7   : > { %v7053_v55 = vadd.f32 %v5345_v30, %v1036_v8  ;;  %v11661_v40 = vpop.f32.mrb[177].mxu0  ;;  %v9936_v46 = vpop.permute.xlu0 %9935  ;;  %v8700_v30 = vrot.slane %v8686_v62, %v14076_v51 }
 0x3a8   : > { %v5348_v5 = vpop.f32.mrb[178].mxu0  ;;  %v15120_v36 = vsel %vm10073_vm7, %v10062_v22, %v9936_v46  ;;  %v8668_v22 = vrot.slane %v8654_v59, %v14076_v51 }
 0x3a9   : > { %7182 = vst.msk [vmem:[#allocation2 + $0x2e0] sm:$0xff] %vm559_vm2, %v7053_v55  ;;  %v11662_v47 = vpop.f32.mrb[179].mxu0  ;;  %15916 = vst [vmem:[#allocation45_spill] sm:$0xff] %v15120_v36  ;;  %9751 = vrot.lane.b32.xlu0 %v8705_v37, %s12720_s11  ;;  %v12199_v55 = vld [vmem:[#allocation2 + $0x288] ss:$16 sps:$4 sm:$0xff]  }
 0x3aa   : > { %v5115_v9 = vpop.f32.mrb[180].mxu1  ;;  %v8707_v37 = vcombine.low %v8668_v22, %v8700_v30  ;;  %v12197_v5 = vld [vmem:[#allocation2 + $0x280] ss:$16 sps:$4 sm:$0xff]   ;;  %v8733_v62 = vrot.slane %v12199_v55, %v14060_v28 }
 0x3ab   : > { %v7048_v53 = vadd.f32 %v5115_v9, %v1031_v18  ;;  %v11631_v2 = vpop.f32.mrb[181].mxu1  ;;  %v1033_v18 = vld [vmem:[#allocation2 + $0x2c8] sm:$0xff]  ;;  %v12201_v9 = vld [vmem:[#allocation2 + $0x2a0] ss:$16 sps:$4 sm:$0xff]  }
 0x3ac   : > { %v5118_v8 = vpop.f32.mrb[182].mxu1  ;;  %v7307_v55 = vld [vmem:[#allocation2 + $0x2b0] sm:$0xff] }
 0x3ad   : > { %7177 = vst.msk [vmem:[#allocation2 + $0x2b8] sm:$0xff] %vm559_vm2, %v7048_v53  ;;  %v11632_v6 = vpop.f32.mrb[183].mxu1  ;;  %9815 = vrot.lane.b32.xlu0 %v8706_v50, %s12723_s5  ;;  %v8708_v50 = vcombine.high %v8668_v22, %v8700_v30  ;;  %v1035_v22 = vld [vmem:[#allocation2 + $0x2d8] sm:$0xff] }
 0x3ae   : > { %v5437_v40 = vpop.f32.mrb[180].mxu0  ;;  %v8717_v6 = vrot.slane %v12197_v5, %v14060_v28 }
 0x3af   : > { %v7055_v46 = vadd.f32 %v5437_v40, %v1038_v25  ;;  %v11673_v63 = vpop.f32.mrb[181].mxu0  ;;  %v9554_v24 = vpop.permute.xlu1 %9553 }
 0x3b0   : > { %v5440_v47 = vpop.f32.mrb[182].mxu0  ;;  %v1040_v63 = vld [vmem:[#allocation2 + $0x300] sm:$0xff] }
 0x3b1   : > { %7184 = vst.msk [vmem:[#allocation2 + $0x2f0] sm:$0xff] %vm559_vm2, %v7055_v46  ;;  %v11674_v13 = vpop.f32.mrb[183].mxu0  ;;  %9879 = vrot.lane.b32.xlu0 %v8707_v37, %s12722_s3  ;;  %v7305_v47 = vld [vmem:[#allocation2 + $0x2a0] sm:$0xff]  ;;  %v7304_v37 = vld [vmem:[#allocation2 + $0x298] sm:$0xff] }
 0x3b2   : > { %v5207_v52 = vpop.f32.mrb[184].mxu1  ;;  %v7306_v13 = vld [vmem:[#allocation2 + $0x2a8] sm:$0xff]  ;;  %v8742_v29 = vcombine.high %v7305_v47, %v7307_v55 }
 0x3b3   : > { %v7050_v53 = vadd.f32 %v5207_v52, %v1033_v18  ;;  %v11643_v59 = vpop.f32.mrb[185].mxu1  ;;  %v9618_v8 = vpop.permute.xlu1 %9617  ;;  %v8749_v18 = vrot.slane %v12201_v9, %v14060_v28 }
 0x3b4   : > { %v5210_v2 = vpop.f32.mrb[186].mxu1  ;;  %v7308_v25 = vld [vmem:[#allocation2 + $0x2b8] sm:$0xff]  ;;  %v8773_v59 = vcombine.low %v8717_v6, %v8733_v62 }
 0x3b5   : > { %v12203_v40 = vld [vmem:[#allocation2 + $0x2a8] ss:$16 sps:$4 sm:$0xff]   ;;  %7179 = vst.msk [vmem:[#allocation2 + $0x2c8] sm:$0xff] %vm559_vm2, %v7050_v53  ;;  %v11644_v46 = vpop.f32.mrb[187].mxu1  ;;  %9943 = vrot.lane.b32.xlu0 %v8708_v50, %s12724_s15  ;;  %v8758_v2 = vcombine.high %v7306_v13, %v7308_v25  ;;  %v8774_v13 = vcombine.high %v8717_v6, %v8733_v62 }
 0x3b6   : > { %v8765_v52 = vrot.slane %v12203_v40, %v14060_v28  ;;  %v5529_v30 = vpop.f32.mrb[184].mxu0  ;;  %v7302_v53 = vld [vmem:[#allocation2 + $0x288] sm:$0xff]  ;;  %v7303_v46 = vld [vmem:[#allocation2 + $0x290] sm:$0xff]  ;;  %v15918_v40 = vcombine.low %v14821_v20, %v14824_v60 }
 0x3b7   : > { %v7057_v5 = vadd.f32 %v5529_v30, %v1040_v63  ;;  %v11685_v54 = vpop.f32.mrb[185].mxu0  ;;  %v9682_v16 = vpop.permute.xlu1 %9681  ;;  %v8726_v0 = vcombine.high %v7302_v53, %v7304_v37  ;;  %v8710_v55 = vcombine.high %v7301_v43, %v7303_v46  ;;  %v1037_v53 = vld [vmem:[#allocation2 + $0x2e8] sm:$0xff] }
 0x3b8   : > { %v8805_v38 = vcombine.low %v8749_v18, %v8765_v52  ;;  %v8806_v36 = vcombine.high %v8749_v18, %v8765_v52  ;;  %v5532_v50 = vpop.f32.mrb[186].mxu0  ;;  %v9979_v44 = vsel %vm559_vm2, %v15918_v40, %v9554_v24  ;;  %v15143_v54 = vrot.slane %v8773_v59, %v14076_v51 }
 0x3b9   : > { %7186 = vst.msk [vmem:[#allocation2 + $0x300] sm:$0xff] %vm559_vm2, %v7057_v5  ;;  %v11686_v9 = vpop.f32.mrb[187].mxu0  ;;  %v9995_v18 = vsel %vm1072_vm1, %v9979_v44, %v9618_v8  ;;  %v8772_v52 = vrot.slane %v8758_v2, %v14060_v28  ;;  %v1042_v5 = vld [vmem:[#allocation2 + $0x310] sm:$0xff]  ;;  %v8740_v62 = vrot.slane %v8726_v0, %v14060_v28  ;;  %v8756_v8 = vrot.slane %v8742_v29, %v14060_v28 }
 0x3ba   : > { %v5299_v25 = vpop.f32.mrb[188].mxu1  ;;  %v15146_v63 = vrot.slane %v8805_v38, %v14076_v51  ;;  %v10012_v30 = vsel %vm10005_vm3, %v9995_v18, %v9682_v16  ;;  %v8820_v59 = vrot.slane %v8806_v36, %v14076_v51  ;;  %v8788_v16 = vrot.slane %v8774_v13, %v14076_v51 }
 0x3bb   : > { %v7052_v37 = vadd.f32 %v5299_v25, %v1035_v22  ;;  %v11655_v47 = vpop.f32.mrb[189].mxu1  ;;  %v9746_v60 = vpop.permute.xlu1 %9745  ;;  %v8724_v50 = vrot.slane %v8710_v55, %v14060_v28  ;;  %v8821_v9 = vcombine.low %v8756_v8, %v8772_v52 }
 0x3bc   : > { %v5302_v20 = vpop.f32.mrb[190].mxu1  ;;  %v8838_v24 = vcombine.high %v15143_v54, %v15146_v63  ;;  %v10029_v43 = vsel %vm10022_vm4, %v10012_v30, %v9746_v60  ;;  %v8839_v46 = vcombine.low %v8788_v16, %v8820_v59 }
 0x3bd   : > { %7181 = vst.msk [vmem:[#allocation2 + $0x2d8] sm:$0xff] %vm559_vm2, %v7052_v37  ;;  %v11656_v44 = vpop.f32.mrb[191].mxu1  ;;  %v8789_v0 = vcombine.low %v8724_v50, %v8740_v62  ;;  %v8840_v20 = vcombine.high %v8788_v16, %v8820_v59  ;;  %v8829_v60 = vrot.slane %v8821_v9, %v14076_v51 }
 0x3be   : > { %9561 = vrot.lane.b32.xlu1 %v8838_v24, %s12719_s29  ;;  %v5621_v6 = vpop.f32.mrb[188].mxu0  ;;  %v1044_v24 = vld [vmem:[#allocation2 + $0x320] sm:$0xff] }
 0x3bf   : > { %v7059_v22 = vadd.f32 %v5621_v6, %v1042_v5  ;;  %v11697_v36 = vpop.f32.mrb[189].mxu0  ;;  %v9810_v2 = vpop.permute.xlu1 %9809  ;;  %v8797_v44 = vrot.slane %v8789_v0, %v14076_v51 }
 0x3c0   : > { %v5624_v40 = vpop.f32.mrb[190].mxu0  ;;  %v10046_v25 = vsel %vm10039_vm5, %v10029_v43, %v9810_v2  ;;  %v1039_v2 = vld [vmem:[#allocation2 + $0x2f8] sm:$0xff] }
 0x3c1   : > { %7188 = vst.msk [vmem:[#allocation2 + $0x310] sm:$0xff] %vm559_vm2, %v7059_v22  ;;  %v11698_v18 = vpop.f32.mrb[191].mxu0 }
 0x3c2   : > { %v5391_v13 = vpop.f32.mrb[192].mxu1  ;;  %9625 = vrot.lane.b32.xlu1 %v8839_v46, %s12721_s18  ;;  %v8822_v46 = vcombine.high %v8756_v8, %v8772_v52 }
 0x3c3   : > { %v7054_v29 = vadd.f32 %v5391_v13, %v1037_v53  ;;  %v11667_v37 = vpop.f32.mrb[193].mxu1  ;;  %v9874_v30 = vpop.permute.xlu1 %9873  ;;  %v8841_v53 = vcombine.low %v8797_v44, %v8829_v60 }
 0x3c4   : > { %v5394_v47 = vpop.f32.mrb[194].mxu1  ;;  %v10063_v5 = vsel %vm10056_vm6, %v10046_v25, %v9874_v30  ;;  %v8790_v25 = vcombine.high %v8724_v50, %v8740_v62  ;;  %v8836_v37 = vrot.slane %v8822_v46, %v14076_v51  ;;  %v12207_v30 = vld [vmem:[#allocation2 + $0x2c8] ss:$16 sps:$4 sm:$0xff]  }
 0x3c5   : > { %7183 = vst.msk [vmem:[#allocation2 + $0x2e8] sm:$0xff] %vm559_vm2, %v7054_v29  ;;  %v11668_v55 = vpop.f32.mrb[195].mxu1  ;;  %v8842_v29 = vcombine.high %v8797_v44, %v8829_v60  ;;  %v1046_v47 = vld [vmem:[#allocation2 + $0x330] sm:$0xff]  ;;  %v1041_v62 = vld [vmem:[#allocation2 + $0x308] sm:$0xff]  ;;  %v15919_v60 = vcombine.low %v14943_v34, %v14946_v42  ;;  %v1048_v34 = vld [vmem:[#allocation2 + $0x340] sm:$0xff] }
 0x3c6   : > { %9689 = vrot.lane.b32.xlu1 %v8840_v20, %s12718_s21  ;;  %v5713_v43 = vpop.f32.mrb[192].mxu0  ;;  %v8804_v8 = vrot.slane %v8790_v25, %v14076_v51 }
 0x3c7   : > { %v7061_v6 = vadd.f32 %v5713_v43, %v1044_v24  ;;  %v11709_v22 = vpop.f32.mrb[193].mxu0  ;;  %v9938_v36 = vpop.permute.xlu1 %9937  ;;  %v12205_v43 = vld [vmem:[#allocation2 + $0x2c0] ss:$16 sps:$4 sm:$0xff]  }
 0x3c8   : > { %v5716_v59 = vpop.f32.mrb[194].mxu0  ;;  %v15173_v9 = vsel %vm10073_vm7, %v10063_v5, %v9938_v36  ;;  %v8843_v50 = vcombine.low %v8804_v8, %v8836_v37  ;;  %v8844_v25 = vcombine.high %v8804_v8, %v8836_v37  ;;  %v7312_v8 = vld [vmem:[#allocation2 + $0x2d8] sm:$0xff] }
 0x3c9   : > { %7190 = vst.msk [vmem:[#allocation2 + $0x320] sm:$0xff] %vm559_vm2, %v7061_v6  ;;  %v11710_v16 = vpop.f32.mrb[195].mxu0 }
 0x3ca   : > { %v5483_v40 = vpop.f32.mrb[196].mxu1  ;;  %9753 = vrot.lane.b32.xlu1 %v8841_v53, %s12720_s11  ;;  %v12209_v53 = vld [vmem:[#allocation2 + $0x2e0] ss:$16 sps:$4 sm:$0xff]  }
 0x3cb   : > { %v7056_v18 = vadd.f32 %v5483_v40, %v1039_v2  ;;  %v11679_v13 = vpop.f32.mrb[197].mxu1  ;;  %v8869_v2 = vrot.slane %v12207_v30, %v14060_v28  ;;  %v8885_v30 = vrot.slane %v12209_v53, %v14060_v28 }
 0x3cc   : > { %v5486_v0 = vpop.f32.mrb[198].mxu1 }
 0x3cd   : > { %7185 = vst.msk [vmem:[#allocation2 + $0x2f8] sm:$0xff] %vm559_vm2, %v7056_v18  ;;  %v11680_v52 = vpop.f32.mrb[199].mxu1  ;;  %v8853_v18 = vrot.slane %v12205_v43, %v14060_v28  ;;  %v1043_v43 = vld [vmem:[#allocation2 + $0x318] sm:$0xff] }
 0x3ce   : > { %9817 = vrot.lane.b32.xlu1 %v8842_v29, %s12723_s5  ;;  %v5805_v20 = vpop.f32.mrb[196].mxu0  ;;  %v7315_v52 = vld [vmem:[#allocation2 + $0x2f0] sm:$0xff] }
 0x3cf   : > { %v7063_v24 = vadd.f32 %v5805_v20, %v1046_v47  ;;  %v11721_v55 = vpop.f32.mrb[197].mxu0  ;;  %v9556_v5 = vpop.permute.xlu0 %9555  ;;  %v7313_v47 = vld [vmem:[#allocation2 + $0x2e0] sm:$0xff] }
 0x3d0   : > { %v5808_v6 = vpop.f32.mrb[198].mxu0  ;;  %v9980_v44 = vsel %vm559_vm2, %v15919_v60, %v9556_v5  ;;  %v7314_v55 = vld [vmem:[#allocation2 + $0x2e8] sm:$0xff]  ;;  %v7311_v60 = vld [vmem:[#allocation2 + $0x2d0] sm:$0xff]  ;;  %v8878_v53 = vcombine.high %v7313_v47, %v7315_v52 }
 0x3d1   : > { %7192 = vst.msk [vmem:[#allocation2 + $0x330] sm:$0xff] %vm559_vm2, %v7063_v24  ;;  %v11722_v22 = vpop.f32.mrb[199].mxu0  ;;  %v8909_v24 = vcombine.low %v8853_v18, %v8869_v2  ;;  %v7309_v6 = vld [vmem:[#allocation2 + $0x2c0] sm:$0xff] }
 0x3d2   : > { %v5575_v36 = vpop.f32.mrb[200].mxu1  ;;  %9881 = vrot.lane.b32.xlu1 %v8843_v50, %s12722_s3 }
 0x3d3   : > { %v7058_v46 = vadd.f32 %v5575_v36, %v1041_v62  ;;  %v11691_v59 = vpop.f32.mrb[201].mxu1  ;;  %v9620_v40 = vpop.permute.xlu0 %9619 }
 0x3d4   : > { %v5578_v16 = vpop.f32.mrb[202].mxu1  ;;  %v12211_v13 = vld [vmem:[#allocation2 + $0x2e8] ss:$16 sps:$4 sm:$0xff]   ;;  %v9996_v0 = vsel %vm1072_vm1, %v9980_v44, %v9620_v40 }
 0x3d5   : > { %7187 = vst.msk [vmem:[#allocation2 + $0x308] sm:$0xff] %vm559_vm2, %v7058_v46  ;;  %v11692_v42 = vpop.f32.mrb[203].mxu1  ;;  %v7316_v29 = vld [vmem:[#allocation2 + $0x2f8] sm:$0xff]  ;;  %v8901_v20 = vrot.slane %v12211_v13, %v14060_v28  ;;  %v7310_v16 = vld [vmem:[#allocation2 + $0x2c8] sm:$0xff]  ;;  %v15196_v13 = vrot.slane %v8909_v24, %v14076_v51 }
 0x3d6   : > { %9945 = vrot.lane.b32.xlu1 %v8844_v25, %s12724_s15  ;;  %v5897_v37 = vpop.f32.mrb[200].mxu0  ;;  %v8894_v36 = vcombine.high %v7314_v55, %v7316_v29  ;;  %v8910_v42 = vcombine.high %v8853_v18, %v8869_v2  ;;  %v8846_v29 = vcombine.high %v7309_v6, %v7311_v60 }
 0x3d7   : > { %v7065_v5 = vadd.f32 %v5897_v37, %v1048_v34  ;;  %v11733_v62 = vpop.f32.mrb[201].mxu0  ;;  %v9684_v50 = vpop.permute.xlu0 %9683  ;;  %v8941_v44 = vcombine.low %v8885_v30, %v8901_v20  ;;  %v8942_v22 = vcombine.high %v8885_v30, %v8901_v20  ;;  %v8862_v37 = vcombine.high %v7310_v16, %v7312_v8 }
 0x3d8   : > { %v5900_v46 = vpop.f32.mrb[202].mxu0  ;;  %v10013_v59 = vsel %vm10005_vm3, %v9996_v0, %v9684_v50  ;;  %v8908_v52 = vrot.slane %v8894_v36, %v14060_v28  ;;  %v8924_v8 = vrot.slane %v8910_v42, %v14076_v51 }
 0x3d9   : > { %7194 = vst.msk [vmem:[#allocation2 + $0x340] sm:$0xff] %vm559_vm2, %v7065_v5  ;;  %v11734_v40 = vpop.f32.mrb[203].mxu0  ;;  %v15199_v34 = vrot.slane %v8941_v44, %v14076_v51  ;;  %v8956_v47 = vrot.slane %v8942_v22, %v14076_v51  ;;  %v1050_v5 = vld [vmem:[#allocation2 + $0x350] sm:$0xff]  ;;  %v8876_v50 = vrot.slane %v8862_v37, %v14060_v28  ;;  %v1045_v22 = vld [vmem:[#allocation2 + $0x328] sm:$0xff]  ;;  %v8860_v46 = vrot.slane %v8846_v29, %v14060_v28 }
 0x3da   : > { %v5667_v25 = vpop.f32.mrb[204].mxu1 }
 0x3db   : > { %15920 = vst [vmem:[#allocation47_spill] sm:$0xff] %v15199_v34  ;;  %v7060_v62 = vadd.f32 %v5667_v25, %v1043_v43  ;;  %v11703_v30 = vpop.f32.mrb[205].mxu1  ;;  %v9748_v55 = vpop.permute.xlu0 %9747  ;;  %v8974_v0 = vcombine.high %v15196_v13, %v15199_v34  ;;  %v8892_v43 = vrot.slane %v8878_v53, %v14060_v28  ;;  %v8975_v36 = vcombine.low %v8924_v8, %v8956_v47 }
 0x3dc   : > { %v5670_v20 = vpop.f32.mrb[206].mxu1  ;;  %v15209_v18 = vsel %vm10022_vm4, %v10013_v59, %v9748_v55  ;;  %v8925_v42 = vcombine.low %v8860_v46, %v8876_v50  ;;  %v8976_v53 = vcombine.high %v8924_v8, %v8956_v47  ;;  %v1052_v55 = vld [vmem:[#allocation2 + $0x360] sm:$0xff] }
 0x3dd   : > { %7189 = vst.msk [vmem:[#allocation2 + $0x318] sm:$0xff] %vm559_vm2, %v7060_v62  ;;  %v11704_v2 = vpop.f32.mrb[207].mxu1  ;;  %9563 = vrot.lane.b32.xlu0 %v8974_v0, %s12719_s29  ;;  %v8957_v16 = vcombine.low %v8892_v43, %v8908_v52 }
 0x3de   : > { %v5989_v6 = vpop.f32.mrb[204].mxu0  ;;  %v8933_v29 = vrot.slane %v8925_v42, %v14076_v51 }
 0x3df   : > { %v7067_v60 = vadd.f32 %v5989_v6, %v1050_v5  ;;  %v11745_v44 = vpop.f32.mrb[205].mxu0  ;;  %v8965_v20 = vrot.slane %v8957_v16, %v14076_v51  ;;  %v8926_v16 = vcombine.high %v8860_v46, %v8876_v50  ;;  %v1049_v50 = vld [vmem:[#allocation2 + $0x348] sm:$0xff] }
 0x3e0   : > { %v5992_v40 = vpop.f32.mrb[206].mxu0 }
 0x3e1   : > { %7196 = vst.msk [vmem:[#allocation2 + $0x350] sm:$0xff] %vm559_vm2, %v7067_v60  ;;  %v11746_v59 = vpop.f32.mrb[207].mxu0  ;;  %9627 = vrot.lane.b32.xlu0 %v8975_v36, %s12721_s18  ;;  %v1047_v60 = vld [vmem:[#allocation2 + $0x338] sm:$0xff]  ;;  %v8977_v44 = vcombine.low %v8933_v29, %v8965_v20  ;;  %v8958_v36 = vcombine.high %v8892_v43, %v8908_v52  ;;  %v8940_v52 = vrot.slane %v8926_v16, %v14076_v51 }
 0x3e2   : > { %v5759_v25 = vpop.f32.mrb[208].mxu1 }
 0x3e3   : > { %v7062_v62 = vadd.f32 %v5759_v25, %v1045_v22  ;;  %v11715_v37 = vpop.f32.mrb[209].mxu1  ;;  %v8972_v42 = vrot.slane %v8958_v36, %v14076_v51 }
 0x3e4   : > { %v5762_v30 = vpop.f32.mrb[210].mxu1  ;;  %v1054_v37 = vld [vmem:[#allocation2 + $0x370] sm:$0xff]  ;;  %v12215_v43 = vld [vmem:[#allocation2 + $0x308] ss:$16 sps:$4 sm:$0xff]  }
 0x3e5   : > { %7191 = vst.msk [vmem:[#allocation2 + $0x328] sm:$0xff] %vm559_vm2, %v7062_v62  ;;  %v11716_v0 = vpop.f32.mrb[211].mxu1  ;;  %9691 = vrot.lane.b32.xlu0 %v8976_v53, %s12718_s21  ;;  %v8978_v62 = vcombine.high %v8933_v29, %v8965_v20  ;;  %v8979_v46 = vcombine.low %v8940_v52, %v8972_v42  ;;  %v15921_v20 = vcombine.low %v15027_v12, %v15030_v21  ;;  %v1056_v12 = vld [vmem:[#allocation2 + $0x380] sm:$0xff] }
 0x3e6   : > { %v6081_v5 = vpop.f32.mrb[208].mxu0  ;;  %v9005_v36 = vrot.slane %v12215_v43, %v14060_v28  ;;  %v7323_v43 = vld [vmem:[#allocation2 + $0x330] sm:$0xff] }
 0x3e7   : > { %v7069_v2 = vadd.f32 %v6081_v5, %v1052_v55  ;;  %v11757_v6 = vpop.f32.mrb[209].mxu0 }
 0x3e8   : > { %v6084_v22 = vpop.f32.mrb[210].mxu0 }
 0x3e9   : > { %7198 = vst.msk [vmem:[#allocation2 + $0x360] sm:$0xff] %vm559_vm2, %v7069_v2  ;;  %v11758_v47 = vpop.f32.mrb[211].mxu0  ;;  %9755 = vrot.lane.b32.xlu0 %v8977_v44, %s12720_s11  ;;  %v12213_v2 = vld [vmem:[#allocation2 + $0x300] ss:$16 sps:$4 sm:$0xff]  }
 0x3ea   : > { %v5851_v8 = vpop.f32.mrb[212].mxu1  ;;  %v12217_v22 = vld [vmem:[#allocation2 + $0x320] ss:$16 sps:$4 sm:$0xff]  }
 0x3eb   : > { %v7064_v40 = vadd.f32 %v5851_v8, %v1047_v60  ;;  %v11727_v59 = vpop.f32.mrb[213].mxu1 }
 0x3ec   : > { %v5854_v25 = vpop.f32.mrb[214].mxu1  ;;  %v8980_v59 = vcombine.high %v8940_v52, %v8972_v42  ;;  %v1051_v52 = vld [vmem:[#allocation2 + $0x358] sm:$0xff] }
 0x3ed   : > { %7193 = vst.msk [vmem:[#allocation2 + $0x338] sm:$0xff] %vm559_vm2, %v7064_v40  ;;  %v11728_v30 = vpop.f32.mrb[215].mxu1  ;;  %9819 = vrot.lane.b32.xlu0 %v8978_v62, %s12723_s5  ;;  %v8989_v25 = vrot.slane %v12213_v2, %v14060_v28 }
 0x3ee   : > { %v6173_v53 = vpop.f32.mrb[212].mxu0 }
 0x3ef   : > { %v7071_v55 = vadd.f32 %v6173_v53, %v1054_v37  ;;  %v11769_v0 = vpop.f32.mrb[213].mxu0  ;;  %v9558_v5 = vpop.permute.xlu1 %9557  ;;  %v7321_v53 = vld [vmem:[#allocation2 + $0x320] sm:$0xff] }
 0x3f0   : > { %v6176_v6 = vpop.f32.mrb[214].mxu0  ;;  %v9981_v29 = vsel %vm559_vm2, %v15921_v20, %v9558_v5  ;;  %v9045_v5 = vcombine.low %v8989_v25, %v9005_v36 }
 0x3f1   : > { %7200 = vst.msk [vmem:[#allocation2 + $0x370] sm:$0xff] %vm559_vm2, %v7071_v55  ;;  %v11770_v60 = vpop.f32.mrb[215].mxu0  ;;  %9883 = vrot.lane.b32.xlu0 %v8979_v46, %s12722_s3  ;;  %v9021_v55 = vrot.slane %v12217_v22, %v14060_v28  ;;  %v7322_v46 = vld [vmem:[#allocation2 + $0x328] sm:$0xff]  ;;  %v9014_v22 = vcombine.high %v7321_v53, %v7323_v43 }
 0x3f2   : > { %v5943_v44 = vpop.f32.mrb[216].mxu1  ;;  %v7317_v60 = vld [vmem:[#allocation2 + $0x300] sm:$0xff]  ;;  %v15244_v24 = vrot.slane %v9045_v5, %v14076_v51 }
 0x3f3   : > { %v7066_v47 = vadd.f32 %v5943_v44, %v1049_v50  ;;  %v11739_v8 = vpop.f32.mrb[217].mxu1  ;;  %v9622_v40 = vpop.permute.xlu1 %9621  ;;  %v7320_v50 = vld [vmem:[#allocation2 + $0x318] sm:$0xff]  ;;  %v7319_v44 = vld [vmem:[#allocation2 + $0x310] sm:$0xff] }
 0x3f4   : > { %v5946_v16 = vpop.f32.mrb[218].mxu1  ;;  %v12219_v62 = vld [vmem:[#allocation2 + $0x328] ss:$16 sps:$4 sm:$0xff]   ;;  %v9997_v37 = vsel %vm1072_vm1, %v9981_v29, %v9622_v40  ;;  %15922 = vst [vmem:[#allocation48_spill] sm:$0xff] %v15244_v24 }
 0x3f5   : > { %7195 = vst.msk [vmem:[#allocation2 + $0x348] sm:$0xff] %vm559_vm2, %v7066_v47  ;;  %v11740_v21 = vpop.f32.mrb[219].mxu1  ;;  %v7324_v30 = vld [vmem:[#allocation2 + $0x338] sm:$0xff]  ;;  %9947 = vrot.lane.b32.xlu0 %v8980_v59, %s12724_s15  ;;  %v9037_v0 = vrot.slane %v12219_v62, %v14060_v28  ;;  %v7318_v59 = vld [vmem:[#allocation2 + $0x308] sm:$0xff] }
 0x3f6   : > { %v6265_v42 = vpop.f32.mrb[216].mxu0  ;;  %v9030_v8 = vcombine.high %v7322_v46, %v7324_v30  ;;  %v8982_v30 = vcombine.high %v7317_v60, %v7319_v44 }
 0x3f7   : > { %v7073_v2 = vadd.f32 %v6265_v42, %v1056_v12  ;;  %v11781_v6 = vpop.f32.mrb[217].mxu0  ;;  %v9686_v20 = vpop.permute.xlu1 %9685  ;;  %v9077_v29 = vcombine.low %v9021_v55, %v9037_v0  ;;  %v9078_v47 = vcombine.high %v9021_v55, %v9037_v0  ;;  %v9046_v42 = vcombine.high %v8989_v25, %v9005_v36 }
 0x3f8   : > { %v6268_v16 = vpop.f32.mrb[218].mxu0  ;;  %v10014_v40 = vsel %vm10005_vm3, %v9997_v37, %v9686_v20  ;;  %v8998_v6 = vcombine.high %v7318_v59, %v7320_v50  ;;  %v9044_v43 = vrot.slane %v9030_v8, %v14060_v28  ;;  %v9028_v20 = vrot.slane %v9014_v22, %v14060_v28  ;;  %v1053_v8 = vld [vmem:[#allocation2 + $0x368] sm:$0xff] }
 0x3f9   : > { %7202 = vst.msk [vmem:[#allocation2 + $0x380] sm:$0xff] %vm559_vm2, %v7073_v2  ;;  %v11782_v62 = vpop.f32.mrb[219].mxu0  ;;  %v15247_v12 = vrot.slane %v9077_v29, %v14076_v51  ;;  %v9092_v53 = vrot.slane %v9078_v47, %v14076_v51  ;;  %v1058_v2 = vld [vmem:[#allocation2 + $0x390] sm:$0xff]  ;;  %v8996_v59 = vrot.slane %v8982_v30, %v14060_v28 }
 0x3fa   : > { %v6035_v21 = vpop.f32.mrb[220].mxu1  ;;  %v9012_v50 = vrot.slane %v8998_v6, %v14060_v28 }
 0x3fb   : > { %15923 = vst [vmem:[#allocation49_spill] sm:$0xff] %v15247_v12  ;;  %v7068_v38 = vadd.f32 %v6035_v21, %v1051_v52  ;;  %v11751_v55 = vpop.f32.mrb[221].mxu1  ;;  %v9750_v46 = vpop.permute.xlu1 %9749  ;;  %v9110_v37 = vcombine.high %v15244_v24, %v15247_v12  ;;  %v9060_v52 = vrot.slane %v9046_v42, %v14076_v51 }
 0x3fc   : > { %v6038_v0 = vpop.f32.mrb[222].mxu1  ;;  %v10031_v25 = vsel %vm10022_vm4, %v10014_v40, %v9750_v46  ;;  %v9061_v22 = vcombine.low %v8996_v59, %v9012_v50 }
 0x3fd   : > { %7197 = vst.msk [vmem:[#allocation2 + $0x358] sm:$0xff] %vm559_vm2, %v7068_v38  ;;  %v11752_v36 = vpop.f32.mrb[223].mxu1  ;;  %9565 = vrot.lane.b32.xlu1 %v9110_v37, %s12719_s29  ;;  %v9111_v16 = vcombine.low %v9060_v52, %v9092_v53  ;;  %v9093_v38 = vcombine.low %v9028_v20, %v9044_v43  ;;  %v9112_v46 = vcombine.high %v9060_v52, %v9092_v53 }
 0x3fe   : > { %v6357_v60 = vpop.f32.mrb[220].mxu0  ;;  %v9069_v36 = vrot.slane %v9061_v22, %v14076_v51 }
 0x3ff   : > { %v7075_v44 = vadd.f32 %v6357_v60, %v1058_v2  ;;  %v11793_v29 = vpop.f32.mrb[221].mxu0  ;;  %v9814_v47 = vpop.permute.xlu1 %9813  ;;  %v9101_v37 = vrot.slane %v9093_v38, %v14076_v51  ;;  %v1060_v2 = vld [vmem:[#allocation2 + $0x3a0] sm:$0xff]  ;;  %v9062_v38 = vcombine.high %v8996_v59, %v9012_v50 }
 0x400   : > { %v6360_v62 = vpop.f32.mrb[222].mxu0  ;;  %v15263_v40 = vsel %vm10039_vm5, %v10031_v25, %v9814_v47  ;;  %v1055_v29 = vld [vmem:[#allocation2 + $0x378] sm:$0xff] }
 0x401   : > { %7204 = vst.msk [vmem:[#allocation2 + $0x390] sm:$0xff] %vm559_vm2, %v7075_v44  ;;  %v11794_v21 = vpop.f32.mrb[223].mxu0  ;;  %9629 = vrot.lane.b32.xlu1 %v9111_v16, %s12721_s18  ;;  %v9113_v47 = vcombine.low %v9069_v36, %v9101_v37  ;;  %v9094_v16 = vcombine.high %v9028_v20, %v9044_v43  ;;  %v9076_v43 = vrot.slane %v9062_v38, %v14076_v51 }
 0x402   : > { %v6127_v42 = vpop.f32.mrb[224].mxu1 }
 0x403   : > { %v7070_v6 = vadd.f32 %v6127_v42, %v1053_v8  ;;  %v11763_v55 = vpop.f32.mrb[225].mxu1  ;;  %v9108_v22 = vrot.slane %v9094_v16, %v14076_v51 }
 0x404   : > { %v6130_v0 = vpop.f32.mrb[226].mxu1  ;;  %v1062_v55 = vld [vmem:[#allocation2 + $0x3b0] sm:$0xff]  ;;  %v12223_v20 = vld [vmem:[#allocation2 + $0x34c] ss:$16 sps:$4 sm:$0xff]  }
 0x405   : > { %7199 = vst.msk [vmem:[#allocation2 + $0x368] sm:$0xff] %vm559_vm2, %v7070_v6  ;;  %v11764_v30 = vpop.f32.mrb[227].mxu1  ;;  %9693 = vrot.lane.b32.xlu1 %v9112_v46, %s12718_s21  ;;  %v9114_v6 = vcombine.high %v9069_v36, %v9101_v37  ;;  %v12230_v46 = vld [vmem:[#allocation2 + $0x348] ss:$16 sps:$4 sm:$0xff]   ;;  %v9115_v59 = vcombine.low %v9076_v43, %v9108_v22  ;;  %v12225_v36 = vld [vmem:[#allocation2 + $0x364] ss:$16 sps:$4 sm:$0xff]  }
 0x406   : > { %v6449_v25 = vpop.f32.mrb[224].mxu0  ;;  %v1057_v30 = vld [vmem:[#allocation2 + $0x388] sm:$0xff] }
 0x407   : > { %v7077_v60 = vadd.f32 %v6449_v25, %v1060_v2  ;;  %v11805_v44 = vpop.f32.mrb[225].mxu0 }
 0x408   : > { %v6452_v8 = vpop.f32.mrb[226].mxu0  ;;  %v12229_v44 = vld [vmem:[#allocation2 + $0x340] ss:$16 sps:$4 sm:$0xff]  }
 0x409   : > { %7206 = vst.msk [vmem:[#allocation2 + $0x3a0] sm:$0xff] %vm559_vm2, %v7077_v60  ;;  %v11806_v53 = vpop.f32.mrb[227].mxu0  ;;  %9757 = vrot.lane.b32.xlu1 %v9113_v47, %s12720_s11  ;;  %v12221_v60 = vld [vmem:[#allocation2 + $0x344] ss:$16 sps:$4 sm:$0xff]   ;;  %v15280_v8 = vrot.slane %v12223_v20, %v14060_v28  ;;  %v9164_v20 = vrot.slane %v12225_v36, %v14060_v28 }
 0x40a   : > { %v6219_v52 = vpop.f32.mrb[228].mxu1  ;;  %v9141_v53 = vrot.slane %v12230_v46, %v14060_v28 }
 0x40b   : > { %v7072_v62 = vadd.f32 %v6219_v52, %v1055_v29  ;;  %v11775_v21 = vpop.f32.mrb[229].mxu1  ;;  %v12231_v29 = vld [vmem:[#allocation2 + $0x360] ss:$16 sps:$4 sm:$0xff]  }
 0x40c   : > { %v6222_v42 = vpop.f32.mrb[230].mxu1 }
 0x40d   : > { %7201 = vst.msk [vmem:[#allocation2 + $0x378] sm:$0xff] %vm559_vm2, %v7072_v62  ;;  %v11776_v0 = vpop.f32.mrb[231].mxu1  ;;  %9821 = vrot.lane.b32.xlu1 %v9114_v6, %s12723_s5  ;;  %v1064_v62 = vld [vmem:[#allocation2 + $0x3c0] sm:$0xff]  ;;  %v9116_v42 = vcombine.high %v9076_v43, %v9108_v22  ;;  %v15284_v6 = vrot.slane %v12221_v60, %v14060_v28 }
 0x40e   : > { %v6541_v2 = vpop.f32.mrb[228].mxu0  ;;  %v9125_v0 = vrot.slane %v12229_v44, %v14060_v28 }
 0x40f   : > { %v7079_v25 = vadd.f32 %v6541_v2, %v1062_v55  ;;  %v11817_v50 = vpop.f32.mrb[229].mxu0  ;;  %v9198_v22 = vcombine.high %v15284_v6, %v15280_v8 }
 0x410   : > { %v6544_v37 = vpop.f32.mrb[230].mxu0  ;;  %v9157_v50 = vrot.slane %v12231_v29, %v14060_v28 }
 0x411   : > { %7208 = vst.msk [vmem:[#allocation2 + $0x3b0] sm:$0xff] %vm559_vm2, %v7079_v25  ;;  %v11818_v47 = vpop.f32.mrb[231].mxu0  ;;  %9885 = vrot.lane.b32.xlu1 %v9115_v59, %s12722_s3  ;;  %v1059_v37 = vld [vmem:[#allocation2 + $0x398] sm:$0xff] }
 0x412   : > { %v6311_v16 = vpop.f32.mrb[232].mxu1 }
 0x413   : > { %v7074_v52 = vadd.f32 %v6311_v16, %v1057_v30  ;;  %v11787_v38 = vpop.f32.mrb[233].mxu1  ;;  %v9181_v30 = vcombine.low %v9125_v0, %v9141_v53 }
 0x414   : > { %v6314_v21 = vpop.f32.mrb[234].mxu1  ;;  %v12227_v55 = vld [vmem:[#allocation2 + $0x36c] ss:$16 sps:$4 sm:$0xff]   ;;  %v12232_v2 = vld [vmem:[#allocation2 + $0x368] ss:$16 sps:$4 sm:$0xff]   ;;  %v9182_v38 = vcombine.high %v9125_v0, %v9141_v53 }
 0x415   : > { %7203 = vst.msk [vmem:[#allocation2 + $0x388] sm:$0xff] %vm559_vm2, %v7074_v52  ;;  %v11788_v25 = vpop.f32.mrb[235].mxu1  ;;  %9949 = vrot.lane.b32.xlu1 %v9116_v42, %s12724_s15  ;;  %v9180_v46 = vrot.slane %v12227_v55, %v14060_v28  ;;  %v9173_v43 = vrot.slane %v12232_v2, %v14060_v28  ;;  %v15297_v42 = vrot.slane %v9198_v22, %v14076_v51 }
 0x416   : > { %v6633_v59 = vpop.f32.mrb[232].mxu0  ;;  %v15303_v2 = vrot.slane %v9181_v30, %v14076_v51  ;;  %v9196_v30 = vrot.slane %v9182_v38, %v14076_v51 }
 0x417   : > { %v7081_v60 = vadd.f32 %v6633_v59, %v1064_v62  ;;  %v11829_v44 = vpop.f32.mrb[233].mxu0  ;;  %v9230_v47 = vcombine.high %v9164_v20, %v9180_v46  ;;  %v9213_v16 = vcombine.low %v9157_v50, %v9173_v43  ;;  %v9214_v52 = vcombine.high %v9157_v50, %v9173_v43  ;;  %v1066_v59 = vld [vmem:[#allocation2 + $0x3d0] sm:$0xff] }
 0x418   : > { %v6636_v36 = vpop.f32.mrb[234].mxu0  ;;  %15924 = vst [vmem:[#allocation50_spill] sm:$0xff] %v15303_v2 }
 0x419   : > { %7210 = vst.msk [vmem:[#allocation2 + $0x3c0] sm:$0xff] %vm559_vm2, %v7081_v60  ;;  %v11830_v29 = vpop.f32.mrb[235].mxu0  ;;  %v15300_v55 = vrot.slane %v9230_v47, %v14076_v51  ;;  %v15306_v62 = vrot.slane %v9213_v16, %v14076_v51  ;;  %v9228_v22 = vrot.slane %v9214_v52, %v14076_v51  ;;  %v1061_v36 = vld [vmem:[#allocation2 + $0x3a8] sm:$0xff] }
 0x41a   : > { %v6403_v21 = vpop.f32.mrb[236].mxu1 }
 0x41b   : > { %15925 = vst [vmem:[#allocation51_spill] sm:$0xff] %v15306_v62  ;;  %v7076_v25 = vadd.f32 %v6403_v21, %v1059_v37  ;;  %v11799_v50 = vpop.f32.mrb[237].mxu1  ;;  %v9252_v53 = vcombine.high %v15297_v42, %v15300_v55  ;;  %v9246_v0 = vcombine.high %v15303_v2, %v15306_v62  ;;  %v9247_v29 = vcombine.low %v9196_v30, %v9228_v22 }
 0x41c   : > { %v6406_v43 = vpop.f32.mrb[238].mxu1  ;;  %v9229_v21 = vcombine.low %v9164_v20, %v9180_v46 }
 0x41d   : > { %7205 = vst.msk [vmem:[#allocation2 + $0x398] sm:$0xff] %vm559_vm2, %v7076_v25  ;;  %v11800_v60 = vpop.f32.mrb[239].mxu1  ;;  %9951 = vrot.lane.b32.xlu1 %v9252_v53, %s12724_s15  ;;  %9567 = vrot.lane.b32.xlu0 %v9246_v0, %s12719_s29  ;;  %v9197_v43 = vcombine.low %v15284_v6, %v15280_v8 }
 0x41e   : > { %v6725_v44 = vpop.f32.mrb[236].mxu0  ;;  %v9248_v60 = vcombine.high %v9196_v30, %v9228_v22 }
 0x41f   : > { %v7083_v47 = vadd.f32 %v6725_v44, %v1066_v59  ;;  %v11841_v16 = vpop.f32.mrb[237].mxu0  ;;  %v9237_v59 = vrot.slane %v9229_v21, %v14076_v51  ;;  %v1068_v44 = vld [vmem:[#allocation2 + $0x3e0] sm:$0xff]  ;;  %v9205_v46 = vrot.slane %v9197_v43, %v14076_v51 }
 0x420   : > { %v6728_v52 = vpop.f32.mrb[238].mxu0 }
 0x421   : > { %7212 = vst.msk [vmem:[#allocation2 + $0x3d0] sm:$0xff] %vm559_vm2, %v7083_v47  ;;  %v11842_v25 = vpop.f32.mrb[239].mxu0  ;;  %9631 = vrot.lane.b32.xlu0 %v9247_v29, %s12721_s18  ;;  %v1063_v52 = vld [vmem:[#allocation2 + $0x3b8] sm:$0xff] }
 0x422   : > { %v6495_v50 = vpop.f32.mrb[240].mxu1  ;;  %v9249_v25 = vcombine.low %v9205_v46, %v9237_v59 }
 0x423   : > { %v7078_v38 = vadd.f32 %v6495_v50, %v1061_v36  ;;  %v11811_v53 = vpop.f32.mrb[241].mxu1  ;;  %v9250_v50 = vcombine.high %v9205_v46, %v9237_v59  ;;  %v12241_v59 = vld [vmem:[#allocation2 + $0x3a4] ss:$16 sps:$4 sm:$0xff]  }
 0x424   : > { %v6498_v0 = vpop.f32.mrb[242].mxu1  ;;  %v12236_v53 = vld [vmem:[#allocation2 + $0x388] ss:$16 sps:$4 sm:$0xff]  }
 0x425   : > { %7207 = vst.msk [vmem:[#allocation2 + $0x3a8] sm:$0xff] %vm559_vm2, %v7078_v38  ;;  %v11812_v20 = vpop.f32.mrb[243].mxu1  ;;  %9695 = vrot.lane.b32.xlu0 %v9248_v60, %s12718_s21  ;;  %v1070_v38 = vld [vmem:[#allocation2 + $0x3f0] sm:$0xff]  ;;  %v12238_v0 = vld [vmem:[#allocation2 + $0x38c] ss:$16 sps:$4 sm:$0xff]  }
 0x426   : > { %v6817_v47 = vpop.f32.mrb[240].mxu0 }
 0x427   : > { %v7085_v16 = vadd.f32 %v6817_v47, %v1068_v44  ;;  %v11853_v29 = vpop.f32.mrb[241].mxu0  ;;  %v1065_v44 = vld [vmem:[#allocation2 + $0x3c8] sm:$0xff] }
 0x428   : > { %v6820_v8 = vpop.f32.mrb[242].mxu0  ;;  %v12233_v29 = vld [vmem:[#allocation2 + $0x380] ss:$16 sps:$4 sm:$0xff]  }
 0x429   : > { %7214 = vst.msk [vmem:[#allocation2 + $0x3e0] sm:$0xff] %vm559_vm2, %v7085_v16  ;;  %v11854_v6 = vpop.f32.mrb[243].mxu0  ;;  %9759 = vrot.lane.b32.xlu0 %v9249_v25, %s12720_s11  ;;  %v9251_v16 = vcombine.low %v15297_v42, %v15300_v55  ;;  %v12239_v8 = vld [vmem:[#allocation2 + $0x3a0] ss:$16 sps:$4 sm:$0xff]   ;;  %v9261_v42 = vrot.slane %v12233_v29, %v14060_v28 }
 0x42a   : > { %v6587_v22 = vpop.f32.mrb[244].mxu1 }
 0x42b   : > { %v7080_v30 = vadd.f32 %v6587_v22, %v1063_v52  ;;  %v11823_v36 = vpop.f32.mrb[245].mxu1  ;;  %v12235_v52 = vld [vmem:[#allocation2 + $0x384] ss:$16 sps:$4 sm:$0xff]   ;;  %v9277_v22 = vrot.slane %v12236_v53, %v14060_v28 }
 0x42c   : > { %v6590_v21 = vpop.f32.mrb[246].mxu1 }
 0x42d   : > { %7209 = vst.msk [vmem:[#allocation2 + $0x3b8] sm:$0xff] %vm559_vm2, %v7080_v30  ;;  %v11824_v43 = vpop.f32.mrb[247].mxu1  ;;  %9823 = vrot.lane.b32.xlu0 %v9250_v50, %s12723_s5  ;;  %v9284_v30 = vrot.slane %v12238_v0, %v14060_v28 }
 0x42e   : > { %v6909_v60 = vpop.f32.mrb[244].mxu0  ;;  %v9268_v43 = vrot.slane %v12235_v52, %v14060_v28 }
 0x42f   : > { %v7087_v20 = vadd.f32 %v6909_v60, %v1070_v38  ;;  %v11865_v47 = vpop.f32.mrb[245].mxu0 }
 0x430   : > { %v6912_v25 = vpop.f32.mrb[246].mxu0  ;;  %v9300_v47 = vrot.slane %v12241_v59, %v14060_v28 }
 0x431   : > { %7216 = vst.msk [vmem:[#allocation2 + $0x3f0] sm:$0xff] %vm559_vm2, %v7087_v20  ;;  %v11866_v46 = vpop.f32.mrb[247].mxu0  ;;  %9887 = vrot.lane.b32.xlu0 %v9251_v16, %s12722_s3  ;;  %v9293_v20 = vrot.slane %v12239_v8, %v14060_v28  ;;  %v9317_v16 = vcombine.low %v9261_v42, %v9277_v22  ;;  %v1067_v25 = vld [vmem:[#allocation2 + $0x3d8] sm:$0xff] }
 0x432   : > { %v6679_v6 = vpop.f32.mrb[248].mxu1 }
 0x433   : > { %v7082_v36 = vadd.f32 %v6679_v6, %v1065_v44  ;;  %v11835_v21 = vpop.f32.mrb[249].mxu1  ;;  %v9333_v44 = vcombine.low %v9268_v43, %v9284_v30  ;;  %v15345_v52 = vrot.slane %v9317_v16, %v14076_v51 }
 0x434   : > { %v6682_v50 = vpop.f32.mrb[250].mxu1  ;;  %v12242_v55 = vld [vmem:[#allocation2 + $0x3a8] ss:$16 sps:$4 sm:$0xff]   ;;  %v12244_v38 = vld [vmem:[#allocation2 + $0x3ac] ss:$16 sps:$4 sm:$0xff]   ;;  %v9318_v21 = vcombine.high %v9261_v42, %v9277_v22 }
 0x435   : > { %7211 = vst.msk [vmem:[#allocation2 + $0x3c8] sm:$0xff] %vm559_vm2, %v7082_v36  ;;  %v11836_v60 = vpop.f32.mrb[251].mxu1  ;;  %v9309_v53 = vrot.slane %v12242_v55, %v14060_v28  ;;  %v9316_v0 = vrot.slane %v12244_v38, %v14060_v28  ;;  %15926 = vst [vmem:[#allocation52_spill] sm:$0xff] %v15345_v52  ;;  %v9341_v8 = vrot.slane %v9333_v44, %v14076_v51  ;;  %v15352_v55 = vpop.permute.xlu0 %9811  ;;  %v1071_v44 = vld [vmem:[#allocation2 + $0x3f8] sm:$0xff] }
 0x436   : > { %v9332_v16 = vrot.slane %v9318_v21, %v14076_v51  ;;  %v9334_v21 = vcombine.high %v9268_v43, %v9284_v30 }
 0x437   : > { %v9349_v46 = vcombine.low %v9293_v20, %v9309_v53  ;;  %v9365_v29 = vcombine.low %v9300_v47, %v9316_v0  ;;  %v9350_v6 = vcombine.high %v9293_v20, %v9309_v53 }
 0x439   : > { %v15348_v36 = vrot.slane %v9349_v46, %v14076_v51  ;;  %v9373_v59 = vrot.slane %v9365_v29, %v14076_v51  ;;  %v9364_v42 = vrot.slane %v9350_v6, %v14076_v51  ;;  %v15363_v46 = vpop.permute.xlu0 %9875 }
 0x43a   : > { %v6771_v50 = vpop.f32.mrb[252].mxu1 }
 0x43b   : > { %15927 = vst [vmem:[#allocation53_spill] sm:$0xff] %v15348_v36  ;;  %v7084_v38 = vadd.f32 %v6771_v50, %v1067_v25  ;;  %v11847_v60 = vpop.f32.mrb[253].mxu1  ;;  %v9382_v20 = vcombine.high %v15345_v52, %v15348_v36  ;;  %v9386_v22 = vcombine.high %v9341_v8, %v9373_v59  ;;  %v1069_v25 = vld [vmem:[#allocation2 + $0x3e8] sm:$0xff]  ;;  %v9385_v5 = vcombine.low %v9341_v8, %v9373_v59  ;;  %v12245_v59 = vld [vmem:[#allocation2 + $0x3c0] ss:$16 sps:$4 sm:$0xff]  }
 0x43c   : > { %v6774_v37 = vpop.f32.mrb[254].mxu1  ;;  %v9384_v60 = vcombine.high %v9332_v16, %v9364_v42 }
 0x43d   : > { %7213 = vst.msk [vmem:[#allocation2 + $0x3d8] sm:$0xff] %vm559_vm2, %v7084_v38  ;;  %v11848_v53 = vpop.f32.mrb[255].mxu1  ;;  %9569 = vrot.lane.b32.xlu1 %v9382_v20, %s12719_s29  ;;  %9825 = vrot.lane.b32.xlu0 %v9386_v22, %s12723_s5  ;;  %v9383_v37 = vcombine.low %v9332_v16, %v9364_v42  ;;  %v15368_v22 = vpop.permute.xlu0 %9939 }
 0x43e   : > { %v9366_v53 = vcombine.high %v9300_v47, %v9316_v0 }
 0x440   : > { %v9380_v36 = vrot.slane %v9366_v53, %v14076_v51 }
 0x441   : > { %9633 = vrot.lane.b32.xlu1 %v9383_v37, %s12721_s18  ;;  %v15373_v37 = vpop.permute.xlu0 %9559 }
 0x442   : > { %v6863_v29 = vpop.f32.mrb[0].mxu1 }
 0x443   : > { %v7086_v6 = vadd.f32 %v6863_v29, %v1069_v25  ;;  %v11859_v50 = vpop.f32.mrb[1].mxu1  ;;  %v9348_v25 = vrot.slane %v9334_v21, %v14076_v51 }
 0x444   : > { %v6866_v38 = vpop.f32.mrb[2].mxu1  ;;  %v12247_v43 = vld [vmem:[#allocation2 + $0x3c8] ss:$16 sps:$4 sm:$0xff]   ;;  %v12255_v50 = vld [vmem:[#allocation2 + $0x3e4] ss:$16 sps:$4 sm:$0xff]  }
 0x445   : > { %7215 = vst.msk [vmem:[#allocation2 + $0x3e8] sm:$0xff] %vm559_vm2, %v7086_v6  ;;  %v11860_v20 = vpop.f32.mrb[3].mxu1  ;;  %9697 = vrot.lane.b32.xlu1 %v9384_v60, %s12718_s21  ;;  %v9387_v16 = vcombine.low %v9348_v25, %v9380_v36  ;;  %v9388_v8 = vcombine.high %v9348_v25, %v9380_v36  ;;  %v15377_v29 = vpop.permute.xlu0 %9623  ;;  %v12249_v6 = vld [vmem:[#allocation2 + $0x3e0] ss:$16 sps:$4 sm:$0xff]   ;;  %v9397_v60 = vrot.slane %v12245_v59, %v14060_v28 }
 0x446   : > { %v15379_v38 = vpop.permute.xlu1 %9877  ;;  %v9429_v21 = vrot.slane %v12249_v6, %v14060_v28  ;;  %v9436_v25 = vrot.slane %v12255_v50, %v14060_v28 }
 0x449   : > { %9761 = vrot.lane.b32.xlu1 %v9385_v5, %s12720_s11  ;;  %v12254_v5 = vld [vmem:[#allocation2 + $0x3cc] ss:$16 sps:$4 sm:$0xff]  }
 0x44a   : > { %v6955_v52 = vpop.f32.mrb[4].mxu1  ;;  %v9420_v36 = vrot.slane %v12254_v5, %v14060_v28 }
 0x44b   : > { %v7088_v47 = vadd.f32 %v6955_v52, %v1071_v44  ;;  %v11871_v0 = vpop.f32.mrb[5].mxu1  ;;  %v9413_v52 = vrot.slane %v12247_v43, %v14060_v28  ;;  %v12253_v44 = vld [vmem:[#allocation2 + $0x3c4] ss:$16 sps:$4 sm:$0xff]  }
 0x44c   : > { %v6958_v42 = vpop.f32.mrb[6].mxu1  ;;  %v9404_v43 = vrot.slane %v12253_v44, %v14060_v28 }
 0x44d   : > { %7217 = vst.msk [vmem:[#allocation2 + $0x3f8] sm:$0xff] %vm559_vm2, %v7088_v47  ;;  %v11872_v30 = vpop.f32.mrb[7].mxu1  ;;  %9889 = vrot.lane.b32.xlu1 %v9387_v16, %s12722_s3  ;;  %v9454_v0 = vcombine.high %v9397_v60, %v9413_v52  ;;  %v9453_v42 = vcombine.low %v9397_v60, %v9413_v52 }
 0x44e   : > { %v15389_v30 = vpop.permute.xlu0 %9687  ;;  %v9470_v6 = vcombine.high %v9404_v43, %v9420_v36 }
 0x44f   : > { %v9468_v5 = vrot.slane %v9454_v0, %v14076_v51 }
 0x450   : > { %v9484_v0 = vrot.slane %v9470_v6, %v14076_v51 }
 0x451   : > { %9953 = vrot.lane.b32.xlu1 %v9388_v8, %s12724_s15  ;;  %v15392_v8 = vpop.permute.xlu1 %9941 }
 0x454   : > { %v12251_v53 = vld [vmem:[#allocation2 + $0x3e8] ss:$16 sps:$4 sm:$0xff]   ;;  %v12256_v20 = vld [vmem:[#allocation2 + $0x3ec] ss:$16 sps:$4 sm:$0xff]  }
 0x455   : > { %v9445_v47 = vrot.slane %v12251_v53, %v14060_v28  ;;  %v9452_v16 = vrot.slane %v12256_v20, %v14060_v28  ;;  %v15397_v53 = vrot.slane %v9453_v42, %v14076_v51  ;;  %v15402_v60 = vpop.permute.xlu1 %9561  ;;  %v9469_v42 = vcombine.low %v9404_v43, %v9420_v36 }
 0x457   : > { %v9486_v59 = vcombine.high %v9429_v21, %v9445_v47  ;;  %v9485_v62 = vcombine.low %v9429_v21, %v9445_v47  ;;  %v9502_v2 = vcombine.high %v9436_v25, %v9452_v16  ;;  %v9501_v21 = vcombine.low %v9436_v25, %v9452_v16  ;;  %v15407_v47 = vpop.permute.xlu0 %9751 }
 0x459   : > { %v9500_v50 = vrot.slane %v9486_v59, %v14076_v51  ;;  %v15400_v52 = vrot.slane %v9485_v62, %v14076_v51  ;;  %v9516_v44 = vrot.slane %v9502_v2, %v14076_v51  ;;  %v9509_v24 = vrot.slane %v9501_v21, %v14076_v51  ;;  %v15415_v34 = vpop.permute.xlu1 %9625 }
 0x45a   : > { %v9477_v2 = vrot.slane %v9469_v42, %v14076_v51 }
 0x45b   : > { %v9520_v20 = vcombine.high %v9468_v5, %v9500_v50  ;;  %v9518_v28 = vcombine.high %v15397_v53, %v15400_v52  ;;  %v9517_v62 = vcombine.low %v15397_v53, %v15400_v52  ;;  %v9524_v59 = vcombine.high %v9484_v0, %v9516_v44  ;;  %v15420_v25 = vpop.permute.xlu0 %9815 }
 0x45c   : > { %v9519_v12 = vcombine.low %v9468_v5, %v9500_v50  ;;  %v9521_v16 = vcombine.low %v9477_v2, %v9509_v24  ;;  %v9522_v43 = vcombine.high %v9477_v2, %v9509_v24  ;;  %v9523_v5 = vcombine.low %v9484_v0, %v9516_v44 }
 0x45d   : > { %9699 = vrot.lane.b32.xlu1 %v9520_v20, %s12718_s21  ;;  %9571 = vrot.lane.b32.xlu0 %v9518_v28, %s12719_s29  ;;  %v15423_v36 = vpop.permute.xlu1 %9689  ;;  %v15928_v24 = vcombine.low %v14106_v14, %v14109_v15 }
 0x45f   : > { %v15425_v6 = vpop.permute.xlu0 %9879  ;;  %v9973_v44 = vsel %vm559_vm2, %v15928_v24, %v14580_v27 }
 0x460   : > { %v9989_v0 = vsel %vm1072_vm1, %v9973_v44, %v14607_v56 }
 0x461   : > { %9955 = vrot.lane.b32.xlu1 %v9524_v59, %s12724_s15  ;;  %9635 = vrot.lane.b32.xlu0 %v9519_v12, %s12721_s18  ;;  %v15428_v50 = vpop.permute.xlu1 %9753  ;;  %v10006_v2 = vsel %vm10005_vm3, %v9989_v0, %v14554_v3  ;;  %s12725_s15 = smov [#allocation17]  }
 0x462   : > { %s12517_s9 = sshll.u32 %s12725_s15, 4  ;;  %s12518_s9 = int_to_ptr.vmem [resolvable:$false] %s12517_s9 }
 0x463   : > { %v15431_v12 = vpop.permute.xlu0 %9943  ;;  %s12519_s2 = scalar_lea.vmem %s12518_s9, 2048  ;;  %p12520_p7 = scmp.lt.s32.totalorder %s15681_s22, %s12518_s9 }
 0x465   : > { %9763 = vrot.lane.b32.xlu0 %v9521_v16, %s12720_s11  ;;  %v15435_v20 = vpop.permute.xlu1 %9817  ;;  %v10023_v16 = vsel %vm10022_vm4, %v10006_v2, %v14593_v39  ;;  %v9991_v39 = vsel %vm1072_vm1, %v14788_v19, %v14985_v32  ;;  %v15929_v32 = vcombine.low %v14545_v57, %v14548_v58  ;;  %v15930_v58 = vld [vmem:[#allocation43_spill] sm:$0xff]  ;;  %s15952_s11 = sld [smem:[#allocation62_spill]] }
 0x466   : > { %v10040_v14 = vsel %vm10039_vm5, %v10023_v16, %v14628_v11  ;;  %v10008_v24 = vsel %vm10005_vm3, %v9991_v39, %v15000_v41  ;;  %v15931_v16 = vld [vmem:[#allocation44_spill] sm:$0xff] }
 0x467   : > { %v15433_v51 = vpop.permute.xlu0 %9563  ;;  %v10057_v27 = vsel %vm10056_vm6, %v10040_v14, %v14613_v1  ;;  %v10025_v11 = vsel %vm10022_vm4, %v10008_v24, %v15011_v7  ;;  %v9977_v41 = vsel %vm559_vm2, %v15929_v32, %v15056_v49 }
 0x468   : > { %v10074_v3 = vsel %vm10073_vm7, %v10057_v27, %v14637_v35  ;;  %v10042_v1 = vsel %vm10039_vm5, %v10025_v11, %v15022_v10  ;;  %v9993_v7 = vsel %vm1072_vm1, %v9977_v41, %v15063_v31  ;;  %v15932_v31 = vld [vmem:[#allocation46_spill] sm:$0xff] }
 0x469   : > { %9827 = vrot.lane.b32.xlu0 %v9522_v43, %s12723_s5  ;;  %v15439_v21 = vpop.permute.xlu1 %9881  ;;  %v10059_v35 = vsel %vm10056_vm6, %v10042_v1, %v15038_v4  ;;  %v10010_v4 = vsel %vm10005_vm3, %v9993_v7, %v15075_v26  ;;  %v15933_v26 = vld [vmem:[#allocation45_spill] sm:$0xff]  ;;  %s12513_s5 = scalar_lea.vmem %s15681_s22, 1024 }
 0x46a   : > { %v10076_v19 = vsel %vm10073_vm7, %v10059_v35, %v15048_v45  ;;  %v10027_v57 = vsel %vm10022_vm4, %v10010_v4, %v15083_v33  ;;  %v10047_v33 = vsel %vm10039_vm5, %v15209_v18, %v15352_v55  ;;  %v15934_v35 = vld [vmem:[#allocation41_spill] sm:$0xff]  ;;  %p12514_p1 = scmp.ne.s32.totalorder %s15681_s22, %s12513_s5  ;;  %p12521_p12 = scmp.lt.s32.totalorder %s12519_s2, %s12513_s5 }
 0x46b   : > { %v15437_v28 = vpop.permute.xlu0 %9627  ;;  %v10044_v49 = vsel %vm10039_vm5, %v10027_v57, %v15930_v58  ;;  %v10064_v39 = vsel %vm10056_vm6, %v10047_v33, %v15363_v46  ;;  %s15688_s18 = scalar_lea.hbm %s15952_s11, %s10831_s4 }
 0x46c   : > { %v10081_v11 = vsel %vm10073_vm7, %v10064_v39, %v15368_v22  ;;  %p12515_p0 = pnand %p12514_p1, %p15954_p5  ;;  %p12522_p6 = por %p12521_p12, %p12520_p7 }
 0x46d   : > { %9891 = vrot.lane.b32.xlu0 %v9523_v5, %s12722_s3  ;;  %v15450_v59 = vpop.permute.xlu1 %9945  ;;  %s15953_s3 = smov %s15952_s11 }
 0x46e   : > { %p12516_p4 = pneg %p12515_p0 }
 0x46f   : > { %v15448_v42 = vpop.permute.xlu0 %9691 }
 0x470   : > { %p12523_p11 = pnand %p12522_p6, %p12516_p4 }
 0x471   : > { %v15456_v43 = vpop.permute.xlu1 %9565 }
 0x473   : > { %v15458_v5 = vpop.permute.xlu0 %9755 }
 0x475   : > { %v15462_v15 = vpop.permute.xlu1 %9629 }
 0x477   : > { %v15466_v56 = vpop.permute.xlu0 %9819 }
 0x479   : > { %v15477_v44 = vpop.permute.xlu1 %9693 }
 0x47b   : > { %v9884_v0 = vpop.permute.xlu0 %9883 }
 0x47d   : > { %v9758_v10 = vpop.permute.xlu1 %9757 }
 0x47f   : > { %v9948_v2 = vpop.permute.xlu0 %9947 }
 0x481   : > { %v9822_v27 = vpop.permute.xlu1 %9821 }
 0x48b   : > { %10090 = vxpose.xlu0.b32.start [1/16] (narrow) %v10074_v3, 64 }
 0x48f   : > { %10091 = vxpose.xlu0.b32.cont [2/16] (narrow) %v14742_v61, 64  ;;  %v10060_v61 = vsel %vm10056_vm6, %v14976_v17, %v15052_v48  ;;  %v10061_v17 = vsel %vm10056_vm6, %v10044_v49, %v15931_v16  ;;  %v9568_v48 = vpop.permute.xlu0 %9567  ;;  %v15944_v16 = vld [vmem:[#allocation51_spill] sm:$0xff] }
 0x490   : > { %v10077_v45 = vsel %vm10073_vm7, %v10060_v61, %v15060_v23  ;;  %v10078_v14 = vsel %vm10073_vm7, %v10061_v17, %v15932_v31  ;;  %v9886_v23 = vpop.permute.xlu1 %9885 }
 0x493   : > { %10092 = vxpose.xlu0.b32.cont [3/16] (narrow) %v10076_v19, 64  ;;  %v9632_v3 = vpop.permute.xlu0 %9631  ;;  %v15935_v19 = vld [vmem:[#allocation42_spill] sm:$0xff] }
 0x494   : > { %v9950_v1 = vpop.permute.xlu1 %9949  ;;  %v15936_v32 = vcombine.low %v15934_v35, %v15935_v19  ;;  %v15947_v35 = vld [vmem:[#allocation53_spill] sm:$0xff] }
 0x496   : > { %v9982_v41 = vsel %vm559_vm2, %v15936_v32, %v15373_v37 }
 0x497   : > { %10093 = vxpose.xlu0.b32.cont [4/16] (narrow) %v10077_v45, 64  ;;  %v9696_v24 = vpop.permute.xlu0 %9695  ;;  %v9998_v18 = vsel %vm1072_vm1, %v9982_v41, %v15377_v29 }
 0x498   : > { %v10015_v55 = vsel %vm10005_vm3, %v9998_v18, %v15389_v30  ;;  %v9952_v61 = vpop.permute.xlu1 %9951 }
 0x499   : > { %v10032_v22 = vsel %vm10022_vm4, %v10015_v55, %v15407_v47 }
 0x49a   : > { %v10049_v37 = vsel %vm10039_vm5, %v10032_v22, %v15420_v25 }
 0x49b   : > { %10094 = vxpose.xlu0.b32.cont [5/16] (narrow) %v10078_v14, 64  ;;  %v10066_v30 = vsel %vm10056_vm6, %v10049_v37, %v15425_v6 }
 0x49c   : > { %v10083_v7 = vsel %vm10073_vm7, %v10066_v30, %v15431_v12 }
 0x49f   : > { %10095 = vxpose.xlu0.b32.cont [6/16] (narrow) %v15933_v26, 64 }
 0x4a3   : > { %10096 = vxpose.xlu0.b32.cont [7/16] (narrow) %v15173_v9, 64  ;;  %v10065_v9 = vsel %vm10056_vm6, %v15263_v40, %v15379_v38  ;;  %v15937_v40 = vcombine.low %v15143_v54, %v15146_v63  ;;  %v9760_v38 = vpop.permute.xlu0 %9759  ;;  %v15938_v63 = vld [vmem:[#allocation47_spill] sm:$0xff] }
 0x4a4   : > { %v10082_v46 = vsel %vm10073_vm7, %v10065_v9, %v15392_v8 }
 0x4a5   : > { %v9983_v29 = vsel %vm559_vm2, %v15937_v40, %v15402_v60  ;;  %v15939_v60 = vcombine.low %v15196_v13, %v15938_v63 }
 0x4a6   : > { %v9999_v8 = vsel %vm1072_vm1, %v9983_v29, %v15415_v34 }
 0x4a7   : > { %10097 = vxpose.xlu0.b32.cont [8/16] (narrow) %v10081_v11, 64  ;;  %v10016_v47 = vsel %vm10005_vm3, %v9999_v8, %v15423_v36  ;;  %v9984_v34 = vsel %vm559_vm2, %v15939_v60, %v15433_v51  ;;  %v9824_v12 = vpop.permute.xlu0 %9823  ;;  %v15940_v51 = vld [vmem:[#allocation48_spill] sm:$0xff] }
 0x4a8   : > { %v10033_v25 = vsel %vm10022_vm4, %v10016_v47, %v15428_v50  ;;  %v10000_v6 = vsel %vm1072_vm1, %v9984_v34, %v15437_v28 }
 0x4a9   : > { %v10050_v54 = vsel %vm10039_vm5, %v10033_v25, %v15435_v20  ;;  %v10017_v50 = vsel %vm10005_vm3, %v10000_v6, %v15448_v42 }
 0x4aa   : > { %v10067_v36 = vsel %vm10056_vm6, %v10050_v54, %v15439_v21  ;;  %v10034_v20 = vsel %vm10022_vm4, %v10017_v50, %v15458_v5  ;;  %v15941_v21 = vld [vmem:[#allocation49_spill] sm:$0xff]  ;;  %v15943_v5 = vld [vmem:[#allocation50_spill] sm:$0xff] }
 0x4ab   : > { %10098 = vxpose.xlu0.b32.cont [9/16] (narrow) %v10082_v46, 64  ;;  %v10084_v45 = vsel %vm10073_vm7, %v10067_v36, %v15450_v59  ;;  %v10051_v13 = vsel %vm10039_vm5, %v10034_v20, %v15466_v56  ;;  %v15942_v58 = vcombine.low %v15940_v51, %v15941_v21  ;;  %v15945_v17 = vcombine.low %v15943_v5, %v15944_v16  ;;  %v9888_v33 = vpop.permute.xlu0 %9887 }
 0x4ac   : > { %v10068_v42 = vsel %vm10056_vm6, %v10051_v13, %v9884_v0 }
 0x4ad   : > { %v9985_v28 = vsel %vm559_vm2, %v15942_v58, %v15456_v43  ;;  %v9986_v31 = vsel %vm559_vm2, %v15945_v17, %v9568_v48  ;;  %v10085_v56 = vsel %vm10073_vm7, %v10068_v42, %v9948_v2 }
 0x4ae   : > { %v10001_v49 = vsel %vm1072_vm1, %v9985_v28, %v15462_v15  ;;  %v10002_v26 = vsel %vm1072_vm1, %v9986_v31, %v9632_v3  ;;  %v15946_v3 = vld [vmem:[#allocation52_spill] sm:$0xff] }
 0x4af   : > { %v9570_v4 = vpop.permute.xlu1 %9569  ;;  %10099 = vxpose.xlu0.b32.cont [10/16] (narrow) %v10083_v7, 64  ;;  %v10018_v59 = vsel %vm10005_vm3, %v10001_v49, %v15477_v44  ;;  %v10019_v15 = vsel %vm10005_vm3, %v10002_v26, %v9696_v24  ;;  %v15948_v19 = vcombine.low %v15946_v3, %v15947_v35 }
 0x4b0   : > { %v10035_v14 = vsel %vm10022_vm4, %v10018_v59, %v9758_v10  ;;  %v10036_v39 = vsel %vm10022_vm4, %v10019_v15, %v9760_v38 }
 0x4b1   : > { %v10052_v0 = vsel %vm10039_vm5, %v10035_v14, %v9822_v27  ;;  %v10053_v11 = vsel %vm10039_vm5, %v10036_v39, %v9824_v12  ;;  %v9987_v27 = vsel %vm559_vm2, %v15948_v19, %v9570_v4 }
 0x4b2   : > { %v10069_v44 = vsel %vm10056_vm6, %v10052_v0, %v9886_v23  ;;  %v10070_v2 = vsel %vm10056_vm6, %v10053_v11, %v9888_v33 }
 0x4b3   : > { %v9634_v57 = vpop.permute.xlu1 %9633  ;;  %10100 = vxpose.xlu0.b32.cont [11/16] (narrow) %v10084_v45, 64  ;;  %v10086_v48 = vsel %vm10073_vm7, %v10069_v44, %v9950_v1  ;;  %v10087_v23 = vsel %vm10073_vm7, %v10070_v2, %v9952_v61  ;;  %v9826_v1 = vpop.permute.xlu0 %9825  ;;  %v12257_v2 = vld [vmem:[#allocation14] sm:$0xff]  }
 0x4b4   : > { %v10003_v24 = vsel %vm1072_vm1, %v9987_v27, %v9634_v57  ;;  %11873 = vmatprep.subr.bf16.mxu0 %v12257_v2  ;;  %v12258_v27 = vld [vmem:[#allocation14 + $0x8] sm:$0xff]  }
 0x4b5   : > { %11874 = vmatpush3.bf16.msra.mxu0 %v12257_v2 }
 0x4b6   : > { %11875 = vmatprep.subr.bf16.mxu0 %v12258_v27 }
 0x4b7   : > { %v9698_v43 = vpop.permute.xlu1 %9697  ;;  %10101 = vxpose.xlu0.b32.cont [12/16] (narrow) %v10085_v56, 64 }
 0x4b8   : > { %v10020_v32 = vsel %vm10005_vm3, %v10003_v24, %v9698_v43 }
 0x4b9   : > { %11876 = vmatpush3.bf16.msra.mxu0 %v12258_v27 }
 0x4bb   : > { %v9762_v10 = vpop.permute.xlu1 %9761  ;;  %10102 = vxpose.xlu0.b32.cont [13/16] (narrow) %v10086_v48, 64 }
 0x4bc   : > { %v10037_v41 = vsel %vm10022_vm4, %v10020_v32, %v9762_v10 }
 0x4bd   : > { %v10054_v18 = vsel %vm10039_vm5, %v10037_v41, %v9826_v1  ;;  %v12260_v41 = vld [vmem:[#allocation14 + $0x18] sm:$0xff]   ;;  %v12262_v1 = vld [vmem:[#allocation14 + $0x28] sm:$0xff]  }
 0x4bf   : > { %v9890_v9 = vpop.permute.xlu1 %9889  ;;  %10103 = vxpose.xlu0.b32.cont [14/16] (narrow) %v10087_v23, 64  ;;  %v12259_v23 = vld [vmem:[#allocation14 + $0x10] sm:$0xff]  }
 0x4c0   : > { %v10071_v55 = vsel %vm10056_vm6, %v10054_v18, %v9890_v9  ;;  %11877 = vmatprep.subr.bf16.mxu0 %v12259_v23  ;;  %v12261_v9 = vld [vmem:[#allocation14 + $0x20] sm:$0xff]   ;;  %v12263_v18 = vld [vmem:[#allocation14 + $0x30] sm:$0xff]  }
 0x4c1   : > { %11878 = vmatpush3.bf16.msra.mxu0 %v12259_v23 }
 0x4c2   : > { %11879 = vmatprep.subr.bf16.mxu0 %v12260_v41 }
 0x4c3   : > { %v9954_v46 = vpop.permute.xlu1 %9953 }
 0x4c4   : > { %v10088_v22 = vsel %vm10073_vm7, %v10071_v55, %v9954_v46  ;;  %v12264_v55 = vld [vmem:[#allocation14 + $0x38] sm:$0xff]  }
 0x4c5   : > { %10104 = vxpose.xlu0.b32.cont [15/16] (narrow) %v10088_v22, 64  ;;  %11880 = vmatpush3.bf16.msra.mxu0 %v12260_v41 }
 0x4c6   : > { %11881 = vmatprep.subr.bf16.mxu0 %v12261_v9 }
 0x4c9   : > { %11882 = vmatpush3.bf16.msra.mxu0 %v12261_v9 }
 0x4ca   : > { %11883 = vmatprep.subr.bf16.mxu0 %v12262_v1 }
 0x4cd   : > { %11884 = vmatpush3.bf16.msra.mxu0 %v12262_v1 }
 0x4ce   : > { %11885 = vmatprep.subr.bf16.mxu0 %v12263_v18 }
 0x4cf   : > { %v9572_v37 = vpop.permute.xlu0 %9571  ;;  %v9700_v38 = vpop.permute.xlu1 %9699 }
 0x4d0   : > { %v9988_v61 = vsel %vm559_vm2, %v9517_v62, %v9572_v37 }
 0x4d1   : > { %11886 = vmatpush3.bf16.msra.mxu0 %v12263_v18 }
 0x4d2   : > { %11887 = vmatprep.subr.bf16.mxu0 %v12264_v55 }
 0x4d3   : > { %v9636_v40 = vpop.permute.xlu0 %9635  ;;  %v9956_v54 = vpop.permute.xlu1 %9955 }
 0x4d4   : > { %v10004_v30 = vsel %vm1072_vm1, %v9988_v61, %v9636_v40 }
 0x4d5   : > { %v10021_v47 = vsel %vm10005_vm3, %v10004_v30, %v9700_v38  ;;  %11888 = vmatpush3.bf16.msra.mxu0 %v12264_v55 }
 0x4d7   : > { %v9764_v29 = vpop.permute.xlu0 %9763 }
 0x4d8   : > { %v10038_v7 = vsel %vm10022_vm4, %v10021_v47, %v9764_v29 }
 0x4db   : > { %v9828_v8 = vpop.permute.xlu0 %9827 }
 0x4dc   : > { %v10055_v25 = vsel %vm10039_vm5, %v10038_v7, %v9828_v8 }
 0x4df   : > { %v9892_v4 = vpop.permute.xlu0 %9891 }
 0x4e0   : > { %v10072_v63 = vsel %vm10056_vm6, %v10055_v25, %v9892_v4 }
 0x4e1   : > { %v10089_v60 = vsel %vm10073_vm7, %v10072_v63, %v9956_v54 }
 0x4e2   : > { %10105 = vxpose.xlu0.b32.end [16/16] (narrow) %v10089_v60, 64 }
 0x526   : > { %v10106_v53 = vpop.trf.xlu0 }
 0x527   : > { %10122 = vadd.xlane.f32.xlu1 %v10106_v53 }
 0x52a   : > { %v10107_v52 = vpop.trf.xlu0 }
 0x52b   : > { %10124 = vadd.xlane.f32.xlu1 %v10107_v52 }
 0x52e   : > { %v10108_v62 = vpop.trf.xlu0 }
 0x52f   : > { %10126 = vadd.xlane.f32.xlu1 %v10108_v62 }
 0x532   : > { %v10109_v34 = vpop.trf.xlu0 }
 0x533   : > { %10128 = vadd.xlane.f32.xlu1 %v10109_v34 }
 0x536   : > { %v10110_v36 = vpop.trf.xlu0 }
 0x537   : > { %10130 = vadd.xlane.f32.xlu1 %v10110_v36 }
 0x53a   : > { %v10111_v6 = vpop.trf.xlu0 }
 0x53b   : > { %10132 = vadd.xlane.f32.xlu1 %v10111_v6 }
 0x53e   : > { %v10112_v50 = vpop.trf.xlu0 }
 0x53f   : > { %10134 = vadd.xlane.f32.xlu1 %v10112_v50 }
 0x542   : > { %v10113_v12 = vpop.trf.xlu0 }
 0x543   : > { %10136 = vadd.xlane.f32.xlu1 %v10113_v12 }
 0x5b4   : > { %v10123_v45 = vpop.xlane.xlu1 %10122 }
 0x5b5   : > { %v10139_v20 = vmul.f32 0.0078125, %v10123_v45 }
 0x5b7   : > { %v15614_v57 = vsub.f32 %v10106_v53, %v10139_v20  ;;  %v10816_v53 = vld [vmem:[#allocation11] ss:$0 sm:$0xff] }
 0x5b8   : > { %v10125_v13 = vpop.xlane.xlu1 %10124 }
 0x5b9   : > { %v10140_v51 = vmul.f32 0.0078125, %v10125_v13  ;;  %v10155_v21 = vmul.f32 %v15614_v57, %v15614_v57 }
 0x5bb   : > { %v15618_v58 = vsub.f32 %v10107_v52, %v10140_v51  ;;  %10163 = vadd.xlane.f32.xlu1 %v10155_v21 }
 0x5bc   : > { %v10127_v28 = vpop.xlane.xlu1 %10126 }
 0x5bd   : > { %v10141_v42 = vmul.f32 0.0078125, %v10127_v28  ;;  %v10156_v49 = vmul.f32 %v15618_v58, %v15618_v58 }
 0x5bf   : > { %v15622_v59 = vsub.f32 %v10108_v62, %v10141_v42  ;;  %10165 = vadd.xlane.f32.xlu1 %v10156_v49 }
 0x5c0   : > { %v10129_v5 = vpop.xlane.xlu1 %10128 }
 0x5c1   : > { %v10142_v16 = vmul.f32 0.0078125, %v10129_v5  ;;  %v10157_v17 = vmul.f32 %v15622_v59, %v15622_v59 }
 0x5c3   : > { %v15626_v31 = vsub.f32 %v10109_v34, %v10142_v16  ;;  %10167 = vadd.xlane.f32.xlu1 %v10157_v17 }
 0x5c4   : > { %v10131_v56 = vpop.xlane.xlu1 %10130 }
 0x5c5   : > { %v10143_v14 = vmul.f32 0.0078125, %v10131_v56  ;;  %v10158_v26 = vmul.f32 %v15626_v31, %v15626_v31 }
 0x5c7   : > { %v15630_v43 = vsub.f32 %v10110_v36, %v10143_v14  ;;  %10169 = vadd.xlane.f32.xlu1 %v10158_v26 }
 0x5c8   : > { %v10133_v0 = vpop.xlane.xlu1 %10132 }
 0x5c9   : > { %v10144_v15 = vmul.f32 0.0078125, %v10133_v0  ;;  %v10159_v33 = vmul.f32 %v15630_v43, %v15630_v43 }
 0x5cb   : > { %v15634_v44 = vsub.f32 %v10111_v6, %v10144_v15  ;;  %10171 = vadd.xlane.f32.xlu1 %v10159_v33 }
 0x5cc   : > { %v10135_v39 = vpop.xlane.xlu1 %10134 }
 0x5cd   : > { %v10145_v11 = vmul.f32 0.0078125, %v10135_v39  ;;  %v10160_v48 = vmul.f32 %v15634_v44, %v15634_v44 }
 0x5cf   : > { %v15638_v10 = vsub.f32 %v10112_v50, %v10145_v11  ;;  %10173 = vadd.xlane.f32.xlu1 %v10160_v48 }
 0x5d0   : > { %v10137_v3 = vpop.xlane.xlu1 %10136 }
 0x5d1   : > { %v10146_v35 = vmul.f32 0.0078125, %v10137_v3  ;;  %v10161_v19 = vmul.f32 %v15638_v10, %v15638_v10 }
 0x5d3   : > { %v15642_v24 = vsub.f32 %v10113_v12, %v10146_v35  ;;  %10175 = vadd.xlane.f32.xlu1 %v10161_v19  ;;  %v10817_v12 = vld [vmem:[#allocation12] ss:$0 sm:$0xff] }
 0x5d5   : > { %v10162_v32 = vmul.f32 %v15642_v24, %v15642_v24 }
 0x5d7   : > { %10177 = vadd.xlane.f32.xlu0 %v10162_v32 }
 0x648   : > { %v10164_v46 = vpop.xlane.xlu1 %10163 }
 0x649   : > { %v10179_v22 = vmul.f32 0.0078125, %v10164_v46  ;;  %v10818_v46 = vld [vmem:[#allocation15] ss:$0 sm:$0xff] }
 0x64b   : > { %v10187_v37 = vadd.f32 1e-05, %v10179_v22 }
 0x64c   : > { %v10166_v40 = vpop.xlane.xlu1 %10165 }
 0x64d   : > { %12265 = vrsqrt.f32 %v10187_v37  ;;  %v10180_v29 = vmul.f32 0.0078125, %v10166_v40 }
 0x64f   : > { %v10188_v61 = vadd.f32 1e-05, %v10180_v29  ;;  %v10381_v29 = vld [vmem:[%s13300_s8] sm:$0xff] }
 0x650   : > { %v10168_v38 = vpop.xlane.xlu1 %10167 }
 0x651   : > { %12267 = vrsqrt.f32 %v10188_v61  ;;  %v10181_v30 = vmul.f32 0.0078125, %v10168_v38  ;;  %v10399_v61 = vld [vmem:[%s13307_s24 + $0x10] sm:$0xff] }
 0x653   : > { %v10189_v8 = vadd.f32 1e-05, %v10181_v30  ;;  %v10384_v30 = vld [vmem:[%s13300_s8 + $0x18] sm:$0xff] }
 0x654   : > { %v10170_v47 = vpop.xlane.xlu1 %10169 }
 0x655   : > { %12269 = vrsqrt.f32 %v10189_v8  ;;  %v10182_v7 = vmul.f32 0.0078125, %v10170_v47  ;;  %v10397_v47 = vld [vmem:[%s13307_s24] sm:$0xff] }
 0x657   : > { %v12266_v25 = vpop.eup %12265  ;;  %v10190_v4 = vadd.f32 1e-05, %v10182_v7 }
 0x658   : > { %v10172_v54 = vpop.xlane.xlu1 %10171  ;;  %v10203_v63 = vmul.f32 %v12266_v25, %v15614_v57 }
 0x659   : > { %12271 = vrsqrt.f32 %v10190_v4  ;;  %v10183_v60 = vmul.f32 0.0078125, %v10172_v54  ;;  %v10382_v4 = vld [vmem:[%s13300_s8 + $0x8] sm:$0xff] }
 0x65a   : > { %v10218_v6 = vmul.f32 %v10816_v53, %v10203_v63  ;;  %v10400_v63 = vld [vmem:[%s13307_s24 + $0x18] sm:$0xff] }
 0x65b   : > { %v12268_v52 = vpop.eup %12267  ;;  %v10191_v62 = vadd.f32 1e-05, %v10183_v60 }
 0x65c   : > { %v10174_v34 = vpop.xlane.xlu1 %10173  ;;  %v10204_v36 = vmul.f32 %v12268_v52, %v15618_v58  ;;  %v10233_v28 = vadd.f32 %v10817_v12, %v10218_v6 }
 0x65d   : > { %12273 = vrsqrt.f32 %v10191_v62  ;;  %v10184_v50 = vmul.f32 0.0078125, %v10174_v34  ;;  %v10398_v62 = vld [vmem:[%s13307_s24 + $0x8] sm:$0xff] }
 0x65e   : > { %v10219_v45 = vmul.f32 %v10816_v53, %v10204_v36 }
 0x65f   : > { %v12270_v20 = vpop.eup %12269  ;;  %v10192_v13 = vadd.f32 1e-05, %v10184_v50 }
 0x660   : > { %v10205_v51 = vmul.f32 %v12270_v20, %v15622_v59  ;;  %v10176_v21 = vpop.xlane.xlu1 %10175  ;;  %v10234_v57 = vadd.f32 %v10817_v12, %v10219_v45  ;;  %v10387_v45 = vld [vmem:[%s13300_s8 + $0x30] sm:$0xff] }
 0x661   : > { %12275 = vrsqrt.f32 %v10192_v13  ;;  %v10185_v42 = vmul.f32 0.0078125, %v10176_v21  ;;  %v10403_v21 = vld [vmem:[%s13307_s24 + $0x30] sm:$0xff] }
 0x662   : > { %v10241_v49 = vpack.c.bf16 %v10234_v57, %v10233_v28  ;;  %v10220_v56 = vmul.f32 %v10816_v53, %v10205_v51  ;;  %v10385_v51 = vld [vmem:[%s13300_s8 + $0x20] sm:$0xff] }
 0x663   : > { %v12272_v5 = vpop.eup %12271  ;;  %v10193_v16 = vadd.f32 1e-05, %v10185_v42  ;;  %v10388_v42 = vld [vmem:[%s13300_s8 + $0x38] sm:$0xff] }
 0x664   : > { %v10206_v17 = vmul.f32 %v12272_v5, %v15626_v31  ;;  %v10178_v58 = vpop.xlane.xlu0 %10177  ;;  %11889 = vmatprep.mubr.bf16.mxu0 %v10241_v49  ;;  %v10235_v33 = vadd.f32 %v10817_v12, %v10220_v56  ;;  %v10401_v5 = vld [vmem:[%s13307_s24 + $0x20] sm:$0xff] }
 0x665   : > { %12277 = vrsqrt.f32 %v10193_v16  ;;  %v10186_v14 = vmul.f32 0.0078125, %v10178_v58  ;;  %v10386_v58 = vld [vmem:[%s13300_s8 + $0x28] sm:$0xff] }
 0x666   : > { %v10221_v26 = vmul.f32 %v10816_v53, %v10206_v17 }
 0x667   : > { %v12274_v0 = vpop.eup %12273  ;;  %v10194_v15 = vadd.f32 1e-05, %v10186_v14  ;;  %v10404_v14 = vld [vmem:[%s13307_s24 + $0x38] sm:$0xff] }
 0x668   : > { %v10236_v59 = vadd.f32 %v10817_v12, %v10221_v26  ;;  %v10207_v39 = vmul.f32 %v12274_v0, %v15630_v43 }
 0x669   : > { %12279 = vrsqrt.f32 %v10194_v15 }
 0x66a   : > { %v10242_v11 = vpack.c.bf16 %v10236_v59, %v10235_v33  ;;  %v10222_v3 = vmul.f32 %v10816_v53, %v10207_v39  ;;  %v10402_v33 = vld [vmem:[%s13307_s24 + $0x28] sm:$0xff]  ;;  %s15694_s24 = scalar_lea.sflag [#allocation5], %s476_s23 }
 0x66b   : > { %v12276_v48 = vpop.eup %12275 }
 0x66c   : > { %11890 = vmatmul.mubr.bf16.vlgmr.msra.gmra.mrb[248].mxu0 %v10242_v11  ;;  %v10208_v2 = vmul.f32 %v12276_v48, %v15634_v44  ;;  %v10237_v19 = vadd.f32 %v10817_v12, %v10222_v3 }
 0x66e   : > { %v10223_v31 = vmul.f32 %v10816_v53, %v10208_v2 }
 0x66f   : > { %v12278_v35 = vpop.eup %12277 }
 0x670   : > { %v10238_v27 = vadd.f32 %v10817_v12, %v10223_v31  ;;  %v10209_v32 = vmul.f32 %v12278_v35, %v15638_v10  ;;  %v10383_v10 = vld [vmem:[%s13300_s8 + $0x10] sm:$0xff] }
 0x672   : > { %v10243_v23 = vpack.c.bf16 %v10238_v27, %v10237_v19  ;;  %v10224_v9 = vmul.f32 %v10816_v53, %v10209_v32 }
 0x673   : > { %v12280_v41 = vpop.eup %12279 }
 0x674   : > { %11893 = vmatprep.mubr.bf16.mxu0 %v10243_v23  ;;  %v10210_v43 = vmul.f32 %v12280_v41, %v15642_v24  ;;  %v10239_v44 = vadd.f32 %v10817_v12, %v10224_v9 }
 0x676   : > { %v10225_v1 = vmul.f32 %v10816_v53, %v10210_v43 }
 0x678   : > { %v10240_v18 = vadd.f32 %v10817_v12, %v10225_v1 }
 0x67a   : > { %v10244_v55 = vpack.c.bf16 %v10240_v18, %v10239_v44 }
 0x67c   : > { %11894 = vmatmul.mubr.bf16.gmra.mrb[252].mxu0 %v10244_v55 }
 0x73f   : > { %v11891_v22 = vpop.f32.mrb[248].mxu0 }
 0x740   : > { %v10359_v37 = vadd.f32 %v11891_v22, %v10818_v46  ;;  %v10350_v40 = vpop.f32.mrb[249].mxu0 }
 0x741   : > { %v10351_v38 = vadd.f32 %v10818_v46, %v10350_v40  ;;  %v11892_v24 = vpop.f32.mrb[250].mxu0 }
 0x742   : > { %v10391_v8 = vmul.f32 %v10383_v10, %v10359_v37  ;;  %v10362_v7 = vadd.f32 %v11892_v24, %v10818_v46  ;;  %v10353_v25 = vpop.f32.mrb[251].mxu0 }
 0x743   : > { %v10389_v54 = vmul.f32 %v10381_v29, %v10351_v38  ;;  %v10354_v60 = vadd.f32 %v10818_v46, %v10353_v25 }
 0x744   : > { %v10407_v53 = vadd.f32 %v10399_v61, %v10391_v8  ;;  %v10392_v52 = vmul.f32 %v10384_v30, %v10362_v7 }
 0x745   : > { %v10405_v34 = vadd.f32 %v10397_v47, %v10389_v54  ;;  %v10390_v36 = vmul.f32 %v10382_v4, %v10354_v60 }
 0x746   : > { %10415 = vst [vmem:[%s15663_s28 + $0x10] sm:$0xff] %v10407_v53  ;;  %v10408_v6 = vadd.f32 %v10400_v63, %v10392_v52 }
 0x747   : > { %10413 = vst [vmem:[%s15663_s28] sm:$0xff] %v10405_v34  ;;  %v10406_v50 = vadd.f32 %v10398_v62, %v10390_v36 }
 0x748   : > { %10416 = vst [vmem:[%s15663_s28 + $0x18] sm:$0xff] %v10408_v6 }
 0x749   : > { %10414 = vst [vmem:[%s15663_s28 + $0x8] sm:$0xff] %v10406_v50 }
 0x74f   : > { %v11895_v12 = vpop.f32.mrb[252].mxu0 }
 0x750   : > { %v10375_v20 = vadd.f32 %v11895_v12, %v10818_v46  ;;  %v10366_v13 = vpop.f32.mrb[253].mxu0 }
 0x751   : > { %v10367_v28 = vadd.f32 %v10818_v46, %v10366_v13  ;;  %v11896_v57 = vpop.f32.mrb[254].mxu0 }
 0x752   : > { %v10395_v49 = vmul.f32 %v10387_v45, %v10375_v20  ;;  %v10378_v16 = vadd.f32 %v11896_v57, %v10818_v46  ;;  %v10369_v17 = vpop.f32.mrb[255].mxu0 }
 0x753   : > { %v10393_v56 = vmul.f32 %v10385_v51, %v10367_v28  ;;  %v10370_v26 = vadd.f32 %v10818_v46, %v10369_v17 }
 0x754   : > { %v10411_v0 = vadd.f32 %v10403_v21, %v10395_v49  ;;  %v10396_v15 = vmul.f32 %v10388_v42, %v10378_v16 }
 0x755   : > { %v10409_v59 = vadd.f32 %v10401_v5, %v10393_v56  ;;  %v10394_v39 = vmul.f32 %v10386_v58, %v10370_v26 }
 0x756   : > { %10419 = vst [vmem:[%s15663_s28 + $0x30] sm:$0xff] %v10411_v0  ;;  %v10412_v11 = vadd.f32 %v10404_v14, %v10396_v15 }
 0x757   : > { %10417 = vst [vmem:[%s15663_s28 + $0x20] sm:$0xff] %v10409_v59  ;;  %v10410_v48 = vadd.f32 %v10402_v33, %v10394_v39 }
 0x758   : > { %10420 = vst [vmem:[%s15663_s28 + $0x38] sm:$0xff] %v10412_v11 }
 0x759   : > { %10418 = vst [vmem:[%s15663_s28 + $0x28] sm:$0xff] %v10410_v48 }
 0x75a   : > { %12526 = shalt.err (!%p12523_p11)
}
 0x75b   : > { %s12527_s0 = scalar_lea.hbm %s15688_s18, 1024  ;;  %s12531_s28 = scalar_lea.hbm %s15953_s3, 8192 }
 0x75c   : > { %p12528_p3 = scmp.ne.s32.totalorder %s15688_s18, %s12527_s0  ;;  %p12532_p2 = scmp.lt.u32.totalorder %s15688_s18, %s15953_s3 }
 0x75d   : > { %p12533_p10 = scmp.lt.u32.totalorder %s12531_s28, %s12527_s0  ;;  %p12535_p1 = scmp.lt.u32.totalorder %s12527_s0, %s15688_s18 }
 0x75e   : > { %p12529_p13 = pnand %p12528_p3, %p15954_p5 }
 0x75f   : > { %p12534_p8 = por %p12533_p10, %p12532_p2 }
 0x760   : > { %p12530_p9 = pneg %p12529_p13 }
 0x761   : > { %p12536_p0 = por %p12535_p1, %p12534_p8 }
 0x763   : > { %p12537_p4 = pnand %p12536_p0, %p12530_p9 }
 0x765   : > { %12540 = shalt.err (!%p12537_p4)
}
 0x766   : > { %s12726_s16 = smov 128   ;;  %s12727_s25 = smov 256  }
 0x767   : > { %11921 = dma.vmem_to_hbm [thread:$0]  (%p15954_p5), %s15681_s22, 1024, %s15688_s18, %s15694_s24, %s12726_s16, %s12727_s25, %s12719_s29  }
 0x768 PF: > { %s15955_s4 = sld [smem:[#allocation26_spill]]  ;;  %p11962_p7 = scmp.ge.s32.totalorder %s12699_s20, 2 }
 0x769   : > { %p15956_p12 = scmp.ne.s32.totalorder %s15892_s1, 0 }
 0x76b   : > { %p11950_p6 = pnand %p11962_p7, %p15956_p12 }
 0x76e   : > { %s10454_s8 = sand.u32 1, %s15955_s4  }
 0x76f   : > { %s10455_s21 = scalar_lea.sflag [#allocation5], %s10454_s8 }
 0x770   : > { %12634 = dma.done.wait (!%p11950_p6), %s10455_s21, 1024  }
 0x771   : > { %12636 = vsyncadd (!%p11950_p6), %s10455_s21, 4294966272  ;;  %s32_s20 = sadd.s32 1, %s12699_s20   ;;  %s15958_s27 = sld [smem:[#allocation27_spill]] }
 0x772   : > { %p15724_p11 = scmp.ge.s32.totalorder %s32_s20, 10   ;;  %s15959_s28 = sld [smem:[#allocation28_spill]] }
 0x773   : > { %s15960_s30 = sld [smem:[#allocation29_spill]]  ;;  %s15961_s14 = sld [smem:[#allocation33_spill]] }
 0x774   : > { %s15962_s15 = sld [smem:[#allocation34_spill]]  ;;  %s15963_s16 = sld [smem:[#allocation35_spill]] }
 0x775   : > { %s15964_s1 = sld [smem:[#allocation37_spill]]  ;;  %s15965_s18 = sld [smem:[#allocation39_spill]] }
 0x776   : > { %s15966_s19 = sld [smem:[#allocation40_spill]]  ;;  %s15968_s29 = smov %s13152_s17 }
 0x777   : > { %s15969_s9 = smov %s12659_s10  ;;  %s15970_s10 = smov %s13100_s7 }
 0x778   : > { %s15971_s11 = smov %s12667_s12  ;;  %s15972_s12 = smov %s12671_s13 }
 0x779   : > { %s15973_s13 = smov %s13095_s6  ;;  %31 = sbr.rel (!%p15724_p11) target bundleno = 27 (0x1b), region = 158 }
 0x77b   : > { %s15974_s17 = smov %s15964_s1 }
 0x780   :  { %10460 = vsyncpa [#allocation4], 1 }
 0x781   :  { %10462 = vsyncpa [#allocation4 + $0x1], 1 }
 0x782   :  { %10463 = vsyncpa [#allocation7], 1 }
 0x783   :  { %10465 = vsyncpa [#allocation7 + $0x1], 1 }
 0x784   :  { %10466 = vsyncpa [#allocation10], 1 }
 0x785   :  { %10468 = vsyncpa [#allocation10 + $0x1], 1 }
 0x786   :  { %10469 = vsyncpa [#allocation13], 1 }
 0x787   :  { %10470 = vsyncpa [#allocation16], 1 }
 0x788   :  { %10471 = vsyncpa [#allocation5], 1 }
 0x789   :  { %10473 = vsyncpa [#allocation5 + $0x1], 1 }

</bundles_post_ra>
